<compile_context>
chip_gen: v6e
topology: v6e:2x2x1
jax: 0.10.0
libtpu: 0.0.40
codegen_flags: <defaults>
</compile_context>

<pallas_src>
import functools
import math

import jax
import jax.numpy as jnp
from jax import lax
from jax.experimental import pallas as pl
from jax.experimental.pallas import tpu as pltpu


# ----------------------------------------------------------------------------
# Pass 1: conv3x3 + bias for one sample, plus BN batch-statistics accumulation.
# ----------------------------------------------------------------------------
def _conv_stats_kernel(x_ref, w_ref, b_ref, m_ref, y_ref, sum_ref, ssq_ref, *,
                       Wp, rows):
    """x_ref : (1, (H+3)*Wp, Cin)  padded input, rows flattened (pad: 1 top, 2 bottom, 1 l/r)
       w_ref : (9, Cin, Cout)      3x3 taps, already (Cin, Cout) -> no transpose before the MXU
       b_ref : (1, Cout)           conv bias
       m_ref : (rows, 1)           1.0 for valid output columns, 0.0 for the 2 junk columns
       y_ref : (1, rows, Cout)     conv output, rows of width Wp (last 2 cols are junk)
       sum_ref/ssq_ref : (1, Cout) per-channel sum / sum-of-squares over valid pixels,
                                   accumulated across the batch grid (BatchNorm stats)."""
    acc = None
    for t in range(9):
        ky, kx = divmod(t, 3)
        chunk = x_ref[0, pl.ds(ky * Wp + kx, rows), :].astype(jnp.float32)
        part = lax.dot_general(
            chunk, w_ref[t].astype(jnp.float32),
            dimension_numbers=(((1,), (0,)), ((), ())),
            preferred_element_type=jnp.float32)
        acc = part if acc is None else acc + part
    acc = acc + b_ref[...].astype(jnp.float32)                 # (rows, Cout)
    y_ref[0] = acc.astype(y_ref.dtype)

    mask = m_ref[...].astype(jnp.float32)                      # (rows, 1)
    masked = acc * mask
    s = jnp.sum(masked, axis=0, keepdims=True)                 # (1, Cout)
    ss = jnp.sum(masked * acc, axis=0, keepdims=True)          # (1, Cout)

    @pl.when(pl.program_id(0) == 0)
    def _():
        sum_ref[...] = jnp.zeros_like(sum_ref)
        ssq_ref[...] = jnp.zeros_like(ssq_ref)

    sum_ref[...] += s
    ssq_ref[...] += ss


# ----------------------------------------------------------------------------
# Pass 2: BatchNorm (batch stats) folded to scale/shift + ReLU (+ fused 2x2 maxpool).
# ----------------------------------------------------------------------------
def _bn_scale_shift(sum_ref, ssq_ref, gamma_ref, beta_ref, inv_count, eps):
    mean = sum_ref[...] * inv_count                            # (1, C)
    var = ssq_ref[...] * inv_count - mean * mean               # biased variance (F.batch_norm)
    inv_std = lax.rsqrt(var + eps)                             # EUP rsqrt
    scale = gamma_ref[...] * inv_std
    shift = beta_ref[...] - mean * scale
    return scale.reshape(1, 1, 1, -1), shift.reshape(1, 1, 1, -1)


def _bn_relu_pool_kernel(y00_ref, y01_ref, y10_ref, y11_ref,
                         sum_ref, ssq_ref, gamma_ref, beta_ref, o_ref, *,
                         inv_count, eps):
    scale, shift = _bn_scale_shift(sum_ref, ssq_ref, gamma_ref, beta_ref, inv_count, eps)

    def bn_relu(ref):
        return jnp.maximum(ref[...].astype(jnp.float32) * scale + shift, 0.0)

    pooled = jnp.maximum(jnp.maximum(bn_relu(y00_ref), bn_relu(y01_ref)),
                         jnp.maximum(bn_relu(y10_ref), bn_relu(y11_ref)))
    o_ref[...] = pooled.astype(o_ref.dtype)


def _bn_relu_kernel(y_ref, sum_ref, ssq_ref, gamma_ref, beta_ref, o_ref, *,
                    inv_count, eps):
    scale, shift = _bn_scale_shift(sum_ref, ssq_ref, gamma_ref, beta_ref, inv_count, eps)
    o_ref[...] = jnp.maximum(y_ref[...].astype(jnp.float32) * scale + shift,
                             0.0).astype(o_ref.dtype)


# ----------------------------------------------------------------------------
# One ConvBlock forward (NHWC), built from the two Pallas passes.
# ----------------------------------------------------------------------------
def _conv_block(x, w_hwio, bias, gamma, beta, *, pool):
    N, H, W, Cin = x.shape
    Cout = w_hwio.shape[-1]
    Wp = W + 2
    rows = H * Wp

    # 1 extra bottom pad row keeps the flattened 3x3 tap slices in-bounds for the
    # (discarded) junk columns; it never touches valid outputs.
    xpad = jnp.pad(x, ((0, 0), (1, 2), (1, 1), (0, 0)))
    xflat = xpad.reshape(N, (H + 3) * Wp, Cin)
    wflat = w_hwio.reshape(9, Cin, Cout)
    b2 = bias.reshape(1, Cout)
    mask = jnp.tile((jnp.arange(Wp) < W), H).astype(jnp.float32).reshape(rows, 1)

    conv_kernel = functools.partial(_conv_stats_kernel, Wp=Wp, rows=rows)
    yflat, csum, cssq = pl.pallas_call(
        conv_kernel,
        grid=(N,),
        in_specs=[
            pl.BlockSpec((1, (H + 3) * Wp, Cin), lambda n: (n, 0, 0)),
            pl.BlockSpec((9, Cin, Cout), lambda n: (0, 0, 0)),
            pl.BlockSpec((1, Cout), lambda n: (0, 0)),
            pl.BlockSpec((rows, 1), lambda n: (0, 0)),
        ],
        out_specs=(
            pl.BlockSpec((1, rows, Cout), lambda n: (n, 0, 0)),
            pl.BlockSpec((1, Cout), lambda n: (0, 0)),   # resident stats accumulator
            pl.BlockSpec((1, Cout), lambda n: (0, 0)),   # resident stats accumulator
        ),
        out_shape=(
            jax.ShapeDtypeStruct((N, rows, Cout), jnp.float32),
            jax.ShapeDtypeStruct((1, Cout), jnp.float32),
            jax.ShapeDtypeStruct((1, Cout), jnp.float32),
        ),
        compiler_params=pltpu.CompilerParams(dimension_semantics=("arbitrary",)),
    )(xflat, wflat, b2, mask)

    # Drop the 2 junk columns of each flattened row: (N, H*Wp, C) -> (N, H, W, C).
    y = yflat.reshape(N, H, Wp, Cout)[:, :, :W, :]

    inv_count = 1.0 / float(N * H * W)
    g2 = gamma.reshape(1, Cout)
    bt2 = beta.reshape(1, Cout)

    if pool:
        He, We = (H // 2) * 2, (W // 2) * 2          # MaxPool2d(2) floors odd sizes
        Hh, Wh = H // 2, W // 2
        yc = y[:, :He, :We, :]
        phases = [yc[:, dy::2, dx::2, :] for dy in (0, 1) for dx in (0, 1)]
        kernel = functools.partial(_bn_relu_pool_kernel, inv_count=inv_count, eps=1e-5)
        out = pl.pallas_call(
            kernel,
            grid=(N,),
            in_specs=[pl.BlockSpec((1, Hh, Wh, Cout), lambda n: (n, 0, 0, 0))] * 4
                     + [pl.BlockSpec((1, Cout), lambda n: (0, 0))] * 4,
            out_specs=pl.BlockSpec((1, Hh, Wh, Cout), lambda n: (n, 0, 0, 0)),
            out_shape=jax.ShapeDtypeStruct((N, Hh, Wh, Cout), jnp.float32),
            compiler_params=pltpu.CompilerParams(dimension_semantics=("parallel",)),
        )(*phases, csum, cssq, g2, bt2)
    else:
        kernel = functools.partial(_bn_relu_kernel, inv_count=inv_count, eps=1e-5)
        out = pl.pallas_call(
            kernel,
            grid=(N,),
            in_specs=[pl.BlockSpec((1, H, W, Cout), lambda n: (n, 0, 0, 0))]
                     + [pl.BlockSpec((1, Cout), lambda n: (0, 0))] * 4,
            out_specs=pl.BlockSpec((1, H, W, Cout), lambda n: (n, 0, 0, 0)),
            out_shape=jax.ShapeDtypeStruct((N, H, W, Cout), jnp.float32),
            compiler_params=pltpu.CompilerParams(dimension_semantics=("parallel",)),
        )(y, csum, cssq, g2, bt2)
    return out


def convnet_forward(x_nchw, params):
    """ConvNet.forward: NCHW input -> flattened features (PyTorch NCHW flatten order)."""
    x = jnp.transpose(x_nchw, (0, 2, 3, 1)).astype(jnp.float32)   # NHWC
    for i, (w, b, g, bt) in enumerate(params):
        x = _conv_block(x, w, b, g, bt, pool=(i < 4))
    return jnp.transpose(x, (0, 3, 1, 2)).reshape(x.shape[0], -1)


# ----------------------------------------------------------------------------
# Plain-JAX reference mirroring the PyTorch module.
# ----------------------------------------------------------------------------
def _reference(x_nchw, params):
    x = x_nchw.astype(jnp.float32)
    for i, (w_hwio, b, g, bt) in enumerate(params):
        w_oihw = jnp.transpose(w_hwio, (3, 2, 0, 1))
        y = lax.conv_general_dilated(x, w_oihw, window_strides=(1, 1),
                                     padding=((1, 1), (1, 1)),
                                     dimension_numbers=("NCHW", "OIHW", "NCHW"))
        y = y + b.reshape(1, -1, 1, 1)
        mean = jnp.mean(y, axis=(0, 2, 3), keepdims=True)
        var = jnp.mean((y - mean) ** 2, axis=(0, 2, 3), keepdims=True)
        y = (y - mean) * lax.rsqrt(var + 1e-5)
        y = y * g.reshape(1, -1, 1, 1) + bt.reshape(1, -1, 1, 1)
        y = jnp.maximum(y, 0.0)
        if i < 4:
            y = lax.reduce_window(y, -jnp.inf, lax.max,
                                  window_dimensions=(1, 1, 2, 2),
                                  window_strides=(1, 1, 2, 2), padding="VALID")
        x = y
    return x.reshape(x.shape[0], -1)


if __name__ == "__main__":
    depth = 4
    N, C0, HS, WS = 2, 3, 16, 16

    key = jax.random.PRNGKey(0)
    key, kx = jax.random.split(key)
    x = jax.random.normal(kx, (N, C0, HS, WS), dtype=jnp.float32)

    params = []
    for i in range(depth):
        cin = 3 if i == 0 else 64
        cout = 64
        key, kw, kb = jax.random.split(key, 3)
        # init_layer: conv weight ~ N(0, sqrt(2 / (k*k*out_channels))); bias PyTorch default.
        w = jax.random.normal(kw, (3, 3, cin, cout), dtype=jnp.float32) * \
            math.sqrt(2.0 / float(3 * 3 * cout))
        bound = 1.0 / math.sqrt(cin * 9)
        b = jax.random.uniform(kb, (cout,), dtype=jnp.float32, minval=-bound, maxval=bound)
        gamma = jnp.ones((cout,), jnp.float32)    # init_layer: BN weight = 1
        beta = jnp.zeros((cout,), jnp.float32)    # init_layer: BN bias   = 0
        params.append((w, b, gamma, beta))

    forward = jax.jit(convnet_forward)
    feats = jax.block_until_ready(forward(x, params))

    ref = jax.block_until_ready(_reference(x, params))
    assert feats.shape == ref.shape == (N, 64), (feats.shape, ref.shape)
    max_err = float(jnp.max(jnp.abs(feats - ref)))
    assert jnp.allclose(feats, ref, atol=2e-3, rtol=2e-3), max_err

    print("KERNEL_OK")
</pallas_src>

<mosaic_0001>
module attributes {stable_mosaic.version = 11 : i64} {
  func.func @_conv_stats_kernel(%arg0: i32, %arg1: memref<1x342x3xf32, #tpu.memory_space<vmem>>, %arg2: memref<9x3x64xf32, #tpu.memory_space<vmem>>, %arg3: memref<1x64xf32, #tpu.memory_space<vmem>>, %arg4: memref<288x1xf32, #tpu.memory_space<vmem>>, %arg5: memref<1x288x64xf32, #tpu.memory_space<vmem>>, %arg6: memref<1x64xf32, #tpu.memory_space<vmem>>, %arg7: memref<1x64xf32, #tpu.memory_space<vmem>>) attributes {dimension_semantics = [#tpu.dimension_semantics<arbitrary>], iteration_bounds = array<i64: 2>, scalar_prefetch = 0 : i64, scratch_operands = 0 : i64, tpu.core_type = #tpu.core_type<tc>, window_params = [{transform_indices = @transform_0, window_bounds = array<i64: 1, 342, 3>}, {pipeline_mode = #tpu.pipeline_mode<synchronous>, transform_indices = @transform_1, window_bounds = array<i64: 9, 3, 64>}, {pipeline_mode = #tpu.pipeline_mode<synchronous>, transform_indices = @transform_2, window_bounds = array<i64: 1, 64>}, {pipeline_mode = #tpu.pipeline_mode<synchronous>, transform_indices = @transform_3, window_bounds = array<i64: 288, 1>}, {transform_indices = @transform_4, window_bounds = array<i64: 1, 288, 64>}, {pipeline_mode = #tpu.pipeline_mode<synchronous>, transform_indices = @transform_5, window_bounds = array<i64: 1, 64>}, {pipeline_mode = #tpu.pipeline_mode<synchronous>, transform_indices = @transform_6, window_bounds = array<i64: 1, 64>}]} {
    %c0 = arith.constant 0 : index
    %c0_0 = arith.constant 0 : index
    %c0_1 = arith.constant 0 : index
    %0 = vector.load %arg1[%c0, %c0_0, %c0_1] : memref<1x342x3xf32, #tpu.memory_space<vmem>>, vector<1x288x3xf32>
    %1 = vector.shape_cast %0 : vector<1x288x3xf32> to vector<288x3xf32>
    %c0_2 = arith.constant 0 : index
    %c0_3 = arith.constant 0 : index
    %c0_4 = arith.constant 0 : index
    %2 = vector.load %arg2[%c0_2, %c0_3, %c0_4] : memref<9x3x64xf32, #tpu.memory_space<vmem>>, vector<1x3x64xf32>
    %3 = vector.shape_cast %2 : vector<1x3x64xf32> to vector<3x64xf32>
    %cst = arith.constant dense<0.000000e+00> : vector<288x64xf32>
    %4 = tpu.matmul %1, %3, %cst {dimension_numbers = #tpu.dot_dimension_numbers<[1], [0], [0], [1], [0, 0, 1, 1], [], []>} : vector<288x3xf32>, vector<3x64xf32>, vector<288x64xf32> -> vector<288x64xf32>
    %c0_5 = arith.constant 0 : index
    %c1 = arith.constant 1 : index
    %c0_6 = arith.constant 0 : index
    %5 = vector.load %arg1[%c0_5, %c1, %c0_6] : memref<1x342x3xf32, #tpu.memory_space<vmem>>, vector<1x288x3xf32>
    %6 = vector.shape_cast %5 : vector<1x288x3xf32> to vector<288x3xf32>
    %c1_7 = arith.constant 1 : index
    %c0_8 = arith.constant 0 : index
    %c0_9 = arith.constant 0 : index
    %7 = vector.load %arg2[%c1_7, %c0_8, %c0_9] : memref<9x3x64xf32, #tpu.memory_space<vmem>>, vector<1x3x64xf32>
    %8 = vector.shape_cast %7 : vector<1x3x64xf32> to vector<3x64xf32>
    %cst_10 = arith.constant dense<0.000000e+00> : vector<288x64xf32>
    %9 = tpu.matmul %6, %8, %cst_10 {dimension_numbers = #tpu.dot_dimension_numbers<[1], [0], [0], [1], [0, 0, 1, 1], [], []>} : vector<288x3xf32>, vector<3x64xf32>, vector<288x64xf32> -> vector<288x64xf32>
    %10 = arith.addf %4, %9 : vector<288x64xf32>
    %c0_11 = arith.constant 0 : index
    %c2 = arith.constant 2 : index
    %c0_12 = arith.constant 0 : index
    %11 = vector.load %arg1[%c0_11, %c2, %c0_12] : memref<1x342x3xf32, #tpu.memory_space<vmem>>, vector<1x288x3xf32>
    %12 = vector.shape_cast %11 : vector<1x288x3xf32> to vector<288x3xf32>
    %c2_13 = arith.constant 2 : index
    %c0_14 = arith.constant 0 : index
    %c0_15 = arith.constant 0 : index
    %13 = vector.load %arg2[%c2_13, %c0_14, %c0_15] : memref<9x3x64xf32, #tpu.memory_space<vmem>>, vector<1x3x64xf32>
    %14 = vector.shape_cast %13 : vector<1x3x64xf32> to vector<3x64xf32>
    %cst_16 = arith.constant dense<0.000000e+00> : vector<288x64xf32>
    %15 = tpu.matmul %12, %14, %cst_16 {dimension_numbers = #tpu.dot_dimension_numbers<[1], [0], [0], [1], [0, 0, 1, 1], [], []>} : vector<288x3xf32>, vector<3x64xf32>, vector<288x64xf32> -> vector<288x64xf32>
    %16 = arith.addf %10, %15 : vector<288x64xf32>
    %c0_17 = arith.constant 0 : index
    %c18 = arith.constant 18 : index
    %c0_18 = arith.constant 0 : index
    %17 = vector.load %arg1[%c0_17, %c18, %c0_18] : memref<1x342x3xf32, #tpu.memory_space<vmem>>, vector<1x288x3xf32>
    %18 = vector.shape_cast %17 : vector<1x288x3xf32> to vector<288x3xf32>
    %c3 = arith.constant 3 : index
    %c0_19 = arith.constant 0 : index
    %c0_20 = arith.constant 0 : index
    %19 = vector.load %arg2[%c3, %c0_19, %c0_20] : memref<9x3x64xf32, #tpu.memory_space<vmem>>, vector<1x3x64xf32>
    %20 = vector.shape_cast %19 : vector<1x3x64xf32> to vector<3x64xf32>
    %cst_21 = arith.constant dense<0.000000e+00> : vector<288x64xf32>
    %21 = tpu.matmul %18, %20, %cst_21 {dimension_numbers = #tpu.dot_dimension_numbers<[1], [0], [0], [1], [0, 0, 1, 1], [], []>} : vector<288x3xf32>, vector<3x64xf32>, vector<288x64xf32> -> vector<288x64xf32>
    %22 = arith.addf %16, %21 : vector<288x64xf32>
    %c0_22 = arith.constant 0 : index
    %c19 = arith.constant 19 : index
    %c0_23 = arith.constant 0 : index
    %23 = vector.load %arg1[%c0_22, %c19, %c0_23] : memref<1x342x3xf32, #tpu.memory_space<vmem>>, vector<1x288x3xf32>
    %24 = vector.shape_cast %23 : vector<1x288x3xf32> to vector<288x3xf32>
    %c4 = arith.constant 4 : index
    %c0_24 = arith.constant 0 : index
    %c0_25 = arith.constant 0 : index
    %25 = vector.load %arg2[%c4, %c0_24, %c0_25] : memref<9x3x64xf32, #tpu.memory_space<vmem>>, vector<1x3x64xf32>
    %26 = vector.shape_cast %25 : vector<1x3x64xf32> to vector<3x64xf32>
    %cst_26 = arith.constant dense<0.000000e+00> : vector<288x64xf32>
    %27 = tpu.matmul %24, %26, %cst_26 {dimension_numbers = #tpu.dot_dimension_numbers<[1], [0], [0], [1], [0, 0, 1, 1], [], []>} : vector<288x3xf32>, vector<3x64xf32>, vector<288x64xf32> -> vector<288x64xf32>
    %28 = arith.addf %22, %27 : vector<288x64xf32>
    %c0_27 = arith.constant 0 : index
    %c20 = arith.constant 20 : index
    %c0_28 = arith.constant 0 : index
    %29 = vector.load %arg1[%c0_27, %c20, %c0_28] : memref<1x342x3xf32, #tpu.memory_space<vmem>>, vector<1x288x3xf32>
    %30 = vector.shape_cast %29 : vector<1x288x3xf32> to vector<288x3xf32>
    %c5 = arith.constant 5 : index
    %c0_29 = arith.constant 0 : index
    %c0_30 = arith.constant 0 : index
    %31 = vector.load %arg2[%c5, %c0_29, %c0_30] : memref<9x3x64xf32, #tpu.memory_space<vmem>>, vector<1x3x64xf32>
    %32 = vector.shape_cast %31 : vector<1x3x64xf32> to vector<3x64xf32>
    %cst_31 = arith.constant dense<0.000000e+00> : vector<288x64xf32>
    %33 = tpu.matmul %30, %32, %cst_31 {dimension_numbers = #tpu.dot_dimension_numbers<[1], [0], [0], [1], [0, 0, 1, 1], [], []>} : vector<288x3xf32>, vector<3x64xf32>, vector<288x64xf32> -> vector<288x64xf32>
    %34 = arith.addf %28, %33 : vector<288x64xf32>
    %c0_32 = arith.constant 0 : index
    %c36 = arith.constant 36 : index
    %c0_33 = arith.constant 0 : index
    %35 = vector.load %arg1[%c0_32, %c36, %c0_33] : memref<1x342x3xf32, #tpu.memory_space<vmem>>, vector<1x288x3xf32>
    %36 = vector.shape_cast %35 : vector<1x288x3xf32> to vector<288x3xf32>
    %c6 = arith.constant 6 : index
    %c0_34 = arith.constant 0 : index
    %c0_35 = arith.constant 0 : index
    %37 = vector.load %arg2[%c6, %c0_34, %c0_35] : memref<9x3x64xf32, #tpu.memory_space<vmem>>, vector<1x3x64xf32>
    %38 = vector.shape_cast %37 : vector<1x3x64xf32> to vector<3x64xf32>
    %cst_36 = arith.constant dense<0.000000e+00> : vector<288x64xf32>
    %39 = tpu.matmul %36, %38, %cst_36 {dimension_numbers = #tpu.dot_dimension_numbers<[1], [0], [0], [1], [0, 0, 1, 1], [], []>} : vector<288x3xf32>, vector<3x64xf32>, vector<288x64xf32> -> vector<288x64xf32>
    %40 = arith.addf %34, %39 : vector<288x64xf32>
    %c0_37 = arith.constant 0 : index
    %c37 = arith.constant 37 : index
    %c0_38 = arith.constant 0 : index
    %41 = vector.load %arg1[%c0_37, %c37, %c0_38] : memref<1x342x3xf32, #tpu.memory_space<vmem>>, vector<1x288x3xf32>
    %42 = vector.shape_cast %41 : vector<1x288x3xf32> to vector<288x3xf32>
    %c7 = arith.constant 7 : index
    %c0_39 = arith.constant 0 : index
    %c0_40 = arith.constant 0 : index
    %43 = vector.load %arg2[%c7, %c0_39, %c0_40] : memref<9x3x64xf32, #tpu.memory_space<vmem>>, vector<1x3x64xf32>
    %44 = vector.shape_cast %43 : vector<1x3x64xf32> to vector<3x64xf32>
    %cst_41 = arith.constant dense<0.000000e+00> : vector<288x64xf32>
    %45 = tpu.matmul %42, %44, %cst_41 {dimension_numbers = #tpu.dot_dimension_numbers<[1], [0], [0], [1], [0, 0, 1, 1], [], []>} : vector<288x3xf32>, vector<3x64xf32>, vector<288x64xf32> -> vector<288x64xf32>
    %46 = arith.addf %40, %45 : vector<288x64xf32>
    %c0_42 = arith.constant 0 : index
    %c38 = arith.constant 38 : index
    %c0_43 = arith.constant 0 : index
    %47 = vector.load %arg1[%c0_42, %c38, %c0_43] : memref<1x342x3xf32, #tpu.memory_space<vmem>>, vector<1x288x3xf32>
    %48 = vector.shape_cast %47 : vector<1x288x3xf32> to vector<288x3xf32>
    %c8 = arith.constant 8 : index
    %c0_44 = arith.constant 0 : index
    %c0_45 = arith.constant 0 : index
    %49 = vector.load %arg2[%c8, %c0_44, %c0_45] : memref<9x3x64xf32, #tpu.memory_space<vmem>>, vector<1x3x64xf32>
    %50 = vector.shape_cast %49 : vector<1x3x64xf32> to vector<3x64xf32>
    %cst_46 = arith.constant dense<0.000000e+00> : vector<288x64xf32>
    %51 = tpu.matmul %48, %50, %cst_46 {dimension_numbers = #tpu.dot_dimension_numbers<[1], [0], [0], [1], [0, 0, 1, 1], [], []>} : vector<288x3xf32>, vector<3x64xf32>, vector<288x64xf32> -> vector<288x64xf32>
    %52 = arith.addf %46, %51 : vector<288x64xf32>
    %c0_47 = arith.constant 0 : index
    %c0_48 = arith.constant 0 : index
    %53 = vector.load %arg3[%c0_47, %c0_48] : memref<1x64xf32, #tpu.memory_space<vmem>>, vector<1x64xf32>
    %54 = vector.broadcast %53 : vector<1x64xf32> to vector<288x64xf32>
    %55 = arith.addf %52, %54 : vector<288x64xf32>
    %c0_49 = arith.constant 0 : index
    %c0_50 = arith.constant 0 : index
    %c0_51 = arith.constant 0 : index
    %56 = vector.load %arg5[%c0_49, %c0_50, %c0_51] : memref<1x288x64xf32, #tpu.memory_space<vmem>>, vector<1x288x64xf32>
    %57 = vector.shape_cast %56 : vector<1x288x64xf32> to vector<288x64xf32>
    %58 = vector.shape_cast %55 : vector<288x64xf32> to vector<1x288x64xf32>
    tpu.vector_store %arg5[%c0_49, %c0_50, %c0_51], %58 {strides = array<i32>} : memref<1x288x64xf32, #tpu.memory_space<vmem>>, vector<1x288x64xf32>,
    %c0_52 = arith.constant 0 : index
    %c0_53 = arith.constant 0 : index
    %59 = vector.load %arg4[%c0_52, %c0_53] : memref<288x1xf32, #tpu.memory_space<vmem>>, vector<288x1xf32>
    %60 = vector.broadcast %59 : vector<288x1xf32> to vector<288x64xf32>
    %61 = arith.mulf %55, %60 : vector<288x64xf32>
    %cst_54 = arith.constant dense<0.000000e+00> : vector<64xf32>
    %62 = vector.multi_reduction <add>, %61, %cst_54 [0] : vector<288x64xf32> to vector<64xf32>
    %63 = vector.shape_cast %62 : vector<64xf32> to vector<1x64xf32>
    %64 = arith.mulf %61, %55 : vector<288x64xf32>
    %cst_55 = arith.constant dense<0.000000e+00> : vector<64xf32>
    %65 = vector.multi_reduction <add>, %64, %cst_55 [0] : vector<288x64xf32> to vector<64xf32>
    %66 = vector.shape_cast %65 : vector<64xf32> to vector<1x64xf32>
    %c0_i32 = arith.constant 0 : i32
    %67 = arith.cmpi eq, %arg0, %c0_i32 : i32
    %68 = arith.extui %67 : i1 to i32
    %c0_i32_56 = arith.constant 0 : i32
    %69 = arith.cmpi ne, %68, %c0_i32_56 : i32
    scf.if %69 {
      %cst_65 = arith.constant 0.000000e+00 : f32
      %76 = vector.broadcast %cst_65 : f32 to vector<1x64xf32>
      %c0_66 = arith.constant 0 : index
      %c0_67 = arith.constant 0 : index
      %77 = vector.load %arg6[%c0_66, %c0_67] : memref<1x64xf32, #tpu.memory_space<vmem>>, vector<1x64xf32>
      tpu.vector_store %arg6[%c0_66, %c0_67], %76 {strides = array<i32>} : memref<1x64xf32, #tpu.memory_space<vmem>>, vector<1x64xf32>,
      %cst_68 = arith.constant 0.000000e+00 : f32
      %78 = vector.broadcast %cst_68 : f32 to vector<1x64xf32>
      %c0_69 = arith.constant 0 : index
      %c0_70 = arith.constant 0 : index
      %79 = vector.load %arg7[%c0_69, %c0_70] : memref<1x64xf32, #tpu.memory_space<vmem>>, vector<1x64xf32>
      tpu.vector_store %arg7[%c0_69, %c0_70], %78 {strides = array<i32>} : memref<1x64xf32, #tpu.memory_space<vmem>>, vector<1x64xf32>,
    } else {
    }
    %c0_57 = arith.constant 0 : index
    %c0_58 = arith.constant 0 : index
    %70 = vector.load %arg6[%c0_57, %c0_58] : memref<1x64xf32, #tpu.memory_space<vmem>>, vector<1x64xf32>
    %71 = arith.addf %70, %63 : vector<1x64xf32>
    %c0_59 = arith.constant 0 : index
    %c0_60 = arith.constant 0 : index
    %72 = vector.load %arg6[%c0_59, %c0_60] : memref<1x64xf32, #tpu.memory_space<vmem>>, vector<1x64xf32>
    tpu.vector_store %arg6[%c0_59, %c0_60], %71 {strides = array<i32>} : memref<1x64xf32, #tpu.memory_space<vmem>>, vector<1x64xf32>,
    %c0_61 = arith.constant 0 : index
    %c0_62 = arith.constant 0 : index
    %73 = vector.load %arg7[%c0_61, %c0_62] : memref<1x64xf32, #tpu.memory_space<vmem>>, vector<1x64xf32>
    %74 = arith.addf %73, %66 : vector<1x64xf32>
    %c0_63 = arith.constant 0 : index
    %c0_64 = arith.constant 0 : index
    %75 = vector.load %arg7[%c0_63, %c0_64] : memref<1x64xf32, #tpu.memory_space<vmem>>, vector<1x64xf32>
    tpu.vector_store %arg7[%c0_63, %c0_64], %74 {strides = array<i32>} : memref<1x64xf32, #tpu.memory_space<vmem>>, vector<1x64xf32>,
    return
  }
  func.func @transform_0(%arg0: i32) -> (i32, i32, i32) {
    %c0_i32 = arith.constant 0 : i32
    %c0_i32_0 = arith.constant 0 : i32
    %c0_i32_1 = arith.constant 0 : i32
    return %arg0, %c0_i32, %c0_i32_0 : i32, i32, i32
  }
  func.func @transform_1(%arg0: i32) -> (i32, i32, i32) {
    %c0_i32 = arith.constant 0 : i32
    %c0_i32_0 = arith.constant 0 : i32
    %c0_i32_1 = arith.constant 0 : i32
    %c0_i32_2 = arith.constant 0 : i32
    return %c0_i32, %c0_i32_0, %c0_i32_1 : i32, i32, i32
  }
  func.func @transform_2(%arg0: i32) -> (i32, i32) {
    %c0_i32 = arith.constant 0 : i32
    %c0_i32_0 = arith.constant 0 : i32
    %c0_i32_1 = arith.constant 0 : i32
    return %c0_i32, %c0_i32_0 : i32, i32
  }
  func.func @transform_3(%arg0: i32) -> (i32, i32) {
    %c0_i32 = arith.constant 0 : i32
    %c0_i32_0 = arith.constant 0 : i32
    %c0_i32_1 = arith.constant 0 : i32
    return %c0_i32, %c0_i32_0 : i32, i32
  }
  func.func @transform_4(%arg0: i32) -> (i32, i32, i32) {
    %c0_i32 = arith.constant 0 : i32
    %c0_i32_0 = arith.constant 0 : i32
    %c0_i32_1 = arith.constant 0 : i32
    return %arg0, %c0_i32, %c0_i32_0 : i32, i32, i32
  }
  func.func @transform_5(%arg0: i32) -> (i32, i32) {
    %c0_i32 = arith.constant 0 : i32
    %c0_i32_0 = arith.constant 0 : i32
    %c0_i32_1 = arith.constant 0 : i32
    return %c0_i32, %c0_i32_0 : i32, i32
  }
  func.func @transform_6(%arg0: i32) -> (i32, i32) {
    %c0_i32 = arith.constant 0 : i32
    %c0_i32_0 = arith.constant 0 : i32
    %c0_i32_1 = arith.constant 0 : i32
    return %c0_i32, %c0_i32_0 : i32, i32
  }
}

module attributes {stable_mosaic.version = 11 : i64} {
  func.func @_bn_relu_pool_kernel(%arg0: i32, %arg1: memref<1x8x8x64xf32, #tpu.memory_space<vmem>>, %arg2: memref<1x8x8x64xf32, #tpu.memory_space<vmem>>, %arg3: memref<1x8x8x64xf32, #tpu.memory_space<vmem>>, %arg4: memref<1x8x8x64xf32, #tpu.memory_space<vmem>>, %arg5: memref<1x64xf32, #tpu.memory_space<vmem>>, %arg6: memref<1x64xf32, #tpu.memory_space<vmem>>, %arg7: memref<1x64xf32, #tpu.memory_space<vmem>>, %arg8: memref<1x64xf32, #tpu.memory_space<vmem>>, %arg9: memref<1x8x8x64xf32, #tpu.memory_space<vmem>>) attributes {dimension_semantics = [#tpu.dimension_semantics<parallel>], iteration_bounds = array<i64: 2>, scalar_prefetch = 0 : i64, scratch_operands = 0 : i64, tpu.core_type = #tpu.core_type<tc>, window_params = [{transform_indices = @transform_0, window_bounds = array<i64: 1, 8, 8, 64>}, {transform_indices = @transform_1, window_bounds = array<i64: 1, 8, 8, 64>}, {transform_indices = @transform_2, window_bounds = array<i64: 1, 8, 8, 64>}, {transform_indices = @transform_3, window_bounds = array<i64: 1, 8, 8, 64>}, {pipeline_mode = #tpu.pipeline_mode<synchronous>, transform_indices = @transform_4, window_bounds = array<i64: 1, 64>}, {pipeline_mode = #tpu.pipeline_mode<synchronous>, transform_indices = @transform_5, window_bounds = array<i64: 1, 64>}, {pipeline_mode = #tpu.pipeline_mode<synchronous>, transform_indices = @transform_6, window_bounds = array<i64: 1, 64>}, {pipeline_mode = #tpu.pipeline_mode<synchronous>, transform_indices = @transform_7, window_bounds = array<i64: 1, 64>}, {transform_indices = @transform_8, window_bounds = array<i64: 1, 8, 8, 64>}]} {
    %c0 = arith.constant 0 : index
    %c0_0 = arith.constant 0 : index
    %0 = vector.load %arg5[%c0, %c0_0] : memref<1x64xf32, #tpu.memory_space<vmem>>, vector<1x64xf32>
    %cst = arith.constant 0.001953125 : f32
    %1 = vector.broadcast %cst : f32 to vector<1x64xf32>
    %2 = arith.mulf %0, %1 : vector<1x64xf32>
    %c0_1 = arith.constant 0 : index
    %c0_2 = arith.constant 0 : index
    %3 = vector.load %arg6[%c0_1, %c0_2] : memref<1x64xf32, #tpu.memory_space<vmem>>, vector<1x64xf32>
    %cst_3 = arith.constant 0.001953125 : f32
    %4 = vector.broadcast %cst_3 : f32 to vector<1x64xf32>
    %5 = arith.mulf %3, %4 : vector<1x64xf32>
    %6 = arith.mulf %2, %2 : vector<1x64xf32>
    %7 = arith.subf %5, %6 : vector<1x64xf32>
    %cst_4 = arith.constant 9.99999974E-6 : f32
    %8 = vector.broadcast %cst_4 : f32 to vector<1x64xf32>
    %9 = arith.addf %7, %8 : vector<1x64xf32>
    %10 = math.rsqrt %9 : vector<1x64xf32>
    %c0_5 = arith.constant 0 : index
    %c0_6 = arith.constant 0 : index
    %11 = vector.load %arg7[%c0_5, %c0_6] : memref<1x64xf32, #tpu.memory_space<vmem>>, vector<1x64xf32>
    %12 = arith.mulf %11, %10 : vector<1x64xf32>
    %c0_7 = arith.constant 0 : index
    %c0_8 = arith.constant 0 : index
    %13 = vector.load %arg8[%c0_7, %c0_8] : memref<1x64xf32, #tpu.memory_space<vmem>>, vector<1x64xf32>
    %14 = arith.mulf %2, %12 : vector<1x64xf32>
    %15 = arith.subf %13, %14 : vector<1x64xf32>
    %16 = vector.shape_cast %12 : vector<1x64xf32> to vector<1x1x1x64xf32>
    %17 = vector.shape_cast %15 : vector<1x64xf32> to vector<1x1x1x64xf32>
    %c0_9 = arith.constant 0 : index
    %c0_10 = arith.constant 0 : index
    %c0_11 = arith.constant 0 : index
    %c0_12 = arith.constant 0 : index
    %18 = vector.load %arg1[%c0_9, %c0_10, %c0_11, %c0_12] : memref<1x8x8x64xf32, #tpu.memory_space<vmem>>, vector<1x8x8x64xf32>
    %19 = vector.broadcast %16 : vector<1x1x1x64xf32> to vector<1x8x8x64xf32>
    %20 = arith.mulf %18, %19 : vector<1x8x8x64xf32>
    %21 = vector.broadcast %17 : vector<1x1x1x64xf32> to vector<1x8x8x64xf32>
    %22 = arith.addf %20, %21 : vector<1x8x8x64xf32>
    %cst_13 = arith.constant 0.000000e+00 : f32
    %23 = vector.broadcast %cst_13 : f32 to vector<1x8x8x64xf32>
    %24 = arith.maximumf %22, %23 : vector<1x8x8x64xf32>
    %c0_14 = arith.constant 0 : index
    %c0_15 = arith.constant 0 : index
    %c0_16 = arith.constant 0 : index
    %c0_17 = arith.constant 0 : index
    %25 = vector.load %arg2[%c0_14, %c0_15, %c0_16, %c0_17] : memref<1x8x8x64xf32, #tpu.memory_space<vmem>>, vector<1x8x8x64xf32>
    %26 = vector.broadcast %16 : vector<1x1x1x64xf32> to vector<1x8x8x64xf32>
    %27 = arith.mulf %25, %26 : vector<1x8x8x64xf32>
    %28 = vector.broadcast %17 : vector<1x1x1x64xf32> to vector<1x8x8x64xf32>
    %29 = arith.addf %27, %28 : vector<1x8x8x64xf32>
    %cst_18 = arith.constant 0.000000e+00 : f32
    %30 = vector.broadcast %cst_18 : f32 to vector<1x8x8x64xf32>
    %31 = arith.maximumf %29, %30 : vector<1x8x8x64xf32>
    %32 = arith.maximumf %24, %31 : vector<1x8x8x64xf32>
    %c0_19 = arith.constant 0 : index
    %c0_20 = arith.constant 0 : index
    %c0_21 = arith.constant 0 : index
    %c0_22 = arith.constant 0 : index
    %33 = vector.load %arg3[%c0_19, %c0_20, %c0_21, %c0_22] : memref<1x8x8x64xf32, #tpu.memory_space<vmem>>, vector<1x8x8x64xf32>
    %34 = vector.broadcast %16 : vector<1x1x1x64xf32> to vector<1x8x8x64xf32>
    %35 = arith.mulf %33, %34 : vector<1x8x8x64xf32>
    %36 = vector.broadcast %17 : vector<1x1x1x64xf32> to vector<1x8x8x64xf32>
    %37 = arith.addf %35, %36 : vector<1x8x8x64xf32>
    %cst_23 = arith.constant 0.000000e+00 : f32
    %38 = vector.broadcast %cst_23 : f32 to vector<1x8x8x64xf32>
    %39 = arith.maximumf %37, %38 : vector<1x8x8x64xf32>
    %c0_24 = arith.constant 0 : index
    %c0_25 = arith.constant 0 : index
    %c0_26 = arith.constant 0 : index
    %c0_27 = arith.constant 0 : index
    %40 = vector.load %arg4[%c0_24, %c0_25, %c0_26, %c0_27] : memref<1x8x8x64xf32, #tpu.memory_space<vmem>>, vector<1x8x8x64xf32>
    %41 = vector.broadcast %16 : vector<1x1x1x64xf32> to vector<1x8x8x64xf32>
    %42 = arith.mulf %40, %41 : vector<1x8x8x64xf32>
    %43 = vector.broadcast %17 : vector<1x1x1x64xf32> to vector<1x8x8x64xf32>
    %44 = arith.addf %42, %43 : vector<1x8x8x64xf32>
    %cst_28 = arith.constant 0.000000e+00 : f32
    %45 = vector.broadcast %cst_28 : f32 to vector<1x8x8x64xf32>
    %46 = arith.maximumf %44, %45 : vector<1x8x8x64xf32>
    %47 = arith.maximumf %39, %46 : vector<1x8x8x64xf32>
    %48 = arith.maximumf %32, %47 : vector<1x8x8x64xf32>
    %c0_29 = arith.constant 0 : index
    %c0_30 = arith.constant 0 : index
    %c0_31 = arith.constant 0 : index
    %c0_32 = arith.constant 0 : index
    %49 = vector.load %arg9[%c0_29, %c0_30, %c0_31, %c0_32] : memref<1x8x8x64xf32, #tpu.memory_space<vmem>>, vector<1x8x8x64xf32>
    tpu.vector_store %arg9[%c0_29, %c0_30, %c0_31, %c0_32], %48 {strides = array<i32>} : memref<1x8x8x64xf32, #tpu.memory_space<vmem>>, vector<1x8x8x64xf32>,
    return
  }
  func.func @transform_0(%arg0: i32) -> (i32, i32, i32, i32) {
    %c0_i32 = arith.constant 0 : i32
    %c0_i32_0 = arith.constant 0 : i32
    %c0_i32_1 = arith.constant 0 : i32
    %c0_i32_2 = arith.constant 0 : i32
    return %arg0, %c0_i32, %c0_i32_0, %c0_i32_1 : i32, i32, i32, i32
  }
  func.func @transform_1(%arg0: i32) -> (i32, i32, i32, i32) {
    %c0_i32 = arith.constant 0 : i32
    %c0_i32_0 = arith.constant 0 : i32
    %c0_i32_1 = arith.constant 0 : i32
    %c0_i32_2 = arith.constant 0 : i32
    return %arg0, %c0_i32, %c0_i32_0, %c0_i32_1 : i32, i32, i32, i32
  }
  func.func @transform_2(%arg0: i32) -> (i32, i32, i32, i32) {
    %c0_i32 = arith.constant 0 : i32
    %c0_i32_0 = arith.constant 0 : i32
    %c0_i32_1 = arith.constant 0 : i32
    %c0_i32_2 = arith.constant 0 : i32
    return %arg0, %c0_i32, %c0_i32_0, %c0_i32_1 : i32, i32, i32, i32
  }
  func.func @transform_3(%arg0: i32) -> (i32, i32, i32, i32) {
    %c0_i32 = arith.constant 0 : i32
    %c0_i32_0 = arith.constant 0 : i32
    %c0_i32_1 = arith.constant 0 : i32
    %c0_i32_2 = arith.constant 0 : i32
    return %arg0, %c0_i32, %c0_i32_0, %c0_i32_1 : i32, i32, i32, i32
  }
  func.func @transform_4(%arg0: i32) -> (i32, i32) {
    %c0_i32 = arith.constant 0 : i32
    %c0_i32_0 = arith.constant 0 : i32
    %c0_i32_1 = arith.constant 0 : i32
    return %c0_i32, %c0_i32_0 : i32, i32
  }
  func.func @transform_5(%arg0: i32) -> (i32, i32) {
    %c0_i32 = arith.constant 0 : i32
    %c0_i32_0 = arith.constant 0 : i32
    %c0_i32_1 = arith.constant 0 : i32
    return %c0_i32, %c0_i32_0 : i32, i32
  }
  func.func @transform_6(%arg0: i32) -> (i32, i32) {
    %c0_i32 = arith.constant 0 : i32
    %c0_i32_0 = arith.constant 0 : i32
    %c0_i32_1 = arith.constant 0 : i32
    return %c0_i32, %c0_i32_0 : i32, i32
  }
  func.func @transform_7(%arg0: i32) -> (i32, i32) {
    %c0_i32 = arith.constant 0 : i32
    %c0_i32_0 = arith.constant 0 : i32
    %c0_i32_1 = arith.constant 0 : i32
    return %c0_i32, %c0_i32_0 : i32, i32
  }
  func.func @transform_8(%arg0: i32) -> (i32, i32, i32, i32) {
    %c0_i32 = arith.constant 0 : i32
    %c0_i32_0 = arith.constant 0 : i32
    %c0_i32_1 = arith.constant 0 : i32
    %c0_i32_2 = arith.constant 0 : i32
    return %arg0, %c0_i32, %c0_i32_0, %c0_i32_1 : i32, i32, i32, i32
  }
}

module attributes {stable_mosaic.version = 11 : i64} {
  func.func @_conv_stats_kernel(%arg0: i32, %arg1: memref<1x110x64xf32, #tpu.memory_space<vmem>>, %arg2: memref<9x64x64xf32, #tpu.memory_space<vmem>>, %arg3: memref<1x64xf32, #tpu.memory_space<vmem>>, %arg4: memref<80x1xf32, #tpu.memory_space<vmem>>, %arg5: memref<1x80x64xf32, #tpu.memory_space<vmem>>, %arg6: memref<1x64xf32, #tpu.memory_space<vmem>>, %arg7: memref<1x64xf32, #tpu.memory_space<vmem>>) attributes {dimension_semantics = [#tpu.dimension_semantics<arbitrary>], iteration_bounds = array<i64: 2>, scalar_prefetch = 0 : i64, scratch_operands = 0 : i64, tpu.core_type = #tpu.core_type<tc>, window_params = [{transform_indices = @transform_0, window_bounds = array<i64: 1, 110, 64>}, {pipeline_mode = #tpu.pipeline_mode<synchronous>, transform_indices = @transform_1, window_bounds = array<i64: 9, 64, 64>}, {pipeline_mode = #tpu.pipeline_mode<synchronous>, transform_indices = @transform_2, window_bounds = array<i64: 1, 64>}, {pipeline_mode = #tpu.pipeline_mode<synchronous>, transform_indices = @transform_3, window_bounds = array<i64: 80, 1>}, {transform_indices = @transform_4, window_bounds = array<i64: 1, 80, 64>}, {pipeline_mode = #tpu.pipeline_mode<synchronous>, transform_indices = @transform_5, window_bounds = array<i64: 1, 64>}, {pipeline_mode = #tpu.pipeline_mode<synchronous>, transform_indices = @transform_6, window_bounds = array<i64: 1, 64>}]} {
    %c0 = arith.constant 0 : index
    %c0_0 = arith.constant 0 : index
    %c0_1 = arith.constant 0 : index
    %0 = vector.load %arg1[%c0, %c0_0, %c0_1] : memref<1x110x64xf32, #tpu.memory_space<vmem>>, vector<1x80x64xf32>
    %1 = vector.shape_cast %0 : vector<1x80x64xf32> to vector<80x64xf32>
    %c0_2 = arith.constant 0 : index
    %c0_3 = arith.constant 0 : index
    %c0_4 = arith.constant 0 : index
    %2 = vector.load %arg2[%c0_2, %c0_3, %c0_4] : memref<9x64x64xf32, #tpu.memory_space<vmem>>, vector<1x64x64xf32>
    %3 = vector.shape_cast %2 : vector<1x64x64xf32> to vector<64x64xf32>
    %cst = arith.constant dense<0.000000e+00> : vector<80x64xf32>
    %4 = tpu.matmul %1, %3, %cst {dimension_numbers = #tpu.dot_dimension_numbers<[1], [0], [0], [1], [0, 0, 1, 1], [], []>} : vector<80x64xf32>, vector<64x64xf32>, vector<80x64xf32> -> vector<80x64xf32>
    %c0_5 = arith.constant 0 : index
    %c1 = arith.constant 1 : index
    %c0_6 = arith.constant 0 : index
    %5 = vector.load %arg1[%c0_5, %c1, %c0_6] : memref<1x110x64xf32, #tpu.memory_space<vmem>>, vector<1x80x64xf32>
    %6 = vector.shape_cast %5 : vector<1x80x64xf32> to vector<80x64xf32>
    %c1_7 = arith.constant 1 : index
    %c0_8 = arith.constant 0 : index
    %c0_9 = arith.constant 0 : index
    %7 = vector.load %arg2[%c1_7, %c0_8, %c0_9] : memref<9x64x64xf32, #tpu.memory_space<vmem>>, vector<1x64x64xf32>
    %8 = vector.shape_cast %7 : vector<1x64x64xf32> to vector<64x64xf32>
    %cst_10 = arith.constant dense<0.000000e+00> : vector<80x64xf32>
    %9 = tpu.matmul %6, %8, %cst_10 {dimension_numbers = #tpu.dot_dimension_numbers<[1], [0], [0], [1], [0, 0, 1, 1], [], []>} : vector<80x64xf32>, vector<64x64xf32>, vector<80x64xf32> -> vector<80x64xf32>
    %10 = arith.addf %4, %9 : vector<80x64xf32>
    %c0_11 = arith.constant 0 : index
    %c2 = arith.constant 2 : index
    %c0_12 = arith.constant 0 : index
    %11 = vector.load %arg1[%c0_11, %c2, %c0_12] : memref<1x110x64xf32, #tpu.memory_space<vmem>>, vector<1x80x64xf32>
    %12 = vector.shape_cast %11 : vector<1x80x64xf32> to vector<80x64xf32>
    %c2_13 = arith.constant 2 : index
    %c0_14 = arith.constant 0 : index
    %c0_15 = arith.constant 0 : index
    %13 = vector.load %arg2[%c2_13, %c0_14, %c0_15] : memref<9x64x64xf32, #tpu.memory_space<vmem>>, vector<1x64x64xf32>
    %14 = vector.shape_cast %13 : vector<1x64x64xf32> to vector<64x64xf32>
    %cst_16 = arith.constant dense<0.000000e+00> : vector<80x64xf32>
    %15 = tpu.matmul %12, %14, %cst_16 {dimension_numbers = #tpu.dot_dimension_numbers<[1], [0], [0], [1], [0, 0, 1, 1], [], []>} : vector<80x64xf32>, vector<64x64xf32>, vector<80x64xf32> -> vector<80x64xf32>
    %16 = arith.addf %10, %15 : vector<80x64xf32>
    %c0_17 = arith.constant 0 : index
    %c10 = arith.constant 10 : index
    %c0_18 = arith.constant 0 : index
    %17 = vector.load %arg1[%c0_17, %c10, %c0_18] : memref<1x110x64xf32, #tpu.memory_space<vmem>>, vector<1x80x64xf32>
    %18 = vector.shape_cast %17 : vector<1x80x64xf32> to vector<80x64xf32>
    %c3 = arith.constant 3 : index
    %c0_19 = arith.constant 0 : index
    %c0_20 = arith.constant 0 : index
    %19 = vector.load %arg2[%c3, %c0_19, %c0_20] : memref<9x64x64xf32, #tpu.memory_space<vmem>>, vector<1x64x64xf32>
    %20 = vector.shape_cast %19 : vector<1x64x64xf32> to vector<64x64xf32>
    %cst_21 = arith.constant dense<0.000000e+00> : vector<80x64xf32>
    %21 = tpu.matmul %18, %20, %cst_21 {dimension_numbers = #tpu.dot_dimension_numbers<[1], [0], [0], [1], [0, 0, 1, 1], [], []>} : vector<80x64xf32>, vector<64x64xf32>, vector<80x64xf32> -> vector<80x64xf32>
    %22 = arith.addf %16, %21 : vector<80x64xf32>
    %c0_22 = arith.constant 0 : index
    %c11 = arith.constant 11 : index
    %c0_23 = arith.constant 0 : index
    %23 = vector.load %arg1[%c0_22, %c11, %c0_23] : memref<1x110x64xf32, #tpu.memory_space<vmem>>, vector<1x80x64xf32>
    %24 = vector.shape_cast %23 : vector<1x80x64xf32> to vector<80x64xf32>
    %c4 = arith.constant 4 : index
    %c0_24 = arith.constant 0 : index
    %c0_25 = arith.constant 0 : index
    %25 = vector.load %arg2[%c4, %c0_24, %c0_25] : memref<9x64x64xf32, #tpu.memory_space<vmem>>, vector<1x64x64xf32>
    %26 = vector.shape_cast %25 : vector<1x64x64xf32> to vector<64x64xf32>
    %cst_26 = arith.constant dense<0.000000e+00> : vector<80x64xf32>
    %27 = tpu.matmul %24, %26, %cst_26 {dimension_numbers = #tpu.dot_dimension_numbers<[1], [0], [0], [1], [0, 0, 1, 1], [], []>} : vector<80x64xf32>, vector<64x64xf32>, vector<80x64xf32> -> vector<80x64xf32>
    %28 = arith.addf %22, %27 : vector<80x64xf32>
    %c0_27 = arith.constant 0 : index
    %c12 = arith.constant 12 : index
    %c0_28 = arith.constant 0 : index
    %29 = vector.load %arg1[%c0_27, %c12, %c0_28] : memref<1x110x64xf32, #tpu.memory_space<vmem>>, vector<1x80x64xf32>
    %30 = vector.shape_cast %29 : vector<1x80x64xf32> to vector<80x64xf32>
    %c5 = arith.constant 5 : index
    %c0_29 = arith.constant 0 : index
    %c0_30 = arith.constant 0 : index
    %31 = vector.load %arg2[%c5, %c0_29, %c0_30] : memref<9x64x64xf32, #tpu.memory_space<vmem>>, vector<1x64x64xf32>
    %32 = vector.shape_cast %31 : vector<1x64x64xf32> to vector<64x64xf32>
    %cst_31 = arith.constant dense<0.000000e+00> : vector<80x64xf32>
    %33 = tpu.matmul %30, %32, %cst_31 {dimension_numbers = #tpu.dot_dimension_numbers<[1], [0], [0], [1], [0, 0, 1, 1], [], []>} : vector<80x64xf32>, vector<64x64xf32>, vector<80x64xf32> -> vector<80x64xf32>
    %34 = arith.addf %28, %33 : vector<80x64xf32>
    %c0_32 = arith.constant 0 : index
    %c20 = arith.constant 20 : index
    %c0_33 = arith.constant 0 : index
    %35 = vector.load %arg1[%c0_32, %c20, %c0_33] : memref<1x110x64xf32, #tpu.memory_space<vmem>>, vector<1x80x64xf32>
    %36 = vector.shape_cast %35 : vector<1x80x64xf32> to vector<80x64xf32>
    %c6 = arith.constant 6 : index
    %c0_34 = arith.constant 0 : index
    %c0_35 = arith.constant 0 : index
    %37 = vector.load %arg2[%c6, %c0_34, %c0_35] : memref<9x64x64xf32, #tpu.memory_space<vmem>>, vector<1x64x64xf32>
    %38 = vector.shape_cast %37 : vector<1x64x64xf32> to vector<64x64xf32>
    %cst_36 = arith.constant dense<0.000000e+00> : vector<80x64xf32>
    %39 = tpu.matmul %36, %38, %cst_36 {dimension_numbers = #tpu.dot_dimension_numbers<[1], [0], [0], [1], [0, 0, 1, 1], [], []>} : vector<80x64xf32>, vector<64x64xf32>, vector<80x64xf32> -> vector<80x64xf32>
    %40 = arith.addf %34, %39 : vector<80x64xf32>
    %c0_37 = arith.constant 0 : index
    %c21 = arith.constant 21 : index
    %c0_38 = arith.constant 0 : index
    %41 = vector.load %arg1[%c0_37, %c21, %c0_38] : memref<1x110x64xf32, #tpu.memory_space<vmem>>, vector<1x80x64xf32>
    %42 = vector.shape_cast %41 : vector<1x80x64xf32> to vector<80x64xf32>
    %c7 = arith.constant 7 : index
    %c0_39 = arith.constant 0 : index
    %c0_40 = arith.constant 0 : index
    %43 = vector.load %arg2[%c7, %c0_39, %c0_40] : memref<9x64x64xf32, #tpu.memory_space<vmem>>, vector<1x64x64xf32>
    %44 = vector.shape_cast %43 : vector<1x64x64xf32> to vector<64x64xf32>
    %cst_41 = arith.constant dense<0.000000e+00> : vector<80x64xf32>
    %45 = tpu.matmul %42, %44, %cst_41 {dimension_numbers = #tpu.dot_dimension_numbers<[1], [0], [0], [1], [0, 0, 1, 1], [], []>} : vector<80x64xf32>, vector<64x64xf32>, vector<80x64xf32> -> vector<80x64xf32>
    %46 = arith.addf %40, %45 : vector<80x64xf32>
    %c0_42 = arith.constant 0 : index
    %c22 = arith.constant 22 : index
    %c0_43 = arith.constant 0 : index
    %47 = vector.load %arg1[%c0_42, %c22, %c0_43] : memref<1x110x64xf32, #tpu.memory_space<vmem>>, vector<1x80x64xf32>
    %48 = vector.shape_cast %47 : vector<1x80x64xf32> to vector<80x64xf32>
    %c8 = arith.constant 8 : index
    %c0_44 = arith.constant 0 : index
    %c0_45 = arith.constant 0 : index
    %49 = vector.load %arg2[%c8, %c0_44, %c0_45] : memref<9x64x64xf32, #tpu.memory_space<vmem>>, vector<1x64x64xf32>
    %50 = vector.shape_cast %49 : vector<1x64x64xf32> to vector<64x64xf32>
    %cst_46 = arith.constant dense<0.000000e+00> : vector<80x64xf32>
    %51 = tpu.matmul %48, %50, %cst_46 {dimension_numbers = #tpu.dot_dimension_numbers<[1], [0], [0], [1], [0, 0, 1, 1], [], []>} : vector<80x64xf32>, vector<64x64xf32>, vector<80x64xf32> -> vector<80x64xf32>
    %52 = arith.addf %46, %51 : vector<80x64xf32>
    %c0_47 = arith.constant 0 : index
    %c0_48 = arith.constant 0 : index
    %53 = vector.load %arg3[%c0_47, %c0_48] : memref<1x64xf32, #tpu.memory_space<vmem>>, vector<1x64xf32>
    %54 = vector.broadcast %53 : vector<1x64xf32> to vector<80x64xf32>
    %55 = arith.addf %52, %54 : vector<80x64xf32>
    %c0_49 = arith.constant 0 : index
    %c0_50 = arith.constant 0 : index
    %c0_51 = arith.constant 0 : index
    %56 = vector.load %arg5[%c0_49, %c0_50, %c0_51] : memref<1x80x64xf32, #tpu.memory_space<vmem>>, vector<1x80x64xf32>
    %57 = vector.shape_cast %56 : vector<1x80x64xf32> to vector<80x64xf32>
    %58 = vector.shape_cast %55 : vector<80x64xf32> to vector<1x80x64xf32>
    tpu.vector_store %arg5[%c0_49, %c0_50, %c0_51], %58 {strides = array<i32>} : memref<1x80x64xf32, #tpu.memory_space<vmem>>, vector<1x80x64xf32>,
    %c0_52 = arith.constant 0 : index
    %c0_53 = arith.constant 0 : index
    %59 = vector.load %arg4[%c0_52, %c0_53] : memref<80x1xf32, #tpu.memory_space<vmem>>, vector<80x1xf32>
    %60 = vector.broadcast %59 : vector<80x1xf32> to vector<80x64xf32>
    %61 = arith.mulf %55, %60 : vector<80x64xf32>
    %cst_54 = arith.constant dense<0.000000e+00> : vector<64xf32>
    %62 = vector.multi_reduction <add>, %61, %cst_54 [0] : vector<80x64xf32> to vector<64xf32>
    %63 = vector.shape_cast %62 : vector<64xf32> to vector<1x64xf32>
    %64 = arith.mulf %61, %55 : vector<80x64xf32>
    %cst_55 = arith.constant dense<0.000000e+00> : vector<64xf32>
    %65 = vector.multi_reduction <add>, %64, %cst_55 [0] : vector<80x64xf32> to vector<64xf32>
    %66 = vector.shape_cast %65 : vector<64xf32> to vector<1x64xf32>
    %c0_i32 = arith.constant 0 : i32
    %67 = arith.cmpi eq, %arg0, %c0_i32 : i32
    %68 = arith.extui %67 : i1 to i32
    %c0_i32_56 = arith.constant 0 : i32
    %69 = arith.cmpi ne, %68, %c0_i32_56 : i32
    scf.if %69 {
      %cst_65 = arith.constant 0.000000e+00 : f32
      %76 = vector.broadcast %cst_65 : f32 to vector<1x64xf32>
      %c0_66 = arith.constant 0 : index
      %c0_67 = arith.constant 0 : index
      %77 = vector.load %arg6[%c0_66, %c0_67] : memref<1x64xf32, #tpu.memory_space<vmem>>, vector<1x64xf32>
      tpu.vector_store %arg6[%c0_66, %c0_67], %76 {strides = array<i32>} : memref<1x64xf32, #tpu.memory_space<vmem>>, vector<1x64xf32>,
      %cst_68 = arith.constant 0.000000e+00 : f32
      %78 = vector.broadcast %cst_68 : f32 to vector<1x64xf32>
      %c0_69 = arith.constant 0 : index
      %c0_70 = arith.constant 0 : index
      %79 = vector.load %arg7[%c0_69, %c0_70] : memref<1x64xf32, #tpu.memory_space<vmem>>, vector<1x64xf32>
      tpu.vector_store %arg7[%c0_69, %c0_70], %78 {strides = array<i32>} : memref<1x64xf32, #tpu.memory_space<vmem>>, vector<1x64xf32>,
    } else {
    }
    %c0_57 = arith.constant 0 : index
    %c0_58 = arith.constant 0 : index
    %70 = vector.load %arg6[%c0_57, %c0_58] : memref<1x64xf32, #tpu.memory_space<vmem>>, vector<1x64xf32>
    %71 = arith.addf %70, %63 : vector<1x64xf32>
    %c0_59 = arith.constant 0 : index
    %c0_60 = arith.constant 0 : index
    %72 = vector.load %arg6[%c0_59, %c0_60] : memref<1x64xf32, #tpu.memory_space<vmem>>, vector<1x64xf32>
    tpu.vector_store %arg6[%c0_59, %c0_60], %71 {strides = array<i32>} : memref<1x64xf32, #tpu.memory_space<vmem>>, vector<1x64xf32>,
    %c0_61 = arith.constant 0 : index
    %c0_62 = arith.constant 0 : index
    %73 = vector.load %arg7[%c0_61, %c0_62] : memref<1x64xf32, #tpu.memory_space<vmem>>, vector<1x64xf32>
    %74 = arith.addf %73, %66 : vector<1x64xf32>
    %c0_63 = arith.constant 0 : index
    %c0_64 = arith.constant 0 : index
    %75 = vector.load %arg7[%c0_63, %c0_64] : memref<1x64xf32, #tpu.memory_space<vmem>>, vector<1x64xf32>
    tpu.vector_store %arg7[%c0_63, %c0_64], %74 {strides = array<i32>} : memref<1x64xf32, #tpu.memory_space<vmem>>, vector<1x64xf32>,
    return
  }
  func.func @transform_0(%arg0: i32) -> (i32, i32, i32) {
    %c0_i32 = arith.constant 0 : i32
    %c0_i32_0 = arith.constant 0 : i32
    %c0_i32_1 = arith.constant 0 : i32
    return %arg0, %c0_i32, %c0_i32_0 : i32, i32, i32
  }
  func.func @transform_1(%arg0: i32) -> (i32, i32, i32) {
    %c0_i32 = arith.constant 0 : i32
    %c0_i32_0 = arith.constant 0 : i32
    %c0_i32_1 = arith.constant 0 : i32
    %c0_i32_2 = arith.constant 0 : i32
    return %c0_i32, %c0_i32_0, %c0_i32_1 : i32, i32, i32
  }
  func.func @transform_2(%arg0: i32) -> (i32, i32) {
    %c0_i32 = arith.constant 0 : i32
    %c0_i32_0 = arith.constant 0 : i32
    %c0_i32_1 = arith.constant 0 : i32
    return %c0_i32, %c0_i32_0 : i32, i32
  }
  func.func @transform_3(%arg0: i32) -> (i32, i32) {
    %c0_i32 = arith.constant 0 : i32
    %c0_i32_0 = arith.constant 0 : i32
    %c0_i32_1 = arith.constant 0 : i32
    return %c0_i32, %c0_i32_0 : i32, i32
  }
  func.func @transform_4(%arg0: i32) -> (i32, i32, i32) {
    %c0_i32 = arith.constant 0 : i32
    %c0_i32_0 = arith.constant 0 : i32
    %c0_i32_1 = arith.constant 0 : i32
    return %arg0, %c0_i32, %c0_i32_0 : i32, i32, i32
  }
  func.func @transform_5(%arg0: i32) -> (i32, i32) {
    %c0_i32 = arith.constant 0 : i32
    %c0_i32_0 = arith.constant 0 : i32
    %c0_i32_1 = arith.constant 0 : i32
    return %c0_i32, %c0_i32_0 : i32, i32
  }
  func.func @transform_6(%arg0: i32) -> (i32, i32) {
    %c0_i32 = arith.constant 0 : i32
    %c0_i32_0 = arith.constant 0 : i32
    %c0_i32_1 = arith.constant 0 : i32
    return %c0_i32, %c0_i32_0 : i32, i32
  }
}

module attributes {stable_mosaic.version = 11 : i64} {
  func.func @_bn_relu_pool_kernel(%arg0: i32, %arg1: memref<1x4x4x64xf32, #tpu.memory_space<vmem>>, %arg2: memref<1x4x4x64xf32, #tpu.memory_space<vmem>>, %arg3: memref<1x4x4x64xf32, #tpu.memory_space<vmem>>, %arg4: memref<1x4x4x64xf32, #tpu.memory_space<vmem>>, %arg5: memref<1x64xf32, #tpu.memory_space<vmem>>, %arg6: memref<1x64xf32, #tpu.memory_space<vmem>>, %arg7: memref<1x64xf32, #tpu.memory_space<vmem>>, %arg8: memref<1x64xf32, #tpu.memory_space<vmem>>, %arg9: memref<1x4x4x64xf32, #tpu.memory_space<vmem>>) attributes {dimension_semantics = [#tpu.dimension_semantics<parallel>], iteration_bounds = array<i64: 2>, scalar_prefetch = 0 : i64, scratch_operands = 0 : i64, tpu.core_type = #tpu.core_type<tc>, window_params = [{transform_indices = @transform_0, window_bounds = array<i64: 1, 4, 4, 64>}, {transform_indices = @transform_1, window_bounds = array<i64: 1, 4, 4, 64>}, {transform_indices = @transform_2, window_bounds = array<i64: 1, 4, 4, 64>}, {transform_indices = @transform_3, window_bounds = array<i64: 1, 4, 4, 64>}, {pipeline_mode = #tpu.pipeline_mode<synchronous>, transform_indices = @transform_4, window_bounds = array<i64: 1, 64>}, {pipeline_mode = #tpu.pipeline_mode<synchronous>, transform_indices = @transform_5, window_bounds = array<i64: 1, 64>}, {pipeline_mode = #tpu.pipeline_mode<synchronous>, transform_indices = @transform_6, window_bounds = array<i64: 1, 64>}, {pipeline_mode = #tpu.pipeline_mode<synchronous>, transform_indices = @transform_7, window_bounds = array<i64: 1, 64>}, {transform_indices = @transform_8, window_bounds = array<i64: 1, 4, 4, 64>}]} {
    %c0 = arith.constant 0 : index
    %c0_0 = arith.constant 0 : index
    %0 = vector.load %arg5[%c0, %c0_0] : memref<1x64xf32, #tpu.memory_space<vmem>>, vector<1x64xf32>
    %cst = arith.constant 7.812500e-03 : f32
    %1 = vector.broadcast %cst : f32 to vector<1x64xf32>
    %2 = arith.mulf %0, %1 : vector<1x64xf32>
    %c0_1 = arith.constant 0 : index
    %c0_2 = arith.constant 0 : index
    %3 = vector.load %arg6[%c0_1, %c0_2] : memref<1x64xf32, #tpu.memory_space<vmem>>, vector<1x64xf32>
    %cst_3 = arith.constant 7.812500e-03 : f32
    %4 = vector.broadcast %cst_3 : f32 to vector<1x64xf32>
    %5 = arith.mulf %3, %4 : vector<1x64xf32>
    %6 = arith.mulf %2, %2 : vector<1x64xf32>
    %7 = arith.subf %5, %6 : vector<1x64xf32>
    %cst_4 = arith.constant 9.99999974E-6 : f32
    %8 = vector.broadcast %cst_4 : f32 to vector<1x64xf32>
    %9 = arith.addf %7, %8 : vector<1x64xf32>
    %10 = math.rsqrt %9 : vector<1x64xf32>
    %c0_5 = arith.constant 0 : index
    %c0_6 = arith.constant 0 : index
    %11 = vector.load %arg7[%c0_5, %c0_6] : memref<1x64xf32, #tpu.memory_space<vmem>>, vector<1x64xf32>
    %12 = arith.mulf %11, %10 : vector<1x64xf32>
    %c0_7 = arith.constant 0 : index
    %c0_8 = arith.constant 0 : index
    %13 = vector.load %arg8[%c0_7, %c0_8] : memref<1x64xf32, #tpu.memory_space<vmem>>, vector<1x64xf32>
    %14 = arith.mulf %2, %12 : vector<1x64xf32>
    %15 = arith.subf %13, %14 : vector<1x64xf32>
    %16 = vector.shape_cast %12 : vector<1x64xf32> to vector<1x1x1x64xf32>
    %17 = vector.shape_cast %15 : vector<1x64xf32> to vector<1x1x1x64xf32>
    %c0_9 = arith.constant 0 : index
    %c0_10 = arith.constant 0 : index
    %c0_11 = arith.constant 0 : index
    %c0_12 = arith.constant 0 : index
    %18 = vector.load %arg1[%c0_9, %c0_10, %c0_11, %c0_12] : memref<1x4x4x64xf32, #tpu.memory_space<vmem>>, vector<1x4x4x64xf32>
    %19 = vector.broadcast %16 : vector<1x1x1x64xf32> to vector<1x4x4x64xf32>
    %20 = arith.mulf %18, %19 : vector<1x4x4x64xf32>
    %21 = vector.broadcast %17 : vector<1x1x1x64xf32> to vector<1x4x4x64xf32>
    %22 = arith.addf %20, %21 : vector<1x4x4x64xf32>
    %cst_13 = arith.constant 0.000000e+00 : f32
    %23 = vector.broadcast %cst_13 : f32 to vector<1x4x4x64xf32>
    %24 = arith.maximumf %22, %23 : vector<1x4x4x64xf32>
    %c0_14 = arith.constant 0 : index
    %c0_15 = arith.constant 0 : index
    %c0_16 = arith.constant 0 : index
    %c0_17 = arith.constant 0 : index
    %25 = vector.load %arg2[%c0_14, %c0_15, %c0_16, %c0_17] : memref<1x4x4x64xf32, #tpu.memory_space<vmem>>, vector<1x4x4x64xf32>
    %26 = vector.broadcast %16 : vector<1x1x1x64xf32> to vector<1x4x4x64xf32>
    %27 = arith.mulf %25, %26 : vector<1x4x4x64xf32>
    %28 = vector.broadcast %17 : vector<1x1x1x64xf32> to vector<1x4x4x64xf32>
    %29 = arith.addf %27, %28 : vector<1x4x4x64xf32>
    %cst_18 = arith.constant 0.000000e+00 : f32
    %30 = vector.broadcast %cst_18 : f32 to vector<1x4x4x64xf32>
    %31 = arith.maximumf %29, %30 : vector<1x4x4x64xf32>
    %32 = arith.maximumf %24, %31 : vector<1x4x4x64xf32>
    %c0_19 = arith.constant 0 : index
    %c0_20 = arith.constant 0 : index
    %c0_21 = arith.constant 0 : index
    %c0_22 = arith.constant 0 : index
    %33 = vector.load %arg3[%c0_19, %c0_20, %c0_21, %c0_22] : memref<1x4x4x64xf32, #tpu.memory_space<vmem>>, vector<1x4x4x64xf32>
    %34 = vector.broadcast %16 : vector<1x1x1x64xf32> to vector<1x4x4x64xf32>
    %35 = arith.mulf %33, %34 : vector<1x4x4x64xf32>
    %36 = vector.broadcast %17 : vector<1x1x1x64xf32> to vector<1x4x4x64xf32>
    %37 = arith.addf %35, %36 : vector<1x4x4x64xf32>
    %cst_23 = arith.constant 0.000000e+00 : f32
    %38 = vector.broadcast %cst_23 : f32 to vector<1x4x4x64xf32>
    %39 = arith.maximumf %37, %38 : vector<1x4x4x64xf32>
    %c0_24 = arith.constant 0 : index
    %c0_25 = arith.constant 0 : index
    %c0_26 = arith.constant 0 : index
    %c0_27 = arith.constant 0 : index
    %40 = vector.load %arg4[%c0_24, %c0_25, %c0_26, %c0_27] : memref<1x4x4x64xf32, #tpu.memory_space<vmem>>, vector<1x4x4x64xf32>
    %41 = vector.broadcast %16 : vector<1x1x1x64xf32> to vector<1x4x4x64xf32>
    %42 = arith.mulf %40, %41 : vector<1x4x4x64xf32>
    %43 = vector.broadcast %17 : vector<1x1x1x64xf32> to vector<1x4x4x64xf32>
    %44 = arith.addf %42, %43 : vector<1x4x4x64xf32>
    %cst_28 = arith.constant 0.000000e+00 : f32
    %45 = vector.broadcast %cst_28 : f32 to vector<1x4x4x64xf32>
    %46 = arith.maximumf %44, %45 : vector<1x4x4x64xf32>
    %47 = arith.maximumf %39, %46 : vector<1x4x4x64xf32>
    %48 = arith.maximumf %32, %47 : vector<1x4x4x64xf32>
    %c0_29 = arith.constant 0 : index
    %c0_30 = arith.constant 0 : index
    %c0_31 = arith.constant 0 : index
    %c0_32 = arith.constant 0 : index
    %49 = vector.load %arg9[%c0_29, %c0_30, %c0_31, %c0_32] : memref<1x4x4x64xf32, #tpu.memory_space<vmem>>, vector<1x4x4x64xf32>
    tpu.vector_store %arg9[%c0_29, %c0_30, %c0_31, %c0_32], %48 {strides = array<i32>} : memref<1x4x4x64xf32, #tpu.memory_space<vmem>>, vector<1x4x4x64xf32>,
    return
  }
  func.func @transform_0(%arg0: i32) -> (i32, i32, i32, i32) {
    %c0_i32 = arith.constant 0 : i32
    %c0_i32_0 = arith.constant 0 : i32
    %c0_i32_1 = arith.constant 0 : i32
    %c0_i32_2 = arith.constant 0 : i32
    return %arg0, %c0_i32, %c0_i32_0, %c0_i32_1 : i32, i32, i32, i32
  }
  func.func @transform_1(%arg0: i32) -> (i32, i32, i32, i32) {
    %c0_i32 = arith.constant 0 : i32
    %c0_i32_0 = arith.constant 0 : i32
    %c0_i32_1 = arith.constant 0 : i32
    %c0_i32_2 = arith.constant 0 : i32
    return %arg0, %c0_i32, %c0_i32_0, %c0_i32_1 : i32, i32, i32, i32
  }
  func.func @transform_2(%arg0: i32) -> (i32, i32, i32, i32) {
    %c0_i32 = arith.constant 0 : i32
    %c0_i32_0 = arith.constant 0 : i32
    %c0_i32_1 = arith.constant 0 : i32
    %c0_i32_2 = arith.constant 0 : i32
    return %arg0, %c0_i32, %c0_i32_0, %c0_i32_1 : i32, i32, i32, i32
  }
  func.func @transform_3(%arg0: i32) -> (i32, i32, i32, i32) {
    %c0_i32 = arith.constant 0 : i32
    %c0_i32_0 = arith.constant 0 : i32
    %c0_i32_1 = arith.constant 0 : i32
    %c0_i32_2 = arith.constant 0 : i32
    return %arg0, %c0_i32, %c0_i32_0, %c0_i32_1 : i32, i32, i32, i32
  }
  func.func @transform_4(%arg0: i32) -> (i32, i32) {
    %c0_i32 = arith.constant 0 : i32
    %c0_i32_0 = arith.constant 0 : i32
    %c0_i32_1 = arith.constant 0 : i32
    return %c0_i32, %c0_i32_0 : i32, i32
  }
  func.func @transform_5(%arg0: i32) -> (i32, i32) {
    %c0_i32 = arith.constant 0 : i32
    %c0_i32_0 = arith.constant 0 : i32
    %c0_i32_1 = arith.constant 0 : i32
    return %c0_i32, %c0_i32_0 : i32, i32
  }
  func.func @transform_6(%arg0: i32) -> (i32, i32) {
    %c0_i32 = arith.constant 0 : i32
    %c0_i32_0 = arith.constant 0 : i32
    %c0_i32_1 = arith.constant 0 : i32
    return %c0_i32, %c0_i32_0 : i32, i32
  }
  func.func @transform_7(%arg0: i32) -> (i32, i32) {
    %c0_i32 = arith.constant 0 : i32
    %c0_i32_0 = arith.constant 0 : i32
    %c0_i32_1 = arith.constant 0 : i32
    return %c0_i32, %c0_i32_0 : i32, i32
  }
  func.func @transform_8(%arg0: i32) -> (i32, i32, i32, i32) {
    %c0_i32 = arith.constant 0 : i32
    %c0_i32_0 = arith.constant 0 : i32
    %c0_i32_1 = arith.constant 0 : i32
    %c0_i32_2 = arith.constant 0 : i32
    return %arg0, %c0_i32, %c0_i32_0, %c0_i32_1 : i32, i32, i32, i32
  }
}

module attributes {stable_mosaic.version = 11 : i64} {
  func.func @_conv_stats_kernel(%arg0: i32, %arg1: memref<1x42x64xf32, #tpu.memory_space<vmem>>, %arg2: memref<9x64x64xf32, #tpu.memory_space<vmem>>, %arg3: memref<1x64xf32, #tpu.memory_space<vmem>>, %arg4: memref<24x1xf32, #tpu.memory_space<vmem>>, %arg5: memref<1x24x64xf32, #tpu.memory_space<vmem>>, %arg6: memref<1x64xf32, #tpu.memory_space<vmem>>, %arg7: memref<1x64xf32, #tpu.memory_space<vmem>>) attributes {dimension_semantics = [#tpu.dimension_semantics<arbitrary>], iteration_bounds = array<i64: 2>, scalar_prefetch = 0 : i64, scratch_operands = 0 : i64, tpu.core_type = #tpu.core_type<tc>, window_params = [{transform_indices = @transform_0, window_bounds = array<i64: 1, 42, 64>}, {pipeline_mode = #tpu.pipeline_mode<synchronous>, transform_indices = @transform_1, window_bounds = array<i64: 9, 64, 64>}, {pipeline_mode = #tpu.pipeline_mode<synchronous>, transform_indices = @transform_2, window_bounds = array<i64: 1, 64>}, {pipeline_mode = #tpu.pipeline_mode<synchronous>, transform_indices = @transform_3, window_bounds = array<i64: 24, 1>}, {transform_indices = @transform_4, window_bounds = array<i64: 1, 24, 64>}, {pipeline_mode = #tpu.pipeline_mode<synchronous>, transform_indices = @transform_5, window_bounds = array<i64: 1, 64>}, {pipeline_mode = #tpu.pipeline_mode<synchronous>, transform_indices = @transform_6, window_bounds = array<i64: 1, 64>}]} {
    %c0 = arith.constant 0 : index
    %c0_0 = arith.constant 0 : index
    %c0_1 = arith.constant 0 : index
    %0 = vector.load %arg1[%c0, %c0_0, %c0_1] : memref<1x42x64xf32, #tpu.memory_space<vmem>>, vector<1x24x64xf32>
    %1 = vector.shape_cast %0 : vector<1x24x64xf32> to vector<24x64xf32>
    %c0_2 = arith.constant 0 : index
    %c0_3 = arith.constant 0 : index
    %c0_4 = arith.constant 0 : index
    %2 = vector.load %arg2[%c0_2, %c0_3, %c0_4] : memref<9x64x64xf32, #tpu.memory_space<vmem>>, vector<1x64x64xf32>
    %3 = vector.shape_cast %2 : vector<1x64x64xf32> to vector<64x64xf32>
    %cst = arith.constant dense<0.000000e+00> : vector<24x64xf32>
    %4 = tpu.matmul %1, %3, %cst {dimension_numbers = #tpu.dot_dimension_numbers<[1], [0], [0], [1], [0, 0, 1, 1], [], []>} : vector<24x64xf32>, vector<64x64xf32>, vector<24x64xf32> -> vector<24x64xf32>
    %c0_5 = arith.constant 0 : index
    %c1 = arith.constant 1 : index
    %c0_6 = arith.constant 0 : index
    %5 = vector.load %arg1[%c0_5, %c1, %c0_6] : memref<1x42x64xf32, #tpu.memory_space<vmem>>, vector<1x24x64xf32>
    %6 = vector.shape_cast %5 : vector<1x24x64xf32> to vector<24x64xf32>
    %c1_7 = arith.constant 1 : index
    %c0_8 = arith.constant 0 : index
    %c0_9 = arith.constant 0 : index
    %7 = vector.load %arg2[%c1_7, %c0_8, %c0_9] : memref<9x64x64xf32, #tpu.memory_space<vmem>>, vector<1x64x64xf32>
    %8 = vector.shape_cast %7 : vector<1x64x64xf32> to vector<64x64xf32>
    %cst_10 = arith.constant dense<0.000000e+00> : vector<24x64xf32>
    %9 = tpu.matmul %6, %8, %cst_10 {dimension_numbers = #tpu.dot_dimension_numbers<[1], [0], [0], [1], [0, 0, 1, 1], [], []>} : vector<24x64xf32>, vector<64x64xf32>, vector<24x64xf32> -> vector<24x64xf32>
    %10 = arith.addf %4, %9 : vector<24x64xf32>
    %c0_11 = arith.constant 0 : index
    %c2 = arith.constant 2 : index
    %c0_12 = arith.constant 0 : index
    %11 = vector.load %arg1[%c0_11, %c2, %c0_12] : memref<1x42x64xf32, #tpu.memory_space<vmem>>, vector<1x24x64xf32>
    %12 = vector.shape_cast %11 : vector<1x24x64xf32> to vector<24x64xf32>
    %c2_13 = arith.constant 2 : index
    %c0_14 = arith.constant 0 : index
    %c0_15 = arith.constant 0 : index
    %13 = vector.load %arg2[%c2_13, %c0_14, %c0_15] : memref<9x64x64xf32, #tpu.memory_space<vmem>>, vector<1x64x64xf32>
    %14 = vector.shape_cast %13 : vector<1x64x64xf32> to vector<64x64xf32>
    %cst_16 = arith.constant dense<0.000000e+00> : vector<24x64xf32>
    %15 = tpu.matmul %12, %14, %cst_16 {dimension_numbers = #tpu.dot_dimension_numbers<[1], [0], [0], [1], [0, 0, 1, 1], [], []>} : vector<24x64xf32>, vector<64x64xf32>, vector<24x64xf32> -> vector<24x64xf32>
    %16 = arith.addf %10, %15 : vector<24x64xf32>
    %c0_17 = arith.constant 0 : index
    %c6 = arith.constant 6 : index
    %c0_18 = arith.constant 0 : index
    %17 = vector.load %arg1[%c0_17, %c6, %c0_18] : memref<1x42x64xf32, #tpu.memory_space<vmem>>, vector<1x24x64xf32>
    %18 = vector.shape_cast %17 : vector<1x24x64xf32> to vector<24x64xf32>
    %c3 = arith.constant 3 : index
    %c0_19 = arith.constant 0 : index
    %c0_20 = arith.constant 0 : index
    %19 = vector.load %arg2[%c3, %c0_19, %c0_20] : memref<9x64x64xf32, #tpu.memory_space<vmem>>, vector<1x64x64xf32>
    %20 = vector.shape_cast %19 : vector<1x64x64xf32> to vector<64x64xf32>
    %cst_21 = arith.constant dense<0.000000e+00> : vector<24x64xf32>
    %21 = tpu.matmul %18, %20, %cst_21 {dimension_numbers = #tpu.dot_dimension_numbers<[1], [0], [0], [1], [0, 0, 1, 1], [], []>} : vector<24x64xf32>, vector<64x64xf32>, vector<24x64xf32> -> vector<24x64xf32>
    %22 = arith.addf %16, %21 : vector<24x64xf32>
    %c0_22 = arith.constant 0 : index
    %c7 = arith.constant 7 : index
    %c0_23 = arith.constant 0 : index
    %23 = vector.load %arg1[%c0_22, %c7, %c0_23] : memref<1x42x64xf32, #tpu.memory_space<vmem>>, vector<1x24x64xf32>
    %24 = vector.shape_cast %23 : vector<1x24x64xf32> to vector<24x64xf32>
    %c4 = arith.constant 4 : index
    %c0_24 = arith.constant 0 : index
    %c0_25 = arith.constant 0 : index
    %25 = vector.load %arg2[%c4, %c0_24, %c0_25] : memref<9x64x64xf32, #tpu.memory_space<vmem>>, vector<1x64x64xf32>
    %26 = vector.shape_cast %25 : vector<1x64x64xf32> to vector<64x64xf32>
    %cst_26 = arith.constant dense<0.000000e+00> : vector<24x64xf32>
    %27 = tpu.matmul %24, %26, %cst_26 {dimension_numbers = #tpu.dot_dimension_numbers<[1], [0], [0], [1], [0, 0, 1, 1], [], []>} : vector<24x64xf32>, vector<64x64xf32>, vector<24x64xf32> -> vector<24x64xf32>
    %28 = arith.addf %22, %27 : vector<24x64xf32>
    %c0_27 = arith.constant 0 : index
    %c8 = arith.constant 8 : index
    %c0_28 = arith.constant 0 : index
    %29 = vector.load %arg1[%c0_27, %c8, %c0_28] : memref<1x42x64xf32, #tpu.memory_space<vmem>>, vector<1x24x64xf32>
    %30 = vector.shape_cast %29 : vector<1x24x64xf32> to vector<24x64xf32>
    %c5 = arith.constant 5 : index
    %c0_29 = arith.constant 0 : index
    %c0_30 = arith.constant 0 : index
    %31 = vector.load %arg2[%c5, %c0_29, %c0_30] : memref<9x64x64xf32, #tpu.memory_space<vmem>>, vector<1x64x64xf32>
    %32 = vector.shape_cast %31 : vector<1x64x64xf32> to vector<64x64xf32>
    %cst_31 = arith.constant dense<0.000000e+00> : vector<24x64xf32>
    %33 = tpu.matmul %30, %32, %cst_31 {dimension_numbers = #tpu.dot_dimension_numbers<[1], [0], [0], [1], [0, 0, 1, 1], [], []>} : vector<24x64xf32>, vector<64x64xf32>, vector<24x64xf32> -> vector<24x64xf32>
    %34 = arith.addf %28, %33 : vector<24x64xf32>
    %c0_32 = arith.constant 0 : index
    %c12 = arith.constant 12 : index
    %c0_33 = arith.constant 0 : index
    %35 = vector.load %arg1[%c0_32, %c12, %c0_33] : memref<1x42x64xf32, #tpu.memory_space<vmem>>, vector<1x24x64xf32>
    %36 = vector.shape_cast %35 : vector<1x24x64xf32> to vector<24x64xf32>
    %c6_34 = arith.constant 6 : index
    %c0_35 = arith.constant 0 : index
    %c0_36 = arith.constant 0 : index
    %37 = vector.load %arg2[%c6_34, %c0_35, %c0_36] : memref<9x64x64xf32, #tpu.memory_space<vmem>>, vector<1x64x64xf32>
    %38 = vector.shape_cast %37 : vector<1x64x64xf32> to vector<64x64xf32>
    %cst_37 = arith.constant dense<0.000000e+00> : vector<24x64xf32>
    %39 = tpu.matmul %36, %38, %cst_37 {dimension_numbers = #tpu.dot_dimension_numbers<[1], [0], [0], [1], [0, 0, 1, 1], [], []>} : vector<24x64xf32>, vector<64x64xf32>, vector<24x64xf32> -> vector<24x64xf32>
    %40 = arith.addf %34, %39 : vector<24x64xf32>
    %c0_38 = arith.constant 0 : index
    %c13 = arith.constant 13 : index
    %c0_39 = arith.constant 0 : index
    %41 = vector.load %arg1[%c0_38, %c13, %c0_39] : memref<1x42x64xf32, #tpu.memory_space<vmem>>, vector<1x24x64xf32>
    %42 = vector.shape_cast %41 : vector<1x24x64xf32> to vector<24x64xf32>
    %c7_40 = arith.constant 7 : index
    %c0_41 = arith.constant 0 : index
    %c0_42 = arith.constant 0 : index
    %43 = vector.load %arg2[%c7_40, %c0_41, %c0_42] : memref<9x64x64xf32, #tpu.memory_space<vmem>>, vector<1x64x64xf32>
    %44 = vector.shape_cast %43 : vector<1x64x64xf32> to vector<64x64xf32>
    %cst_43 = arith.constant dense<0.000000e+00> : vector<24x64xf32>
    %45 = tpu.matmul %42, %44, %cst_43 {dimension_numbers = #tpu.dot_dimension_numbers<[1], [0], [0], [1], [0, 0, 1, 1], [], []>} : vector<24x64xf32>, vector<64x64xf32>, vector<24x64xf32> -> vector<24x64xf32>
    %46 = arith.addf %40, %45 : vector<24x64xf32>
    %c0_44 = arith.constant 0 : index
    %c14 = arith.constant 14 : index
    %c0_45 = arith.constant 0 : index
    %47 = vector.load %arg1[%c0_44, %c14, %c0_45] : memref<1x42x64xf32, #tpu.memory_space<vmem>>, vector<1x24x64xf32>
    %48 = vector.shape_cast %47 : vector<1x24x64xf32> to vector<24x64xf32>
    %c8_46 = arith.constant 8 : index
    %c0_47 = arith.constant 0 : index
    %c0_48 = arith.constant 0 : index
    %49 = vector.load %arg2[%c8_46, %c0_47, %c0_48] : memref<9x64x64xf32, #tpu.memory_space<vmem>>, vector<1x64x64xf32>
    %50 = vector.shape_cast %49 : vector<1x64x64xf32> to vector<64x64xf32>
    %cst_49 = arith.constant dense<0.000000e+00> : vector<24x64xf32>
    %51 = tpu.matmul %48, %50, %cst_49 {dimension_numbers = #tpu.dot_dimension_numbers<[1], [0], [0], [1], [0, 0, 1, 1], [], []>} : vector<24x64xf32>, vector<64x64xf32>, vector<24x64xf32> -> vector<24x64xf32>
    %52 = arith.addf %46, %51 : vector<24x64xf32>
    %c0_50 = arith.constant 0 : index
    %c0_51 = arith.constant 0 : index
    %53 = vector.load %arg3[%c0_50, %c0_51] : memref<1x64xf32, #tpu.memory_space<vmem>>, vector<1x64xf32>
    %54 = vector.broadcast %53 : vector<1x64xf32> to vector<24x64xf32>
    %55 = arith.addf %52, %54 : vector<24x64xf32>
    %c0_52 = arith.constant 0 : index
    %c0_53 = arith.constant 0 : index
    %c0_54 = arith.constant 0 : index
    %56 = vector.load %arg5[%c0_52, %c0_53, %c0_54] : memref<1x24x64xf32, #tpu.memory_space<vmem>>, vector<1x24x64xf32>
    %57 = vector.shape_cast %56 : vector<1x24x64xf32> to vector<24x64xf32>
    %58 = vector.shape_cast %55 : vector<24x64xf32> to vector<1x24x64xf32>
    tpu.vector_store %arg5[%c0_52, %c0_53, %c0_54], %58 {strides = array<i32>} : memref<1x24x64xf32, #tpu.memory_space<vmem>>, vector<1x24x64xf32>,
    %c0_55 = arith.constant 0 : index
    %c0_56 = arith.constant 0 : index
    %59 = vector.load %arg4[%c0_55, %c0_56] : memref<24x1xf32, #tpu.memory_space<vmem>>, vector<24x1xf32>
    %60 = vector.broadcast %59 : vector<24x1xf32> to vector<24x64xf32>
    %61 = arith.mulf %55, %60 : vector<24x64xf32>
    %cst_57 = arith.constant dense<0.000000e+00> : vector<64xf32>
    %62 = vector.multi_reduction <add>, %61, %cst_57 [0] : vector<24x64xf32> to vector<64xf32>
    %63 = vector.shape_cast %62 : vector<64xf32> to vector<1x64xf32>
    %64 = arith.mulf %61, %55 : vector<24x64xf32>
    %cst_58 = arith.constant dense<0.000000e+00> : vector<64xf32>
    %65 = vector.multi_reduction <add>, %64, %cst_58 [0] : vector<24x64xf32> to vector<64xf32>
    %66 = vector.shape_cast %65 : vector<64xf32> to vector<1x64xf32>
    %c0_i32 = arith.constant 0 : i32
    %67 = arith.cmpi eq, %arg0, %c0_i32 : i32
    %68 = arith.extui %67 : i1 to i32
    %c0_i32_59 = arith.constant 0 : i32
    %69 = arith.cmpi ne, %68, %c0_i32_59 : i32
    scf.if %69 {
      %cst_68 = arith.constant 0.000000e+00 : f32
      %76 = vector.broadcast %cst_68 : f32 to vector<1x64xf32>
      %c0_69 = arith.constant 0 : index
      %c0_70 = arith.constant 0 : index
      %77 = vector.load %arg6[%c0_69, %c0_70] : memref<1x64xf32, #tpu.memory_space<vmem>>, vector<1x64xf32>
      tpu.vector_store %arg6[%c0_69, %c0_70], %76 {strides = array<i32>} : memref<1x64xf32, #tpu.memory_space<vmem>>, vector<1x64xf32>,
      %cst_71 = arith.constant 0.000000e+00 : f32
      %78 = vector.broadcast %cst_71 : f32 to vector<1x64xf32>
      %c0_72 = arith.constant 0 : index
      %c0_73 = arith.constant 0 : index
      %79 = vector.load %arg7[%c0_72, %c0_73] : memref<1x64xf32, #tpu.memory_space<vmem>>, vector<1x64xf32>
      tpu.vector_store %arg7[%c0_72, %c0_73], %78 {strides = array<i32>} : memref<1x64xf32, #tpu.memory_space<vmem>>, vector<1x64xf32>,
    } else {
    }
    %c0_60 = arith.constant 0 : index
    %c0_61 = arith.constant 0 : index
    %70 = vector.load %arg6[%c0_60, %c0_61] : memref<1x64xf32, #tpu.memory_space<vmem>>, vector<1x64xf32>
    %71 = arith.addf %70, %63 : vector<1x64xf32>
    %c0_62 = arith.constant 0 : index
    %c0_63 = arith.constant 0 : index
    %72 = vector.load %arg6[%c0_62, %c0_63] : memref<1x64xf32, #tpu.memory_space<vmem>>, vector<1x64xf32>
    tpu.vector_store %arg6[%c0_62, %c0_63], %71 {strides = array<i32>} : memref<1x64xf32, #tpu.memory_space<vmem>>, vector<1x64xf32>,
    %c0_64 = arith.constant 0 : index
    %c0_65 = arith.constant 0 : index
    %73 = vector.load %arg7[%c0_64, %c0_65] : memref<1x64xf32, #tpu.memory_space<vmem>>, vector<1x64xf32>
    %74 = arith.addf %73, %66 : vector<1x64xf32>
    %c0_66 = arith.constant 0 : index
    %c0_67 = arith.constant 0 : index
    %75 = vector.load %arg7[%c0_66, %c0_67] : memref<1x64xf32, #tpu.memory_space<vmem>>, vector<1x64xf32>
    tpu.vector_store %arg7[%c0_66, %c0_67], %74 {strides = array<i32>} : memref<1x64xf32, #tpu.memory_space<vmem>>, vector<1x64xf32>,
    return
  }
  func.func @transform_0(%arg0: i32) -> (i32, i32, i32) {
    %c0_i32 = arith.constant 0 : i32
    %c0_i32_0 = arith.constant 0 : i32
    %c0_i32_1 = arith.constant 0 : i32
    return %arg0, %c0_i32, %c0_i32_0 : i32, i32, i32
  }
  func.func @transform_1(%arg0: i32) -> (i32, i32, i32) {
    %c0_i32 = arith.constant 0 : i32
    %c0_i32_0 = arith.constant 0 : i32
    %c0_i32_1 = arith.constant 0 : i32
    %c0_i32_2 = arith.constant 0 : i32
    return %c0_i32, %c0_i32_0, %c0_i32_1 : i32, i32, i32
  }
  func.func @transform_2(%arg0: i32) -> (i32, i32) {
    %c0_i32 = arith.constant 0 : i32
    %c0_i32_0 = arith.constant 0 : i32
    %c0_i32_1 = arith.constant 0 : i32
    return %c0_i32, %c0_i32_0 : i32, i32
  }
  func.func @transform_3(%arg0: i32) -> (i32, i32) {
    %c0_i32 = arith.constant 0 : i32
    %c0_i32_0 = arith.constant 0 : i32
    %c0_i32_1 = arith.constant 0 : i32
    return %c0_i32, %c0_i32_0 : i32, i32
  }
  func.func @transform_4(%arg0: i32) -> (i32, i32, i32) {
    %c0_i32 = arith.constant 0 : i32
    %c0_i32_0 = arith.constant 0 : i32
    %c0_i32_1 = arith.constant 0 : i32
    return %arg0, %c0_i32, %c0_i32_0 : i32, i32, i32
  }
  func.func @transform_5(%arg0: i32) -> (i32, i32) {
    %c0_i32 = arith.constant 0 : i32
    %c0_i32_0 = arith.constant 0 : i32
    %c0_i32_1 = arith.constant 0 : i32
    return %c0_i32, %c0_i32_0 : i32, i32
  }
  func.func @transform_6(%arg0: i32) -> (i32, i32) {
    %c0_i32 = arith.constant 0 : i32
    %c0_i32_0 = arith.constant 0 : i32
    %c0_i32_1 = arith.constant 0 : i32
    return %c0_i32, %c0_i32_0 : i32, i32
  }
}

module attributes {stable_mosaic.version = 11 : i64} {
  func.func @_bn_relu_pool_kernel(%arg0: i32, %arg1: memref<1x2x2x64xf32, #tpu.memory_space<vmem>>, %arg2: memref<1x2x2x64xf32, #tpu.memory_space<vmem>>, %arg3: memref<1x2x2x64xf32, #tpu.memory_space<vmem>>, %arg4: memref<1x2x2x64xf32, #tpu.memory_space<vmem>>, %arg5: memref<1x64xf32, #tpu.memory_space<vmem>>, %arg6: memref<1x64xf32, #tpu.memory_space<vmem>>, %arg7: memref<1x64xf32, #tpu.memory_space<vmem>>, %arg8: memref<1x64xf32, #tpu.memory_space<vmem>>, %arg9: memref<1x2x2x64xf32, #tpu.memory_space<vmem>>) attributes {dimension_semantics = [#tpu.dimension_semantics<parallel>], iteration_bounds = array<i64: 2>, scalar_prefetch = 0 : i64, scratch_operands = 0 : i64, tpu.core_type = #tpu.core_type<tc>, window_params = [{transform_indices = @transform_0, window_bounds = array<i64: 1, 2, 2, 64>}, {transform_indices = @transform_1, window_bounds = array<i64: 1, 2, 2, 64>}, {transform_indices = @transform_2, window_bounds = array<i64: 1, 2, 2, 64>}, {transform_indices = @transform_3, window_bounds = array<i64: 1, 2, 2, 64>}, {pipeline_mode = #tpu.pipeline_mode<synchronous>, transform_indices = @transform_4, window_bounds = array<i64: 1, 64>}, {pipeline_mode = #tpu.pipeline_mode<synchronous>, transform_indices = @transform_5, window_bounds = array<i64: 1, 64>}, {pipeline_mode = #tpu.pipeline_mode<synchronous>, transform_indices = @transform_6, window_bounds = array<i64: 1, 64>}, {pipeline_mode = #tpu.pipeline_mode<synchronous>, transform_indices = @transform_7, window_bounds = array<i64: 1, 64>}, {transform_indices = @transform_8, window_bounds = array<i64: 1, 2, 2, 64>}]} {
    %c0 = arith.constant 0 : index
    %c0_0 = arith.constant 0 : index
    %0 = vector.load %arg5[%c0, %c0_0] : memref<1x64xf32, #tpu.memory_space<vmem>>, vector<1x64xf32>
    %cst = arith.constant 3.125000e-02 : f32
    %1 = vector.broadcast %cst : f32 to vector<1x64xf32>
    %2 = arith.mulf %0, %1 : vector<1x64xf32>
    %c0_1 = arith.constant 0 : index
    %c0_2 = arith.constant 0 : index
    %3 = vector.load %arg6[%c0_1, %c0_2] : memref<1x64xf32, #tpu.memory_space<vmem>>, vector<1x64xf32>
    %cst_3 = arith.constant 3.125000e-02 : f32
    %4 = vector.broadcast %cst_3 : f32 to vector<1x64xf32>
    %5 = arith.mulf %3, %4 : vector<1x64xf32>
    %6 = arith.mulf %2, %2 : vector<1x64xf32>
    %7 = arith.subf %5, %6 : vector<1x64xf32>
    %cst_4 = arith.constant 9.99999974E-6 : f32
    %8 = vector.broadcast %cst_4 : f32 to vector<1x64xf32>
    %9 = arith.addf %7, %8 : vector<1x64xf32>
    %10 = math.rsqrt %9 : vector<1x64xf32>
    %c0_5 = arith.constant 0 : index
    %c0_6 = arith.constant 0 : index
    %11 = vector.load %arg7[%c0_5, %c0_6] : memref<1x64xf32, #tpu.memory_space<vmem>>, vector<1x64xf32>
    %12 = arith.mulf %11, %10 : vector<1x64xf32>
    %c0_7 = arith.constant 0 : index
    %c0_8 = arith.constant 0 : index
    %13 = vector.load %arg8[%c0_7, %c0_8] : memref<1x64xf32, #tpu.memory_space<vmem>>, vector<1x64xf32>
    %14 = arith.mulf %2, %12 : vector<1x64xf32>
    %15 = arith.subf %13, %14 : vector<1x64xf32>
    %16 = vector.shape_cast %12 : vector<1x64xf32> to vector<1x1x1x64xf32>
    %17 = vector.shape_cast %15 : vector<1x64xf32> to vector<1x1x1x64xf32>
    %c0_9 = arith.constant 0 : index
    %c0_10 = arith.constant 0 : index
    %c0_11 = arith.constant 0 : index
    %c0_12 = arith.constant 0 : index
    %18 = vector.load %arg1[%c0_9, %c0_10, %c0_11, %c0_12] : memref<1x2x2x64xf32, #tpu.memory_space<vmem>>, vector<1x2x2x64xf32>
    %19 = vector.broadcast %16 : vector<1x1x1x64xf32> to vector<1x2x2x64xf32>
    %20 = arith.mulf %18, %19 : vector<1x2x2x64xf32>
    %21 = vector.broadcast %17 : vector<1x1x1x64xf32> to vector<1x2x2x64xf32>
    %22 = arith.addf %20, %21 : vector<1x2x2x64xf32>
    %cst_13 = arith.constant 0.000000e+00 : f32
    %23 = vector.broadcast %cst_13 : f32 to vector<1x2x2x64xf32>
    %24 = arith.maximumf %22, %23 : vector<1x2x2x64xf32>
    %c0_14 = arith.constant 0 : index
    %c0_15 = arith.constant 0 : index
    %c0_16 = arith.constant 0 : index
    %c0_17 = arith.constant 0 : index
    %25 = vector.load %arg2[%c0_14, %c0_15, %c0_16, %c0_17] : memref<1x2x2x64xf32, #tpu.memory_space<vmem>>, vector<1x2x2x64xf32>
    %26 = vector.broadcast %16 : vector<1x1x1x64xf32> to vector<1x2x2x64xf32>
    %27 = arith.mulf %25, %26 : vector<1x2x2x64xf32>
    %28 = vector.broadcast %17 : vector<1x1x1x64xf32> to vector<1x2x2x64xf32>
    %29 = arith.addf %27, %28 : vector<1x2x2x64xf32>
    %cst_18 = arith.constant 0.000000e+00 : f32
    %30 = vector.broadcast %cst_18 : f32 to vector<1x2x2x64xf32>
    %31 = arith.maximumf %29, %30 : vector<1x2x2x64xf32>
    %32 = arith.maximumf %24, %31 : vector<1x2x2x64xf32>
    %c0_19 = arith.constant 0 : index
    %c0_20 = arith.constant 0 : index
    %c0_21 = arith.constant 0 : index
    %c0_22 = arith.constant 0 : index
    %33 = vector.load %arg3[%c0_19, %c0_20, %c0_21, %c0_22] : memref<1x2x2x64xf32, #tpu.memory_space<vmem>>, vector<1x2x2x64xf32>
    %34 = vector.broadcast %16 : vector<1x1x1x64xf32> to vector<1x2x2x64xf32>
    %35 = arith.mulf %33, %34 : vector<1x2x2x64xf32>
    %36 = vector.broadcast %17 : vector<1x1x1x64xf32> to vector<1x2x2x64xf32>
    %37 = arith.addf %35, %36 : vector<1x2x2x64xf32>
    %cst_23 = arith.constant 0.000000e+00 : f32
    %38 = vector.broadcast %cst_23 : f32 to vector<1x2x2x64xf32>
    %39 = arith.maximumf %37, %38 : vector<1x2x2x64xf32>
    %c0_24 = arith.constant 0 : index
    %c0_25 = arith.constant 0 : index
    %c0_26 = arith.constant 0 : index
    %c0_27 = arith.constant 0 : index
    %40 = vector.load %arg4[%c0_24, %c0_25, %c0_26, %c0_27] : memref<1x2x2x64xf32, #tpu.memory_space<vmem>>, vector<1x2x2x64xf32>
    %41 = vector.broadcast %16 : vector<1x1x1x64xf32> to vector<1x2x2x64xf32>
    %42 = arith.mulf %40, %41 : vector<1x2x2x64xf32>
    %43 = vector.broadcast %17 : vector<1x1x1x64xf32> to vector<1x2x2x64xf32>
    %44 = arith.addf %42, %43 : vector<1x2x2x64xf32>
    %cst_28 = arith.constant 0.000000e+00 : f32
    %45 = vector.broadcast %cst_28 : f32 to vector<1x2x2x64xf32>
    %46 = arith.maximumf %44, %45 : vector<1x2x2x64xf32>
    %47 = arith.maximumf %39, %46 : vector<1x2x2x64xf32>
    %48 = arith.maximumf %32, %47 : vector<1x2x2x64xf32>
    %c0_29 = arith.constant 0 : index
    %c0_30 = arith.constant 0 : index
    %c0_31 = arith.constant 0 : index
    %c0_32 = arith.constant 0 : index
    %49 = vector.load %arg9[%c0_29, %c0_30, %c0_31, %c0_32] : memref<1x2x2x64xf32, #tpu.memory_space<vmem>>, vector<1x2x2x64xf32>
    tpu.vector_store %arg9[%c0_29, %c0_30, %c0_31, %c0_32], %48 {strides = array<i32>} : memref<1x2x2x64xf32, #tpu.memory_space<vmem>>, vector<1x2x2x64xf32>,
    return
  }
  func.func @transform_0(%arg0: i32) -> (i32, i32, i32, i32) {
    %c0_i32 = arith.constant 0 : i32
    %c0_i32_0 = arith.constant 0 : i32
    %c0_i32_1 = arith.constant 0 : i32
    %c0_i32_2 = arith.constant 0 : i32
    return %arg0, %c0_i32, %c0_i32_0, %c0_i32_1 : i32, i32, i32, i32
  }
  func.func @transform_1(%arg0: i32) -> (i32, i32, i32, i32) {
    %c0_i32 = arith.constant 0 : i32
    %c0_i32_0 = arith.constant 0 : i32
    %c0_i32_1 = arith.constant 0 : i32
    %c0_i32_2 = arith.constant 0 : i32
    return %arg0, %c0_i32, %c0_i32_0, %c0_i32_1 : i32, i32, i32, i32
  }
  func.func @transform_2(%arg0: i32) -> (i32, i32, i32, i32) {
    %c0_i32 = arith.constant 0 : i32
    %c0_i32_0 = arith.constant 0 : i32
    %c0_i32_1 = arith.constant 0 : i32
    %c0_i32_2 = arith.constant 0 : i32
    return %arg0, %c0_i32, %c0_i32_0, %c0_i32_1 : i32, i32, i32, i32
  }
  func.func @transform_3(%arg0: i32) -> (i32, i32, i32, i32) {
    %c0_i32 = arith.constant 0 : i32
    %c0_i32_0 = arith.constant 0 : i32
    %c0_i32_1 = arith.constant 0 : i32
    %c0_i32_2 = arith.constant 0 : i32
    return %arg0, %c0_i32, %c0_i32_0, %c0_i32_1 : i32, i32, i32, i32
  }
  func.func @transform_4(%arg0: i32) -> (i32, i32) {
    %c0_i32 = arith.constant 0 : i32
    %c0_i32_0 = arith.constant 0 : i32
    %c0_i32_1 = arith.constant 0 : i32
    return %c0_i32, %c0_i32_0 : i32, i32
  }
  func.func @transform_5(%arg0: i32) -> (i32, i32) {
    %c0_i32 = arith.constant 0 : i32
    %c0_i32_0 = arith.constant 0 : i32
    %c0_i32_1 = arith.constant 0 : i32
    return %c0_i32, %c0_i32_0 : i32, i32
  }
  func.func @transform_6(%arg0: i32) -> (i32, i32) {
    %c0_i32 = arith.constant 0 : i32
    %c0_i32_0 = arith.constant 0 : i32
    %c0_i32_1 = arith.constant 0 : i32
    return %c0_i32, %c0_i32_0 : i32, i32
  }
  func.func @transform_7(%arg0: i32) -> (i32, i32) {
    %c0_i32 = arith.constant 0 : i32
    %c0_i32_0 = arith.constant 0 : i32
    %c0_i32_1 = arith.constant 0 : i32
    return %c0_i32, %c0_i32_0 : i32, i32
  }
  func.func @transform_8(%arg0: i32) -> (i32, i32, i32, i32) {
    %c0_i32 = arith.constant 0 : i32
    %c0_i32_0 = arith.constant 0 : i32
    %c0_i32_1 = arith.constant 0 : i32
    %c0_i32_2 = arith.constant 0 : i32
    return %arg0, %c0_i32, %c0_i32_0, %c0_i32_1 : i32, i32, i32, i32
  }
}

module attributes {stable_mosaic.version = 11 : i64} {
  func.func @_bn_relu_pool_kernel(%arg0: i32, %arg1: memref<1x1x1x64xf32, #tpu.memory_space<vmem>>, %arg2: memref<1x1x1x64xf32, #tpu.memory_space<vmem>>, %arg3: memref<1x1x1x64xf32, #tpu.memory_space<vmem>>, %arg4: memref<1x1x1x64xf32, #tpu.memory_space<vmem>>, %arg5: memref<1x64xf32, #tpu.memory_space<vmem>>, %arg6: memref<1x64xf32, #tpu.memory_space<vmem>>, %arg7: memref<1x64xf32, #tpu.memory_space<vmem>>, %arg8: memref<1x64xf32, #tpu.memory_space<vmem>>, %arg9: memref<1x1x1x64xf32, #tpu.memory_space<vmem>>) attributes {dimension_semantics = [#tpu.dimension_semantics<parallel>], iteration_bounds = array<i64: 2>, scalar_prefetch = 0 : i64, scratch_operands = 0 : i64, tpu.core_type = #tpu.core_type<tc>, window_params = [{transform_indices = @transform_0, window_bounds = array<i64: 1, 1, 1, 64>}, {transform_indices = @transform_1, window_bounds = array<i64: 1, 1, 1, 64>}, {transform_indices = @transform_2, window_bounds = array<i64: 1, 1, 1, 64>}, {transform_indices = @transform_3, window_bounds = array<i64: 1, 1, 1, 64>}, {pipeline_mode = #tpu.pipeline_mode<synchronous>, transform_indices = @transform_4, window_bounds = array<i64: 1, 64>}, {pipeline_mode = #tpu.pipeline_mode<synchronous>, transform_indices = @transform_5, window_bounds = array<i64: 1, 64>}, {pipeline_mode = #tpu.pipeline_mode<synchronous>, transform_indices = @transform_6, window_bounds = array<i64: 1, 64>}, {pipeline_mode = #tpu.pipeline_mode<synchronous>, transform_indices = @transform_7, window_bounds = array<i64: 1, 64>}, {transform_indices = @transform_8, window_bounds = array<i64: 1, 1, 1, 64>}]} {
    %c0 = arith.constant 0 : index
    %c0_0 = arith.constant 0 : index
    %0 = vector.load %arg5[%c0, %c0_0] : memref<1x64xf32, #tpu.memory_space<vmem>>, vector<1x64xf32>
    %cst = arith.constant 1.250000e-01 : f32
    %1 = vector.broadcast %cst : f32 to vector<1x64xf32>
    %2 = arith.mulf %0, %1 : vector<1x64xf32>
    %c0_1 = arith.constant 0 : index
    %c0_2 = arith.constant 0 : index
    %3 = vector.load %arg6[%c0_1, %c0_2] : memref<1x64xf32, #tpu.memory_space<vmem>>, vector<1x64xf32>
    %cst_3 = arith.constant 1.250000e-01 : f32
    %4 = vector.broadcast %cst_3 : f32 to vector<1x64xf32>
    %5 = arith.mulf %3, %4 : vector<1x64xf32>
    %6 = arith.mulf %2, %2 : vector<1x64xf32>
    %7 = arith.subf %5, %6 : vector<1x64xf32>
    %cst_4 = arith.constant 9.99999974E-6 : f32
    %8 = vector.broadcast %cst_4 : f32 to vector<1x64xf32>
    %9 = arith.addf %7, %8 : vector<1x64xf32>
    %10 = math.rsqrt %9 : vector<1x64xf32>
    %c0_5 = arith.constant 0 : index
    %c0_6 = arith.constant 0 : index
    %11 = vector.load %arg7[%c0_5, %c0_6] : memref<1x64xf32, #tpu.memory_space<vmem>>, vector<1x64xf32>
    %12 = arith.mulf %11, %10 : vector<1x64xf32>
    %c0_7 = arith.constant 0 : index
    %c0_8 = arith.constant 0 : index
    %13 = vector.load %arg8[%c0_7, %c0_8] : memref<1x64xf32, #tpu.memory_space<vmem>>, vector<1x64xf32>
    %14 = arith.mulf %2, %12 : vector<1x64xf32>
    %15 = arith.subf %13, %14 : vector<1x64xf32>
    %16 = vector.shape_cast %12 : vector<1x64xf32> to vector<1x1x1x64xf32>
    %17 = vector.shape_cast %15 : vector<1x64xf32> to vector<1x1x1x64xf32>
    %c0_9 = arith.constant 0 : index
    %c0_10 = arith.constant 0 : index
    %c0_11 = arith.constant 0 : index
    %c0_12 = arith.constant 0 : index
    %18 = vector.load %arg1[%c0_9, %c0_10, %c0_11, %c0_12] : memref<1x1x1x64xf32, #tpu.memory_space<vmem>>, vector<1x1x1x64xf32>
    %19 = arith.mulf %18, %16 : vector<1x1x1x64xf32>
    %20 = arith.addf %19, %17 : vector<1x1x1x64xf32>
    %cst_13 = arith.constant 0.000000e+00 : f32
    %21 = vector.broadcast %cst_13 : f32 to vector<1x1x1x64xf32>
    %22 = arith.maximumf %20, %21 : vector<1x1x1x64xf32>
    %c0_14 = arith.constant 0 : index
    %c0_15 = arith.constant 0 : index
    %c0_16 = arith.constant 0 : index
    %c0_17 = arith.constant 0 : index
    %23 = vector.load %arg2[%c0_14, %c0_15, %c0_16, %c0_17] : memref<1x1x1x64xf32, #tpu.memory_space<vmem>>, vector<1x1x1x64xf32>
    %24 = arith.mulf %23, %16 : vector<1x1x1x64xf32>
    %25 = arith.addf %24, %17 : vector<1x1x1x64xf32>
    %cst_18 = arith.constant 0.000000e+00 : f32
    %26 = vector.broadcast %cst_18 : f32 to vector<1x1x1x64xf32>
    %27 = arith.maximumf %25, %26 : vector<1x1x1x64xf32>
    %28 = arith.maximumf %22, %27 : vector<1x1x1x64xf32>
    %c0_19 = arith.constant 0 : index
    %c0_20 = arith.constant 0 : index
    %c0_21 = arith.constant 0 : index
    %c0_22 = arith.constant 0 : index
    %29 = vector.load %arg3[%c0_19, %c0_20, %c0_21, %c0_22] : memref<1x1x1x64xf32, #tpu.memory_space<vmem>>, vector<1x1x1x64xf32>
    %30 = arith.mulf %29, %16 : vector<1x1x1x64xf32>
    %31 = arith.addf %30, %17 : vector<1x1x1x64xf32>
    %cst_23 = arith.constant 0.000000e+00 : f32
    %32 = vector.broadcast %cst_23 : f32 to vector<1x1x1x64xf32>
    %33 = arith.maximumf %31, %32 : vector<1x1x1x64xf32>
    %c0_24 = arith.constant 0 : index
    %c0_25 = arith.constant 0 : index
    %c0_26 = arith.constant 0 : index
    %c0_27 = arith.constant 0 : index
    %34 = vector.load %arg4[%c0_24, %c0_25, %c0_26, %c0_27] : memref<1x1x1x64xf32, #tpu.memory_space<vmem>>, vector<1x1x1x64xf32>
    %35 = arith.mulf %34, %16 : vector<1x1x1x64xf32>
    %36 = arith.addf %35, %17 : vector<1x1x1x64xf32>
    %cst_28 = arith.constant 0.000000e+00 : f32
    %37 = vector.broadcast %cst_28 : f32 to vector<1x1x1x64xf32>
    %38 = arith.maximumf %36, %37 : vector<1x1x1x64xf32>
    %39 = arith.maximumf %33, %38 : vector<1x1x1x64xf32>
    %40 = arith.maximumf %28, %39 : vector<1x1x1x64xf32>
    %c0_29 = arith.constant 0 : index
    %c0_30 = arith.constant 0 : index
    %c0_31 = arith.constant 0 : index
    %c0_32 = arith.constant 0 : index
    %41 = vector.load %arg9[%c0_29, %c0_30, %c0_31, %c0_32] : memref<1x1x1x64xf32, #tpu.memory_space<vmem>>, vector<1x1x1x64xf32>
    tpu.vector_store %arg9[%c0_29, %c0_30, %c0_31, %c0_32], %40 {strides = array<i32>} : memref<1x1x1x64xf32, #tpu.memory_space<vmem>>, vector<1x1x1x64xf32>,
    return
  }
  func.func @transform_0(%arg0: i32) -> (i32, i32, i32, i32) {
    %c0_i32 = arith.constant 0 : i32
    %c0_i32_0 = arith.constant 0 : i32
    %c0_i32_1 = arith.constant 0 : i32
    %c0_i32_2 = arith.constant 0 : i32
    return %arg0, %c0_i32, %c0_i32_0, %c0_i32_1 : i32, i32, i32, i32
  }
  func.func @transform_1(%arg0: i32) -> (i32, i32, i32, i32) {
    %c0_i32 = arith.constant 0 : i32
    %c0_i32_0 = arith.constant 0 : i32
    %c0_i32_1 = arith.constant 0 : i32
    %c0_i32_2 = arith.constant 0 : i32
    return %arg0, %c0_i32, %c0_i32_0, %c0_i32_1 : i32, i32, i32, i32
  }
  func.func @transform_2(%arg0: i32) -> (i32, i32, i32, i32) {
    %c0_i32 = arith.constant 0 : i32
    %c0_i32_0 = arith.constant 0 : i32
    %c0_i32_1 = arith.constant 0 : i32
    %c0_i32_2 = arith.constant 0 : i32
    return %arg0, %c0_i32, %c0_i32_0, %c0_i32_1 : i32, i32, i32, i32
  }
  func.func @transform_3(%arg0: i32) -> (i32, i32, i32, i32) {
    %c0_i32 = arith.constant 0 : i32
    %c0_i32_0 = arith.constant 0 : i32
    %c0_i32_1 = arith.constant 0 : i32
    %c0_i32_2 = arith.constant 0 : i32
    return %arg0, %c0_i32, %c0_i32_0, %c0_i32_1 : i32, i32, i32, i32
  }
  func.func @transform_4(%arg0: i32) -> (i32, i32) {
    %c0_i32 = arith.constant 0 : i32
    %c0_i32_0 = arith.constant 0 : i32
    %c0_i32_1 = arith.constant 0 : i32
    return %c0_i32, %c0_i32_0 : i32, i32
  }
  func.func @transform_5(%arg0: i32) -> (i32, i32) {
    %c0_i32 = arith.constant 0 : i32
    %c0_i32_0 = arith.constant 0 : i32
    %c0_i32_1 = arith.constant 0 : i32
    return %c0_i32, %c0_i32_0 : i32, i32
  }
  func.func @transform_6(%arg0: i32) -> (i32, i32) {
    %c0_i32 = arith.constant 0 : i32
    %c0_i32_0 = arith.constant 0 : i32
    %c0_i32_1 = arith.constant 0 : i32
    return %c0_i32, %c0_i32_0 : i32, i32
  }
  func.func @transform_7(%arg0: i32) -> (i32, i32) {
    %c0_i32 = arith.constant 0 : i32
    %c0_i32_0 = arith.constant 0 : i32
    %c0_i32_1 = arith.constant 0 : i32
    return %c0_i32, %c0_i32_0 : i32, i32
  }
  func.func @transform_8(%arg0: i32) -> (i32, i32, i32, i32) {
    %c0_i32 = arith.constant 0 : i32
    %c0_i32_0 = arith.constant 0 : i32
    %c0_i32_1 = arith.constant 0 : i32
    %c0_i32_2 = arith.constant 0 : i32
    return %arg0, %c0_i32, %c0_i32_0, %c0_i32_1 : i32, i32, i32, i32
  }
}

module attributes {stable_mosaic.version = 11 : i64} {
  func.func @_conv_stats_kernel(%arg0: i32, %arg1: memref<1x20x64xf32, #tpu.memory_space<vmem>>, %arg2: memref<9x64x64xf32, #tpu.memory_space<vmem>>, %arg3: memref<1x64xf32, #tpu.memory_space<vmem>>, %arg4: memref<8x1xf32, #tpu.memory_space<vmem>>, %arg5: memref<1x8x64xf32, #tpu.memory_space<vmem>>, %arg6: memref<1x64xf32, #tpu.memory_space<vmem>>, %arg7: memref<1x64xf32, #tpu.memory_space<vmem>>) attributes {dimension_semantics = [#tpu.dimension_semantics<arbitrary>], iteration_bounds = array<i64: 2>, scalar_prefetch = 0 : i64, scratch_operands = 0 : i64, tpu.core_type = #tpu.core_type<tc>, window_params = [{transform_indices = @transform_0, window_bounds = array<i64: 1, 20, 64>}, {pipeline_mode = #tpu.pipeline_mode<synchronous>, transform_indices = @transform_1, window_bounds = array<i64: 9, 64, 64>}, {pipeline_mode = #tpu.pipeline_mode<synchronous>, transform_indices = @transform_2, window_bounds = array<i64: 1, 64>}, {pipeline_mode = #tpu.pipeline_mode<synchronous>, transform_indices = @transform_3, window_bounds = array<i64: 8, 1>}, {transform_indices = @transform_4, window_bounds = array<i64: 1, 8, 64>}, {pipeline_mode = #tpu.pipeline_mode<synchronous>, transform_indices = @transform_5, window_bounds = array<i64: 1, 64>}, {pipeline_mode = #tpu.pipeline_mode<synchronous>, transform_indices = @transform_6, window_bounds = array<i64: 1, 64>}]} {
    %c0 = arith.constant 0 : index
    %c0_0 = arith.constant 0 : index
    %c0_1 = arith.constant 0 : index
    %0 = vector.load %arg1[%c0, %c0_0, %c0_1] : memref<1x20x64xf32, #tpu.memory_space<vmem>>, vector<1x8x64xf32>
    %1 = vector.shape_cast %0 : vector<1x8x64xf32> to vector<8x64xf32>
    %c0_2 = arith.constant 0 : index
    %c0_3 = arith.constant 0 : index
    %c0_4 = arith.constant 0 : index
    %2 = vector.load %arg2[%c0_2, %c0_3, %c0_4] : memref<9x64x64xf32, #tpu.memory_space<vmem>>, vector<1x64x64xf32>
    %3 = vector.shape_cast %2 : vector<1x64x64xf32> to vector<64x64xf32>
    %cst = arith.constant dense<0.000000e+00> : vector<8x64xf32>
    %4 = tpu.matmul %1, %3, %cst {dimension_numbers = #tpu.dot_dimension_numbers<[1], [0], [0], [1], [0, 0, 1, 1], [], []>} : vector<8x64xf32>, vector<64x64xf32>, vector<8x64xf32> -> vector<8x64xf32>
    %c0_5 = arith.constant 0 : index
    %c1 = arith.constant 1 : index
    %c0_6 = arith.constant 0 : index
    %5 = vector.load %arg1[%c0_5, %c1, %c0_6] : memref<1x20x64xf32, #tpu.memory_space<vmem>>, vector<1x8x64xf32>
    %6 = vector.shape_cast %5 : vector<1x8x64xf32> to vector<8x64xf32>
    %c1_7 = arith.constant 1 : index
    %c0_8 = arith.constant 0 : index
    %c0_9 = arith.constant 0 : index
    %7 = vector.load %arg2[%c1_7, %c0_8, %c0_9] : memref<9x64x64xf32, #tpu.memory_space<vmem>>, vector<1x64x64xf32>
    %8 = vector.shape_cast %7 : vector<1x64x64xf32> to vector<64x64xf32>
    %cst_10 = arith.constant dense<0.000000e+00> : vector<8x64xf32>
    %9 = tpu.matmul %6, %8, %cst_10 {dimension_numbers = #tpu.dot_dimension_numbers<[1], [0], [0], [1], [0, 0, 1, 1], [], []>} : vector<8x64xf32>, vector<64x64xf32>, vector<8x64xf32> -> vector<8x64xf32>
    %10 = arith.addf %4, %9 : vector<8x64xf32>
    %c0_11 = arith.constant 0 : index
    %c2 = arith.constant 2 : index
    %c0_12 = arith.constant 0 : index
    %11 = vector.load %arg1[%c0_11, %c2, %c0_12] : memref<1x20x64xf32, #tpu.memory_space<vmem>>, vector<1x8x64xf32>
    %12 = vector.shape_cast %11 : vector<1x8x64xf32> to vector<8x64xf32>
    %c2_13 = arith.constant 2 : index
    %c0_14 = arith.constant 0 : index
    %c0_15 = arith.constant 0 : index
    %13 = vector.load %arg2[%c2_13, %c0_14, %c0_15] : memref<9x64x64xf32, #tpu.memory_space<vmem>>, vector<1x64x64xf32>
    %14 = vector.shape_cast %13 : vector<1x64x64xf32> to vector<64x64xf32>
    %cst_16 = arith.constant dense<0.000000e+00> : vector<8x64xf32>
    %15 = tpu.matmul %12, %14, %cst_16 {dimension_numbers = #tpu.dot_dimension_numbers<[1], [0], [0], [1], [0, 0, 1, 1], [], []>} : vector<8x64xf32>, vector<64x64xf32>, vector<8x64xf32> -> vector<8x64xf32>
    %16 = arith.addf %10, %15 : vector<8x64xf32>
    %c0_17 = arith.constant 0 : index
    %c4 = arith.constant 4 : index
    %c0_18 = arith.constant 0 : index
    %17 = vector.load %arg1[%c0_17, %c4, %c0_18] : memref<1x20x64xf32, #tpu.memory_space<vmem>>, vector<1x8x64xf32>
    %18 = vector.shape_cast %17 : vector<1x8x64xf32> to vector<8x64xf32>
    %c3 = arith.constant 3 : index
    %c0_19 = arith.constant 0 : index
    %c0_20 = arith.constant 0 : index
    %19 = vector.load %arg2[%c3, %c0_19, %c0_20] : memref<9x64x64xf32, #tpu.memory_space<vmem>>, vector<1x64x64xf32>
    %20 = vector.shape_cast %19 : vector<1x64x64xf32> to vector<64x64xf32>
    %cst_21 = arith.constant dense<0.000000e+00> : vector<8x64xf32>
    %21 = tpu.matmul %18, %20, %cst_21 {dimension_numbers = #tpu.dot_dimension_numbers<[1], [0], [0], [1], [0, 0, 1, 1], [], []>} : vector<8x64xf32>, vector<64x64xf32>, vector<8x64xf32> -> vector<8x64xf32>
    %22 = arith.addf %16, %21 : vector<8x64xf32>
    %c0_22 = arith.constant 0 : index
    %c5 = arith.constant 5 : index
    %c0_23 = arith.constant 0 : index
    %23 = vector.load %arg1[%c0_22, %c5, %c0_23] : memref<1x20x64xf32, #tpu.memory_space<vmem>>, vector<1x8x64xf32>
    %24 = vector.shape_cast %23 : vector<1x8x64xf32> to vector<8x64xf32>
    %c4_24 = arith.constant 4 : index
    %c0_25 = arith.constant 0 : index
    %c0_26 = arith.constant 0 : index
    %25 = vector.load %arg2[%c4_24, %c0_25, %c0_26] : memref<9x64x64xf32, #tpu.memory_space<vmem>>, vector<1x64x64xf32>
    %26 = vector.shape_cast %25 : vector<1x64x64xf32> to vector<64x64xf32>
    %cst_27 = arith.constant dense<0.000000e+00> : vector<8x64xf32>
    %27 = tpu.matmul %24, %26, %cst_27 {dimension_numbers = #tpu.dot_dimension_numbers<[1], [0], [0], [1], [0, 0, 1, 1], [], []>} : vector<8x64xf32>, vector<64x64xf32>, vector<8x64xf32> -> vector<8x64xf32>
    %28 = arith.addf %22, %27 : vector<8x64xf32>
    %c0_28 = arith.constant 0 : index
    %c6 = arith.constant 6 : index
    %c0_29 = arith.constant 0 : index
    %29 = vector.load %arg1[%c0_28, %c6, %c0_29] : memref<1x20x64xf32, #tpu.memory_space<vmem>>, vector<1x8x64xf32>
    %30 = vector.shape_cast %29 : vector<1x8x64xf32> to vector<8x64xf32>
    %c5_30 = arith.constant 5 : index
    %c0_31 = arith.constant 0 : index
    %c0_32 = arith.constant 0 : index
    %31 = vector.load %arg2[%c5_30, %c0_31, %c0_32] : memref<9x64x64xf32, #tpu.memory_space<vmem>>, vector<1x64x64xf32>
    %32 = vector.shape_cast %31 : vector<1x64x64xf32> to vector<64x64xf32>
    %cst_33 = arith.constant dense<0.000000e+00> : vector<8x64xf32>
    %33 = tpu.matmul %30, %32, %cst_33 {dimension_numbers = #tpu.dot_dimension_numbers<[1], [0], [0], [1], [0, 0, 1, 1], [], []>} : vector<8x64xf32>, vector<64x64xf32>, vector<8x64xf32> -> vector<8x64xf32>
    %34 = arith.addf %28, %33 : vector<8x64xf32>
    %c0_34 = arith.constant 0 : index
    %c8 = arith.constant 8 : index
    %c0_35 = arith.constant 0 : index
    %35 = vector.load %arg1[%c0_34, %c8, %c0_35] : memref<1x20x64xf32, #tpu.memory_space<vmem>>, vector<1x8x64xf32>
    %36 = vector.shape_cast %35 : vector<1x8x64xf32> to vector<8x64xf32>
    %c6_36 = arith.constant 6 : index
    %c0_37 = arith.constant 0 : index
    %c0_38 = arith.constant 0 : index
    %37 = vector.load %arg2[%c6_36, %c0_37, %c0_38] : memref<9x64x64xf32, #tpu.memory_space<vmem>>, vector<1x64x64xf32>
    %38 = vector.shape_cast %37 : vector<1x64x64xf32> to vector<64x64xf32>
    %cst_39 = arith.constant dense<0.000000e+00> : vector<8x64xf32>
    %39 = tpu.matmul %36, %38, %cst_39 {dimension_numbers = #tpu.dot_dimension_numbers<[1], [0], [0], [1], [0, 0, 1, 1], [], []>} : vector<8x64xf32>, vector<64x64xf32>, vector<8x64xf32> -> vector<8x64xf32>
    %40 = arith.addf %34, %39 : vector<8x64xf32>
    %c0_40 = arith.constant 0 : index
    %c9 = arith.constant 9 : index
    %c0_41 = arith.constant 0 : index
    %41 = vector.load %arg1[%c0_40, %c9, %c0_41] : memref<1x20x64xf32, #tpu.memory_space<vmem>>, vector<1x8x64xf32>
    %42 = vector.shape_cast %41 : vector<1x8x64xf32> to vector<8x64xf32>
    %c7 = arith.constant 7 : index
    %c0_42 = arith.constant 0 : index
    %c0_43 = arith.constant 0 : index
    %43 = vector.load %arg2[%c7, %c0_42, %c0_43] : memref<9x64x64xf32, #tpu.memory_space<vmem>>, vector<1x64x64xf32>
    %44 = vector.shape_cast %43 : vector<1x64x64xf32> to vector<64x64xf32>
    %cst_44 = arith.constant dense<0.000000e+00> : vector<8x64xf32>
    %45 = tpu.matmul %42, %44, %cst_44 {dimension_numbers = #tpu.dot_dimension_numbers<[1], [0], [0], [1], [0, 0, 1, 1], [], []>} : vector<8x64xf32>, vector<64x64xf32>, vector<8x64xf32> -> vector<8x64xf32>
    %46 = arith.addf %40, %45 : vector<8x64xf32>
    %c0_45 = arith.constant 0 : index
    %c10 = arith.constant 10 : index
    %c0_46 = arith.constant 0 : index
    %47 = vector.load %arg1[%c0_45, %c10, %c0_46] : memref<1x20x64xf32, #tpu.memory_space<vmem>>, vector<1x8x64xf32>
    %48 = vector.shape_cast %47 : vector<1x8x64xf32> to vector<8x64xf32>
    %c8_47 = arith.constant 8 : index
    %c0_48 = arith.constant 0 : index
    %c0_49 = arith.constant 0 : index
    %49 = vector.load %arg2[%c8_47, %c0_48, %c0_49] : memref<9x64x64xf32, #tpu.memory_space<vmem>>, vector<1x64x64xf32>
    %50 = vector.shape_cast %49 : vector<1x64x64xf32> to vector<64x64xf32>
    %cst_50 = arith.constant dense<0.000000e+00> : vector<8x64xf32>
    %51 = tpu.matmul %48, %50, %cst_50 {dimension_numbers = #tpu.dot_dimension_numbers<[1], [0], [0], [1], [0, 0, 1, 1], [], []>} : vector<8x64xf32>, vector<64x64xf32>, vector<8x64xf32> -> vector<8x64xf32>
    %52 = arith.addf %46, %51 : vector<8x64xf32>
    %c0_51 = arith.constant 0 : index
    %c0_52 = arith.constant 0 : index
    %53 = vector.load %arg3[%c0_51, %c0_52] : memref<1x64xf32, #tpu.memory_space<vmem>>, vector<1x64xf32>
    %54 = vector.broadcast %53 : vector<1x64xf32> to vector<8x64xf32>
    %55 = arith.addf %52, %54 : vector<8x64xf32>
    %c0_53 = arith.constant 0 : index
    %c0_54 = arith.constant 0 : index
    %c0_55 = arith.constant 0 : index
    %56 = vector.load %arg5[%c0_53, %c0_54, %c0_55] : memref<1x8x64xf32, #tpu.memory_space<vmem>>, vector<1x8x64xf32>
    %57 = vector.shape_cast %56 : vector<1x8x64xf32> to vector<8x64xf32>
    %58 = vector.shape_cast %55 : vector<8x64xf32> to vector<1x8x64xf32>
    tpu.vector_store %arg5[%c0_53, %c0_54, %c0_55], %58 {strides = array<i32>} : memref<1x8x64xf32, #tpu.memory_space<vmem>>, vector<1x8x64xf32>,
    %c0_56 = arith.constant 0 : index
    %c0_57 = arith.constant 0 : index
    %59 = vector.load %arg4[%c0_56, %c0_57] : memref<8x1xf32, #tpu.memory_space<vmem>>, vector<8x1xf32>
    %60 = vector.broadcast %59 : vector<8x1xf32> to vector<8x64xf32>
    %61 = arith.mulf %55, %60 : vector<8x64xf32>
    %cst_58 = arith.constant dense<0.000000e+00> : vector<64xf32>
    %62 = vector.multi_reduction <add>, %61, %cst_58 [0] : vector<8x64xf32> to vector<64xf32>
    %63 = vector.shape_cast %62 : vector<64xf32> to vector<1x64xf32>
    %64 = arith.mulf %61, %55 : vector<8x64xf32>
    %cst_59 = arith.constant dense<0.000000e+00> : vector<64xf32>
    %65 = vector.multi_reduction <add>, %64, %cst_59 [0] : vector<8x64xf32> to vector<64xf32>
    %66 = vector.shape_cast %65 : vector<64xf32> to vector<1x64xf32>
    %c0_i32 = arith.constant 0 : i32
    %67 = arith.cmpi eq, %arg0, %c0_i32 : i32
    %68 = arith.extui %67 : i1 to i32
    %c0_i32_60 = arith.constant 0 : i32
    %69 = arith.cmpi ne, %68, %c0_i32_60 : i32
    scf.if %69 {
      %cst_69 = arith.constant 0.000000e+00 : f32
      %76 = vector.broadcast %cst_69 : f32 to vector<1x64xf32>
      %c0_70 = arith.constant 0 : index
      %c0_71 = arith.constant 0 : index
      %77 = vector.load %arg6[%c0_70, %c0_71] : memref<1x64xf32, #tpu.memory_space<vmem>>, vector<1x64xf32>
      tpu.vector_store %arg6[%c0_70, %c0_71], %76 {strides = array<i32>} : memref<1x64xf32, #tpu.memory_space<vmem>>, vector<1x64xf32>,
      %cst_72 = arith.constant 0.000000e+00 : f32
      %78 = vector.broadcast %cst_72 : f32 to vector<1x64xf32>
      %c0_73 = arith.constant 0 : index
      %c0_74 = arith.constant 0 : index
      %79 = vector.load %arg7[%c0_73, %c0_74] : memref<1x64xf32, #tpu.memory_space<vmem>>, vector<1x64xf32>
      tpu.vector_store %arg7[%c0_73, %c0_74], %78 {strides = array<i32>} : memref<1x64xf32, #tpu.memory_space<vmem>>, vector<1x64xf32>,
    } else {
    }
    %c0_61 = arith.constant 0 : index
    %c0_62 = arith.constant 0 : index
    %70 = vector.load %arg6[%c0_61, %c0_62] : memref<1x64xf32, #tpu.memory_space<vmem>>, vector<1x64xf32>
    %71 = arith.addf %70, %63 : vector<1x64xf32>
    %c0_63 = arith.constant 0 : index
    %c0_64 = arith.constant 0 : index
    %72 = vector.load %arg6[%c0_63, %c0_64] : memref<1x64xf32, #tpu.memory_space<vmem>>, vector<1x64xf32>
    tpu.vector_store %arg6[%c0_63, %c0_64], %71 {strides = array<i32>} : memref<1x64xf32, #tpu.memory_space<vmem>>, vector<1x64xf32>,
    %c0_65 = arith.constant 0 : index
    %c0_66 = arith.constant 0 : index
    %73 = vector.load %arg7[%c0_65, %c0_66] : memref<1x64xf32, #tpu.memory_space<vmem>>, vector<1x64xf32>
    %74 = arith.addf %73, %66 : vector<1x64xf32>
    %c0_67 = arith.constant 0 : index
    %c0_68 = arith.constant 0 : index
    %75 = vector.load %arg7[%c0_67, %c0_68] : memref<1x64xf32, #tpu.memory_space<vmem>>, vector<1x64xf32>
    tpu.vector_store %arg7[%c0_67, %c0_68], %74 {strides = array<i32>} : memref<1x64xf32, #tpu.memory_space<vmem>>, vector<1x64xf32>,
    return
  }
  func.func @transform_0(%arg0: i32) -> (i32, i32, i32) {
    %c0_i32 = arith.constant 0 : i32
    %c0_i32_0 = arith.constant 0 : i32
    %c0_i32_1 = arith.constant 0 : i32
    return %arg0, %c0_i32, %c0_i32_0 : i32, i32, i32
  }
  func.func @transform_1(%arg0: i32) -> (i32, i32, i32) {
    %c0_i32 = arith.constant 0 : i32
    %c0_i32_0 = arith.constant 0 : i32
    %c0_i32_1 = arith.constant 0 : i32
    %c0_i32_2 = arith.constant 0 : i32
    return %c0_i32, %c0_i32_0, %c0_i32_1 : i32, i32, i32
  }
  func.func @transform_2(%arg0: i32) -> (i32, i32) {
    %c0_i32 = arith.constant 0 : i32
    %c0_i32_0 = arith.constant 0 : i32
    %c0_i32_1 = arith.constant 0 : i32
    return %c0_i32, %c0_i32_0 : i32, i32
  }
  func.func @transform_3(%arg0: i32) -> (i32, i32) {
    %c0_i32 = arith.constant 0 : i32
    %c0_i32_0 = arith.constant 0 : i32
    %c0_i32_1 = arith.constant 0 : i32
    return %c0_i32, %c0_i32_0 : i32, i32
  }
  func.func @transform_4(%arg0: i32) -> (i32, i32, i32) {
    %c0_i32 = arith.constant 0 : i32
    %c0_i32_0 = arith.constant 0 : i32
    %c0_i32_1 = arith.constant 0 : i32
    return %arg0, %c0_i32, %c0_i32_0 : i32, i32, i32
  }
  func.func @transform_5(%arg0: i32) -> (i32, i32) {
    %c0_i32 = arith.constant 0 : i32
    %c0_i32_0 = arith.constant 0 : i32
    %c0_i32_1 = arith.constant 0 : i32
    return %c0_i32, %c0_i32_0 : i32, i32
  }
  func.func @transform_6(%arg0: i32) -> (i32, i32) {
    %c0_i32 = arith.constant 0 : i32
    %c0_i32_0 = arith.constant 0 : i32
    %c0_i32_1 = arith.constant 0 : i32
    return %c0_i32, %c0_i32_0 : i32, i32
  }
}

</mosaic_0001>

<bundles_post_ra>
// kernel: convnet_forward.9
= control target key start
LH: loop header
LB: loop body
LE: loop exit
PB: predicated region body
PF: predicated region fallthrough
CT: control target
= control target key end

     0   :  { %s728_s27 = smov 0   ;;  %s899_s0 = inlined_call_operand.vmem [shape: f32[2,8,8,64], index: 0, kind: input, shape index: {}]   ;;  %s900_s1 = inlined_call_operand.vmem [shape: f32[2,8,8,64], index: 1, kind: input, shape index: {}]   ;;  %s901_s2 = inlined_call_operand.vmem [shape: f32[2,8,8,64], index: 2, kind: input, shape index: {}]   ;;  %s902_s3 = inlined_call_operand.vmem [shape: f32[2,8,8,64], index: 3, kind: input, shape index: {}]   ;;  %s903_s4 = inlined_call_operand.vmem [shape: f32[1,64], index: 4, kind: input, shape index: {}]   ;;  %s904_s5 = inlined_call_operand.vmem [shape: f32[1,64], index: 5, kind: input, shape index: {}]   ;;  %s905_s6 = inlined_call_operand.vmem [shape: f32[1,64], index: 6, kind: input, shape index: {}]   ;;  %s906_s7 = inlined_call_operand.vmem [shape: f32[1,64], index: 7, kind: input, shape index: {}]   ;;  %s907_s8 = inlined_call_operand.vmem [shape: f32[2,8,8,64], index: 8, kind: output, shape index: {}]  }
   0x1 LB: > { %s643_s28 = sadd.s32 4294967295, %s681_s27   ;;  %p647_p0 = scmp.ge.s32.totalorder %s681_s27, 1  ;;  %s681_s27 = sphi %s728_s27, %s18_s27  }
   0x2   : > { %p292_p1 = scmp.lt.s32.totalorder %s681_s27, 3 }
   0x4   : > { %p293_p2 = pnand %p647_p0, %p292_p1 }
   0x5   : > { %p341_p3 = scmp.lt.s32.totalorder (!%p293_p2), %s643_s28, 1 }
   0x6   : > { %296 = sbr.rel (%p293_p2) target bundleno = 75 (0x4b), region = 52 }
   0xb   : > { %v366_v0 = vld [vmem:[%s903_s4] sm:$0x1]  ;;  %s909_s28 = smov (!%p341_p3, %s643_s28), 1  ;;  %v388_v7 = vlaneseq  ;;  %vm543_vm0 = vcmask 523264  }
   0xc   : > { %v368_v1 = vld [vmem:[%s904_s5] sm:$0x1]  ;;  %v367_v2 = vmul.f32 0.001953125, %v366_v0  ;;  %s742_s11 = sshll.u32 %s909_s28, 6 }
   0xd   : > { %v369_v3 = vmul.f32 0.001953125, %v368_v1  ;;  %v389_v8 = vshrl.u32 %v388_v7, 7  ;;  %s748_s14 = scalar_lea.vmem %s899_s0, %s742_s11  ;;  %s754_s17 = scalar_lea.vmem %s900_s1, %s742_s11  ;;  %v374_v9 = vld [vmem:[%s905_s6] sm:$0x1] }
   0xe   : > { %v370_v4 = vmul.f32 %v367_v2, %v367_v2  ;;  %s763_s22 = scalar_lea.vmem %s901_s2, %s742_s11  ;;  %s769_s25 = scalar_lea.vmem %s902_s3, %s742_s11  ;;  %v376_v13 = vld [vmem:[%s906_s7] sm:$0x1]  ;;  %v380_v18 = vld [vmem:[%s748_s14 + $0x8] sm:$0xff]  ;;  %v381_v24 = vld [vmem:[%s748_s14 + $0x10] sm:$0xff] }
   0xf   : > { %v390_v10 = vsub.s32 0, %v389_v8  ;;  %v379_v14 = vld [vmem:[%s748_s14] sm:$0xff]  ;;  %v424_v21 = vld [vmem:[%s754_s17 + $0x8] sm:$0xff]  ;;  %v425_v25 = vld [vmem:[%s754_s17 + $0x10] sm:$0xff]  ;;  %s820_s9 = scalar_lea.vmem %s907_s8, %s742_s11 }
  0x10   : > { %v371_v5 = vsub.f32 %v369_v3, %v370_v4  ;;  %v423_v15 = vld [vmem:[%s754_s17] sm:$0xff]  ;;  %v464_v22 = vld [vmem:[%s763_s22 + $0x8] sm:$0xff]  ;;  %v465_v26 = vld [vmem:[%s763_s22 + $0x10] sm:$0xff] }
  0x11   : > { %v463_v16 = vld [vmem:[%s763_s22] sm:$0xff]  ;;  %v496_v23 = vld [vmem:[%s769_s25 + $0x8] sm:$0xff]  ;;  %v497_v31 = vld [vmem:[%s769_s25 + $0x10] sm:$0xff] }
  0x12   : > { %v372_v6 = vadd.f32 1e-05, %v371_v5  ;;  %v495_v17 = vld [vmem:[%s769_s25] sm:$0xff]  ;;  %v382_v32 = vld [vmem:[%s748_s14 + $0x18] sm:$0xff] }
  0x13   : > { %v426_v33 = vld [vmem:[%s754_s17 + $0x18] sm:$0xff] }
  0x14   : > { %673 = vrsqrt.f32 %v372_v6  ;;  %v466_v6 = vld [vmem:[%s763_s22 + $0x18] sm:$0xff] }
  0x15   : > { %v498_v7 = vld [vmem:[%s769_s25 + $0x18] sm:$0xff] }
  0x21   : > { %v674_v11 = vpop.eup %673 }
  0x22   : > { %v375_v12 = vmul.f32 %v674_v11, %v374_v9 }
  0x24   : > { %v377_v19 = vmul.f32 %v375_v12, %v367_v2  ;;  %v779_v20 = vrot.slane %v375_v12, %v390_v10  ;;  %v383_v12 = vld [vmem:[%s748_s14 + $0x20] sm:$0xff] }
  0x26   : > { %v378_v27 = vsub.f32 %v376_v13, %v377_v19  ;;  %v393_v28 = vmul.f32 %v779_v20, %v379_v14  ;;  %v431_v29 = vmul.f32 %v423_v15, %v779_v20  ;;  %v471_v30 = vmul.f32 %v463_v16, %v779_v20  ;;  %v427_v13 = vld [vmem:[%s754_s17 + $0x20] sm:$0xff] }
  0x27   : > { %v503_v34 = vmul.f32 %v495_v17, %v779_v20  ;;  %v394_v35 = vmul.f32 %v779_v20, %v380_v18  ;;  %v432_v36 = vmul.f32 %v424_v21, %v779_v20  ;;  %v472_v37 = vmul.f32 %v464_v22, %v779_v20  ;;  %v467_v18 = vld [vmem:[%s763_s22 + $0x20] sm:$0xff] }
  0x28   : > { %v797_v38 = vrot.slane %v378_v27, %v390_v10  ;;  %v504_v39 = vmul.f32 %v496_v23, %v779_v20  ;;  %v395_v40 = vmul.f32 %v779_v20, %v381_v24  ;;  %v433_v41 = vmul.f32 %v425_v25, %v779_v20  ;;  %v499_v19 = vld [vmem:[%s769_s25 + $0x20] sm:$0xff] }
  0x29   : > { %v473_v42 = vmul.f32 %v465_v26, %v779_v20  ;;  %v505_v43 = vmul.f32 %v497_v31, %v779_v20  ;;  %v396_v44 = vmul.f32 %v779_v20, %v382_v32  ;;  %v434_v45 = vmul.f32 %v426_v33, %v779_v20  ;;  %v384_v33 = vld [vmem:[%s748_s14 + $0x28] sm:$0xff] }
  0x2a   : > { %v407_v46 = vadd.f32 %v797_v38, %v393_v28  ;;  %v439_v47 = vadd.f32 %v431_v29, %v797_v38  ;;  %v479_v48 = vadd.f32 %v471_v30, %v797_v38  ;;  %v511_v49 = vadd.f32 %v503_v34, %v797_v38  ;;  %v428_v34 = vld [vmem:[%s754_s17 + $0x28] sm:$0xff] }
  0x2b   : > { %v408_v50 = vadd.f32 %v797_v38, %v394_v35  ;;  %v440_v51 = vadd.f32 %v432_v36, %v797_v38  ;;  %v480_v52 = vadd.f32 %v472_v37, %v797_v38  ;;  %v512_v53 = vadd.f32 %v504_v39, %v797_v38 }
  0x2c   : > { %v415_v54 = vmax.f32 %v407_v46, 0.0  ;;  %v447_v55 = vmax.f32 %v439_v47, 0.0  ;;  %v487_v56 = vmax.f32 %v479_v48, 0.0  ;;  %v519_v57 = vmax.f32 %v511_v49, 0.0 }
  0x2d   : > { %v416_v58 = vmax.f32 %v408_v50, 0.0  ;;  %v448_v59 = vmax.f32 %v440_v51, 0.0  ;;  %v488_v60 = vmax.f32 %v480_v52, 0.0  ;;  %v520_v61 = vmax.f32 %v512_v53, 0.0  ;;  %v385_v50 = vld [vmem:[%s748_s14 + $0x30] sm:$0xff] }
  0x2e   : > { %v455_v62 = vmax.f32 %v415_v54, %v447_v55  ;;  %v527_v63 = vmax.f32 %v487_v56, %v519_v57  ;;  %v409_v0 = vadd.f32 %v797_v38, %v395_v40  ;;  %v441_v1 = vadd.f32 %v433_v41, %v797_v38  ;;  %v468_v40 = vld [vmem:[%s763_s22 + $0x28] sm:$0xff]  ;;  %v429_v55 = vld [vmem:[%s754_s17 + $0x30] sm:$0xff] }
  0x2f   : > { %v456_v2 = vmax.f32 %v416_v58, %v448_v59  ;;  %v528_v3 = vmax.f32 %v488_v60, %v520_v61  ;;  %v481_v4 = vadd.f32 %v473_v42, %v797_v38  ;;  %v513_v5 = vadd.f32 %v505_v43, %v797_v38  ;;  %v469_v60 = vld [vmem:[%s763_s22 + $0x30] sm:$0xff] }
  0x30   : > { %v535_v8 = vmax.f32 %v455_v62, %v527_v63  ;;  %v417_v9 = vmax.f32 %v409_v0, 0.0  ;;  %v449_v10 = vmax.f32 %v441_v1, 0.0  ;;  %v410_v11 = vadd.f32 %v797_v38, %v396_v44  ;;  %v501_v1 = vld [vmem:[%s769_s25 + $0x30] sm:$0xff] }
  0x31   : > { %v536_v14 = vmax.f32 %v456_v2, %v528_v3  ;;  %v489_v15 = vmax.f32 %v481_v4, 0.0  ;;  %v521_v16 = vmax.f32 %v513_v5, 0.0  ;;  %v442_v17 = vadd.f32 %v434_v45, %v797_v38  ;;  %v500_v45 = vld [vmem:[%s769_s25 + $0x28] sm:$0xff] }
  0x32   : > { %544 = vst.msk [vmem:[%s820_s9] sm:$0xff] %vm543_vm0, %v535_v8  ;;  %v457_v21 = vmax.f32 %v417_v9, %v449_v10  ;;  %v418_v22 = vmax.f32 %v410_v11, 0.0  ;;  %v474_v23 = vmul.f32 %v466_v6, %v779_v20  ;;  %v506_v24 = vmul.f32 %v498_v7, %v779_v20  ;;  %v386_v6 = vld [vmem:[%s748_s14 + $0x38] sm:$0xff] }
  0x33   : > { %545 = vst.msk [vmem:[%s820_s9 + $0x8] sm:$0xff] %vm543_vm0, %v536_v14  ;;  %v529_v25 = vmax.f32 %v489_v15, %v521_v16  ;;  %v450_v26 = vmax.f32 %v442_v17, 0.0  ;;  %v397_v27 = vmul.f32 %v779_v20, %v383_v12  ;;  %v435_v28 = vmul.f32 %v427_v13, %v779_v20  ;;  %v430_v7 = vld [vmem:[%s754_s17 + $0x38] sm:$0xff] }
  0x34   : > { %v482_v29 = vadd.f32 %v474_v23, %v797_v38  ;;  %v514_v30 = vadd.f32 %v506_v24, %v797_v38  ;;  %v475_v31 = vmul.f32 %v467_v18, %v779_v20  ;;  %v507_v32 = vmul.f32 %v499_v19, %v779_v20  ;;  %v470_v12 = vld [vmem:[%s763_s22 + $0x38] sm:$0xff] }
  0x35   : > { %v537_v35 = vmax.f32 %v457_v21, %v529_v25  ;;  %v458_v36 = vmax.f32 %v418_v22, %v450_v26  ;;  %v411_v37 = vadd.f32 %v797_v38, %v397_v27  ;;  %v443_v39 = vadd.f32 %v435_v28, %v797_v38  ;;  %v502_v17 = vld [vmem:[%s769_s25 + $0x38] sm:$0xff] }
  0x36   : > { %v490_v41 = vmax.f32 %v482_v29, 0.0  ;;  %v522_v42 = vmax.f32 %v514_v30, 0.0  ;;  %v483_v43 = vadd.f32 %v475_v31, %v797_v38  ;;  %v515_v44 = vadd.f32 %v507_v32, %v797_v38 }
  0x37   : > { %546 = vst.msk [vmem:[%s820_s9 + $0x10] sm:$0xff] %vm543_vm0, %v537_v35  ;;  %v419_v46 = vmax.f32 %v411_v37, 0.0  ;;  %v451_v47 = vmax.f32 %v443_v39, 0.0  ;;  %v398_v48 = vmul.f32 %v779_v20, %v384_v33  ;;  %v436_v49 = vmul.f32 %v428_v34, %v779_v20 }
  0x38   : > { %v530_v51 = vmax.f32 %v490_v41, %v522_v42  ;;  %v491_v52 = vmax.f32 %v483_v43, 0.0  ;;  %v523_v53 = vmax.f32 %v515_v44, 0.0  ;;  %v476_v54 = vmul.f32 %v468_v40, %v779_v20 }
  0x39   : > { %v459_v56 = vmax.f32 %v419_v46, %v451_v47  ;;  %v412_v57 = vadd.f32 %v797_v38, %v398_v48  ;;  %v444_v58 = vadd.f32 %v436_v49, %v797_v38  ;;  %v508_v59 = vmul.f32 %v500_v45, %v779_v20 }
  0x3a   : > { %v538_v61 = vmax.f32 %v458_v36, %v530_v51  ;;  %v531_v62 = vmax.f32 %v491_v52, %v523_v53  ;;  %v484_v63 = vadd.f32 %v476_v54, %v797_v38  ;;  %v399_v0 = vmul.f32 %v779_v20, %v385_v50 }
  0x3b   : > { %v420_v2 = vmax.f32 %v412_v57, 0.0  ;;  %v452_v3 = vmax.f32 %v444_v58, 0.0  ;;  %v516_v4 = vadd.f32 %v508_v59, %v797_v38  ;;  %v437_v5 = vmul.f32 %v429_v55, %v779_v20 }
  0x3c   : > { %547 = vst.msk [vmem:[%s820_s9 + $0x18] sm:$0xff] %vm543_vm0, %v538_v61  ;;  %v539_v8 = vmax.f32 %v459_v56, %v531_v62  ;;  %v492_v9 = vmax.f32 %v484_v63, 0.0  ;;  %v413_v10 = vadd.f32 %v797_v38, %v399_v0  ;;  %v477_v11 = vmul.f32 %v469_v60, %v779_v20 }
  0x3d   : > { %v460_v13 = vmax.f32 %v420_v2, %v452_v3  ;;  %v524_v14 = vmax.f32 %v516_v4, 0.0  ;;  %v445_v15 = vadd.f32 %v437_v5, %v797_v38  ;;  %v509_v16 = vmul.f32 %v501_v1, %v779_v20 }
  0x3e   : > { %548 = vst.msk [vmem:[%s820_s9 + $0x20] sm:$0xff] %vm543_vm0, %v539_v8  ;;  %v421_v18 = vmax.f32 %v413_v10, 0.0  ;;  %v485_v19 = vadd.f32 %v477_v11, %v797_v38  ;;  %v400_v21 = vmul.f32 %v779_v20, %v386_v6  ;;  %v438_v22 = vmul.f32 %v430_v7, %v779_v20 }
  0x3f   : > { %v532_v23 = vmax.f32 %v492_v9, %v524_v14  ;;  %v453_v24 = vmax.f32 %v445_v15, 0.0  ;;  %v517_v25 = vadd.f32 %v509_v16, %v797_v38  ;;  %v478_v26 = vmul.f32 %v470_v12, %v779_v20 }
  0x40   : > { %v493_v27 = vmax.f32 %v485_v19, 0.0  ;;  %v414_v28 = vadd.f32 %v797_v38, %v400_v21  ;;  %v446_v29 = vadd.f32 %v438_v22, %v797_v38  ;;  %v510_v30 = vmul.f32 %v502_v17, %v779_v20 }
  0x41   : > { %v540_v31 = vmax.f32 %v460_v13, %v532_v23  ;;  %v461_v32 = vmax.f32 %v421_v18, %v453_v24  ;;  %v525_v33 = vmax.f32 %v517_v25, 0.0  ;;  %v486_v34 = vadd.f32 %v478_v26, %v797_v38 }
  0x42   : > { %v422_v35 = vmax.f32 %v414_v28, 0.0  ;;  %v454_v36 = vmax.f32 %v446_v29, 0.0  ;;  %v518_v37 = vadd.f32 %v510_v30, %v797_v38 }
  0x43   : > { %549 = vst.msk [vmem:[%s820_s9 + $0x28] sm:$0xff] %vm543_vm0, %v540_v31  ;;  %v533_v39 = vmax.f32 %v493_v27, %v525_v33  ;;  %v494_v40 = vmax.f32 %v486_v34, 0.0 }
  0x44   : > { %v462_v41 = vmax.f32 %v422_v35, %v454_v36  ;;  %v526_v42 = vmax.f32 %v518_v37, 0.0 }
  0x45   : > { %v541_v43 = vmax.f32 %v461_v32, %v533_v39 }
  0x46   : > { %v534_v44 = vmax.f32 %v494_v40, %v526_v42 }
  0x47   : > { %550 = vst.msk [vmem:[%s820_s9 + $0x30] sm:$0xff] %vm543_vm0, %v541_v43 }
  0x48   : > { %v542_v20 = vmax.f32 %v462_v41, %v534_v44 }
  0x4a   : > { %551 = vst.msk [vmem:[%s820_s9 + $0x38] sm:$0xff] %vm543_vm0, %v542_v20 }
  0x4b PF: > { %s18_s27 = sadd.s32 1, %s681_s27  }
  0x4c   : > { %p15_p4 = scmp.ge.s32.totalorder %s18_s27, 4  }
  0x4e   :  { %17 = sbr.rel (!%p15_p4) target bundleno = 1 (0x1), region = 91 }

// kernel: convnet_forward.8
= control target key start
LH: loop header
LB: loop body
LE: loop exit
PB: predicated region body
PF: predicated region fallthrough
CT: control target
= control target key end

     0   :  { %s5899_s21 = smov 0   ;;  %s7522_s0 = inlined_call_operand.vmem [shape: f32[2,342,3], index: 0, kind: input, shape index: {}]   ;;  %s7523_s1 = inlined_call_operand.vmem [shape: f32[9,3,64], index: 1, kind: input, shape index: {}]   ;;  %s7524_s2 = inlined_call_operand.vmem [shape: f32[1,64], index: 2, kind: input, shape index: {}]   ;;  %s7525_s3 = inlined_call_operand.vmem [shape: f32[288,1], index: 3, kind: input, shape index: {}]   ;;  %s7526_s4 = inlined_call_operand.vmem [shape: f32[2,288,64], index: 4, kind: output, shape index: {0}]   ;;  %s7527_s5 = inlined_call_operand.vmem [shape: f32[1,64], index: 5, kind: output, shape index: {1}]   ;;  %s7528_s6 = inlined_call_operand.vmem [shape: f32[1,64], index: 6, kind: output, shape index: {2}]  }
   0x1 LB: > { %s5905_s22 = sadd.s32 4294967295, %s5860_s21   ;;  %p4653_p0 = scmp.ge.s32.totalorder %s5860_s21, 1  ;;  %s5860_s21 = sphi %s5899_s21, %s17_s21  }
   0x2   : > { %p207_p1 = scmp.lt.s32.totalorder %s5860_s21, 3 }
   0x4   : > { %p208_p2 = pnand %p4653_p0, %p207_p1 }
   0x5   : > { %p237_p3 = scmp.lt.s32.totalorder (!%p208_p2), %s5905_s22, 1  ;;  %p4998_p4 = scmp.ne.s32.totalorder (!%p208_p2), %s5905_s22, 0 }
   0x6   : > { %211 = sbr.rel (%p208_p2) target bundleno = 580 (0x244), region = 36 }
   0xb   : > { %v4656_v0 = vld [vmem:[%s7523_s1 + $0x4] sm:$0x7]  ;;  %vm431_vm0 = vcmask 1042432   ;;  %v283_v1 = vld [vmem:[%s7523_s1] sm:$0x7]  ;;  %s5924_s29 = scalar_select %p237_p3, %s5905_s22, 1 }
   0xc   : > { %5838 = vmatprep.subr.msk.mxu1 %vm431_vm0, %v4656_v0  ;;  %5334 = vmatprep.subr.msk.mxu0 %vm431_vm0, %v4656_v0  ;;  %v4731_v2 = vld [vmem:[%s7523_s1 + $0x8] sm:$0x7]  ;;  %vm322_vm1 = vcmask 23552   ;;  %v5947_v9 = vld [vmem:[%s7523_s1 + $0xc] sm:$0x7]  ;;  %vm4089_vm2 = vcmask 523264  }
   0xd   : > { %5839 = vmatpush3.msk.msra.mxu1 %vm431_vm0, %v4656_v0  ;;  %5335 = vmatpush3.msk.msra.mxu0 %vm431_vm0, %v4656_v0  ;;  %s5840_s30 = smul.u32 344, %s5924_s29  ;;  %v5952_v10 = vld [vmem:[%s7523_s1 + $0x10] sm:$0x7]  ;;  %v6037_v47 = vld [vmem:[%s7523_s1 + $0x14] sm:$0x7] }
   0xe   : > { %5390 = vmatprep.subr.msk.mxu1 %vm431_vm0, %v283_v1  ;;  %5446 = vmatprep.subr.msk.mxu0 %vm431_vm0, %v4731_v2  ;;  %v6042_v48 = vld [vmem:[%s7523_s1 + $0x18] sm:$0x7] }
   0xf   : > { %s5932_s9 = scalar_lea.vmem %s7522_s0, %s5840_s30 }
  0x10   : > { %v284_v3 = vld [vmem:[%s5932_s9 + $0x1] sm:$0xff]  ;;  %v302_v4 = vld [vmem:[%s5932_s9 + $0x91] sm:$0xff]  ;;  %v285_v5 = vld [vmem:[%s5932_s9 + $0x9] sm:$0xff] }
  0x11   : > { %5336 = vmatprep.mubr.msk.f32.mxu0 %vm322_vm1, %v284_v3  ;;  %5363 = vmatprep.mubr.msk.f32.mxu1 %vm322_vm1, %v302_v4  ;;  %v303_v6 = vld [vmem:[%s5932_s9 + $0x99] sm:$0xff]  ;;  %v286_v7 = vld [vmem:[%s5932_s9 + $0x11] sm:$0xff]  ;;  %v304_v8 = vld [vmem:[%s5932_s9 + $0xa1] sm:$0xff] }
  0x12   : > { %5337 = vmatmul.mubr.msk.f32.vlgmr.msra.gmra.mxu0 %vm322_vm1, %v285_v5  ;;  %5364 = vmatmul.mubr.msk.f32.vlgmr.msra.gmra.mxu1 %vm322_vm1, %v303_v6  ;;  %v287_v11 = vld [vmem:[%s5932_s9 + $0x19] sm:$0xff]  ;;  %v305_v12 = vld [vmem:[%s5932_s9 + $0xa9] sm:$0xff]  ;;  %v288_v13 = vld [vmem:[%s5932_s9 + $0x21] sm:$0xff] }
  0x13   : > { %5391 = vmatpush3.msk.msra.mxu1 %vm431_vm0, %v283_v1  ;;  %5447 = vmatpush3.msk.msra.mxu0 %vm431_vm0, %v4731_v2  ;;  %v306_v14 = vld [vmem:[%s5932_s9 + $0xb1] sm:$0xff]  ;;  %v289_v15 = vld [vmem:[%s5932_s9 + $0x29] sm:$0xff]  ;;  %v307_v16 = vld [vmem:[%s5932_s9 + $0xb9] sm:$0xff] }
  0x14   : > { %5339 = vmatprep.mubr.msk.f32.mxu0 %vm322_vm1, %v286_v7  ;;  %5366 = vmatprep.mubr.msk.f32.mxu1 %vm322_vm1, %v304_v8  ;;  %v290_v17 = vld [vmem:[%s5932_s9 + $0x31] sm:$0xff]  ;;  %v308_v18 = vld [vmem:[%s5932_s9 + $0xc1] sm:$0xff]  ;;  %v291_v19 = vld [vmem:[%s5932_s9 + $0x39] sm:$0xff] }
  0x15   : > { %5502 = vmatprep.subr.msk.mxu1 %vm431_vm0, %v5947_v9  ;;  %5558 = vmatprep.subr.msk.mxu0 %vm431_vm0, %v5952_v10  ;;  %v309_v20 = vld [vmem:[%s5932_s9 + $0xc9] sm:$0xff]  ;;  %v292_v21 = vld [vmem:[%s5932_s9 + $0x41] sm:$0xff]  ;;  %v310_v22 = vld [vmem:[%s5932_s9 + $0xd1] sm:$0xff] }
  0x16   : > { %5340 = vmatmul.mubr.msk.f32.gmra.mxu0 %vm322_vm1, %v287_v11  ;;  %5367 = vmatmul.mubr.msk.f32.gmra.mxu1 %vm322_vm1, %v305_v12  ;;  %v293_v23 = vld [vmem:[%s5932_s9 + $0x49] sm:$0xff]  ;;  %v311_v24 = vld [vmem:[%s5932_s9 + $0xd9] sm:$0xff]  ;;  %v294_v25 = vld [vmem:[%s5932_s9 + $0x51] sm:$0xff] }
  0x17   : > { %5342 = vmatprep.mubr.msk.f32.mxu0 %vm322_vm1, %v288_v13  ;;  %5369 = vmatprep.mubr.msk.f32.mxu1 %vm322_vm1, %v306_v14  ;;  %v312_v26 = vld [vmem:[%s5932_s9 + $0xe1] sm:$0xff]  ;;  %v295_v27 = vld [vmem:[%s5932_s9 + $0x59] sm:$0xff]  ;;  %v313_v28 = vld [vmem:[%s5932_s9 + $0xe9] sm:$0xff] }
  0x18   : > { %v296_v29 = vld [vmem:[%s5932_s9 + $0x61] sm:$0xff]  ;;  %v314_v30 = vld [vmem:[%s5932_s9 + $0xf1] sm:$0xff]  ;;  %v297_v31 = vld [vmem:[%s5932_s9 + $0x69] sm:$0xff] }
  0x19   : > { %v315_v32 = vld [vmem:[%s5932_s9 + $0xf9] sm:$0xff]  ;;  %v298_v33 = vld [vmem:[%s5932_s9 + $0x71] sm:$0xff]  ;;  %v316_v34 = vld [vmem:[%s5932_s9 + $0x101] sm:$0xff] }
  0x1a   : > { %5343 = vmatmul.mubr.msk.f32.gmra.mxu0 %vm322_vm1, %v289_v15  ;;  %5370 = vmatmul.mubr.msk.f32.gmra.mxu1 %vm322_vm1, %v307_v16  ;;  %v299_v35 = vld [vmem:[%s5932_s9 + $0x79] sm:$0xff]  ;;  %v317_v36 = vld [vmem:[%s5932_s9 + $0x109] sm:$0xff]  ;;  %v300_v37 = vld [vmem:[%s5932_s9 + $0x81] sm:$0xff] }
  0x1b   : > { %5345 = vmatprep.mubr.msk.f32.mxu0 %vm322_vm1, %v290_v17  ;;  %5372 = vmatprep.mubr.msk.f32.mxu1 %vm322_vm1, %v308_v18  ;;  %v318_v38 = vld [vmem:[%s5932_s9 + $0x111] sm:$0xff]  ;;  %v301_v39 = vld [vmem:[%s5932_s9 + $0x89] sm:$0xff]  ;;  %v319_v40 = vld [vmem:[%s5932_s9 + $0x119] sm:$0xff] }
  0x1c   : > { %v247_v41 = vld [vmem:[%s5932_s9] sm:$0xff]  ;;  %v248_v43 = vld [vmem:[%s5932_s9 + $0x8] sm:$0xff]  ;;  %v249_v45 = vld [vmem:[%s5932_s9 + $0x10] sm:$0xff] }
  0x1d   : > { %v1036_v42 = vld [vmem:[%s5932_s9 + $0x2] sm:$0xff]  ;;  %v1037_v44 = vld [vmem:[%s5932_s9 + $0xa] sm:$0xff]  ;;  %v6030_v46 = vld [vmem:[%s5932_s9 + $0x12] sm:$0xff] }
  0x1e   : > { %5346 = vmatmul.mubr.msk.f32.gmra.mxu0 %vm322_vm1, %v291_v19  ;;  %5373 = vmatmul.mubr.msk.f32.gmra.mxu1 %vm322_vm1, %v309_v20  ;;  %v250_v49 = vld [vmem:[%s5932_s9 + $0x18] sm:$0xff]  ;;  %v251_v51 = vld [vmem:[%s5932_s9 + $0x20] sm:$0xff]  ;;  %v252_v53 = vld [vmem:[%s5932_s9 + $0x28] sm:$0xff] }
  0x1f   : > { %5348 = vmatprep.mubr.msk.f32.mxu0 %vm322_vm1, %v292_v21  ;;  %5375 = vmatprep.mubr.msk.f32.mxu1 %vm322_vm1, %v310_v22  ;;  %v6050_v50 = vld [vmem:[%s5932_s9 + $0x1a] sm:$0xff]  ;;  %v6057_v52 = vld [vmem:[%s5932_s9 + $0x22] sm:$0xff]  ;;  %v6071_v54 = vld [vmem:[%s5932_s9 + $0x2a] sm:$0xff] }
  0x20   : > { %v253_v55 = vld [vmem:[%s5932_s9 + $0x30] sm:$0xff]  ;;  %v254_v57 = vld [vmem:[%s5932_s9 + $0x38] sm:$0xff]  ;;  %v255_v59 = vld [vmem:[%s5932_s9 + $0x40] sm:$0xff] }
  0x21   : > { %v6075_v56 = vld [vmem:[%s5932_s9 + $0x32] sm:$0xff]  ;;  %v6085_v58 = vld [vmem:[%s5932_s9 + $0x3a] sm:$0xff]  ;;  %v6089_v60 = vld [vmem:[%s5932_s9 + $0x42] sm:$0xff] }
  0x22   : > { %5349 = vmatmul.mubr.msk.f32.gmra.mxu0 %vm322_vm1, %v293_v23  ;;  %5376 = vmatmul.mubr.msk.f32.gmra.mxu1 %vm322_vm1, %v311_v24  ;;  %v256_v61 = vld [vmem:[%s5932_s9 + $0x48] sm:$0xff]  ;;  %v257_v63 = vld [vmem:[%s5932_s9 + $0x50] sm:$0xff]  ;;  %v258_v1 = vld [vmem:[%s5932_s9 + $0x58] sm:$0xff] }
  0x23   : > { %5351 = vmatprep.mubr.msk.f32.mxu0 %vm322_vm1, %v294_v25  ;;  %5378 = vmatprep.mubr.msk.f32.mxu1 %vm322_vm1, %v312_v26  ;;  %v6099_v62 = vld [vmem:[%s5932_s9 + $0x4a] sm:$0xff]  ;;  %v6103_v0 = vld [vmem:[%s5932_s9 + $0x52] sm:$0xff]  ;;  %v6113_v2 = vld [vmem:[%s5932_s9 + $0x5a] sm:$0xff] }
  0x24   : > { %v259_v3 = vld [vmem:[%s5932_s9 + $0x60] sm:$0xff]  ;;  %v260_v5 = vld [vmem:[%s5932_s9 + $0x68] sm:$0xff]  ;;  %v261_v7 = vld [vmem:[%s5932_s9 + $0x70] sm:$0xff] }
  0x25   : > { %v6117_v4 = vld [vmem:[%s5932_s9 + $0x62] sm:$0xff]  ;;  %v6127_v6 = vld [vmem:[%s5932_s9 + $0x6a] sm:$0xff]  ;;  %v6131_v8 = vld [vmem:[%s5932_s9 + $0x72] sm:$0xff] }
  0x26   : > { %5352 = vmatmul.mubr.msk.f32.gmra.mxu0 %vm322_vm1, %v295_v27  ;;  %5379 = vmatmul.mubr.msk.f32.gmra.mxu1 %vm322_vm1, %v313_v28  ;;  %v263_v11 = vld [vmem:[%s5932_s9 + $0x80] sm:$0xff]  ;;  %v264_v13 = vld [vmem:[%s5932_s9 + $0x88] sm:$0xff]  ;;  %v265_v15 = vld [vmem:[%s5932_s9 + $0x90] sm:$0xff] }
  0x27   : > { %5354 = vmatprep.mubr.msk.f32.mxu0 %vm322_vm1, %v296_v29  ;;  %5381 = vmatprep.mubr.msk.f32.mxu1 %vm322_vm1, %v314_v30  ;;  %v6145_v12 = vld [vmem:[%s5932_s9 + $0x82] sm:$0xff]  ;;  %v6155_v14 = vld [vmem:[%s5932_s9 + $0x8a] sm:$0xff]  ;;  %v6159_v16 = vld [vmem:[%s5932_s9 + $0x92] sm:$0xff] }
  0x28   : > { %v266_v17 = vld [vmem:[%s5932_s9 + $0x98] sm:$0xff]  ;;  %v267_v19 = vld [vmem:[%s5932_s9 + $0xa0] sm:$0xff]  ;;  %v268_v21 = vld [vmem:[%s5932_s9 + $0xa8] sm:$0xff] }
  0x29   : > { %v6169_v18 = vld [vmem:[%s5932_s9 + $0x9a] sm:$0xff]  ;;  %v6173_v20 = vld [vmem:[%s5932_s9 + $0xa2] sm:$0xff]  ;;  %v6183_v22 = vld [vmem:[%s5932_s9 + $0xaa] sm:$0xff] }
  0x2a   : > { %5355 = vmatmul.mubr.msk.f32.gmra.mxu0 %vm322_vm1, %v297_v31  ;;  %5382 = vmatmul.mubr.msk.f32.gmra.mxu1 %vm322_vm1, %v315_v32  ;;  %v269_v23 = vld [vmem:[%s5932_s9 + $0xb0] sm:$0xff]  ;;  %v270_v25 = vld [vmem:[%s5932_s9 + $0xb8] sm:$0xff]  ;;  %v271_v27 = vld [vmem:[%s5932_s9 + $0xc0] sm:$0xff] }
  0x2b   : > { %5357 = vmatprep.mubr.msk.f32.mxu0 %vm322_vm1, %v298_v33  ;;  %5384 = vmatprep.mubr.msk.f32.mxu1 %vm322_vm1, %v316_v34  ;;  %v6187_v24 = vld [vmem:[%s5932_s9 + $0xb2] sm:$0xff]  ;;  %v6197_v26 = vld [vmem:[%s5932_s9 + $0xba] sm:$0xff]  ;;  %v6201_v28 = vld [vmem:[%s5932_s9 + $0xc2] sm:$0xff] }
  0x2c   : > { %v272_v29 = vld [vmem:[%s5932_s9 + $0xc8] sm:$0xff]  ;;  %v273_v31 = vld [vmem:[%s5932_s9 + $0xd0] sm:$0xff]  ;;  %v274_v33 = vld [vmem:[%s5932_s9 + $0xd8] sm:$0xff] }
  0x2d   : > { %v6211_v30 = vld [vmem:[%s5932_s9 + $0xca] sm:$0xff]  ;;  %v6215_v32 = vld [vmem:[%s5932_s9 + $0xd2] sm:$0xff]  ;;  %v6225_v34 = vld [vmem:[%s5932_s9 + $0xda] sm:$0xff] }
  0x2e   : > { %5358 = vmatmul.mubr.msk.f32.gmra.mxu0 %vm322_vm1, %v299_v35  ;;  %5385 = vmatmul.mubr.msk.f32.gmra.mxu1 %vm322_vm1, %v317_v36  ;;  %v275_v35 = vld [vmem:[%s5932_s9 + $0xe0] sm:$0xff] }
  0x2f   : > { %5360 = vmatprep.mubr.msk.f32.mxu0 %vm322_vm1, %v300_v37  ;;  %5387 = vmatprep.mubr.msk.f32.mxu1 %vm322_vm1, %v318_v38  ;;  %v6229_v36 = vld [vmem:[%s5932_s9 + $0xe2] sm:$0xff]  ;;  %v6239_v38 = vld [vmem:[%s5932_s9 + $0xea] sm:$0xff] }
  0x30   : > { %v276_v37 = vld [vmem:[%s5932_s9 + $0xe8] sm:$0xff] }
  0x32   : > { %5361 = vmatmul.mubr.msk.f32.gmra.mxu0 %vm322_vm1, %v301_v39  ;;  %5388 = vmatmul.mubr.msk.f32.gmra.mxu1 %vm322_vm1, %v319_v40  ;;  %v277_v39 = vld [vmem:[%s5932_s9 + $0xf0] sm:$0xff] }
  0x33   : > { %5392 = vmatprep.mubr.msk.f32.mxu1 %vm322_vm1, %v247_v41  ;;  %5448 = vmatprep.mubr.msk.f32.mxu0 %vm322_vm1, %v1036_v42  ;;  %v6243_v40 = vld [vmem:[%s5932_s9 + $0xf2] sm:$0xff]  ;;  %v6253_v42 = vld [vmem:[%s5932_s9 + $0xfa] sm:$0xff] }
  0x34   : > { %v278_v41 = vld [vmem:[%s5932_s9 + $0xf8] sm:$0xff] }
  0x36   : > { %5393 = vmatmul.mubr.msk.f32.vlgmr.msra.gmra.mxu1 %vm322_vm1, %v248_v43  ;;  %5449 = vmatmul.mubr.msk.f32.vlgmr.msra.gmra.mxu0 %vm322_vm1, %v1037_v44  ;;  %v279_v43 = vld [vmem:[%s5932_s9 + $0x100] sm:$0xff] }
  0x37   : > { %5503 = vmatpush3.msk.msra.mxu1 %vm431_vm0, %v5947_v9  ;;  %5559 = vmatpush3.msk.msra.mxu0 %vm431_vm0, %v5952_v10  ;;  %v262_v9 = vld [vmem:[%s5932_s9 + $0x78] sm:$0xff]  ;;  %v6257_v44 = vld [vmem:[%s5932_s9 + $0x102] sm:$0xff] }
  0x38   : > { %5395 = vmatprep.mubr.msk.f32.mxu1 %vm322_vm1, %v249_v45  ;;  %5451 = vmatprep.mubr.msk.f32.mxu0 %vm322_vm1, %v6030_v46  ;;  %v6141_v10 = vld [vmem:[%s5932_s9 + $0x7a] sm:$0xff]  ;;  %v280_v45 = vld [vmem:[%s5932_s9 + $0x108] sm:$0xff] }
  0x39   : > { %5614 = vmatprep.subr.msk.mxu1 %vm431_vm0, %v6037_v47  ;;  %5670 = vmatprep.subr.msk.mxu0 %vm431_vm0, %v6042_v48 }
  0x3a   : > { %5396 = vmatmul.mubr.msk.f32.gmra.mxu1 %vm322_vm1, %v250_v49  ;;  %5452 = vmatmul.mubr.msk.f32.gmra.mxu0 %vm322_vm1, %v6050_v50  ;;  %v6267_v49 = vld [vmem:[%s5932_s9 + $0x10a] sm:$0xff] }
  0x3b   : > { %5398 = vmatprep.mubr.msk.f32.mxu1 %vm322_vm1, %v251_v51  ;;  %5454 = vmatprep.mubr.msk.f32.mxu0 %vm322_vm1, %v6057_v52  ;;  %v281_v51 = vld [vmem:[%s5932_s9 + $0x110] sm:$0xff] }
  0x3e   : > { %5399 = vmatmul.mubr.msk.f32.gmra.mxu1 %vm322_vm1, %v252_v53  ;;  %5455 = vmatmul.mubr.msk.f32.gmra.mxu0 %vm322_vm1, %v6071_v54  ;;  %v6271_v53 = vld [vmem:[%s5932_s9 + $0x112] sm:$0xff] }
  0x3f   : > { %5401 = vmatprep.mubr.msk.f32.mxu1 %vm322_vm1, %v253_v55  ;;  %5457 = vmatprep.mubr.msk.f32.mxu0 %vm322_vm1, %v6075_v56  ;;  %v282_v55 = vld [vmem:[%s5932_s9 + $0x118] sm:$0xff] }
  0x42   : > { %5402 = vmatmul.mubr.msk.f32.gmra.mxu1 %vm322_vm1, %v254_v57  ;;  %5458 = vmatmul.mubr.msk.f32.gmra.mxu0 %vm322_vm1, %v6085_v58  ;;  %v6281_v57 = vld [vmem:[%s5932_s9 + $0x11a] sm:$0xff] }
  0x43   : > { %5404 = vmatprep.mubr.msk.f32.mxu1 %vm322_vm1, %v255_v59  ;;  %5460 = vmatprep.mubr.msk.f32.mxu0 %vm322_vm1, %v6089_v60  ;;  %v1896_v59 = vld [vmem:[%s5932_s9 + $0x13] sm:$0xff] }
  0x46   : > { %5405 = vmatmul.mubr.msk.f32.gmra.mxu1 %vm322_vm1, %v256_v61  ;;  %5461 = vmatmul.mubr.msk.f32.gmra.mxu0 %vm322_vm1, %v6099_v62  ;;  %v1897_v61 = vld [vmem:[%s5932_s9 + $0x1b] sm:$0xff] }
  0x47   : > { %5407 = vmatprep.mubr.msk.f32.mxu1 %vm322_vm1, %v257_v63  ;;  %5463 = vmatprep.mubr.msk.f32.mxu0 %vm322_vm1, %v6103_v0  ;;  %v1898_v63 = vld [vmem:[%s5932_s9 + $0x23] sm:$0xff] }
  0x4a   : > { %5408 = vmatmul.mubr.msk.f32.gmra.mxu1 %vm322_vm1, %v258_v1  ;;  %5464 = vmatmul.mubr.msk.f32.gmra.mxu0 %vm322_vm1, %v6113_v2  ;;  %v6298_v1 = vld [vmem:[%s7523_s1 + $0x1c] sm:$0x7] }
  0x4b   : > { %5410 = vmatprep.mubr.msk.f32.mxu1 %vm322_vm1, %v259_v3  ;;  %5466 = vmatprep.mubr.msk.f32.mxu0 %vm322_vm1, %v6117_v4  ;;  %v1900_v3 = vld [vmem:[%s5932_s9 + $0x33] sm:$0xff] }
  0x4e   : > { %5411 = vmatmul.mubr.msk.f32.gmra.mxu1 %vm322_vm1, %v260_v5  ;;  %5467 = vmatmul.mubr.msk.f32.gmra.mxu0 %vm322_vm1, %v6127_v6  ;;  %v5862_v5 = vmov 0  }
  0x4f   : > { %5413 = vmatprep.mubr.msk.f32.mxu1 %vm322_vm1, %v261_v7  ;;  %5469 = vmatprep.mubr.msk.f32.mxu0 %vm322_vm1, %v6131_v8  ;;  %v1912_v7 = vld [vmem:[%s5932_s9 + $0x93] sm:$0xff] }
  0x50   : > { %5852 = vset.pattern.permute.xlu0 %v5862_v5  ;;  %5853 = vset.pattern.permute.xlu1 %v5862_v5  ;;  %v4155_v5 = vld [vmem:[%s7525_s3 + $0xe8] sm:$0xff] }
  0x52   : > { %5414 = vmatmul.mubr.msk.f32.gmra.mxu1 %vm322_vm1, %v262_v9  ;;  %5470 = vmatmul.mubr.msk.f32.gmra.mxu0 %vm322_vm1, %v6141_v10  ;;  %v4127_v9 = vld [vmem:[%s7525_s3 + $0x8] sm:$0xff] }
  0x53   : > { %5416 = vmatprep.mubr.msk.f32.mxu1 %vm322_vm1, %v263_v11  ;;  %5472 = vmatprep.mubr.msk.f32.mxu0 %vm322_vm1, %v6145_v12  ;;  %v1914_v11 = vld [vmem:[%s5932_s9 + $0xa3] sm:$0xff] }
  0x56   : > { %5417 = vmatmul.mubr.msk.f32.gmra.mxu1 %vm322_vm1, %v264_v13  ;;  %5473 = vmatmul.mubr.msk.f32.gmra.mxu0 %vm322_vm1, %v6155_v14  ;;  %v4130_v13 = vld [vmem:[%s7525_s3 + $0x20] sm:$0xff] }
  0x57   : > { %5419 = vmatprep.mubr.msk.f32.mxu1 %vm322_vm1, %v265_v15  ;;  %5475 = vmatprep.mubr.msk.f32.mxu0 %vm322_vm1, %v6159_v16  ;;  %v1916_v15 = vld [vmem:[%s5932_s9 + $0xb3] sm:$0xff] }
  0x5a   : > { %5420 = vmatmul.mubr.msk.f32.gmra.mxu1 %vm322_vm1, %v266_v17  ;;  %5476 = vmatmul.mubr.msk.f32.gmra.mxu0 %vm322_vm1, %v6169_v18  ;;  %v4132_v17 = vld [vmem:[%s7525_s3 + $0x30] sm:$0xff] }
  0x5b   : > { %5422 = vmatprep.mubr.msk.f32.mxu1 %vm322_vm1, %v267_v19  ;;  %5478 = vmatprep.mubr.msk.f32.mxu0 %vm322_vm1, %v6173_v20  ;;  %v1918_v19 = vld [vmem:[%s5932_s9 + $0xc3] sm:$0xff] }
  0x5e   : > { %5423 = vmatmul.mubr.msk.f32.gmra.mxu1 %vm322_vm1, %v268_v21  ;;  %5479 = vmatmul.mubr.msk.f32.gmra.mxu0 %vm322_vm1, %v6183_v22  ;;  %v4134_v21 = vld [vmem:[%s7525_s3 + $0x40] sm:$0xff] }
  0x5f   : > { %5425 = vmatprep.mubr.msk.f32.mxu1 %vm322_vm1, %v269_v23  ;;  %5481 = vmatprep.mubr.msk.f32.mxu0 %vm322_vm1, %v6187_v24  ;;  %v1920_v23 = vld [vmem:[%s5932_s9 + $0xd3] sm:$0xff] }
  0x62   : > { %5426 = vmatmul.mubr.msk.f32.gmra.mxu1 %vm322_vm1, %v270_v25  ;;  %5482 = vmatmul.mubr.msk.f32.gmra.mxu0 %vm322_vm1, %v6197_v26  ;;  %v4136_v25 = vld [vmem:[%s7525_s3 + $0x50] sm:$0xff] }
  0x63   : > { %5428 = vmatprep.mubr.msk.f32.mxu1 %vm322_vm1, %v271_v27  ;;  %5484 = vmatprep.mubr.msk.f32.mxu0 %vm322_vm1, %v6201_v28  ;;  %v1922_v27 = vld [vmem:[%s5932_s9 + $0xe3] sm:$0xff] }
  0x66   : > { %5429 = vmatmul.mubr.msk.f32.gmra.mxu1 %vm322_vm1, %v272_v29  ;;  %5485 = vmatmul.mubr.msk.f32.gmra.mxu0 %vm322_vm1, %v6211_v30  ;;  %v4138_v29 = vld [vmem:[%s7525_s3 + $0x60] sm:$0xff] }
  0x67   : > { %5431 = vmatprep.mubr.msk.f32.mxu1 %vm322_vm1, %v273_v31  ;;  %5487 = vmatprep.mubr.msk.f32.mxu0 %vm322_vm1, %v6215_v32  ;;  %v1924_v31 = vld [vmem:[%s5932_s9 + $0xf3] sm:$0xff] }
  0x6a   : > { %5432 = vmatmul.mubr.msk.f32.gmra.mxu1 %vm322_vm1, %v274_v33  ;;  %5488 = vmatmul.mubr.msk.f32.gmra.mxu0 %vm322_vm1, %v6225_v34  ;;  %v4140_v33 = vld [vmem:[%s7525_s3 + $0x70] sm:$0xff] }
  0x6b   : > { %5434 = vmatprep.mubr.msk.f32.mxu1 %vm322_vm1, %v275_v35  ;;  %5490 = vmatprep.mubr.msk.f32.mxu0 %vm322_vm1, %v6229_v36  ;;  %v1926_v35 = vld [vmem:[%s5932_s9 + $0x103] sm:$0xff] }
  0x6e   : > { %5435 = vmatmul.mubr.msk.f32.gmra.mxu1 %vm322_vm1, %v276_v37  ;;  %5491 = vmatmul.mubr.msk.f32.gmra.mxu0 %vm322_vm1, %v6239_v38  ;;  %v4142_v37 = vld [vmem:[%s7525_s3 + $0x80] sm:$0xff] }
  0x6f   : > { %5437 = vmatprep.mubr.msk.f32.mxu1 %vm322_vm1, %v277_v39  ;;  %5493 = vmatprep.mubr.msk.f32.mxu0 %vm322_vm1, %v6243_v40  ;;  %v1928_v39 = vld [vmem:[%s5932_s9 + $0x113] sm:$0xff] }
  0x72   : > { %5438 = vmatmul.mubr.msk.f32.gmra.mxu1 %vm322_vm1, %v278_v41  ;;  %5494 = vmatmul.mubr.msk.f32.gmra.mxu0 %vm322_vm1, %v6253_v42  ;;  %v4144_v41 = vld [vmem:[%s7525_s3 + $0x90] sm:$0xff] }
  0x73   : > { %5440 = vmatprep.mubr.msk.f32.mxu1 %vm322_vm1, %v279_v43  ;;  %5496 = vmatprep.mubr.msk.f32.mxu0 %vm322_vm1, %v6257_v44  ;;  %v1500_v43 = vld [vmem:[%s5932_s9 + $0x122] sm:$0xff] }
  0x76   : > { %5441 = vmatmul.mubr.msk.f32.gmra.mxu1 %vm322_vm1, %v280_v45  ;;  %5497 = vmatmul.mubr.msk.f32.gmra.mxu0 %vm322_vm1, %v6267_v49  ;;  %v4145_v45 = vld [vmem:[%s7525_s3 + $0x98] sm:$0xff] }
  0x77   : > { %5443 = vmatprep.mubr.msk.f32.mxu1 %vm322_vm1, %v281_v51  ;;  %5499 = vmatprep.mubr.msk.f32.mxu0 %vm322_vm1, %v6271_v53  ;;  %v1501_v51 = vld [vmem:[%s5932_s9 + $0x12a] sm:$0xff] }
  0x7a   : > { %5444 = vmatmul.mubr.msk.f32.gmra.mxu1 %vm322_vm1, %v282_v55  ;;  %5500 = vmatmul.mubr.msk.f32.gmra.mxu0 %vm322_vm1, %v6281_v57  ;;  %v2326_v55 = vld [vmem:[%s5932_s9 + $0x14] sm:$0xff] }
  0x7b   : > { %5504 = vmatprep.mubr.msk.f32.mxu1 %vm322_vm1, %v6030_v46  ;;  %5560 = vmatprep.mubr.msk.f32.mxu0 %vm322_vm1, %v1896_v59  ;;  %v6303_v46 = vld [vmem:[%s7523_s1 + $0x20] sm:$0x7]  ;;  %v2756_v59 = vld [vmem:[%s5932_s9 + $0x24] sm:$0xff] }
  0x7e   : > { %5505 = vmatmul.mubr.msk.f32.vlgmr.msra.gmra.mxu1 %vm322_vm1, %v6050_v50  ;;  %5561 = vmatmul.mubr.msk.f32.vlgmr.msra.gmra.mxu0 %vm322_vm1, %v1897_v61  ;;  %v1899_v50 = vld [vmem:[%s5932_s9 + $0x2b] sm:$0xff] }
  0x7f   : > { %5615 = vmatpush3.msk.msra.mxu1 %vm431_vm0, %v6037_v47  ;;  %5671 = vmatpush3.msk.msra.mxu0 %vm431_vm0, %v6042_v48  ;;  %v1901_v47 = vld [vmem:[%s5932_s9 + $0x3b] sm:$0xff]  ;;  %v1902_v48 = vld [vmem:[%s5932_s9 + $0x43] sm:$0xff] }
  0x80   : > { %5507 = vmatprep.mubr.msk.f32.mxu1 %vm322_vm1, %v6057_v52  ;;  %5563 = vmatprep.mubr.msk.f32.mxu0 %vm322_vm1, %v1898_v63  ;;  %v1903_v52 = vld [vmem:[%s5932_s9 + $0x4b] sm:$0xff]  ;;  %v2327_v63 = vld [vmem:[%s5932_s9 + $0x1c] sm:$0xff] }
  0x81   : > { %5726 = vmatprep.subr.msk.mxu1 %vm431_vm0, %v6298_v1  ;;  %5782 = vmatprep.subr.msk.mxu0 %vm431_vm0, %v6303_v46  ;;  %v4147_v61 = vld [vmem:[%s7525_s3 + $0xa8] sm:$0xff] }
  0x82   : > { %5508 = vmatmul.mubr.msk.f32.gmra.mxu1 %vm322_vm1, %v6071_v54  ;;  %5564 = vmatmul.mubr.msk.f32.gmra.mxu0 %vm322_vm1, %v1899_v50  ;;  %v1904_v54 = vld [vmem:[%s5932_s9 + $0x53] sm:$0xff] }
  0x83   : > { %5510 = vmatprep.mubr.msk.f32.mxu1 %vm322_vm1, %v6075_v56  ;;  %5566 = vmatprep.mubr.msk.f32.mxu0 %vm322_vm1, %v1900_v3  ;;  %v1905_v56 = vld [vmem:[%s5932_s9 + $0x5b] sm:$0xff]  ;;  %v2757_v50 = vld [vmem:[%s5932_s9 + $0x2c] sm:$0xff] }
  0x84   : > { %v4149_v3 = vld [vmem:[%s7525_s3 + $0xb8] sm:$0xff] }
  0x86   : > { %5511 = vmatmul.mubr.msk.f32.gmra.mxu1 %vm322_vm1, %v6085_v58  ;;  %5567 = vmatmul.mubr.msk.f32.gmra.mxu0 %vm322_vm1, %v1901_v47  ;;  %v1906_v58 = vld [vmem:[%s5932_s9 + $0x63] sm:$0xff] }
  0x87   : > { %5513 = vmatprep.mubr.msk.f32.mxu1 %vm322_vm1, %v6089_v60  ;;  %5569 = vmatprep.mubr.msk.f32.mxu0 %vm322_vm1, %v1902_v48  ;;  %v1907_v60 = vld [vmem:[%s5932_s9 + $0x6b] sm:$0xff]  ;;  %v4150_v47 = vld [vmem:[%s7525_s3 + $0xc0] sm:$0xff]  ;;  %v2758_v48 = vld [vmem:[%s5932_s9 + $0x34] sm:$0xff] }
  0x8a   : > { %5514 = vmatmul.mubr.msk.f32.gmra.mxu1 %vm322_vm1, %v6099_v62  ;;  %5570 = vmatmul.mubr.msk.f32.gmra.mxu0 %vm322_vm1, %v1903_v52  ;;  %v1908_v62 = vld [vmem:[%s5932_s9 + $0x73] sm:$0xff]  ;;  %v2759_v52 = vld [vmem:[%s5932_s9 + $0x3c] sm:$0xff] }
  0x8b   : > { %5516 = vmatprep.mubr.msk.f32.mxu1 %vm322_vm1, %v6103_v0  ;;  %5572 = vmatprep.mubr.msk.f32.mxu0 %vm322_vm1, %v1904_v54  ;;  %v1909_v0 = vld [vmem:[%s5932_s9 + $0x7b] sm:$0xff]  ;;  %v2760_v54 = vld [vmem:[%s5932_s9 + $0x44] sm:$0xff] }
  0x8e   : > { %5517 = vmatmul.mubr.msk.f32.gmra.mxu1 %vm322_vm1, %v6113_v2  ;;  %5573 = vmatmul.mubr.msk.f32.gmra.mxu0 %vm322_vm1, %v1905_v56  ;;  %v1910_v2 = vld [vmem:[%s5932_s9 + $0x83] sm:$0xff] }
  0x8f   : > { %5519 = vmatprep.mubr.msk.f32.mxu1 %vm322_vm1, %v6117_v4  ;;  %5575 = vmatprep.mubr.msk.f32.mxu0 %vm322_vm1, %v1906_v58  ;;  %v4126_v4 = vld [vmem:[%s7525_s3] sm:$0xff]  ;;  %v4151_v56 = vld [vmem:[%s7525_s3 + $0xc8] sm:$0xff]  ;;  %v4152_v58 = vld [vmem:[%s7525_s3 + $0xd0] sm:$0xff] }
  0x90   : > { %4164 = vperm.xlu0 %5852, %v4126_v4   ;;  %v4156_v4 = vld [vmem:[%s7525_s3 + $0xf0] sm:$0xff] }
  0x92   : > { %5520 = vmatmul.mubr.msk.f32.gmra.mxu1 %vm322_vm1, %v6127_v6  ;;  %5576 = vmatmul.mubr.msk.f32.gmra.mxu0 %vm322_vm1, %v1907_v60  ;;  %v1911_v6 = vld [vmem:[%s5932_s9 + $0x8b] sm:$0xff]  ;;  %v4153_v60 = vld [vmem:[%s7525_s3 + $0xd8] sm:$0xff] }
  0x93   : > { %5522 = vmatprep.mubr.msk.f32.mxu1 %vm322_vm1, %v6131_v8  ;;  %5578 = vmatprep.mubr.msk.f32.mxu0 %vm322_vm1, %v1908_v62  ;;  %v4128_v8 = vld [vmem:[%s7525_s3 + $0x10] sm:$0xff]  ;;  %v4154_v62 = vld [vmem:[%s7525_s3 + $0xe0] sm:$0xff] }
  0x94   : > { %4174 = vperm.xlu1 %5853, %v4128_v8   ;;  %4169 = vperm.xlu0 %5852, %v4127_v9   ;;  %v2765_v8 = vld [vmem:[%s5932_s9 + $0x6c] sm:$0xff] }
  0x96   : > { %5523 = vmatmul.mubr.msk.f32.gmra.mxu1 %vm322_vm1, %v6141_v10  ;;  %5579 = vmatmul.mubr.msk.f32.gmra.mxu0 %vm322_vm1, %v1909_v0  ;;  %v1913_v10 = vld [vmem:[%s5932_s9 + $0x9b] sm:$0xff] }
  0x97   : > { %5525 = vmatprep.mubr.msk.f32.mxu1 %vm322_vm1, %v6145_v12  ;;  %5581 = vmatprep.mubr.msk.f32.mxu0 %vm322_vm1, %v1910_v2  ;;  %v4129_v12 = vld [vmem:[%s7525_s3 + $0x18] sm:$0xff]  ;;  %v2764_v2 = vld [vmem:[%s5932_s9 + $0x64] sm:$0xff] }
  0x98   : > { %4179 = vperm.xlu1 %5853, %v4129_v12   ;;  %4184 = vperm.xlu0 %5852, %v4130_v13   ;;  %v2763_v0 = vld [vmem:[%s5932_s9 + $0x5c] sm:$0xff] }
  0x99   : > { %v4157_v12 = vld [vmem:[%s7525_s3 + $0xf8] sm:$0xff]  ;;  %v4158_v13 = vld [vmem:[%s7525_s3 + $0x100] sm:$0xff] }
  0x9a   : > { %5526 = vmatmul.mubr.msk.f32.gmra.mxu1 %vm322_vm1, %v6155_v14  ;;  %5582 = vmatmul.mubr.msk.f32.gmra.mxu0 %vm322_vm1, %v1911_v6  ;;  %v1915_v14 = vld [vmem:[%s5932_s9 + $0xab] sm:$0xff] }
  0x9b   : > { %5528 = vmatprep.mubr.msk.f32.mxu1 %vm322_vm1, %v6159_v16  ;;  %5584 = vmatprep.mubr.msk.f32.mxu0 %vm322_vm1, %v1912_v7  ;;  %v4131_v16 = vld [vmem:[%s7525_s3 + $0x28] sm:$0xff] }
  0x9c   : > { %4189 = vperm.xlu1 %5853, %v4131_v16   ;;  %4194 = vperm.xlu0 %5852, %v4132_v17   ;;  %v2767_v16 = vld [vmem:[%s5932_s9 + $0x7c] sm:$0xff] }
  0x9e   : > { %5529 = vmatmul.mubr.msk.f32.gmra.mxu1 %vm322_vm1, %v6169_v18  ;;  %5585 = vmatmul.mubr.msk.f32.gmra.mxu0 %vm322_vm1, %v1913_v10  ;;  %v1917_v18 = vld [vmem:[%s5932_s9 + $0xbb] sm:$0xff] }
  0x9f   : > { %5531 = vmatprep.mubr.msk.f32.mxu1 %vm322_vm1, %v6173_v20  ;;  %5587 = vmatprep.mubr.msk.f32.mxu0 %vm322_vm1, %v1914_v11  ;;  %v4133_v20 = vld [vmem:[%s7525_s3 + $0x38] sm:$0xff] }
  0xa0   : > { %4199 = vperm.xlu1 %5853, %v4133_v20   ;;  %4204 = vperm.xlu0 %5852, %v4134_v21   ;;  %v2766_v11 = vld [vmem:[%s5932_s9 + $0x74] sm:$0xff]  ;;  %v4159_v20 = vld [vmem:[%s7525_s3 + $0x108] sm:$0xff] }
  0xa1   : > { %v4160_v21 = vld [vmem:[%s7525_s3 + $0x110] sm:$0xff] }
  0xa2   : > { %5532 = vmatmul.mubr.msk.f32.gmra.mxu1 %vm322_vm1, %v6183_v22  ;;  %5588 = vmatmul.mubr.msk.f32.gmra.mxu0 %vm322_vm1, %v1915_v14  ;;  %v1919_v22 = vld [vmem:[%s5932_s9 + $0xcb] sm:$0xff] }
  0xa3   : > { %5534 = vmatprep.mubr.msk.f32.mxu1 %vm322_vm1, %v6187_v24  ;;  %5590 = vmatprep.mubr.msk.f32.mxu0 %vm322_vm1, %v1916_v15  ;;  %v4135_v24 = vld [vmem:[%s7525_s3 + $0x48] sm:$0xff] }
  0xa4   : > { %4209 = vperm.xlu1 %5853, %v4135_v24   ;;  %4214 = vperm.xlu0 %5852, %v4136_v25   ;;  %v2769_v24 = vld [vmem:[%s5932_s9 + $0x8c] sm:$0xff] }
  0xa6   : > { %5535 = vmatmul.mubr.msk.f32.gmra.mxu1 %vm322_vm1, %v6197_v26  ;;  %5591 = vmatmul.mubr.msk.f32.gmra.mxu0 %vm322_vm1, %v1917_v18  ;;  %v1921_v26 = vld [vmem:[%s5932_s9 + $0xdb] sm:$0xff] }
  0xa7   : > { %5537 = vmatprep.mubr.msk.f32.mxu1 %vm322_vm1, %v6201_v28  ;;  %5593 = vmatprep.mubr.msk.f32.mxu0 %vm322_vm1, %v1918_v19  ;;  %v4137_v28 = vld [vmem:[%s7525_s3 + $0x58] sm:$0xff]  ;;  %v2768_v19 = vld [vmem:[%s5932_s9 + $0x84] sm:$0xff] }
  0xa8   : > { %4219 = vperm.xlu1 %5853, %v4137_v28   ;;  %4224 = vperm.xlu0 %5852, %v4138_v29   ;;  %v4161_v28 = vld [vmem:[%s7525_s3 + $0x118] sm:$0xff] }
  0xaa   : > { %5538 = vmatmul.mubr.msk.f32.gmra.mxu1 %vm322_vm1, %v6211_v30  ;;  %5594 = vmatmul.mubr.msk.f32.gmra.mxu0 %vm322_vm1, %v1919_v22  ;;  %v1923_v30 = vld [vmem:[%s5932_s9 + $0xeb] sm:$0xff] }
  0xab   : > { %5540 = vmatprep.mubr.msk.f32.mxu1 %vm322_vm1, %v6215_v32  ;;  %5596 = vmatprep.mubr.msk.f32.mxu0 %vm322_vm1, %v1920_v23  ;;  %v4139_v32 = vld [vmem:[%s7525_s3 + $0x68] sm:$0xff] }
  0xac   : > { %4229 = vperm.xlu1 %5853, %v4139_v32   ;;  %4234 = vperm.xlu0 %5852, %v4140_v33  }
  0xae   : > { %5541 = vmatmul.mubr.msk.f32.gmra.mxu1 %vm322_vm1, %v6225_v34  ;;  %5597 = vmatmul.mubr.msk.f32.gmra.mxu0 %vm322_vm1, %v1921_v26  ;;  %v1925_v34 = vld [vmem:[%s5932_s9 + $0xfb] sm:$0xff] }
  0xaf   : > { %5543 = vmatprep.mubr.msk.f32.mxu1 %vm322_vm1, %v6229_v36  ;;  %5599 = vmatprep.mubr.msk.f32.mxu0 %vm322_vm1, %v1922_v27  ;;  %v4141_v36 = vld [vmem:[%s7525_s3 + $0x78] sm:$0xff] }
  0xb0   : > { %4239 = vperm.xlu1 %5853, %v4141_v36   ;;  %4244 = vperm.xlu0 %5852, %v4142_v37   ;;  %v2770_v27 = vld [vmem:[%s5932_s9 + $0x94] sm:$0xff]  ;;  %v2773_v37 = vld [vmem:[%s5932_s9 + $0xac] sm:$0xff] }
  0xb2   : > { %5544 = vmatmul.mubr.msk.f32.gmra.mxu1 %vm322_vm1, %v6239_v38  ;;  %5600 = vmatmul.mubr.msk.f32.gmra.mxu0 %vm322_vm1, %v1923_v30  ;;  %v1927_v38 = vld [vmem:[%s5932_s9 + $0x10b] sm:$0xff] }
  0xb3   : > { %5546 = vmatprep.mubr.msk.f32.mxu1 %vm322_vm1, %v6243_v40  ;;  %5602 = vmatprep.mubr.msk.f32.mxu0 %vm322_vm1, %v1924_v31  ;;  %v4143_v40 = vld [vmem:[%s7525_s3 + $0x88] sm:$0xff]  ;;  %v2771_v31 = vld [vmem:[%s5932_s9 + $0x9c] sm:$0xff] }
  0xb4   : > { %4249 = vperm.xlu1 %5853, %v4143_v40   ;;  %4254 = vperm.xlu0 %5852, %v4144_v41   ;;  %v2774_v40 = vld [vmem:[%s5932_s9 + $0xb4] sm:$0xff] }
  0xb6   : > { %5547 = vmatmul.mubr.msk.f32.gmra.mxu1 %vm322_vm1, %v6253_v42  ;;  %5603 = vmatmul.mubr.msk.f32.gmra.mxu0 %vm322_vm1, %v1925_v34  ;;  %v1929_v42 = vld [vmem:[%s5932_s9 + $0x11b] sm:$0xff]  ;;  %v2772_v34 = vld [vmem:[%s5932_s9 + $0xa4] sm:$0xff] }
  0xb7   : > { %5549 = vmatprep.mubr.msk.f32.mxu1 %vm322_vm1, %v6257_v44  ;;  %5605 = vmatprep.mubr.msk.f32.mxu0 %vm322_vm1, %v1926_v35  ;;  %v1930_v44 = vld [vmem:[%s5932_s9 + $0x123] sm:$0xff] }
  0xb8   : > { %4259 = vperm.xlu1 %5853, %v4145_v45  }
  0xba   : > { %5550 = vmatmul.mubr.msk.f32.gmra.mxu1 %vm322_vm1, %v6267_v49  ;;  %5606 = vmatmul.mubr.msk.f32.gmra.mxu0 %vm322_vm1, %v1927_v38  ;;  %v4146_v49 = vld [vmem:[%s7525_s3 + $0xa0] sm:$0xff] }
  0xbb   : > { %5552 = vmatprep.mubr.msk.f32.mxu1 %vm322_vm1, %v6271_v53  ;;  %5608 = vmatprep.mubr.msk.f32.mxu0 %vm322_vm1, %v1928_v39  ;;  %v1931_v53 = vld [vmem:[%s5932_s9 + $0x12b] sm:$0xff] }
  0xbc   : > { %4264 = vperm.xlu0 %5852, %v4146_v49   ;;  %4269 = vperm.xlu1 %5853, %v4147_v61   ;;  %v2776_v49 = vld [vmem:[%s5932_s9 + $0xc4] sm:$0xff] }
  0xbe   : > { %5553 = vmatmul.mubr.msk.f32.gmra.mxu1 %vm322_vm1, %v6281_v57  ;;  %5609 = vmatmul.mubr.msk.f32.gmra.mxu0 %vm322_vm1, %v1929_v42  ;;  %v4148_v57 = vld [vmem:[%s7525_s3 + $0xb0] sm:$0xff] }
  0xbf   : > { %5555 = vmatprep.mubr.msk.f32.mxu1 %vm322_vm1, %v1500_v43  ;;  %5611 = vmatprep.mubr.msk.f32.mxu0 %vm322_vm1, %v1930_v44  ;;  %v2775_v43 = vld [vmem:[%s5932_s9 + $0xbc] sm:$0xff] }
  0xc0   : > { %4274 = vperm.xlu0 %5852, %v4148_v57   ;;  %4279 = vperm.xlu1 %5853, %v4149_v3   ;;  %v2778_v57 = vld [vmem:[%s5932_s9 + $0xd4] sm:$0xff]  ;;  %v2779_v3 = vld [vmem:[%s5932_s9 + $0xdc] sm:$0xff] }
  0xc2   : > { %5556 = vmatmul.mubr.msk.f32.gmra.mxu1 %vm322_vm1, %v1501_v51  ;;  %5612 = vmatmul.mubr.msk.f32.gmra.mxu0 %vm322_vm1, %v1931_v53 }
  0xc3   : > { %5616 = vmatprep.mubr.msk.f32.mxu1 %vm322_vm1, %v2326_v55  ;;  %5672 = vmatprep.mubr.msk.f32.mxu0 %vm322_vm1, %v2756_v59  ;;  %v2777_v55 = vld [vmem:[%s5932_s9 + $0xcc] sm:$0xff] }
  0xc4   : > { %4284 = vperm.xlu0 %5852, %v4150_v47   ;;  %4289 = vperm.xlu1 %5853, %v4151_v56  }
  0xc6   : > { %5617 = vmatmul.mubr.msk.f32.vlgmr.msra.gmra.mxu1 %vm322_vm1, %v2327_v63  ;;  %5673 = vmatmul.mubr.msk.f32.vlgmr.msra.gmra.mxu0 %vm322_vm1, %v2757_v50 }
  0xc7   : > { %5727 = vmatpush3.msk.msra.mxu1 %vm431_vm0, %v6298_v1  ;;  %5783 = vmatpush3.msk.msra.mxu0 %vm431_vm0, %v6303_v46  ;;  %v2761_v1 = vld [vmem:[%s5932_s9 + $0x4c] sm:$0xff]  ;;  %v2762_v46 = vld [vmem:[%s5932_s9 + $0x54] sm:$0xff] }
  0xc8   : > { %5619 = vmatprep.mubr.msk.f32.mxu1 %vm322_vm1, %v2756_v59  ;;  %5675 = vmatprep.mubr.msk.f32.mxu0 %vm322_vm1, %v2758_v48 }
  0xc9   : > { %4294 = vperm.xlu0 %5852, %v4152_v58   ;;  %4299 = vperm.xlu1 %5853, %v4153_v60   ;;  %v2781_v58 = vld [vmem:[%s5932_s9 + $0xec] sm:$0xff]  ;;  %v2782_v60 = vld [vmem:[%s5932_s9 + $0xf4] sm:$0xff] }
  0xca   : > { %5620 = vmatmul.mubr.msk.f32.gmra.mxu1 %vm322_vm1, %v2757_v50  ;;  %5676 = vmatmul.mubr.msk.f32.gmra.mxu0 %vm322_vm1, %v2759_v52 }
  0xcb   : > { %5622 = vmatprep.mubr.msk.f32.mxu1 %vm322_vm1, %v2758_v48  ;;  %5678 = vmatprep.mubr.msk.f32.mxu0 %vm322_vm1, %v2760_v54 }
  0xcd   : > { %4304 = vperm.xlu0 %5852, %v4154_v62   ;;  %4309 = vperm.xlu1 %5853, %v4155_v5   ;;  %v2783_v5 = vld [vmem:[%s5932_s9 + $0xfc] sm:$0xff] }
  0xce   : > { %5623 = vmatmul.mubr.msk.f32.gmra.mxu1 %vm322_vm1, %v2759_v52  ;;  %5679 = vmatmul.mubr.msk.f32.gmra.mxu0 %vm322_vm1, %v2761_v1  ;;  %v2780_v52 = vld [vmem:[%s5932_s9 + $0xe4] sm:$0xff] }
  0xcf   : > { %5625 = vmatprep.mubr.msk.f32.mxu1 %vm322_vm1, %v2760_v54  ;;  %5681 = vmatprep.mubr.msk.f32.mxu0 %vm322_vm1, %v2762_v46 }
  0xd1   : > { %4314 = vperm.xlu0 %5852, %v4156_v4   ;;  %4319 = vperm.xlu1 %5853, %v4157_v12  }
  0xd2   : > { %v6570_v6 = vpop.f32.mrf.mxu0  ;;  %v6572_v7 = vpop.f32.mrf.mxu1  ;;  %5626 = vmatmul.mubr.msk.f32.gmra.mxu1 %vm322_vm1, %v2761_v1  ;;  %5682 = vmatmul.mubr.msk.f32.gmra.mxu0 %vm322_vm1, %v2763_v0 }
  0xd3   : > { %5628 = vmatprep.mubr.msk.f32.mxu1 %vm322_vm1, %v2762_v46  ;;  %5684 = vmatprep.mubr.msk.f32.mxu0 %vm322_vm1, %v2764_v2 }
  0xd4   : > { %v6579_v9 = vpop.f32.mrf.mxu0  ;;  %v6581_v10 = vpop.f32.mrf.mxu1 }
  0xd5   : > { %4324 = vperm.xlu0 %5852, %v4158_v13   ;;  %4329 = vperm.xlu1 %5853, %v4159_v20  }
  0xd6   : > { %v6590_v14 = vpop.f32.mrf.mxu0  ;;  %v6592_v15 = vpop.f32.mrf.mxu1  ;;  %5629 = vmatmul.mubr.msk.f32.gmra.mxu1 %vm322_vm1, %v2763_v0  ;;  %5685 = vmatmul.mubr.msk.f32.gmra.mxu0 %vm322_vm1, %v2765_v8 }
  0xd7   : > { %5631 = vmatprep.mubr.msk.f32.mxu1 %vm322_vm1, %v2764_v2  ;;  %5687 = vmatprep.mubr.msk.f32.mxu0 %vm322_vm1, %v2766_v11 }
  0xd8   : > { %v6599_v17 = vpop.f32.mrf.mxu0  ;;  %v6601_v18 = vpop.f32.mrf.mxu1 }
  0xd9   : > { %4334 = vperm.xlu0 %5852, %v4160_v21   ;;  %4339 = vperm.xlu1 %5853, %v4161_v28   ;;  %v2785_v21 = vld [vmem:[%s5932_s9 + $0x10c] sm:$0xff] }
  0xda   : > { %v6610_v22 = vpop.f32.mrf.mxu0  ;;  %v6612_v23 = vpop.f32.mrf.mxu1  ;;  %5632 = vmatmul.mubr.msk.f32.gmra.mxu1 %vm322_vm1, %v2765_v8  ;;  %5688 = vmatmul.mubr.msk.f32.gmra.mxu0 %vm322_vm1, %v2767_v16 }
  0xdb   : > { %5634 = vmatprep.mubr.msk.f32.mxu1 %vm322_vm1, %v2766_v11  ;;  %5690 = vmatprep.mubr.msk.f32.mxu0 %vm322_vm1, %v2768_v19  ;;  %v2784_v11 = vld [vmem:[%s5932_s9 + $0x104] sm:$0xff] }
  0xdc   : > { %v6619_v25 = vpop.f32.mrf.mxu0  ;;  %v6621_v26 = vpop.f32.mrf.mxu1 }
  0xde   : > { %v6627_v29 = vpop.f32.mrf.mxu0  ;;  %v6629_v30 = vpop.f32.mrf.mxu1  ;;  %5635 = vmatmul.mubr.msk.f32.gmra.mxu1 %vm322_vm1, %v2767_v16  ;;  %5691 = vmatmul.mubr.msk.f32.gmra.mxu0 %vm322_vm1, %v2769_v24 }
  0xdf   : > { %5637 = vmatprep.mubr.msk.f32.mxu1 %vm322_vm1, %v2768_v19  ;;  %5693 = vmatprep.mubr.msk.f32.mxu0 %vm322_vm1, %v2770_v27 }
  0xe0   : > { %v6636_v32 = vpop.f32.mrf.mxu0  ;;  %v6638_v33 = vpop.f32.mrf.mxu1 }
  0xe2   : > { %v6641_v35 = vpop.f32.mrf.mxu0  ;;  %v6643_v36 = vpop.f32.mrf.mxu1  ;;  %5638 = vmatmul.mubr.msk.f32.gmra.mxu1 %vm322_vm1, %v2769_v24  ;;  %5694 = vmatmul.mubr.msk.f32.gmra.mxu0 %vm322_vm1, %v2771_v31 }
  0xe3   : > { %5640 = vmatprep.mubr.msk.f32.mxu1 %vm322_vm1, %v2770_v27  ;;  %5696 = vmatprep.mubr.msk.f32.mxu0 %vm322_vm1, %v2772_v34 }
  0xe4   : > { %v6650_v38 = vpop.f32.mrf.mxu0  ;;  %v6652_v39 = vpop.f32.mrf.mxu1 }
  0xe6   : > { %v6655_v41 = vpop.f32.mrf.mxu0  ;;  %v6657_v42 = vpop.f32.mrf.mxu1  ;;  %5641 = vmatmul.mubr.msk.f32.gmra.mxu1 %vm322_vm1, %v2771_v31  ;;  %5697 = vmatmul.mubr.msk.f32.gmra.mxu0 %vm322_vm1, %v2773_v37 }
  0xe7   : > { %5643 = vmatprep.mubr.msk.f32.mxu1 %vm322_vm1, %v2772_v34  ;;  %5699 = vmatprep.mubr.msk.f32.mxu0 %vm322_vm1, %v2774_v40 }
  0xe8   : > { %v6664_v44 = vpop.f32.mrf.mxu0  ;;  %v6666_v45 = vpop.f32.mrf.mxu1 }
  0xea   : > { %v6669_v51 = vpop.f32.mrf.mxu0  ;;  %v6671_v53 = vpop.f32.mrf.mxu1  ;;  %5644 = vmatmul.mubr.msk.f32.gmra.mxu1 %vm322_vm1, %v2773_v37  ;;  %5700 = vmatmul.mubr.msk.f32.gmra.mxu0 %vm322_vm1, %v2775_v43 }
  0xeb   : > { %5646 = vmatprep.mubr.msk.f32.mxu1 %vm322_vm1, %v2774_v40  ;;  %5702 = vmatprep.mubr.msk.f32.mxu0 %vm322_vm1, %v2776_v49 }
  0xec   : > { %v6678_v59 = vpop.f32.mrf.mxu0  ;;  %v6680_v61 = vpop.f32.mrf.mxu1 }
  0xee   : > { %v6683_v63 = vpop.f32.mrf.mxu0  ;;  %v6685_v50 = vpop.f32.mrf.mxu1  ;;  %5647 = vmatmul.mubr.msk.f32.gmra.mxu1 %vm322_vm1, %v2775_v43  ;;  %5703 = vmatmul.mubr.msk.f32.gmra.mxu0 %vm322_vm1, %v2777_v55  ;;  %v2787_v43 = vld [vmem:[%s5932_s9 + $0x11c] sm:$0xff] }
  0xef   : > { %5649 = vmatprep.mubr.msk.f32.mxu1 %vm322_vm1, %v2776_v49  ;;  %5705 = vmatprep.mubr.msk.f32.mxu0 %vm322_vm1, %v2778_v57 }
  0xf0   : > { %v6692_v47 = vpop.f32.mrf.mxu0  ;;  %v6694_v48 = vpop.f32.mrf.mxu1 }
  0xf2   : > { %v6697_v54 = vpop.f32.mrf.mxu0  ;;  %v6699_v56 = vpop.f32.mrf.mxu1  ;;  %5650 = vmatmul.mubr.msk.f32.gmra.mxu1 %vm322_vm1, %v2777_v55  ;;  %5706 = vmatmul.mubr.msk.f32.gmra.mxu0 %vm322_vm1, %v2779_v3 }
  0xf3   : > { %5652 = vmatprep.mubr.msk.f32.mxu1 %vm322_vm1, %v2778_v57  ;;  %5708 = vmatprep.mubr.msk.f32.mxu0 %vm322_vm1, %v2780_v52 }
  0xf4   : > { %v6706_v1 = vpop.f32.mrf.mxu0  ;;  %v6708_v46 = vpop.f32.mrf.mxu1 }
  0xf6   : > { %v5394_v62 = vpop.f32.mrf.mxu1  ;;  %v5450_v0 = vpop.f32.mrf.mxu0  ;;  %5653 = vmatmul.mubr.msk.f32.gmra.mxu1 %vm322_vm1, %v2779_v3  ;;  %5709 = vmatmul.mubr.msk.f32.gmra.mxu0 %vm322_vm1, %v2781_v58 }
  0xf7   : > { %v863_v2 = vadd.f32 %v5394_v62, %v6570_v6  ;;  %5655 = vmatprep.mubr.msk.f32.mxu1 %vm322_vm1, %v2780_v52  ;;  %5711 = vmatprep.mubr.msk.f32.mxu0 %vm322_vm1, %v2782_v60  ;;  %v2789_v62 = vld [vmem:[%s5932_s9 + $0x12c] sm:$0xff] }
  0xf8   : > { %v857_v4 = vpop.f32.mrf.mxu1  ;;  %v1251_v8 = vpop.f32.mrf.mxu0 }
  0xf9   : > { %v6718_v12 = vadd.f32 %v5450_v0, %v863_v2  ;;  %v858_v13 = vadd.f32 %v857_v4, %v6579_v9  ;;  %v2786_v9 = vld [vmem:[%s5932_s9 + $0x114] sm:$0xff] }
  0xfa   : > { %v5397_v16 = vpop.f32.mrf.mxu1  ;;  %v5453_v19 = vpop.f32.mrf.mxu0  ;;  %5656 = vmatmul.mubr.msk.f32.gmra.mxu1 %vm322_vm1, %v2781_v58  ;;  %5712 = vmatmul.mubr.msk.f32.gmra.mxu0 %vm322_vm1, %v2783_v5 }
  0xfb   : > { %v6723_v6 = vadd.f32 %v1251_v8, %v858_v13  ;;  %v873_v20 = vadd.f32 %v5397_v16, %v6590_v14  ;;  %5658 = vmatprep.mubr.msk.f32.mxu1 %vm322_vm1, %v2782_v60  ;;  %5714 = vmatprep.mubr.msk.f32.mxu0 %vm322_vm1, %v2784_v11  ;;  %v2791_v16 = vld [vmem:[%s5932_s9 + $0x13c] sm:$0xff] }
  0xfc   : > { %v867_v24 = vpop.f32.mrf.mxu1  ;;  %v1261_v27 = vpop.f32.mrf.mxu0 }
  0xfd   : > { %v6730_v28 = vadd.f32 %v5453_v19, %v873_v20  ;;  %v868_v31 = vadd.f32 %v867_v24, %v6599_v17  ;;  %v2788_v17 = vld [vmem:[%s5932_s9 + $0x124] sm:$0xff] }
  0xfe   : > { %v5400_v34 = vpop.f32.mrf.mxu1  ;;  %v5456_v37 = vpop.f32.mrf.mxu0  ;;  %5659 = vmatmul.mubr.msk.f32.gmra.mxu1 %vm322_vm1, %v2783_v5  ;;  %5715 = vmatmul.mubr.msk.f32.gmra.mxu0 %vm322_vm1, %v2785_v21 }
  0xff   : > { %v6735_v14 = vadd.f32 %v1261_v27, %v868_v31  ;;  %v883_v40 = vadd.f32 %v5400_v34, %v6610_v22  ;;  %5661 = vmatprep.mubr.msk.f32.mxu1 %vm322_vm1, %v2784_v11  ;;  %5717 = vmatprep.mubr.msk.f32.mxu0 %vm322_vm1, %v2786_v9 }
 0x100   : > { %v877_v49 = vpop.f32.mrf.mxu1  ;;  %v1271_v55 = vpop.f32.mrf.mxu0 }
 0x101   : > { %v6742_v57 = vadd.f32 %v5456_v37, %v883_v40  ;;  %v878_v3 = vadd.f32 %v877_v49, %v6619_v25  ;;  %v2790_v25 = vld [vmem:[%s5932_s9 + $0x134] sm:$0xff] }
 0x102   : > { %v5403_v52 = vpop.f32.mrf.mxu1  ;;  %v5459_v58 = vpop.f32.mrf.mxu0  ;;  %5662 = vmatmul.mubr.msk.f32.gmra.mxu1 %vm322_vm1, %v2785_v21  ;;  %5718 = vmatmul.mubr.msk.f32.gmra.mxu0 %vm322_vm1, %v2787_v43  ;;  %v3616_v21 = vld [vmem:[%s5932_s9 + $0x26] sm:$0xff]  ;;  %v3617_v40 = vld [vmem:[%s5932_s9 + $0x2e] sm:$0xff] }
 0x103   : > { %v6747_v22 = vadd.f32 %v1271_v55, %v878_v3  ;;  %v893_v60 = vadd.f32 %v5403_v52, %v6627_v29  ;;  %5664 = vmatprep.mubr.msk.f32.mxu1 %vm322_vm1, %v2786_v9  ;;  %5720 = vmatprep.mubr.msk.f32.mxu0 %vm322_vm1, %v2788_v17  ;;  %v3187_v37 = vld [vmem:[%s5932_s9 + $0x2d] sm:$0xff]  ;;  %v3188_v49 = vld [vmem:[%s5932_s9 + $0x35] sm:$0xff] }
 0x104   : > { %v887_v0 = vpop.f32.mrf.mxu1  ;;  %v1281_v2 = vpop.f32.mrf.mxu0  ;;  %v3618_v55 = vld [vmem:[%s5932_s9 + $0x36] sm:$0xff] }
 0x105   : > { %v6754_v5 = vadd.f32 %v5459_v58, %v893_v60  ;;  %v888_v4 = vadd.f32 %v887_v0, %v6636_v32  ;;  %v3186_v32 = vld [vmem:[%s5932_s9 + $0x25] sm:$0xff] }
 0x106   : > { %v5406_v8 = vpop.f32.mrf.mxu1  ;;  %v5462_v11 = vpop.f32.mrf.mxu0  ;;  %5665 = vmatmul.mubr.msk.f32.gmra.mxu1 %vm322_vm1, %v2787_v43  ;;  %5721 = vmatmul.mubr.msk.f32.gmra.mxu0 %vm322_vm1, %v2789_v62  ;;  %v3619_v0 = vld [vmem:[%s5932_s9 + $0x3e] sm:$0xff] }
 0x107   : > { %v6759_v29 = vadd.f32 %v1281_v2, %v888_v4  ;;  %v903_v13 = vadd.f32 %v5406_v8, %v6641_v35  ;;  %5667 = vmatprep.mubr.msk.f32.mxu1 %vm322_vm1, %v2788_v17  ;;  %5723 = vmatprep.mubr.msk.f32.mxu0 %vm322_vm1, %v2790_v25  ;;  %v3190_v25 = vld [vmem:[%s5932_s9 + $0x45] sm:$0xff] }
 0x108   : > { %v897_v19 = vpop.f32.mrf.mxu1  ;;  %v1291_v20 = vpop.f32.mrf.mxu0  ;;  %v3620_v4 = vld [vmem:[%s5932_s9 + $0x46] sm:$0xff] }
 0x109   : > { %v6767_v24 = vadd.f32 %v5462_v11, %v903_v13  ;;  %v898_v27 = vadd.f32 %v897_v19, %v6650_v38 }
 0x10a   : > { %v5409_v9 = vpop.f32.mrf.mxu1  ;;  %v5465_v31 = vpop.f32.mrf.mxu0  ;;  %5668 = vmatmul.mubr.msk.f32.gmra.mxu1 %vm322_vm1, %v2789_v62  ;;  %5724 = vmatmul.mubr.msk.f32.gmra.mxu0 %vm322_vm1, %v2791_v16  ;;  %v3189_v62 = vld [vmem:[%s5932_s9 + $0x3d] sm:$0xff] }
 0x10b   : > { %v6772_v35 = vadd.f32 %v1291_v20, %v898_v27  ;;  %v913_v34 = vadd.f32 %v5409_v9, %v6655_v41  ;;  %5728 = vmatprep.mubr.msk.f32.mxu1 %vm322_vm1, %v3186_v32  ;;  %5784 = vmatprep.mubr.msk.f32.mxu0 %vm322_vm1, %v3616_v21  ;;  %v3191_v20 = vld [vmem:[%s5932_s9 + $0x4d] sm:$0xff]  ;;  %v3192_v27 = vld [vmem:[%s5932_s9 + $0x55] sm:$0xff] }
 0x10c   : > { %v907_v43 = vpop.f32.mrf.mxu1  ;;  %v1301_v38 = vpop.f32.mrf.mxu0  ;;  %v3621_v32 = vld [vmem:[%s5932_s9 + $0x4e] sm:$0xff]  ;;  %v3622_v9 = vld [vmem:[%s5932_s9 + $0x56] sm:$0xff] }
 0x10d   : > { %v6781_v17 = vadd.f32 %v5465_v31, %v913_v34  ;;  %v908_v3 = vadd.f32 %v907_v43, %v6664_v44 }
 0x10e   : > { %v5412_v52 = vpop.f32.mrf.mxu1  ;;  %v5468_v41 = vpop.f32.mrf.mxu0  ;;  %5729 = vmatmul.mubr.msk.f32.vlgmr.msra.gmra.mxu1 %vm322_vm1, %v3187_v37  ;;  %5785 = vmatmul.mubr.msk.f32.vlgmr.msra.gmra.mxu0 %vm322_vm1, %v3617_v40 }
 0x10f   : > { %v6786_v58 = vadd.f32 %v1301_v38, %v908_v3  ;;  %v923_v60 = vadd.f32 %v5412_v52, %v6669_v51  ;;  %5731 = vmatprep.mubr.msk.f32.mxu1 %vm322_vm1, %v3188_v49  ;;  %5787 = vmatprep.mubr.msk.f32.mxu0 %vm322_vm1, %v3618_v55  ;;  %v3193_v38 = vld [vmem:[%s5932_s9 + $0x5d] sm:$0xff]  ;;  %v3194_v3 = vld [vmem:[%s5932_s9 + $0x65] sm:$0xff] }
 0x110   : > { %v917_v2 = vpop.f32.mrf.mxu1  ;;  %v1311_v44 = vpop.f32.mrf.mxu0  ;;  %v3623_v49 = vld [vmem:[%s5932_s9 + $0x5e] sm:$0xff]  ;;  %v3624_v52 = vld [vmem:[%s5932_s9 + $0x66] sm:$0xff] }
 0x111   : > { %v6795_v8 = vadd.f32 %v5468_v41, %v923_v60  ;;  %v918_v11 = vadd.f32 %v917_v2, %v6678_v59 }
 0x112   : > { %v5415_v13 = vpop.f32.mrf.mxu1  ;;  %v5471_v51 = vpop.f32.mrf.mxu0  ;;  %5732 = vmatmul.mubr.msk.f32.gmra.mxu1 %vm322_vm1, %v3189_v62  ;;  %5788 = vmatmul.mubr.msk.f32.gmra.mxu0 %vm322_vm1, %v3619_v0 }
 0x113   : > { %v6800_v16 = vadd.f32 %v1311_v44, %v918_v11  ;;  %v933_v19 = vadd.f32 %v5415_v13, %v6683_v63  ;;  %5734 = vmatprep.mubr.msk.f32.mxu1 %vm322_vm1, %v3190_v25  ;;  %5790 = vmatprep.mubr.msk.f32.mxu0 %vm322_vm1, %v3620_v4  ;;  %v3195_v44 = vld [vmem:[%s5932_s9 + $0x6d] sm:$0xff]  ;;  %v3196_v11 = vld [vmem:[%s5932_s9 + $0x75] sm:$0xff] }
 0x114   : > { %v927_v21 = vpop.f32.mrf.mxu1  ;;  %v1321_v59 = vpop.f32.mrf.mxu0  ;;  %v3625_v25 = vld [vmem:[%s5932_s9 + $0x6e] sm:$0xff]  ;;  %v3626_v13 = vld [vmem:[%s5932_s9 + $0x76] sm:$0xff] }
 0x115   : > { %v6809_v31 = vadd.f32 %v5471_v51, %v933_v19  ;;  %v928_v34 = vadd.f32 %v927_v21, %v6692_v47 }
 0x116   : > { %v5418_v37 = vpop.f32.mrf.mxu1  ;;  %v5474_v63 = vpop.f32.mrf.mxu0  ;;  %5735 = vmatmul.mubr.msk.f32.gmra.mxu1 %vm322_vm1, %v3191_v20  ;;  %5791 = vmatmul.mubr.msk.f32.gmra.mxu0 %vm322_vm1, %v3621_v32 }
 0x117   : > { %v6814_v40 = vadd.f32 %v1321_v59, %v928_v34  ;;  %v943_v43 = vadd.f32 %v5418_v37, %v6697_v54  ;;  %5737 = vmatprep.mubr.msk.f32.mxu1 %vm322_vm1, %v3192_v27  ;;  %5793 = vmatprep.mubr.msk.f32.mxu0 %vm322_vm1, %v3622_v9  ;;  %v3197_v59 = vld [vmem:[%s5932_s9 + $0x7d] sm:$0xff]  ;;  %v3198_v34 = vld [vmem:[%s5932_s9 + $0x85] sm:$0xff] }
 0x118   : > { %v937_v55 = vpop.f32.mrf.mxu1  ;;  %v1331_v47 = vpop.f32.mrf.mxu0  ;;  %v3627_v27 = vld [vmem:[%s5932_s9 + $0x7e] sm:$0xff]  ;;  %v3628_v37 = vld [vmem:[%s5932_s9 + $0x86] sm:$0xff] }
 0x119   : > { %v6823_v41 = vadd.f32 %v5474_v63, %v943_v43  ;;  %v938_v60 = vadd.f32 %v937_v55, %v6706_v1 }
 0x11a   : > { %v5421_v62 = vpop.f32.mrf.mxu1  ;;  %v5477_v54 = vpop.f32.mrf.mxu0  ;;  %5738 = vmatmul.mubr.msk.f32.gmra.mxu1 %vm322_vm1, %v3193_v38  ;;  %5794 = vmatmul.mubr.msk.f32.gmra.mxu0 %vm322_vm1, %v3623_v49 }
 0x11b   : > { %v6828_v0 = vadd.f32 %v1331_v47, %v938_v60  ;;  %v953_v2 = vadd.f32 %v5421_v62, %v6572_v7  ;;  %5740 = vmatprep.mubr.msk.f32.mxu1 %vm322_vm1, %v3194_v3  ;;  %5796 = vmatprep.mubr.msk.f32.mxu0 %vm322_vm1, %v3624_v52  ;;  %v3199_v47 = vld [vmem:[%s5932_s9 + $0x8d] sm:$0xff]  ;;  %v3200_v60 = vld [vmem:[%s5932_s9 + $0x95] sm:$0xff] }
 0x11c   : > { %v947_v4 = vpop.f32.mrf.mxu1  ;;  %v1341_v1 = vpop.f32.mrf.mxu0  ;;  %v3629_v3 = vld [vmem:[%s5932_s9 + $0x8e] sm:$0xff]  ;;  %v3630_v62 = vld [vmem:[%s5932_s9 + $0x96] sm:$0xff] }
 0x11d   : > { %v6837_v51 = vadd.f32 %v5477_v54, %v953_v2  ;;  %v948_v19 = vadd.f32 %v947_v4, %v6581_v10 }
 0x11e   : > { %v5424_v20 = vpop.f32.mrf.mxu1  ;;  %v5480_v7 = vpop.f32.mrf.mxu0  ;;  %5741 = vmatmul.mubr.msk.f32.gmra.mxu1 %vm322_vm1, %v3195_v44  ;;  %5797 = vmatmul.mubr.msk.f32.gmra.mxu0 %vm322_vm1, %v3625_v25 }
 0x11f   : > { %v6842_v32 = vadd.f32 %v1341_v1, %v948_v19  ;;  %v963_v21 = vadd.f32 %v5424_v20, %v6592_v15  ;;  %5743 = vmatprep.mubr.msk.f32.mxu1 %vm322_vm1, %v3196_v11  ;;  %5799 = vmatprep.mubr.msk.f32.mxu0 %vm322_vm1, %v3626_v13  ;;  %v3201_v1 = vld [vmem:[%s5932_s9 + $0x9d] sm:$0xff]  ;;  %v3202_v19 = vld [vmem:[%s5932_s9 + $0xa5] sm:$0xff] }
 0x120   : > { %v957_v9 = vpop.f32.mrf.mxu1  ;;  %v1351_v10 = vpop.f32.mrf.mxu0  ;;  %v3631_v11 = vld [vmem:[%s5932_s9 + $0x9e] sm:$0xff]  ;;  %v3632_v20 = vld [vmem:[%s5932_s9 + $0xa6] sm:$0xff] }
 0x121   : > { %v6851_v63 = vadd.f32 %v5480_v7, %v963_v21  ;;  %v958_v43 = vadd.f32 %v957_v9, %v6601_v18 }
 0x122   : > { %v5427_v38 = vpop.f32.mrf.mxu1  ;;  %v5483_v15 = vpop.f32.mrf.mxu0  ;;  %5744 = vmatmul.mubr.msk.f32.gmra.mxu1 %vm322_vm1, %v3197_v59  ;;  %5800 = vmatmul.mubr.msk.f32.gmra.mxu0 %vm322_vm1, %v3627_v27 }
 0x123   : > { %v6856_v49 = vadd.f32 %v1351_v10, %v958_v43  ;;  %v973_v55 = vadd.f32 %v5427_v38, %v6612_v23  ;;  %5746 = vmatprep.mubr.msk.f32.mxu1 %vm322_vm1, %v3198_v34  ;;  %5802 = vmatprep.mubr.msk.f32.mxu0 %vm322_vm1, %v3628_v37  ;;  %v3203_v10 = vld [vmem:[%s5932_s9 + $0xad] sm:$0xff]  ;;  %v3204_v43 = vld [vmem:[%s5932_s9 + $0xb5] sm:$0xff] }
 0x124   : > { %v967_v52 = vpop.f32.mrf.mxu1  ;;  %v1361_v18 = vpop.f32.mrf.mxu0  ;;  %v3633_v34 = vld [vmem:[%s5932_s9 + $0xae] sm:$0xff]  ;;  %v3634_v38 = vld [vmem:[%s5932_s9 + $0xb6] sm:$0xff] }
 0x125   : > { %v6865_v54 = vadd.f32 %v5483_v15, %v973_v55  ;;  %v968_v2 = vadd.f32 %v967_v52, %v6621_v26 }
 0x126   : > { %v5430_v44 = vpop.f32.mrf.mxu1  ;;  %v5486_v23 = vpop.f32.mrf.mxu0  ;;  %5747 = vmatmul.mubr.msk.f32.gmra.mxu1 %vm322_vm1, %v3199_v47  ;;  %5803 = vmatmul.mubr.msk.f32.gmra.mxu0 %vm322_vm1, %v3629_v3 }
 0x127   : > { %v6870_v25 = vadd.f32 %v1361_v18, %v968_v2  ;;  %v983_v4 = vadd.f32 %v5430_v44, %v6629_v30  ;;  %5749 = vmatprep.mubr.msk.f32.mxu1 %vm322_vm1, %v3200_v60  ;;  %5805 = vmatprep.mubr.msk.f32.mxu0 %vm322_vm1, %v3630_v62  ;;  %v3205_v18 = vld [vmem:[%s5932_s9 + $0xbd] sm:$0xff]  ;;  %v3206_v2 = vld [vmem:[%s5932_s9 + $0xc5] sm:$0xff] }
 0x128   : > { %v977_v13 = vpop.f32.mrf.mxu1  ;;  %v1371_v26 = vpop.f32.mrf.mxu0  ;;  %v3635_v60 = vld [vmem:[%s5932_s9 + $0xbe] sm:$0xff]  ;;  %v3636_v44 = vld [vmem:[%s5932_s9 + $0xc6] sm:$0xff] }
 0x129   : > { %v6879_v7 = vadd.f32 %v5486_v23, %v983_v4  ;;  %v978_v21 = vadd.f32 %v977_v13, %v6638_v33 }
 0x12a   : > { %v5433_v59 = vpop.f32.mrf.mxu1  ;;  %v5489_v30 = vpop.f32.mrf.mxu0  ;;  %5750 = vmatmul.mubr.msk.f32.gmra.mxu1 %vm322_vm1, %v3201_v1  ;;  %5806 = vmatmul.mubr.msk.f32.gmra.mxu0 %vm322_vm1, %v3631_v11 }
 0x12b   : > { %v6884_v27 = vadd.f32 %v1371_v26, %v978_v21  ;;  %v993_v9 = vadd.f32 %v5433_v59, %v6643_v36  ;;  %5752 = vmatprep.mubr.msk.f32.mxu1 %vm322_vm1, %v3202_v19  ;;  %5808 = vmatprep.mubr.msk.f32.mxu0 %vm322_vm1, %v3632_v20  ;;  %v3207_v26 = vld [vmem:[%s5932_s9 + $0xcd] sm:$0xff]  ;;  %v3208_v21 = vld [vmem:[%s5932_s9 + $0xd5] sm:$0xff] }
 0x12c   : > { %v987_v37 = vpop.f32.mrf.mxu1  ;;  %v1381_v33 = vpop.f32.mrf.mxu0  ;;  %v3637_v19 = vld [vmem:[%s5932_s9 + $0xce] sm:$0xff]  ;;  %v3638_v59 = vld [vmem:[%s5932_s9 + $0xd6] sm:$0xff] }
 0x12d   : > { %v6893_v15 = vadd.f32 %v5489_v30, %v993_v9  ;;  %v988_v55 = vadd.f32 %v987_v37, %v6652_v39 }
 0x12e   : > { %v5436_v47 = vpop.f32.mrf.mxu1  ;;  %v5492_v36 = vpop.f32.mrf.mxu0  ;;  %5753 = vmatmul.mubr.msk.f32.gmra.mxu1 %vm322_vm1, %v3203_v10  ;;  %5809 = vmatmul.mubr.msk.f32.gmra.mxu0 %vm322_vm1, %v3633_v34 }
 0x12f   : > { %v6898_v3 = vadd.f32 %v1381_v33, %v988_v55  ;;  %v1003_v52 = vadd.f32 %v5436_v47, %v6657_v42  ;;  %5755 = vmatprep.mubr.msk.f32.mxu1 %vm322_vm1, %v3204_v43  ;;  %5811 = vmatprep.mubr.msk.f32.mxu0 %vm322_vm1, %v3634_v38  ;;  %v3209_v33 = vld [vmem:[%s5932_s9 + $0xdd] sm:$0xff]  ;;  %v3210_v55 = vld [vmem:[%s5932_s9 + $0xe5] sm:$0xff] }
 0x130   : > { %v997_v62 = vpop.f32.mrf.mxu1  ;;  %v1391_v39 = vpop.f32.mrf.mxu0  ;;  %v3639_v43 = vld [vmem:[%s5932_s9 + $0xde] sm:$0xff]  ;;  %v3640_v47 = vld [vmem:[%s5932_s9 + $0xe6] sm:$0xff] }
 0x131   : > { %v6907_v23 = vadd.f32 %v5492_v36, %v1003_v52  ;;  %v998_v4 = vadd.f32 %v997_v62, %v6666_v45 }
 0x132   : > { %v5439_v1 = vpop.f32.mrf.mxu1  ;;  %v5495_v42 = vpop.f32.mrf.mxu0  ;;  %5756 = vmatmul.mubr.msk.f32.gmra.mxu1 %vm322_vm1, %v3205_v18  ;;  %5812 = vmatmul.mubr.msk.f32.gmra.mxu0 %vm322_vm1, %v3635_v60 }
 0x133   : > { %v6912_v11 = vadd.f32 %v1391_v39, %v998_v4  ;;  %v1013_v13 = vadd.f32 %v5439_v1, %v6671_v53  ;;  %5758 = vmatprep.mubr.msk.f32.mxu1 %vm322_vm1, %v3206_v2  ;;  %5814 = vmatprep.mubr.msk.f32.mxu0 %vm322_vm1, %v3636_v44  ;;  %v3211_v39 = vld [vmem:[%s5932_s9 + $0xed] sm:$0xff]  ;;  %v3212_v4 = vld [vmem:[%s5932_s9 + $0xf5] sm:$0xff] }
 0x134   : > { %v1007_v20 = vpop.f32.mrf.mxu1  ;;  %v1401_v45 = vpop.f32.mrf.mxu0  ;;  %v3641_v2 = vld [vmem:[%s5932_s9 + $0xee] sm:$0xff]  ;;  %v3642_v1 = vld [vmem:[%s5932_s9 + $0xf6] sm:$0xff] }
 0x135   : > { %v6921_v30 = vadd.f32 %v5495_v42, %v1013_v13  ;;  %v1008_v9 = vadd.f32 %v1007_v20, %v6680_v61 }
 0x136   : > { %v5442_v10 = vpop.f32.mrf.mxu1  ;;  %v5498_v53 = vpop.f32.mrf.mxu0  ;;  %5759 = vmatmul.mubr.msk.f32.gmra.mxu1 %vm322_vm1, %v3207_v26  ;;  %5815 = vmatmul.mubr.msk.f32.gmra.mxu0 %vm322_vm1, %v3637_v19 }
 0x137   : > { %v6926_v34 = vadd.f32 %v1401_v45, %v1008_v9  ;;  %v1023_v37 = vadd.f32 %v5442_v10, %v6685_v50  ;;  %5761 = vmatprep.mubr.msk.f32.mxu1 %vm322_vm1, %v3208_v21  ;;  %5817 = vmatprep.mubr.msk.f32.mxu0 %vm322_vm1, %v3638_v59  ;;  %v3213_v45 = vld [vmem:[%s5932_s9 + $0xfd] sm:$0xff]  ;;  %v3214_v9 = vld [vmem:[%s5932_s9 + $0x105] sm:$0xff] }
 0x138   : > { %v1017_v38 = vpop.f32.mrf.mxu1  ;;  %v1411_v61 = vpop.f32.mrf.mxu0  ;;  %v3643_v21 = vld [vmem:[%s5932_s9 + $0xfe] sm:$0xff]  ;;  %v3644_v10 = vld [vmem:[%s5932_s9 + $0x106] sm:$0xff] }
 0x139   : > { %v6935_v36 = vadd.f32 %v5498_v53, %v1023_v37  ;;  %v1018_v52 = vadd.f32 %v1017_v38, %v6694_v48 }
 0x13a   : > { %v5445_v18 = vpop.f32.mrf.mxu1  ;;  %v5501_v50 = vpop.f32.mrf.mxu0  ;;  %5762 = vmatmul.mubr.msk.f32.gmra.mxu1 %vm322_vm1, %v3209_v33  ;;  %5818 = vmatmul.mubr.msk.f32.gmra.mxu0 %vm322_vm1, %v3639_v43 }
 0x13b   : > { %v6940_v60 = vadd.f32 %v1411_v61, %v1018_v52  ;;  %v1033_v62 = vadd.f32 %v5445_v18, %v6699_v56  ;;  %5764 = vmatprep.mubr.msk.f32.mxu1 %vm322_vm1, %v3210_v55  ;;  %5820 = vmatprep.mubr.msk.f32.mxu0 %vm322_vm1, %v3640_v47  ;;  %v3215_v61 = vld [vmem:[%s5932_s9 + $0x10d] sm:$0xff]  ;;  %v3216_v52 = vld [vmem:[%s5932_s9 + $0x115] sm:$0xff] }
 0x13c   : > { %v1027_v44 = vpop.f32.mrf.mxu1  ;;  %v1421_v48 = vpop.f32.mrf.mxu0  ;;  %v3645_v55 = vld [vmem:[%s5932_s9 + $0x10e] sm:$0xff]  ;;  %v3646_v18 = vld [vmem:[%s5932_s9 + $0x116] sm:$0xff] }
 0x13d   : > { %v6949_v42 = vadd.f32 %v5501_v50, %v1033_v62  ;;  %v1028_v13 = vadd.f32 %v1027_v44, %v6708_v46 }
 0x13e   : > { %v5506_v26 = vpop.f32.mrf.mxu1  ;;  %v5562_v56 = vpop.f32.mrf.mxu0  ;;  %5765 = vmatmul.mubr.msk.f32.gmra.mxu1 %vm322_vm1, %v3211_v39  ;;  %5821 = vmatmul.mubr.msk.f32.gmra.mxu0 %vm322_vm1, %v3641_v2 }
 0x13f   : > { %v6954_v19 = vadd.f32 %v1421_v48, %v1028_v13  ;;  %v1861_v20 = vadd.f32 %v5506_v26, %v6718_v12  ;;  %5767 = vmatprep.mubr.msk.f32.mxu1 %vm322_vm1, %v3212_v4  ;;  %5823 = vmatprep.mubr.msk.f32.mxu0 %vm322_vm1, %v3642_v1  ;;  %v3217_v48 = vld [vmem:[%s5932_s9 + $0x11d] sm:$0xff]  ;;  %v3218_v13 = vld [vmem:[%s5932_s9 + $0x125] sm:$0xff] }
 0x140   : > { %v1681_v59 = vpop.f32.mrf.mxu1  ;;  %v2111_v46 = vpop.f32.mrf.mxu0  ;;  %v3647_v4 = vld [vmem:[%s5932_s9 + $0x11e] sm:$0xff]  ;;  %v3648_v26 = vld [vmem:[%s5932_s9 + $0x126] sm:$0xff] }
 0x141   : > { %v6963_v53 = vadd.f32 %v5562_v56, %v1861_v20  ;;  %v1860_v37 = vadd.f32 %v1681_v59, %v6723_v6 }
 0x142   : > { %v5509_v33 = vpop.f32.mrf.mxu1  ;;  %v5565_v12 = vpop.f32.mrf.mxu0  ;;  %5768 = vmatmul.mubr.msk.f32.gmra.mxu1 %vm322_vm1, %v3213_v45  ;;  %5824 = vmatmul.mubr.msk.f32.gmra.mxu0 %vm322_vm1, %v3643_v21 }
 0x143   : > { %v6968_v43 = vadd.f32 %v2111_v46, %v1860_v37  ;;  %v1863_v38 = vadd.f32 %v5509_v33, %v6730_v28  ;;  %5770 = vmatprep.mubr.msk.f32.mxu1 %vm322_vm1, %v3214_v9  ;;  %5826 = vmatprep.mubr.msk.f32.mxu0 %vm322_vm1, %v3644_v10  ;;  %v3219_v46 = vld [vmem:[%s5932_s9 + $0x12d] sm:$0xff]  ;;  %v3220_v37 = vld [vmem:[%s5932_s9 + $0x135] sm:$0xff] }
 0x144   : > { %v1691_v47 = vpop.f32.mrf.mxu1  ;;  %v2121_v6 = vpop.f32.mrf.mxu0  ;;  %v3649_v9 = vld [vmem:[%s5932_s9 + $0x12e] sm:$0xff]  ;;  %v3650_v33 = vld [vmem:[%s5932_s9 + $0x136] sm:$0xff] }
 0x145   : > { %v6977_v50 = vadd.f32 %v5565_v12, %v1863_v38  ;;  %v1862_v62 = vadd.f32 %v1691_v47, %v6735_v14 }
 0x146   : > { %v5512_v39 = vpop.f32.mrf.mxu1  ;;  %v5568_v28 = vpop.f32.mrf.mxu0  ;;  %5771 = vmatmul.mubr.msk.f32.gmra.mxu1 %vm322_vm1, %v3215_v61  ;;  %5827 = vmatmul.mubr.msk.f32.gmra.mxu0 %vm322_vm1, %v3645_v55 }
 0x147   : > { %v6982_v2 = vadd.f32 %v2121_v6, %v1862_v62  ;;  %v1865_v44 = vadd.f32 %v5512_v39, %v6742_v57  ;;  %5773 = vmatprep.mubr.msk.f32.mxu1 %vm322_vm1, %v3216_v52  ;;  %5829 = vmatprep.mubr.msk.f32.mxu0 %vm322_vm1, %v3646_v18  ;;  %v3221_v6 = vld [vmem:[%s5932_s9 + $0x13d] sm:$0xff] }
 0x148   : > { %v1701_v1 = vpop.f32.mrf.mxu1  ;;  %v2131_v14 = vpop.f32.mrf.mxu0  ;;  %v3651_v52 = vld [vmem:[%s5932_s9 + $0x13e] sm:$0xff]  ;;  %s5841_s9 = smul.u32 288, %s5924_s29 }
 0x149   : > { %v6991_v56 = vadd.f32 %v5568_v28, %v1865_v44  ;;  %v1864_v20 = vadd.f32 %v1701_v1, %v6747_v22 }
 0x14a   : > { %v5515_v45 = vpop.f32.mrf.mxu1  ;;  %v5571_v57 = vpop.f32.mrf.mxu0  ;;  %5774 = vmatmul.mubr.msk.f32.gmra.mxu1 %vm322_vm1, %v3217_v48  ;;  %5830 = vmatmul.mubr.msk.f32.gmra.mxu0 %vm322_vm1, %v3647_v4  ;;  %s7235_s18 = scalar_lea.vmem %s7526_s4, %s5841_s9 }
 0x14b   : > { %v6996_v21 = vadd.f32 %v2131_v14, %v1864_v20  ;;  %v1867_v59 = vadd.f32 %v5515_v45, %v6754_v5  ;;  %5776 = vmatprep.mubr.msk.f32.mxu1 %vm322_vm1, %v3218_v13  ;;  %5832 = vmatprep.mubr.msk.f32.mxu0 %vm322_vm1, %v3648_v26 }
 0x14c   : > { %v1711_v10 = vpop.f32.mrf.mxu1  ;;  %v2141_v22 = vpop.f32.mrf.mxu0 }
 0x14d   : > { %v7005_v12 = vadd.f32 %v5571_v57, %v1867_v59  ;;  %v1866_v38 = vadd.f32 %v1711_v10, %v6759_v29 }
 0x14e   : > { %v5518_v61 = vpop.f32.mrf.mxu1  ;;  %v5574_v55 = vpop.f32.mrf.mxu0  ;;  %5777 = vmatmul.mubr.msk.f32.gmra.mxu1 %vm322_vm1, %v3219_v46  ;;  %5833 = vmatmul.mubr.msk.f32.gmra.mxu0 %vm322_vm1, %v3649_v9 }
 0x14f   : > { %v7010_v5 = vadd.f32 %v2141_v22, %v1866_v38  ;;  %v1869_v47 = vadd.f32 %v5518_v61, %v6767_v24  ;;  %5779 = vmatprep.mubr.msk.f32.mxu1 %vm322_vm1, %v3220_v37  ;;  %5835 = vmatprep.mubr.msk.f32.mxu0 %vm322_vm1, %v3650_v33 }
 0x150   : > { %v1721_v18 = vpop.f32.mrf.mxu1  ;;  %v2151_v62 = vpop.f32.mrf.mxu0 }
 0x151   : > { %v7017_v39 = vadd.f32 %v5574_v55, %v1869_v47  ;;  %v1868_v29 = vadd.f32 %v1721_v18, %v6772_v35 }
 0x152   : > { %v5521_v28 = vpop.f32.mrf.mxu1  ;;  %v5577_v44 = vpop.f32.mrf.mxu0  ;;  %5780 = vmatmul.mubr.msk.f32.gmra.mxu1 %vm322_vm1, %v3221_v6  ;;  %5836 = vmatmul.mubr.msk.f32.gmra.mxu0 %vm322_vm1, %v3651_v52 }
 0x153   : > { %v7022_v48 = vadd.f32 %v2151_v62, %v1868_v29  ;;  %v1871_v24 = vadd.f32 %v5521_v28, %v6781_v17 }
 0x154   : > { %v1731_v4 = vpop.f32.mrf.mxu1  ;;  %v2161_v1 = vpop.f32.mrf.mxu0 }
 0x155   : > { %v7025_v14 = vadd.f32 %v5577_v44, %v1871_v24  ;;  %v1870_v13 = vadd.f32 %v1731_v4, %v6786_v58 }
 0x156   : > { %v5524_v26 = vpop.f32.mrf.mxu1  ;;  %v5580_v20 = vpop.f32.mrf.mxu0 }
 0x157   : > { %v7028_v45 = vadd.f32 %v2161_v1, %v1870_v13  ;;  %v1873_v35 = vadd.f32 %v5524_v26, %v6795_v8 }
 0x158   : > { %v1741_v57 = vpop.f32.mrf.mxu1  ;;  %v2171_v59 = vpop.f32.mrf.mxu0 }
 0x159   : > { %v7031_v46 = vadd.f32 %v5580_v20, %v1873_v35  ;;  %v1872_v9 = vadd.f32 %v1741_v57, %v6800_v16 }
 0x15a   : > { %v5527_v10 = vpop.f32.mrf.mxu1  ;;  %v5583_v17 = vpop.f32.mrf.mxu0 }
 0x15b   : > { %v7034_v22 = vadd.f32 %v2171_v59, %v1872_v9  ;;  %v1875_v37 = vadd.f32 %v5527_v10, %v6809_v31 }
 0x15c   : > { %v1751_v33 = vpop.f32.mrf.mxu1  ;;  %v2181_v58 = vpop.f32.mrf.mxu0 }
 0x15d   : > { %v7037_v38 = vadd.f32 %v5583_v17, %v1875_v37  ;;  %v1874_v61 = vadd.f32 %v1751_v33, %v6814_v40 }
 0x15e   : > { %v5530_v55 = vpop.f32.mrf.mxu1  ;;  %v5586_v8 = vpop.f32.mrf.mxu0 }
 0x15f   : > { %v7040_v47 = vadd.f32 %v2181_v58, %v1874_v61  ;;  %v1877_v6 = vadd.f32 %v5530_v55, %v6823_v41 }
 0x160   : > { %v1761_v52 = vpop.f32.mrf.mxu1  ;;  %v2191_v16 = vpop.f32.mrf.mxu0 }
 0x161   : > { %v7043_v18 = vadd.f32 %v5586_v8, %v1877_v6  ;;  %v1876_v62 = vadd.f32 %v1761_v52, %v6828_v0 }
 0x162   : > { %v5533_v29 = vpop.f32.mrf.mxu1  ;;  %v5589_v31 = vpop.f32.mrf.mxu0 }
 0x163   : > { %v7046_v28 = vadd.f32 %v2191_v16, %v1876_v62  ;;  %v1879_v44 = vadd.f32 %v5533_v29, %v6837_v51 }
 0x164   : > { %v1771_v24 = vpop.f32.mrf.mxu1  ;;  %v2201_v40 = vpop.f32.mrf.mxu0 }
 0x165   : > { %v7049_v4 = vadd.f32 %v5589_v31, %v1879_v44  ;;  %v1878_v1 = vadd.f32 %v1771_v24, %v6842_v32 }
 0x166   : > { %v5536_v13 = vpop.f32.mrf.mxu1  ;;  %v5592_v41 = vpop.f32.mrf.mxu0 }
 0x167   : > { %v7052_v26 = vadd.f32 %v2201_v40, %v1878_v1  ;;  %v1881_v20 = vadd.f32 %v5536_v13, %v6851_v63 }
 0x168   : > { %v1781_v35 = vpop.f32.mrf.mxu1  ;;  %v2211_v0 = vpop.f32.mrf.mxu0 }
 0x169   : > { %v7055_v57 = vadd.f32 %v5592_v41, %v1881_v20  ;;  %v1880_v59 = vadd.f32 %v1781_v35, %v6856_v49 }
 0x16a   : > { %v5539_v9 = vpop.f32.mrf.mxu1  ;;  %v5595_v51 = vpop.f32.mrf.mxu0 }
 0x16b   : > { %v7058_v10 = vadd.f32 %v2211_v0, %v1880_v59  ;;  %v1883_v17 = vadd.f32 %v5539_v9, %v6865_v54 }
 0x16c   : > { %v1791_v37 = vpop.f32.mrf.mxu1  ;;  %v2221_v32 = vpop.f32.mrf.mxu0 }
 0x16d   : > { %v7061_v33 = vadd.f32 %v5595_v51, %v1883_v17  ;;  %v1882_v58 = vadd.f32 %v1791_v37, %v6870_v25 }
 0x16e   : > { %v5542_v61 = vpop.f32.mrf.mxu1  ;;  %v5598_v63 = vpop.f32.mrf.mxu0 }
 0x16f   : > { %v7064_v55 = vadd.f32 %v2221_v32, %v1882_v58  ;;  %v1885_v8 = vadd.f32 %v5542_v61, %v6879_v7 }
 0x170   : > { %v1801_v6 = vpop.f32.mrf.mxu1  ;;  %v2231_v49 = vpop.f32.mrf.mxu0 }
 0x171   : > { %v7067_v52 = vadd.f32 %v5598_v63, %v1885_v8  ;;  %v1884_v16 = vadd.f32 %v1801_v6, %v6884_v27 }
 0x172   : > { %v5545_v62 = vpop.f32.mrf.mxu1  ;;  %v5601_v54 = vpop.f32.mrf.mxu0 }
 0x173   : > { %v7070_v29 = vadd.f32 %v2231_v49, %v1884_v16  ;;  %v1887_v31 = vadd.f32 %v5545_v62, %v6893_v15 }
 0x174   : > { %v1811_v44 = vpop.f32.mrf.mxu1  ;;  %v2241_v25 = vpop.f32.mrf.mxu0 }
 0x175   : > { %v7073_v24 = vadd.f32 %v5601_v54, %v1887_v31  ;;  %v1886_v40 = vadd.f32 %v1811_v44, %v6898_v3 }
 0x176   : > { %v5548_v1 = vpop.f32.mrf.mxu1  ;;  %v5604_v7 = vpop.f32.mrf.mxu0 }
 0x177   : > { %v7076_v13 = vadd.f32 %v2241_v25, %v1886_v40  ;;  %v1889_v41 = vadd.f32 %v5548_v1, %v6907_v23 }
 0x178   : > { %v1821_v20 = vpop.f32.mrf.mxu1  ;;  %v2251_v27 = vpop.f32.mrf.mxu0 }
 0x179   : > { %v7079_v35 = vadd.f32 %v5604_v7, %v1889_v41  ;;  %v1888_v0 = vadd.f32 %v1821_v20, %v6912_v11 }
 0x17a   : > { %v5551_v59 = vpop.f32.mrf.mxu1  ;;  %v5607_v15 = vpop.f32.mrf.mxu0 }
 0x17b   : > { %v7082_v9 = vadd.f32 %v2251_v27, %v1888_v0  ;;  %v1891_v51 = vadd.f32 %v5551_v59, %v6921_v30 }
 0x17c   : > { %v1831_v17 = vpop.f32.mrf.mxu1  ;;  %v2261_v3 = vpop.f32.mrf.mxu0 }
 0x17d   : > { %v7085_v37 = vadd.f32 %v5607_v15, %v1891_v51  ;;  %v1890_v32 = vadd.f32 %v1831_v17, %v6926_v34 }
 0x17e   : > { %v5554_v58 = vpop.f32.mrf.mxu1  ;;  %v5610_v23 = vpop.f32.mrf.mxu0 }
 0x17f   : > { %v7088_v61 = vadd.f32 %v2261_v3, %v1890_v32  ;;  %v1893_v63 = vadd.f32 %v5554_v58, %v6935_v36 }
 0x180   : > { %v1841_v8 = vpop.f32.mrf.mxu1  ;;  %v2271_v11 = vpop.f32.mrf.mxu0 }
 0x181   : > { %v7091_v6 = vadd.f32 %v5610_v23, %v1893_v63  ;;  %v1892_v49 = vadd.f32 %v1841_v8, %v6940_v60 }
 0x182   : > { %v5557_v16 = vpop.f32.mrf.mxu1  ;;  %v5613_v30 = vpop.f32.mrf.mxu0 }
 0x183   : > { %v7094_v62 = vadd.f32 %v2271_v11, %v1892_v49  ;;  %v1895_v54 = vadd.f32 %v5557_v16, %v6949_v42 }
 0x184   : > { %v1851_v31 = vpop.f32.mrf.mxu1  ;;  %v2281_v34 = vpop.f32.mrf.mxu0 }
 0x185   : > { %v7097_v44 = vadd.f32 %v5613_v30, %v1895_v54  ;;  %v1894_v25 = vadd.f32 %v1851_v31, %v6954_v19 }
 0x186   : > { %v5618_v40 = vpop.f32.mrf.mxu1  ;;  %v5674_v36 = vpop.f32.mrf.mxu0 }
 0x187   : > { %v7100_v1 = vadd.f32 %v2281_v34, %v1894_v25  ;;  %v2721_v7 = vadd.f32 %v5618_v40, %v6963_v53 }
 0x188   : > { %v2541_v41 = vpop.f32.mrf.mxu1  ;;  %v2971_v60 = vpop.f32.mrf.mxu0 }
 0x189   : > { %v7103_v20 = vadd.f32 %v5674_v36, %v2721_v7  ;;  %v2720_v27 = vadd.f32 %v2541_v41, %v6968_v43 }
 0x18a   : > { %v5621_v0 = vpop.f32.mrf.mxu1  ;;  %v5677_v42 = vpop.f32.mrf.mxu0 }
 0x18b   : > { %v7106_v59 = vadd.f32 %v2971_v60, %v2720_v27  ;;  %v2723_v15 = vadd.f32 %v5621_v0, %v6977_v50 }
 0x18c   : > { %v2551_v51 = vpop.f32.mrf.mxu1  ;;  %v2981_v19 = vpop.f32.mrf.mxu0 }
 0x18d   : > { %v7109_v17 = vadd.f32 %v5677_v42, %v2723_v15  ;;  %v2722_v3 = vadd.f32 %v2551_v51, %v6982_v2 }
 0x18e   : > { %v5624_v32 = vpop.f32.mrf.mxu1  ;;  %v5680_v53 = vpop.f32.mrf.mxu0 }
 0x18f   : > { %v7112_v58 = vadd.f32 %v2981_v19, %v2722_v3  ;;  %v2725_v23 = vadd.f32 %v5624_v32, %v6991_v56 }
 0x190   : > { %v2561_v63 = vpop.f32.mrf.mxu1  ;;  %v2991_v43 = vpop.f32.mrf.mxu0 }
 0x191   : > { %v7115_v8 = vadd.f32 %v5680_v53, %v2725_v23  ;;  %v2724_v11 = vadd.f32 %v2561_v63, %v6996_v21 }
 0x192   : > { %v5627_v49 = vpop.f32.mrf.mxu1  ;;  %v5683_v50 = vpop.f32.mrf.mxu0 }
 0x193   : > { %v7118_v16 = vadd.f32 %v2991_v43, %v2724_v11  ;;  %v2727_v30 = vadd.f32 %v5627_v49, %v7005_v12 }
 0x194   : > { %v2571_v54 = vpop.f32.mrf.mxu1  ;;  %v3001_v2 = vpop.f32.mrf.mxu0 }
 0x195   : > { %v7121_v31 = vadd.f32 %v5683_v50, %v2727_v30  ;;  %v2726_v34 = vadd.f32 %v2571_v54, %v7010_v5 }
 0x196   : > { %v5630_v25 = vpop.f32.mrf.mxu1  ;;  %v5686_v56 = vpop.f32.mrf.mxu0 }
 0x197   : > { %v7124_v40 = vadd.f32 %v3001_v2, %v2726_v34  ;;  %v2729_v36 = vadd.f32 %v5630_v25, %v7017_v39 }
 0x198   : > { %v2581_v7 = vpop.f32.mrf.mxu1  ;;  %v3011_v21 = vpop.f32.mrf.mxu0 }
 0x199   : > { %v7127_v41 = vadd.f32 %v5686_v56, %v2729_v36  ;;  %v2728_v60 = vadd.f32 %v2581_v7, %v7022_v48 }
 0x19a   : > { %v5633_v27 = vpop.f32.mrf.mxu1  ;;  %v5689_v12 = vpop.f32.mrf.mxu0 }
 0x19b   : > { %v7130_v0 = vadd.f32 %v3011_v21, %v2728_v60  ;;  %v2731_v42 = vadd.f32 %v5633_v27, %v7025_v14 }
 0x19c   : > { %v2591_v15 = vpop.f32.mrf.mxu1  ;;  %v3021_v5 = vpop.f32.mrf.mxu0 }
 0x19d   : > { %v7133_v51 = vadd.f32 %v5689_v12, %v2731_v42  ;;  %v2730_v19 = vadd.f32 %v2591_v15, %v7028_v45 }
 0x19e   : > { %v5636_v3 = vpop.f32.mrf.mxu1  ;;  %v5692_v39 = vpop.f32.mrf.mxu0 }
 0x19f   : > { %v7136_v32 = vadd.f32 %v3021_v5, %v2730_v19  ;;  %v2733_v53 = vadd.f32 %v5636_v3, %v7031_v46 }
 0x1a0   : > { %v2601_v23 = vpop.f32.mrf.mxu1  ;;  %v3031_v48 = vpop.f32.mrf.mxu0 }
 0x1a1   : > { %v7139_v63 = vadd.f32 %v5692_v39, %v2733_v53  ;;  %v2732_v43 = vadd.f32 %v2601_v23, %v7034_v22 }
 0x1a2   : > { %v5639_v11 = vpop.f32.mrf.mxu1  ;;  %v5695_v14 = vpop.f32.mrf.mxu0 }
 0x1a3   : > { %v7142_v49 = vadd.f32 %v3031_v48, %v2732_v43  ;;  %v2735_v50 = vadd.f32 %v5639_v11, %v7037_v38 }
 0x1a4   : > { %v2611_v30 = vpop.f32.mrf.mxu1  ;;  %v3041_v45 = vpop.f32.mrf.mxu0 }
 0x1a5   : > { %v7145_v54 = vadd.f32 %v5695_v14, %v2735_v50  ;;  %v2734_v2 = vadd.f32 %v2611_v30, %v7040_v47 }
 0x1a6   : > { %v5642_v34 = vpop.f32.mrf.mxu1  ;;  %v5698_v46 = vpop.f32.mrf.mxu0 }
 0x1a7   : > { %v7148_v25 = vadd.f32 %v3041_v45, %v2734_v2  ;;  %v2737_v56 = vadd.f32 %v5642_v34, %v7043_v18 }
 0x1a8   : > { %v2621_v36 = vpop.f32.mrf.mxu1  ;;  %v3051_v22 = vpop.f32.mrf.mxu0 }
 0x1a9   : > { %v7151_v7 = vadd.f32 %v5698_v46, %v2737_v56  ;;  %v2736_v21 = vadd.f32 %v2621_v36, %v7046_v28 }
 0x1aa   : > { %v5645_v60 = vpop.f32.mrf.mxu1  ;;  %v5701_v38 = vpop.f32.mrf.mxu0 }
 0x1ab   : > { %v7154_v27 = vadd.f32 %v3051_v22, %v2736_v21  ;;  %v2739_v12 = vadd.f32 %v5645_v60, %v7049_v4  ;;  %v7178_v60 = vpop.permute.xlu0 %4164 }
 0x1ac   : > { %v2631_v42 = vpop.f32.mrf.mxu1  ;;  %v3061_v47 = vpop.f32.mrf.mxu0 }
 0x1ad   : > { %v7157_v15 = vadd.f32 %v5701_v38, %v2739_v12  ;;  %v2738_v5 = vadd.f32 %v2631_v42, %v7052_v26  ;;  %v7180_v38 = vpop.permute.xlu1 %4174 }
 0x1ae   : > { %v5648_v19 = vpop.f32.mrf.mxu1  ;;  %v5704_v18 = vpop.f32.mrf.mxu0 }
 0x1af   : > { %v7160_v3 = vadd.f32 %v3061_v47, %v2738_v5  ;;  %v2741_v39 = vadd.f32 %v5648_v19, %v7055_v57 }
 0x1b0   : > { %v2641_v53 = vpop.f32.mrf.mxu1  ;;  %v3071_v28 = vpop.f32.mrf.mxu0 }
 0x1b1   : > { %v7163_v23 = vadd.f32 %v5704_v18, %v2741_v39  ;;  %v2740_v48 = vadd.f32 %v2641_v53, %v7058_v10 }
 0x1b2   : > { %v5651_v43 = vpop.f32.mrf.mxu1  ;;  %v5707_v4 = vpop.f32.mrf.mxu0 }
 0x1b3   : > { %v7166_v11 = vadd.f32 %v3071_v28, %v2740_v48  ;;  %v2743_v14 = vadd.f32 %v5651_v43, %v7061_v33  ;;  %v4170_v48 = vpop.permute.xlu0 %4169  ;;  %v7191_v43 = vpop.permute.xlu1 %4179 }
 0x1b4   : > { %v2651_v50 = vpop.f32.mrf.mxu1  ;;  %v3081_v26 = vpop.f32.mrf.mxu0 }
 0x1b5   : > { %v7169_v30 = vadd.f32 %v5707_v4, %v2743_v14  ;;  %v2742_v45 = vadd.f32 %v2651_v50, %v7064_v55 }
 0x1b6   : > { %v5654_v2 = vpop.f32.mrf.mxu1  ;;  %v5710_v57 = vpop.f32.mrf.mxu0 }
 0x1b7   : > { %v7172_v34 = vadd.f32 %v3081_v26, %v2742_v45  ;;  %v2745_v46 = vadd.f32 %v5654_v2, %v7067_v52 }
 0x1b8   : > { %v2661_v56 = vpop.f32.mrf.mxu1  ;;  %v3091_v10 = vpop.f32.mrf.mxu0 }
 0x1b9   : > { %v7175_v36 = vadd.f32 %v5710_v57, %v2745_v46  ;;  %v2744_v22 = vadd.f32 %v2661_v56, %v7070_v29 }
 0x1ba   : > { %v5657_v21 = vpop.f32.mrf.mxu1  ;;  %v5713_v33 = vpop.f32.mrf.mxu0 }
 0x1bb   : > { %v7182_v12 = vadd.f32 %v3091_v10, %v2744_v22  ;;  %v2747_v55 = vadd.f32 %v5657_v21, %v7073_v24  ;;  %v7202_v10 = vpop.permute.xlu0 %4184  ;;  %v7204_v22 = vpop.permute.xlu1 %4189 }
 0x1bc   : > { %v2671_v42 = vpop.f32.mrf.mxu1  ;;  %v3101_v47 = vpop.f32.mrf.mxu0 }
 0x1bd   : > { %v7185_v5 = vadd.f32 %v5713_v33, %v2747_v55  ;;  %v2746_v52 = vadd.f32 %v2671_v42, %v7076_v13 }
 0x1be   : > { %v5660_v19 = vpop.f32.mrf.mxu1  ;;  %v5716_v18 = vpop.f32.mrf.mxu0 }
 0x1bf   : > { %v7188_v39 = vadd.f32 %v3101_v47, %v2746_v52  ;;  %v2749_v29 = vadd.f32 %v5660_v19, %v7079_v35 }
 0x1c0   : > { %v2681_v53 = vpop.f32.mrf.mxu1  ;;  %v3111_v28 = vpop.f32.mrf.mxu0 }
 0x1c1   : > { %v7193_v4 = vadd.f32 %v5716_v18, %v2749_v29  ;;  %v2748_v24 = vadd.f32 %v2681_v53, %v7082_v9  ;;  %v7215_v53 = vpop.permute.xlu0 %4194 }
 0x1c2   : > { %v5663_v14 = vpop.f32.mrf.mxu1  ;;  %v5719_v50 = vpop.f32.mrf.mxu0 }
 0x1c3   : > { %v7196_v26 = vadd.f32 %v3111_v28, %v2748_v24  ;;  %v2751_v13 = vadd.f32 %v5663_v14, %v7085_v37  ;;  %v7217_v28 = vpop.permute.xlu1 %4199 }
 0x1c4   : > { %v2691_v45 = vpop.f32.mrf.mxu1  ;;  %v3121_v2 = vpop.f32.mrf.mxu0 }
 0x1c5   : > { %v7199_v57 = vadd.f32 %v5719_v50, %v2751_v13  ;;  %v2750_v35 = vadd.f32 %v2691_v45, %v7088_v61 }
 0x1c6   : > { %v5666_v46 = vpop.f32.mrf.mxu1  ;;  %v5722_v56 = vpop.f32.mrf.mxu0 }
 0x1c7   : > { %v7206_v21 = vadd.f32 %v3121_v2, %v2750_v35  ;;  %v2753_v9 = vadd.f32 %v5666_v46, %v7091_v6 }
 0x1c8   : > { %v2701_v33 = vpop.f32.mrf.mxu1  ;;  %v3131_v55 = vpop.f32.mrf.mxu0 }
 0x1c9   : > { %v7209_v37 = vadd.f32 %v5722_v56, %v2753_v9  ;;  %v2752_v42 = vadd.f32 %v2701_v33, %v7094_v62  ;;  %v7239_v9 = vpop.permute.xlu1 %4209 }
 0x1ca   : > { %v5669_v47 = vpop.f32.mrf.mxu1  ;;  %v5725_v52 = vpop.f32.mrf.mxu0 }
 0x1cb   : > { %v7212_v61 = vadd.f32 %v3131_v55, %v2752_v42  ;;  %v2755_v19 = vadd.f32 %v5669_v47, %v7097_v44  ;;  %v7229_v44 = vld [vmem:[%s7524_s2] ss:$0 sm:$0xff] }
 0x1cc   : > { %v2711_v18 = vpop.f32.mrf.mxu1  ;;  %v3141_v29 = vpop.f32.mrf.mxu0 }
 0x1cd   : > { %v7219_v6 = vadd.f32 %v5725_v52, %v2755_v19  ;;  %v2754_v24 = vadd.f32 %v2711_v18, %v7100_v1 }
 0x1ce   : > { %v5730_v14 = vpop.f32.mrf.mxu1  ;;  %v5786_v50 = vpop.f32.mrf.mxu0 }
 0x1cf   : > { %v7223_v62 = vadd.f32 %v3141_v29, %v2754_v24  ;;  %v3581_v13 = vadd.f32 %v5730_v14, %v7103_v20  ;;  %v7237_v20 = vpop.permute.xlu0 %4204 }
 0x1d0   : > { %v3401_v45 = vpop.f32.mrf.mxu1  ;;  %v3831_v2 = vpop.f32.mrf.mxu0 }
 0x1d1   : > { %v4011_v35 = vadd.f32 %v5786_v50, %v3581_v13  ;;  %v3580_v46 = vadd.f32 %v3401_v45, %v7106_v59 }
 0x1d2   : > { %v5733_v1 = vpop.f32.mrf.mxu1  ;;  %v5789_v56 = vpop.f32.mrf.mxu0 }
 0x1d3   : > { %v4054_v33 = vadd.f32 %v7229_v44, %v4011_v35  ;;  %v4010_v55 = vadd.f32 %v3831_v2, %v3580_v46  ;;  %v3583_v42 = vadd.f32 %v5733_v1, %v7109_v17  ;;  %v7252_v46 = vpop.permute.xlu0 %4214  ;;  %v7254_v1 = vpop.permute.xlu1 %4219 }
 0x1d4   : > { %v3411_v59 = vpop.f32.mrf.mxu1  ;;  %v3841_v47 = vpop.f32.mrf.mxu0 }
 0x1d5   : > { %4091 = vst.msk [vmem:[%s7235_s18 + $0x8] sm:$0xff] %vm4089_vm2, %v4054_v33  ;;  %v4343_v52 = vmul.f32 %v4170_v48, %v4054_v33  ;;  %v4053_v19 = vadd.f32 %v7229_v44, %v4010_v55  ;;  %v4013_v18 = vadd.f32 %v5789_v56, %v3583_v42  ;;  %v3582_v29 = vadd.f32 %v3411_v59, %v7112_v58 }
 0x1d6   : > { %v5736_v24 = vpop.f32.mrf.mxu1  ;;  %v5792_v14 = vpop.f32.mrf.mxu0 }
 0x1d7   : > { %v4456_v50 = vmul.f32 %v4343_v52, %v4054_v33  ;;  %4090 = vst.msk [vmem:[%s7235_s18] sm:$0xff] %vm4089_vm2, %v4053_v19  ;;  %v4342_v13 = vmul.f32 %v7178_v60, %v4053_v19  ;;  %v4056_v17 = vadd.f32 %v7229_v44, %v4013_v18  ;;  %v4012_v45 = vadd.f32 %v3841_v47, %v3582_v29 }
 0x1d8   : > { %v3585_v2 = vadd.f32 %v5736_v24, %v7115_v8  ;;  %v3421_v35 = vpop.f32.mrf.mxu1  ;;  %v3851_v48 = vpop.f32.mrf.mxu0  ;;  %v4379_v58 = vsel %vm4089_vm2, %v4343_v52, 0.0 }
 0x1d9   : > { %v4378_v56 = vsel %vm4089_vm2, %v4342_v13, 0.0  ;;  %v4455_v33 = vmul.f32 %v4342_v13, %v4053_v19  ;;  %4093 = vst.msk [vmem:[%s7235_s18 + $0x18] sm:$0xff] %vm4089_vm2, %v4056_v17  ;;  %v4345_v60 = vmul.f32 %v7191_v43, %v4056_v17  ;;  %v4055_v42 = vadd.f32 %v7229_v44, %v4012_v45 }
 0x1da   : > { %v4380_v55 = vadd.f32 %v4379_v58, %v4378_v56  ;;  %v4015_v8 = vadd.f32 %v5792_v14, %v3585_v2  ;;  %v3584_v59 = vadd.f32 %v3421_v35, %v7118_v16  ;;  %v5739_v47 = vpop.f32.mrf.mxu1  ;;  %v5795_v18 = vpop.f32.mrf.mxu0  ;;  %v4492_v29 = vsel %vm4089_vm2, %v4456_v50, 0.0 }
 0x1db   : > { %v4491_v52 = vsel %vm4089_vm2, %v4455_v33, 0.0  ;;  %v4458_v24 = vmul.f32 %v4345_v60, %v4056_v17  ;;  %v3587_v19 = vadd.f32 %v5739_v47, %v7121_v31  ;;  %4092 = vst.msk [vmem:[%s7235_s18 + $0x10] sm:$0xff] %vm4089_vm2, %v4055_v42  ;;  %v4344_v43 = vmul.f32 %v7180_v38, %v4055_v42 }
 0x1dc   : > { %v4493_v13 = vadd.f32 %v4492_v29, %v4491_v52  ;;  %v4058_v45 = vadd.f32 %v7229_v44, %v4015_v8  ;;  %v4014_v14 = vadd.f32 %v3851_v48, %v3584_v59  ;;  %v3431_v2 = vpop.f32.mrf.mxu1  ;;  %v3861_v16 = vpop.f32.mrf.mxu0  ;;  %v4383_v35 = vsel %vm4089_vm2, %v4345_v60, 0.0 }
 0x1dd   : > { %v4017_v58 = vadd.f32 %v5795_v18, %v3587_v19  ;;  %v3586_v50 = vadd.f32 %v3431_v2, %v7124_v40  ;;  %v4381_v56 = vsel %vm4089_vm2, %v4344_v43, 0.0  ;;  %v4457_v17 = vmul.f32 %v4344_v43, %v4055_v42  ;;  %v7277_v48 = vpop.permute.xlu0 %4224  ;;  %v7279_v59 = vpop.permute.xlu1 %4229 }
 0x1de   : > { %4095 = vst.msk [vmem:[%s7235_s18 + $0x28] sm:$0xff] %vm4089_vm2, %v4058_v45  ;;  %v4347_v31 = vmul.f32 %v7204_v22, %v4058_v45  ;;  %v4057_v38 = vadd.f32 %v7229_v44, %v4014_v14  ;;  %v5742_v33 = vpop.f32.mrf.mxu1  ;;  %v5798_v8 = vpop.f32.mrf.mxu0  ;;  %v4382_v60 = vadd.f32 %v4381_v56, %v4380_v55  ;;  %v4496_v42 = vsel %vm4089_vm2, %v4458_v24, 0.0 }
 0x1df   : > { %v4060_v40 = vadd.f32 %v7229_v44, %v4017_v58  ;;  %v4016_v47 = vadd.f32 %v3861_v16, %v3586_v50  ;;  %v3589_v18 = vadd.f32 %v5742_v33, %v7127_v41  ;;  %v4494_v29 = vsel %vm4089_vm2, %v4457_v17, 0.0 }
 0x1e0   : > { %v4460_v22 = vmul.f32 %v4347_v31, %v4058_v45  ;;  %4094 = vst.msk [vmem:[%s7235_s18 + $0x20] sm:$0xff] %vm4089_vm2, %v4057_v38  ;;  %v4346_v52 = vmul.f32 %v7202_v10, %v4057_v38  ;;  %v3441_v19 = vpop.f32.mrf.mxu1  ;;  %v3871_v43 = vpop.f32.mrf.mxu0  ;;  %v4495_v14 = vadd.f32 %v4494_v29, %v4493_v13  ;;  %v4384_v2 = vadd.f32 %v4383_v35, %v4382_v60 }
 0x1e1   : > { %4097 = vst.msk [vmem:[%s7235_s18 + $0x38] sm:$0xff] %vm4089_vm2, %v4060_v40  ;;  %v4349_v55 = vmul.f32 %v7217_v28, %v4060_v40  ;;  %v4059_v41 = vadd.f32 %v7229_v44, %v4016_v47  ;;  %v4387_v24 = vsel %vm4089_vm2, %v4347_v31, 0.0  ;;  %v4019_v58 = vadd.f32 %v5798_v8, %v3589_v18  ;;  %v7301_v47 = vpop.permute.xlu0 %4234  ;;  %v7303_v18 = vpop.permute.xlu1 %4239 }
 0x1e2   : > { %v4385_v16 = vsel %vm4089_vm2, %v4346_v52, 0.0  ;;  %v4459_v45 = vmul.f32 %v4346_v52, %v4057_v38  ;;  %v5745_v50 = vpop.f32.mrf.mxu1  ;;  %v5801_v56 = vpop.f32.mrf.mxu0  ;;  %v4500_v10 = vsel %vm4089_vm2, %v4460_v22, 0.0  ;;  %v4497_v33 = vadd.f32 %v4496_v42, %v4495_v14 }
 0x1e3   : > { %v4386_v17 = vadd.f32 %v4385_v16, %v4384_v2  ;;  %v4462_v13 = vmul.f32 %v4349_v55, %v4060_v40  ;;  %4096 = vst.msk [vmem:[%s7235_s18 + $0x30] sm:$0xff] %vm4089_vm2, %v4059_v41  ;;  %v4348_v35 = vmul.f32 %v7215_v53, %v4059_v41  ;;  %v4062_v31 = vadd.f32 %v7229_v44, %v4019_v58 }
 0x1e4   : > { %v4498_v28 = vsel %vm4089_vm2, %v4459_v45, 0.0  ;;  %v3588_v60 = vadd.f32 %v3441_v19, %v7130_v0  ;;  %v3451_v38 = vpop.f32.mrf.mxu1  ;;  %v3881_v8 = vpop.f32.mrf.mxu0  ;;  %v4391_v40 = vsel %vm4089_vm2, %v4349_v55, 0.0  ;;  %v3591_v22 = vadd.f32 %v5745_v50, %v7133_v51 }
 0x1e5   : > { %v4499_v29 = vadd.f32 %v4498_v28, %v4497_v33  ;;  %v4388_v42 = vadd.f32 %v4387_v24, %v4386_v17  ;;  %v4389_v52 = vsel %vm4089_vm2, %v4348_v35, 0.0  ;;  %v4461_v14 = vmul.f32 %v4348_v35, %v4059_v41  ;;  %4099 = vst.msk [vmem:[%s7235_s18 + $0x48] sm:$0xff] %vm4089_vm2, %v4062_v31 }
 0x1e6   : > { %v4351_v53 = vmul.f32 %v7239_v9, %v4062_v31  ;;  %v4018_v0 = vadd.f32 %v3871_v43, %v3588_v60  ;;  %v5748_v19 = vpop.f32.mrf.mxu1  ;;  %v5804_v2 = vpop.f32.mrf.mxu0  ;;  %v4021_v58 = vadd.f32 %v5801_v56, %v3591_v22  ;;  %v3590_v33 = vadd.f32 %v3451_v38, %v7136_v32 }
 0x1e7   : > { %v4390_v16 = vadd.f32 %v4389_v52, %v4388_v42  ;;  %v4501_v45 = vadd.f32 %v4500_v10, %v4499_v29  ;;  %v4504_v55 = vsel %vm4089_vm2, %v4462_v13, 0.0  ;;  %v4502_v51 = vsel %vm4089_vm2, %v4461_v14, 0.0  ;;  %v7322_v38 = vpop.permute.xlu0 %4244  ;;  %v7324_v29 = vpop.permute.xlu1 %4249 }
 0x1e8   : > { %v4464_v24 = vmul.f32 %v4351_v53, %v4062_v31  ;;  %v4061_v41 = vadd.f32 %v7229_v44, %v4018_v0  ;;  %v3461_v50 = vpop.f32.mrf.mxu1  ;;  %v3891_v17 = vpop.f32.mrf.mxu0  ;;  %v4064_v28 = vadd.f32 %v7229_v44, %v4021_v58  ;;  %v4020_v35 = vadd.f32 %v3881_v8, %v3590_v33 }
 0x1e9   : > { %v4503_v9 = vadd.f32 %v4502_v51, %v4501_v45  ;;  %v4392_v43 = vadd.f32 %v4391_v40, %v4390_v16  ;;  %v4395_v10 = vsel %vm4089_vm2, %v4351_v53, 0.0  ;;  %v3593_v56 = vadd.f32 %v5748_v19, %v7139_v63 }
 0x1ea   : > { %4098 = vst.msk [vmem:[%s7235_s18 + $0x40] sm:$0xff] %vm4089_vm2, %v4061_v41  ;;  %v4350_v32 = vmul.f32 %v7237_v20, %v4061_v41  ;;  %v3592_v13 = vadd.f32 %v3461_v50, %v7142_v49  ;;  %v5751_v31 = vpop.f32.mrf.mxu1  ;;  %v5807_v60 = vpop.f32.mrf.mxu0  ;;  %4101 = vst.msk [vmem:[%s7235_s18 + $0x58] sm:$0xff] %vm4089_vm2, %v4064_v28  ;;  %v4353_v8 = vmul.f32 %v7254_v1, %v4064_v28  ;;  %v4508_v0 = vsel %vm4089_vm2, %v4464_v24, 0.0 }
 0x1eb   : > { %v4505_v40 = vadd.f32 %v4504_v55, %v4503_v9  ;;  %v4063_v42 = vadd.f32 %v7229_v44, %v4020_v35  ;;  %v3595_v20 = vadd.f32 %v5751_v31, %v7145_v54  ;;  %v4023_v49 = vadd.f32 %v5804_v2, %v3593_v56  ;;  %v7350_v56 = vpop.permute.xlu1 %4259 }
 0x1ec   : > { %v4393_v63 = vsel %vm4089_vm2, %v4350_v32, 0.0  ;;  %v4463_v22 = vmul.f32 %v4350_v32, %v4061_v41  ;;  %v4022_v52 = vadd.f32 %v3891_v17, %v3592_v13  ;;  %v3471_v14 = vpop.f32.mrf.mxu1  ;;  %v3901_v53 = vpop.f32.mrf.mxu0  ;;  %v4466_v16 = vmul.f32 %v4353_v8, %v4064_v28 }
 0x1ed   : > { %v4394_v19 = vadd.f32 %v4393_v63, %v4392_v43  ;;  %4100 = vst.msk [vmem:[%s7235_s18 + $0x50] sm:$0xff] %vm4089_vm2, %v4063_v42  ;;  %v4352_v1 = vmul.f32 %v7252_v46, %v4063_v42  ;;  %v4066_v54 = vadd.f32 %v7229_v44, %v4023_v49  ;;  %v4025_v2 = vadd.f32 %v5807_v60, %v3595_v20  ;;  %v7348_v32 = vpop.permute.xlu0 %4254 }
 0x1ee   : > { %v4506_v45 = vsel %vm4089_vm2, %v4463_v22, 0.0  ;;  %v4065_v58 = vadd.f32 %v7229_v44, %v4022_v52  ;;  %v5754_v33 = vpop.f32.mrf.mxu1  ;;  %v5810_v55 = vpop.f32.mrf.mxu0  ;;  %v4399_v24 = vsel %vm4089_vm2, %v4353_v8, 0.0  ;;  %v3594_v31 = vadd.f32 %v3471_v14, %v7148_v25 }
 0x1ef   : > { %v4507_v51 = vadd.f32 %v4506_v45, %v4505_v40  ;;  %v4396_v41 = vadd.f32 %v4395_v10, %v4394_v19  ;;  %v4397_v50 = vsel %vm4089_vm2, %v4352_v1, 0.0  ;;  %v4465_v17 = vmul.f32 %v4352_v1, %v4063_v42  ;;  %4103 = vst.msk [vmem:[%s7235_s18 + $0x68] sm:$0xff] %vm4089_vm2, %v4066_v54 }
 0x1f0   : > { %v4355_v46 = vmul.f32 %v7279_v59, %v4066_v54  ;;  %4102 = vst.msk [vmem:[%s7235_s18 + $0x60] sm:$0xff] %vm4089_vm2, %v4065_v58  ;;  %v4354_v9 = vmul.f32 %v7277_v48, %v4065_v58  ;;  %v4068_v43 = vadd.f32 %v7229_v44, %v4025_v2  ;;  %v3481_v28 = vpop.f32.mrf.mxu1  ;;  %v3911_v35 = vpop.f32.mrf.mxu0  ;;  %v3597_v60 = vadd.f32 %v5754_v33, %v7151_v7 }
 0x1f1   : > { %v4398_v10 = vadd.f32 %v4397_v50, %v4396_v41  ;;  %v4509_v13 = vadd.f32 %v4508_v0, %v4507_v51  ;;  %v4512_v59 = vsel %vm4089_vm2, %v4466_v16, 0.0  ;;  %v4510_v40 = vsel %vm4089_vm2, %v4465_v17, 0.0 }
 0x1f2   : > { %v4468_v8 = vmul.f32 %v4355_v46, %v4066_v54  ;;  %v4401_v48 = vsel %vm4089_vm2, %v4354_v9, 0.0  ;;  %4105 = vst.msk [vmem:[%s7235_s18 + $0x78] sm:$0xff] %vm4089_vm2, %v4068_v43  ;;  %v5757_v42 = vpop.f32.mrf.mxu1  ;;  %v5813_v20 = vpop.f32.mrf.mxu0  ;;  %v4467_v49 = vmul.f32 %v4354_v9, %v4065_v58  ;;  %v4357_v52 = vmul.f32 %v7303_v18, %v4068_v43 }
 0x1f3   : > { %v4511_v63 = vadd.f32 %v4510_v40, %v4509_v13  ;;  %v4400_v22 = vadd.f32 %v4399_v24, %v4398_v10  ;;  %v4403_v25 = vsel %vm4089_vm2, %v4355_v46, 0.0  ;;  %v4024_v14 = vadd.f32 %v3901_v53, %v3594_v31  ;;  %v7366_v24 = vpop.permute.xlu0 %4264 }
 0x1f4   : > { %v4027_v7 = vadd.f32 %v5810_v55, %v3597_v60  ;;  %v3596_v0 = vadd.f32 %v3481_v28, %v7154_v27  ;;  %v3491_v19 = vpop.f32.mrf.mxu1  ;;  %v3921_v16 = vpop.f32.mrf.mxu0  ;;  %v4516_v1 = vsel %vm4089_vm2, %v4468_v8, 0.0  ;;  %v4514_v2 = vsel %vm4089_vm2, %v4467_v49, 0.0 }
 0x1f5   : > { %v4402_v45 = vadd.f32 %v4401_v48, %v4400_v22  ;;  %v4513_v54 = vadd.f32 %v4512_v59, %v4511_v63  ;;  %v4470_v33 = vmul.f32 %v4357_v52, %v4068_v43  ;;  %v4067_v58 = vadd.f32 %v7229_v44, %v4024_v14  ;;  %v4270_v27 = vpop.permute.xlu1 %4269 }
 0x1f6   : > { %v4070_v18 = vadd.f32 %v7229_v44, %v4027_v7  ;;  %v4026_v51 = vadd.f32 %v3911_v35, %v3596_v0  ;;  %v5760_v53 = vpop.f32.mrf.mxu1  ;;  %v5816_v55 = vpop.f32.mrf.mxu0  ;;  %v3599_v17 = vadd.f32 %v5757_v42, %v7157_v15  ;;  %v3598_v46 = vadd.f32 %v3491_v19, %v7160_v3 }
 0x1f7   : > { %v4515_v41 = vadd.f32 %v4514_v2, %v4513_v54  ;;  %v4404_v50 = vadd.f32 %v4403_v25, %v4402_v45  ;;  %v4407_v9 = vsel %vm4089_vm2, %v4357_v52, 0.0  ;;  %4104 = vst.msk [vmem:[%s7235_s18 + $0x70] sm:$0xff] %vm4089_vm2, %v4067_v58  ;;  %v4356_v43 = vmul.f32 %v7301_v47, %v4067_v58  ;;  %v7389_v0 = vpop.permute.xlu0 %4274 }
 0x1f8   : > { %4107 = vst.msk [vmem:[%s7235_s18 + $0x88] sm:$0xff] %vm4089_vm2, %v4070_v18  ;;  %v4359_v28 = vmul.f32 %v7324_v29, %v4070_v18  ;;  %v4069_v35 = vadd.f32 %v7229_v44, %v4026_v51  ;;  %v3501_v10 = vpop.f32.mrf.mxu1  ;;  %v3931_v13 = vpop.f32.mrf.mxu0  ;;  %v4029_v60 = vadd.f32 %v5813_v20, %v3599_v17  ;;  %v4028_v15 = vadd.f32 %v3921_v16, %v3598_v46 }
 0x1f9   : > { %v4517_v31 = vadd.f32 %v4516_v1, %v4515_v41  ;;  %v3601_v3 = vadd.f32 %v5760_v53, %v7163_v23  ;;  %v4520_v59 = vsel %vm4089_vm2, %v4470_v33, 0.0  ;;  %v4405_v40 = vsel %vm4089_vm2, %v4356_v43, 0.0  ;;  %v4280_v19 = vpop.permute.xlu1 %4279 }
 0x1fa   : > { %v4469_v8 = vmul.f32 %v4356_v43, %v4067_v58  ;;  %v4411_v47 = vsel %vm4089_vm2, %v4359_v28, 0.0  ;;  %4106 = vst.msk [vmem:[%s7235_s18 + $0x80] sm:$0xff] %vm4089_vm2, %v4069_v35  ;;  %v5763_v48 = vpop.f32.mrf.mxu1  ;;  %v5819_v29 = vpop.f32.mrf.mxu0  ;;  %v4406_v42 = vadd.f32 %v4405_v40, %v4404_v50  ;;  %v4358_v63 = vmul.f32 %v7322_v38, %v4069_v35 }
 0x1fb   : > { %v4072_v20 = vadd.f32 %v7229_v44, %v4029_v60  ;;  %v4071_v23 = vadd.f32 %v7229_v44, %v4028_v15  ;;  %v4472_v49 = vmul.f32 %v4359_v28, %v4070_v18  ;;  %v4031_v52 = vadd.f32 %v5816_v55, %v3601_v3 }
 0x1fc   : > { %v4518_v22 = vsel %vm4089_vm2, %v4469_v8, 0.0  ;;  %v3600_v25 = vadd.f32 %v3501_v10, %v7166_v11  ;;  %v3511_v14 = vpop.f32.mrf.mxu1  ;;  %v3941_v7 = vpop.f32.mrf.mxu0  ;;  %v4408_v1 = vadd.f32 %v4407_v9, %v4406_v42  ;;  %v4409_v38 = vsel %vm4089_vm2, %v4358_v63, 0.0 }
 0x1fd   : > { %v4519_v16 = vadd.f32 %v4518_v22, %v4517_v31  ;;  %v4471_v45 = vmul.f32 %v4358_v63, %v4069_v35  ;;  %4109 = vst.msk [vmem:[%s7235_s18 + $0x98] sm:$0xff] %vm4089_vm2, %v4072_v20  ;;  %4108 = vst.msk [vmem:[%s7235_s18 + $0x90] sm:$0xff] %vm4089_vm2, %v4071_v23  ;;  %v4361_v54 = vmul.f32 %v7350_v56, %v4072_v20  ;;  %v4524_v50 = vsel %vm4089_vm2, %v4472_v49, 0.0  ;;  %v4290_v40 = vpop.permute.xlu1 %4289 }
 0x1fe   : > { %v4360_v2 = vmul.f32 %v7348_v32, %v4071_v23  ;;  %v4074_v11 = vadd.f32 %v7229_v44, %v4031_v52  ;;  %v4030_v33 = vadd.f32 %v3931_v13, %v3600_v25  ;;  %v5766_v58 = vpop.f32.mrf.mxu1  ;;  %v5822_v18 = vpop.f32.mrf.mxu0  ;;  %v4410_v51 = vadd.f32 %v4409_v38, %v4408_v1 }
 0x1ff   : > { %v4521_v53 = vadd.f32 %v4520_v59, %v4519_v16  ;;  %v4522_v55 = vsel %vm4089_vm2, %v4471_v45, 0.0  ;;  %v3603_v41 = vadd.f32 %v5763_v48, %v7169_v30  ;;  %v4474_v17 = vmul.f32 %v4361_v54, %v4072_v20  ;;  %v4285_v59 = vpop.permute.xlu0 %4284 }
 0x200   : > { %v4413_v46 = vsel %vm4089_vm2, %v4360_v2, 0.0  ;;  %v4473_v9 = vmul.f32 %v4360_v2, %v4071_v23  ;;  %4111 = vst.msk [vmem:[%s7235_s18 + $0xa8] sm:$0xff] %vm4089_vm2, %v4074_v11  ;;  %v3521_v32 = vpop.f32.mrf.mxu1  ;;  %v3951_v56 = vpop.f32.mrf.mxu0  ;;  %v4412_v28 = vadd.f32 %v4411_v47, %v4410_v51  ;;  %v4363_v35 = vmul.f32 %v4270_v27, %v4074_v11 }
 0x201   : > { %v4523_v43 = vadd.f32 %v4522_v55, %v4521_v53  ;;  %v4073_v10 = vadd.f32 %v7229_v44, %v4030_v33  ;;  %v4415_v13 = vsel %vm4089_vm2, %v4361_v54, 0.0  ;;  %v4033_v31 = vadd.f32 %v5819_v29, %v3603_v41  ;;  %v4300_v55 = vpop.permute.xlu1 %4299 }
 0x202   : > { %v4526_v30 = vsel %vm4089_vm2, %v4473_v9, 0.0  ;;  %v3602_v60 = vadd.f32 %v3511_v14, %v7172_v34  ;;  %v5769_v15 = vpop.f32.mrf.mxu1  ;;  %v5825_v3 = vpop.f32.mrf.mxu0  ;;  %v4528_v8 = vsel %vm4089_vm2, %v4474_v17, 0.0  ;;  %v4414_v48 = vadd.f32 %v4413_v46, %v4412_v28 }
 0x203   : > { %v4525_v42 = vadd.f32 %v4524_v50, %v4523_v43  ;;  %v4476_v47 = vmul.f32 %v4363_v35, %v4074_v11  ;;  %4110 = vst.msk [vmem:[%s7235_s18 + $0xa0] sm:$0xff] %vm4089_vm2, %v4073_v10  ;;  %v4362_v27 = vmul.f32 %v7366_v24, %v4073_v10  ;;  %v4076_v63 = vadd.f32 %v7229_v44, %v4033_v31  ;;  %v4295_v53 = vpop.permute.xlu0 %4294 }
 0x204   : > { %v4032_v20 = vadd.f32 %v3941_v7, %v3602_v60  ;;  %v3605_v29 = vadd.f32 %v5766_v58, %v7175_v36  ;;  %v3531_v34 = vpop.f32.mrf.mxu1  ;;  %v3961_v23 = vpop.f32.mrf.mxu0  ;;  %v4419_v49 = vsel %vm4089_vm2, %v4363_v35, 0.0  ;;  %v4416_v52 = vadd.f32 %v4415_v13, %v4414_v48 }
 0x205   : > { %v4527_v22 = vadd.f32 %v4526_v30, %v4525_v42  ;;  %v3604_v25 = vadd.f32 %v3521_v32, %v7182_v12  ;;  %v4417_v14 = vsel %vm4089_vm2, %v4362_v27, 0.0  ;;  %v4475_v16 = vmul.f32 %v4362_v27, %v4073_v10  ;;  %4113 = vst.msk [vmem:[%s7235_s18 + $0xb8] sm:$0xff] %vm4089_vm2, %v4076_v63 }
 0x206   : > { %v4365_v24 = vmul.f32 %v4280_v19, %v4076_v63  ;;  %v4075_v1 = vadd.f32 %v7229_v44, %v4032_v20  ;;  %v5772_v7 = vpop.f32.mrf.mxu1  ;;  %v5828_v38 = vpop.f32.mrf.mxu0  ;;  %v4418_v36 = vadd.f32 %v4417_v14, %v4416_v52  ;;  %v4035_v54 = vadd.f32 %v5822_v18, %v3605_v29 }
 0x207   : > { %v4529_v45 = vadd.f32 %v4528_v8, %v4527_v22  ;;  %v4034_v2 = vadd.f32 %v3951_v56, %v3604_v25  ;;  %v4532_v11 = vsel %vm4089_vm2, %v4476_v47, 0.0  ;;  %v4530_v33 = vsel %vm4089_vm2, %v4475_v16, 0.0  ;;  %v4310_v22 = vpop.permute.xlu1 %4309 }
 0x208   : > { %v4478_v58 = vmul.f32 %v4365_v24, %v4076_v63  ;;  %4112 = vst.msk [vmem:[%s7235_s18 + $0xb0] sm:$0xff] %vm4089_vm2, %v4075_v1  ;;  %v4364_v12 = vmul.f32 %v7389_v0, %v4075_v1  ;;  %v3541_v51 = vpop.f32.mrf.mxu1  ;;  %v3971_v19 = vpop.f32.mrf.mxu0  ;;  %v4420_v50 = vadd.f32 %v4419_v49, %v4418_v36  ;;  %v4078_v18 = vadd.f32 %v7229_v44, %v4035_v54 }
 0x209   : > { %v4531_v41 = vadd.f32 %v4530_v33, %v4529_v45  ;;  %v4077_v17 = vadd.f32 %v7229_v44, %v4034_v2  ;;  %v4423_v46 = vsel %vm4089_vm2, %v4365_v24, 0.0  ;;  %v3607_v56 = vadd.f32 %v5769_v15, %v7185_v5 }
 0x20a   : > { %v4421_v9 = vsel %vm4089_vm2, %v4364_v12, 0.0  ;;  %v4477_v32 = vmul.f32 %v4364_v12, %v4075_v1  ;;  %v5775_v0 = vpop.f32.mrf.mxu1  ;;  %v5831_v43 = vpop.f32.mrf.mxu0  ;;  %4115 = vst.msk [vmem:[%s7235_s18 + $0xc8] sm:$0xff] %vm4089_vm2, %v4078_v18  ;;  %v4367_v10 = vmul.f32 %v4290_v40, %v4078_v18  ;;  %v3606_v60 = vadd.f32 %v3531_v34, %v7188_v39 }
 0x20b   : > { %v4422_v28 = vadd.f32 %v4421_v9, %v4420_v50  ;;  %v4533_v35 = vadd.f32 %v4532_v11, %v4531_v41  ;;  %4114 = vst.msk [vmem:[%s7235_s18 + $0xc0] sm:$0xff] %vm4089_vm2, %v4077_v17  ;;  %v4366_v13 = vmul.f32 %v4285_v59, %v4077_v17  ;;  %v4037_v31 = vadd.f32 %v5825_v3, %v3607_v56  ;;  %v4305_v3 = vpop.permute.xlu0 %4304  ;;  %v4320_v50 = vpop.permute.xlu1 %4319 }
 0x20c   : > { %v4534_v30 = vsel %vm4089_vm2, %v4477_v32, 0.0  ;;  %v3609_v8 = vadd.f32 %v5772_v7, %v7193_v4  ;;  %v3551_v48 = vpop.f32.mrf.mxu1  ;;  %v4536_v5 = vsel %vm4089_vm2, %v4478_v58, 0.0  ;;  %v4480_v42 = vmul.f32 %v4367_v10, %v4078_v18  ;;  %v3981_v20 = vpop.f32.mrf.mxu0 }
 0x20d   : > { %v4535_v15 = vadd.f32 %v4534_v30, %v4533_v35  ;;  %v4424_v47 = vadd.f32 %v4423_v46, %v4422_v28  ;;  %v4425_v27 = vsel %vm4089_vm2, %v4366_v13, 0.0  ;;  %v4479_v40 = vmul.f32 %v4366_v13, %v4077_v17 }
 0x20e   : > { %v4080_v63 = vadd.f32 %v7229_v44, %v4037_v31  ;;  %v4036_v59 = vadd.f32 %v3961_v23, %v3606_v60  ;;  %v5778_v29 = vpop.f32.mrf.mxu1  ;;  %v4427_v39 = vsel %vm4089_vm2, %v4367_v10, 0.0  ;;  %v4039_v49 = vadd.f32 %v5828_v38, %v3609_v8  ;;  %v5834_v2 = vpop.f32.mrf.mxu0 }
 0x20f   : > { %v4426_v4 = vadd.f32 %v4425_v27, %v4424_v47  ;;  %v4537_v34 = vadd.f32 %v4536_v5, %v4535_v15  ;;  %v4538_v52 = vsel %vm4089_vm2, %v4479_v40, 0.0  ;;  %v3608_v23 = vadd.f32 %v3541_v51, %v7196_v26  ;;  %v4315_v41 = vpop.permute.xlu0 %4314 }
 0x210   : > { %4117 = vst.msk [vmem:[%s7235_s18 + $0xd8] sm:$0xff] %vm4089_vm2, %v4080_v63  ;;  %v4369_v25 = vmul.f32 %v4300_v55, %v4080_v63  ;;  %v4079_v14 = vadd.f32 %v7229_v44, %v4036_v59  ;;  %v4082_v1 = vadd.f32 %v7229_v44, %v4039_v49  ;;  %v3611_v7 = vadd.f32 %v5775_v0, %v7199_v57  ;;  %v3561_v11 = vpop.f32.mrf.mxu1  ;;  %v3991_v56 = vpop.f32.mrf.mxu0 }
 0x211   : > { %v4539_v16 = vadd.f32 %v4538_v52, %v4537_v34  ;;  %v4428_v24 = vadd.f32 %v4427_v39, %v4426_v4  ;;  %v4540_v36 = vsel %vm4089_vm2, %v4480_v42, 0.0  ;;  %v4038_v54 = vadd.f32 %v3971_v19, %v3608_v23 }
 0x212   : > { %v4482_v45 = vmul.f32 %v4369_v25, %v4080_v63  ;;  %4116 = vst.msk [vmem:[%s7235_s18 + $0xd0] sm:$0xff] %vm4089_vm2, %v4079_v14  ;;  %v4368_v38 = vmul.f32 %v4295_v53, %v4079_v14  ;;  %4119 = vst.msk [vmem:[%s7235_s18 + $0xe8] sm:$0xff] %vm4089_vm2, %v4082_v1  ;;  %v4371_v26 = vmul.f32 %v4310_v22, %v4082_v1  ;;  %v4431_v19 = vsel %vm4089_vm2, %v4369_v25, 0.0  ;;  %v5781_v0 = vpop.f32.mrf.mxu1  ;;  %v5837_v27 = vpop.f32.mrf.mxu0 }
 0x213   : > { %v4541_v33 = vadd.f32 %v4540_v36, %v4539_v16  ;;  %v4041_v58 = vadd.f32 %v5831_v43, %v3611_v7  ;;  %v3610_v12 = vadd.f32 %v3551_v48, %v7206_v21  ;;  %v4081_v55 = vadd.f32 %v7229_v44, %v4038_v54  ;;  %v4330_v63 = vpop.permute.xlu1 %4329  ;;  %v4325_v22 = vpop.permute.xlu0 %4324 }
 0x214   : > { %v4429_v51 = vsel %vm4089_vm2, %v4368_v38, 0.0  ;;  %v4481_v57 = vmul.f32 %v4368_v38, %v4079_v14  ;;  %v4544_v53 = vsel %vm4089_vm2, %v4482_v45, 0.0  ;;  %v3613_v32 = vadd.f32 %v5778_v29, %v7209_v37  ;;  %v3571_v40 = vpop.f32.mrf.mxu1 }
 0x215   : > { %v4430_v18 = vadd.f32 %v4429_v51, %v4428_v24  ;;  %v4084_v17 = vadd.f32 %v7229_v44, %v4041_v58  ;;  %4118 = vst.msk [vmem:[%s7235_s18 + $0xe0] sm:$0xff] %vm4089_vm2, %v4081_v55  ;;  %v4370_v21 = vmul.f32 %v4305_v3, %v4081_v55  ;;  %v4040_v9 = vadd.f32 %v3981_v20, %v3610_v12 }
 0x216   : > { %v4542_v46 = vsel %vm4089_vm2, %v4481_v57, 0.0  ;;  %v4484_v28 = vmul.f32 %v4371_v26, %v4082_v1  ;;  %v4043_v60 = vadd.f32 %v5834_v2, %v3613_v32  ;;  %v4435_v8 = vsel %vm4089_vm2, %v4371_v26, 0.0  ;;  %v4001_v1 = vpop.f32.mrf.mxu0 }
 0x217   : > { %v4543_v43 = vadd.f32 %v4542_v46, %v4541_v33  ;;  %v4432_v35 = vadd.f32 %v4431_v19, %v4430_v18  ;;  %4121 = vst.msk [vmem:[%s7235_s18 + $0xf8] sm:$0xff] %vm4089_vm2, %v4084_v17  ;;  %v4373_v10 = vmul.f32 %v4320_v50, %v4084_v17  ;;  %v4433_v13 = vsel %vm4089_vm2, %v4370_v21, 0.0  ;;  %v4335_v26 = vpop.permute.xlu0 %4334 }
 0x218   : > { %v4483_v30 = vmul.f32 %v4370_v21, %v4081_v55  ;;  %v4083_v31 = vadd.f32 %v7229_v44, %v4040_v9  ;;  %v4086_v42 = vadd.f32 %v7229_v44, %v4043_v60  ;;  %v3612_v47 = vadd.f32 %v3561_v11, %v7212_v61 }
 0x219   : > { %v4434_v48 = vadd.f32 %v4433_v13, %v4432_v35  ;;  %v4545_v5 = vadd.f32 %v4544_v53, %v4543_v43  ;;  %v4548_v59 = vsel %vm4089_vm2, %v4484_v28, 0.0  ;;  %v3615_v3 = vadd.f32 %v5781_v0, %v7219_v6 }
 0x21a   : > { %v4546_v37 = vsel %vm4089_vm2, %v4483_v30, 0.0  ;;  %4120 = vst.msk [vmem:[%s7235_s18 + $0xf0] sm:$0xff] %vm4089_vm2, %v4083_v31  ;;  %v4372_v15 = vmul.f32 %v4315_v41, %v4083_v31  ;;  %v4486_v39 = vmul.f32 %v4373_v10, %v4084_v17  ;;  %4123 = vst.msk [vmem:[%s7235_s18 + $0x108] sm:$0xff] %vm4089_vm2, %v4086_v42  ;;  %v4042_v49 = vadd.f32 %v3991_v56, %v3612_v47 }
 0x21b   : > { %v4547_v20 = vadd.f32 %v4546_v37, %v4545_v5  ;;  %v4436_v29 = vadd.f32 %v4435_v8, %v4434_v48  ;;  %v4045_v25 = vadd.f32 %v5837_v27, %v3615_v3  ;;  %v3614_v14 = vadd.f32 %v3571_v40, %v7223_v62  ;;  %v4340_v62 = vpop.permute.xlu1 %4339 }
 0x21c   : > { %v4437_v4 = vsel %vm4089_vm2, %v4372_v15, 0.0  ;;  %v4485_v34 = vmul.f32 %v4372_v15, %v4083_v31  ;;  %v4439_v23 = vsel %vm4089_vm2, %v4373_v10, 0.0  ;;  %v4375_v6 = vmul.f32 %v4330_v63, %v4086_v42 }
 0x21d   : > { %v4438_v52 = vadd.f32 %v4437_v4, %v4436_v29  ;;  %v4549_v61 = vadd.f32 %v4548_v59, %v4547_v20  ;;  %v4085_v24 = vadd.f32 %v7229_v44, %v4042_v49  ;;  %v4088_v45 = vadd.f32 %v7229_v44, %v4045_v25 }
 0x21e   : > { %v4550_v16 = vsel %vm4089_vm2, %v4485_v34, 0.0  ;;  %v4044_v38 = vadd.f32 %v4001_v1, %v3614_v14  ;;  %v4552_v54 = vsel %vm4089_vm2, %v4486_v39, 0.0  ;;  %v4488_v58 = vmul.f32 %v4375_v6, %v4086_v42 }
 0x21f   : > { %v4551_v7 = vadd.f32 %v4550_v16, %v4549_v61  ;;  %v4440_v36 = vadd.f32 %v4439_v23, %v4438_v52  ;;  %4122 = vst.msk [vmem:[%s7235_s18 + $0x100] sm:$0xff] %vm4089_vm2, %v4085_v24  ;;  %v4374_v2 = vmul.f32 %v4325_v22, %v4085_v24  ;;  %4125 = vst.msk [vmem:[%s7235_s18 + $0x118] sm:$0xff] %vm4089_vm2, %v4088_v45  ;;  %v4443_v50 = vsel %vm4089_vm2, %v4375_v6, 0.0 }
 0x220   : > { %v4087_v33 = vadd.f32 %v7229_v44, %v4044_v38  ;;  %v4377_v57 = vmul.f32 %v4340_v62, %v4088_v45  ;;  %v4556_v44 = vsel %vm4089_vm2, %v4488_v58, 0.0 }
 0x221   : > { %v4553_v11 = vadd.f32 %v4552_v54, %v4551_v7  ;;  %v4441_v12 = vsel %vm4089_vm2, %v4374_v2, 0.0  ;;  %v4487_v51 = vmul.f32 %v4374_v2, %v4085_v24 }
 0x222   : > { %v4442_v55 = vadd.f32 %v4441_v12, %v4440_v36  ;;  %4124 = vst.msk [vmem:[%s7235_s18 + $0x110] sm:$0xff] %vm4089_vm2, %v4087_v33  ;;  %v4376_v41 = vmul.f32 %v4335_v26, %v4087_v33  ;;  %v4490_v46 = vmul.f32 %v4377_v57, %v4088_v45  ;;  %v4447_v56 = vsel %vm4089_vm2, %v4377_v57, 0.0 }
 0x223   : > { %v4554_v19 = vsel %vm4089_vm2, %v4487_v51, 0.0 }
 0x224   : > { %v4555_v53 = vadd.f32 %v4554_v19, %v4553_v11  ;;  %v4444_v18 = vadd.f32 %v4443_v50, %v4442_v55  ;;  %v4445_v17 = vsel %vm4089_vm2, %v4376_v41, 0.0  ;;  %v4489_v21 = vmul.f32 %v4376_v41, %v4087_v33 }
 0x225   : > { %v4560_v35 = vsel %vm4089_vm2, %v4490_v46, 0.0 }
 0x226   : > { %v4446_v9 = vadd.f32 %v4445_v17, %v4444_v18  ;;  %v4557_v32 = vadd.f32 %v4556_v44, %v4555_v53  ;;  %v4558_v0 = vsel %vm4089_vm2, %v4489_v21, 0.0 }
 0x228   : > { %v4448_v43 = vadd.f32 %v4447_v56, %v4446_v9  ;;  %v4559_v28 = vadd.f32 %v4558_v0, %v4557_v32 }
 0x22a   : > { %v4449_v10 = vrot.slane %v4448_v43, 4  ;;  %v4561_v13 = vadd.f32 %v4560_v35, %v4559_v28 }
 0x22c   : > { %v4450_v30 = vadd.f32 %v4449_v10, %v4448_v43  ;;  %v4562_v31 = vrot.slane %v4561_v13, 4 }
 0x22e   : > { %v4451_v60 = vrot.slane %v4450_v30, 2  ;;  %v4563_v8 = vadd.f32 %v4562_v31, %v4561_v13 }
 0x230   : > { %v4452_v48 = vadd.f32 %v4451_v60, %v4450_v30  ;;  %v4564_v5 = vrot.slane %v4563_v8, 2 }
 0x232   : > { %v4453_v37 = vrot.slane %v4452_v48, 1  ;;  %v4565_v15 = vadd.f32 %v4564_v5, %v4563_v8  ;;  %4571 = sbr.rel (%p4998_p4) target bundleno = 569 (0x239), region = 40 }
 0x234   : > { %v4454_v42 = vadd.f32 %v4453_v37, %v4452_v48  ;;  %v4566_v47 = vrot.slane %v4565_v15, 1 }
 0x236   : > { %v4567_v27 = vadd.f32 %v4566_v47, %v4565_v15 }
 0x237   : > { %vm4572_vm3 = vcmask 516096   ;;  %v5863_v40 = vmov 0.0  }
 0x238   : > { %4573 = vst.msk [vmem:[%s7527_s5] sm:$0x1] %vm4572_vm3, %v5863_v40  ;;  %4574 = vst.msk [vmem:[%s7528_s6] sm:$0x1] %vm4572_vm3, %v5863_v40 }
 0x239 PF: > { %vm4577_vm4 = vcmask 516096  }
 0x23f   : > { %v4575_v63 = vld [vmem:[%s7527_s5] sm:$0x1] }
 0x240   : > { %v4579_v59 = vld [vmem:[%s7528_s6] sm:$0x1]  ;;  %v4576_v20 = vadd.f32 %v4575_v63, %v4454_v42 }
 0x241   : > { %v4580_v29 = vadd.f32 %v4579_v59, %v4567_v27 }
 0x242   : > { %4578 = vst.msk [vmem:[%s7527_s5] sm:$0x1] %vm4577_vm4, %v4576_v20 }
 0x243   : > { %4581 = vst.msk [vmem:[%s7528_s6] sm:$0x1] %vm4577_vm4, %v4580_v29 }
 0x244 PF: > { %s17_s21 = sadd.s32 1, %s5860_s21  }
 0x245   : > { %p14_p5 = scmp.ge.s32.totalorder %s17_s21, 4  }
 0x247   :  { %16 = sbr.rel (!%p14_p5) target bundleno = 1 (0x1), region = 94 }

// kernel: convnet_forward.11
= control target key start
LH: loop header
LB: loop body
LE: loop exit
PB: predicated region body
PF: predicated region fallthrough
CT: control target
= control target key end

     0   :  { %s648_s27 = smov 0   ;;  %s733_s0 = inlined_call_operand.vmem [shape: f32[2,4,4,64], index: 0, kind: input, shape index: {}]   ;;  %s734_s1 = inlined_call_operand.vmem [shape: f32[2,4,4,64], index: 1, kind: input, shape index: {}]   ;;  %s735_s2 = inlined_call_operand.vmem [shape: f32[2,4,4,64], index: 2, kind: input, shape index: {}]   ;;  %s736_s3 = inlined_call_operand.vmem [shape: f32[2,4,4,64], index: 3, kind: input, shape index: {}]   ;;  %s737_s4 = inlined_call_operand.vmem [shape: f32[1,64], index: 4, kind: input, shape index: {}]   ;;  %s738_s5 = inlined_call_operand.vmem [shape: f32[1,64], index: 5, kind: input, shape index: {}]   ;;  %s739_s6 = inlined_call_operand.vmem [shape: f32[1,64], index: 6, kind: input, shape index: {}]   ;;  %s740_s7 = inlined_call_operand.vmem [shape: f32[1,64], index: 7, kind: input, shape index: {}]   ;;  %s741_s8 = inlined_call_operand.vmem [shape: f32[2,4,4,64], index: 8, kind: output, shape index: {}]  }
   0x1 LB: > { %s563_s28 = sadd.s32 4294967295, %s601_s27   ;;  %p567_p0 = scmp.ge.s32.totalorder %s601_s27, 1  ;;  %s601_s27 = sphi %s648_s27, %s18_s27  }
   0x2   : > { %p292_p1 = scmp.lt.s32.totalorder %s601_s27, 3 }
   0x4   : > { %p293_p2 = pnand %p567_p0, %p292_p1 }
   0x5   : > { %p341_p3 = scmp.lt.s32.totalorder (!%p293_p2), %s563_s28, 1 }
   0x6   : > { %296 = sbr.rel (%p293_p2) target bundleno = 61 (0x3d), region = 52 }
   0xb   : > { %v366_v0 = vld [vmem:[%s737_s4] sm:$0x1]  ;;  %s743_s28 = smov (!%p341_p3, %s563_s28), 1  ;;  %v384_v7 = vlaneseq  ;;  %vm467_vm0 = vcmask 519168  }
   0xc   : > { %v368_v1 = vld [vmem:[%s738_s5] sm:$0x1]  ;;  %v367_v2 = vmul.f32 0.0078125, %v366_v0  ;;  %s662_s11 = sshll.u32 %s743_s28, 4 }
   0xd   : > { %v369_v3 = vmul.f32 0.0078125, %v368_v1  ;;  %v385_v8 = vshrl.u32 %v384_v7, 7  ;;  %s345_s14 = scalar_lea.vmem %s733_s0, %s662_s11  ;;  %s350_s17 = scalar_lea.vmem %s734_s1, %s662_s11  ;;  %v374_v9 = vld [vmem:[%s739_s6] sm:$0x1] }
   0xe   : > { %v370_v4 = vmul.f32 %v367_v2, %v367_v2  ;;  %s679_s22 = scalar_lea.vmem %s735_s2, %s662_s11  ;;  %s685_s25 = scalar_lea.vmem %s736_s3, %s662_s11  ;;  %v376_v13 = vld [vmem:[%s740_s7] sm:$0x1]  ;;  %v380_v18 = vld [vmem:[%s345_s14 + $0x4] sm:$0xf]  ;;  %v381_v24 = vld [vmem:[%s345_s14 + $0x8] sm:$0xf] }
   0xf   : > { %v386_v10 = vsub.s32 0, %v385_v8  ;;  %v379_v14 = vld [vmem:[%s345_s14] sm:$0xf]  ;;  %v408_v21 = vld [vmem:[%s350_s17 + $0x4] sm:$0xf]  ;;  %s716_s9 = scalar_lea.vmem %s741_s8, %s662_s11 }
  0x10   : > { %v371_v5 = vsub.f32 %v369_v3, %v370_v4  ;;  %v407_v15 = vld [vmem:[%s350_s17] sm:$0xf]  ;;  %v428_v22 = vld [vmem:[%s679_s22 + $0x4] sm:$0xf]  ;;  %v409_v25 = vld [vmem:[%s350_s17 + $0x8] sm:$0xf] }
  0x11   : > { %v427_v16 = vld [vmem:[%s679_s22] sm:$0xf]  ;;  %v444_v23 = vld [vmem:[%s685_s25 + $0x4] sm:$0xf]  ;;  %v429_v26 = vld [vmem:[%s679_s22 + $0x8] sm:$0xf] }
  0x12   : > { %v372_v6 = vadd.f32 1e-05, %v371_v5  ;;  %v443_v17 = vld [vmem:[%s685_s25] sm:$0xf]  ;;  %v445_v31 = vld [vmem:[%s685_s25 + $0x8] sm:$0xf] }
  0x13   : > { %v382_v32 = vld [vmem:[%s345_s14 + $0xc] sm:$0xf] }
  0x14   : > { %593 = vrsqrt.f32 %v372_v6  ;;  %v410_v33 = vld [vmem:[%s350_s17 + $0xc] sm:$0xf] }
  0x15   : > { %v430_v6 = vld [vmem:[%s679_s22 + $0xc] sm:$0xf] }
  0x16   : > { %v446_v7 = vld [vmem:[%s685_s25 + $0xc] sm:$0xf] }
  0x21   : > { %v594_v11 = vpop.eup %593 }
  0x22   : > { %v375_v12 = vmul.f32 %v594_v11, %v374_v9 }
  0x24   : > { %v377_v19 = vmul.f32 %v375_v12, %v367_v2  ;;  %v692_v20 = vrot.slane %v375_v12, %v386_v10 }
  0x26   : > { %v378_v27 = vsub.f32 %v376_v13, %v377_v19  ;;  %v389_v28 = vmul.f32 %v692_v20, %v379_v14  ;;  %v411_v29 = vmul.f32 %v407_v15, %v692_v20  ;;  %v431_v30 = vmul.f32 %v427_v16, %v692_v20 }
  0x27   : > { %v447_v34 = vmul.f32 %v443_v17, %v692_v20  ;;  %v390_v35 = vmul.f32 %v692_v20, %v380_v18  ;;  %v412_v36 = vmul.f32 %v408_v21, %v692_v20  ;;  %v432_v37 = vmul.f32 %v428_v22, %v692_v20 }
  0x28   : > { %v397_v38 = vrot.slane %v378_v27, %v386_v10  ;;  %v448_v39 = vmul.f32 %v444_v23, %v692_v20  ;;  %v391_v40 = vmul.f32 %v692_v20, %v381_v24  ;;  %v413_v41 = vmul.f32 %v409_v25, %v692_v20 }
  0x29   : > { %v433_v42 = vmul.f32 %v429_v26, %v692_v20  ;;  %v449_v43 = vmul.f32 %v445_v31, %v692_v20  ;;  %v392_v44 = vmul.f32 %v692_v20, %v382_v32  ;;  %v414_v45 = vmul.f32 %v410_v33, %v692_v20 }
  0x2a   : > { %v399_v46 = vadd.f32 %v397_v38, %v389_v28  ;;  %v415_v47 = vadd.f32 %v411_v29, %v397_v38  ;;  %v435_v48 = vadd.f32 %v431_v30, %v397_v38  ;;  %v451_v49 = vadd.f32 %v447_v34, %v397_v38 }
  0x2b   : > { %v400_v50 = vadd.f32 %v397_v38, %v390_v35  ;;  %v416_v51 = vadd.f32 %v412_v36, %v397_v38  ;;  %v436_v52 = vadd.f32 %v432_v37, %v397_v38  ;;  %v452_v53 = vadd.f32 %v448_v39, %v397_v38 }
  0x2c   : > { %v403_v54 = vmax.f32 %v399_v46, 0.0  ;;  %v419_v55 = vmax.f32 %v415_v47, 0.0  ;;  %v439_v56 = vmax.f32 %v435_v48, 0.0  ;;  %v455_v57 = vmax.f32 %v451_v49, 0.0 }
  0x2d   : > { %v404_v58 = vmax.f32 %v400_v50, 0.0  ;;  %v420_v59 = vmax.f32 %v416_v51, 0.0  ;;  %v440_v60 = vmax.f32 %v436_v52, 0.0  ;;  %v456_v61 = vmax.f32 %v452_v53, 0.0 }
  0x2e   : > { %v423_v62 = vmax.f32 %v403_v54, %v419_v55  ;;  %v459_v63 = vmax.f32 %v439_v56, %v455_v57  ;;  %v401_v0 = vadd.f32 %v397_v38, %v391_v40  ;;  %v417_v1 = vadd.f32 %v413_v41, %v397_v38 }
  0x2f   : > { %v424_v2 = vmax.f32 %v404_v58, %v420_v59  ;;  %v460_v3 = vmax.f32 %v440_v60, %v456_v61  ;;  %v437_v4 = vadd.f32 %v433_v42, %v397_v38  ;;  %v453_v5 = vadd.f32 %v449_v43, %v397_v38 }
  0x30   : > { %v463_v8 = vmax.f32 %v423_v62, %v459_v63  ;;  %v405_v9 = vmax.f32 %v401_v0, 0.0  ;;  %v421_v10 = vmax.f32 %v417_v1, 0.0  ;;  %v402_v11 = vadd.f32 %v397_v38, %v392_v44 }
  0x31   : > { %v464_v12 = vmax.f32 %v424_v2, %v460_v3  ;;  %v441_v13 = vmax.f32 %v437_v4, 0.0  ;;  %v457_v14 = vmax.f32 %v453_v5, 0.0  ;;  %v418_v15 = vadd.f32 %v414_v45, %v397_v38 }
  0x32   : > { %468 = vst.msk [vmem:[%s716_s9] sm:$0xf] %vm467_vm0, %v463_v8  ;;  %v425_v16 = vmax.f32 %v405_v9, %v421_v10  ;;  %v406_v17 = vmax.f32 %v402_v11, 0.0  ;;  %v434_v18 = vmul.f32 %v430_v6, %v692_v20  ;;  %v450_v19 = vmul.f32 %v446_v7, %v692_v20 }
  0x33   : > { %469 = vst.msk [vmem:[%s716_s9 + $0x4] sm:$0xf] %vm467_vm0, %v464_v12  ;;  %v461_v21 = vmax.f32 %v441_v13, %v457_v14  ;;  %v422_v22 = vmax.f32 %v418_v15, 0.0 }
  0x34   : > { %v438_v23 = vadd.f32 %v434_v18, %v397_v38  ;;  %v454_v24 = vadd.f32 %v450_v19, %v397_v38 }
  0x35   : > { %v465_v25 = vmax.f32 %v425_v16, %v461_v21  ;;  %v426_v26 = vmax.f32 %v406_v17, %v422_v22 }
  0x36   : > { %v442_v27 = vmax.f32 %v438_v23, 0.0  ;;  %v458_v28 = vmax.f32 %v454_v24, 0.0 }
  0x37   : > { %470 = vst.msk [vmem:[%s716_s9 + $0x8] sm:$0xf] %vm467_vm0, %v465_v25 }
  0x38   : > { %v462_v29 = vmax.f32 %v442_v27, %v458_v28 }
  0x3a   : > { %v466_v30 = vmax.f32 %v426_v26, %v462_v29 }
  0x3c   : > { %471 = vst.msk [vmem:[%s716_s9 + $0xc] sm:$0xf] %vm467_vm0, %v466_v30 }
  0x3d PF: > { %s18_s27 = sadd.s32 1, %s601_s27  }
  0x3e   : > { %p15_p4 = scmp.ge.s32.totalorder %s18_s27, 4  }
  0x40   :  { %17 = sbr.rel (!%p15_p4) target bundleno = 1 (0x1), region = 91 }

// kernel: convnet_forward.10
= control target key start
LH: loop header
LB: loop body
LE: loop exit
PB: predicated region body
PF: predicated region fallthrough
CT: control target
= control target key end

     0   :  { %s2712_s21 = smov 0   ;;  %s3385_s0 = inlined_call_operand.vmem [shape: f32[2,110,64], index: 0, kind: input, shape index: {}]   ;;  %s3386_s1 = inlined_call_operand.vmem [shape: f32[9,64,64], index: 1, kind: input, shape index: {}]   ;;  %s3387_s2 = inlined_call_operand.vmem [shape: f32[1,64], index: 2, kind: input, shape index: {}]   ;;  %s3388_s3 = inlined_call_operand.vmem [shape: f32[80,1], index: 3, kind: input, shape index: {}]   ;;  %s3389_s4 = inlined_call_operand.vmem [shape: f32[2,80,64], index: 4, kind: output, shape index: {0}]   ;;  %s3390_s5 = inlined_call_operand.vmem [shape: f32[1,64], index: 5, kind: output, shape index: {1}]   ;;  %s3391_s6 = inlined_call_operand.vmem [shape: f32[1,64], index: 6, kind: output, shape index: {2}]  }
   0x1 LB: > { %s2718_s22 = sadd.s32 4294967295, %s2673_s21   ;;  %p2035_p0 = scmp.ge.s32.totalorder %s2673_s21, 1  ;;  %s2673_s21 = sphi %s2712_s21, %s17_s21  }
   0x2   : > { %p207_p1 = scmp.lt.s32.totalorder %s2673_s21, 3 }
   0x4   : > { %p208_p2 = pnand %p2035_p0, %p207_p1 }
   0x6   : > { %211 = sbr.rel (%p208_p2) target bundleno = 382 (0x17e), region = 36 }
   0xb   : > { %v2045_v0 = vld [vmem:[%s3386_s1 + $0x78] sm:$0xff]  ;;  %v2044_v2 = vld [vmem:[%s3386_s1 + $0x70] sm:$0xff]  ;;  %p237_p3 = scmp.lt.s32.totalorder %s2718_s22, 1  ;;  %v2043_v4 = vld [vmem:[%s3386_s1 + $0x68] sm:$0xff]  ;;  %vm284_vm0 = vcmask 523264   ;;  %p2193_p4 = scmp.ne.s32.totalorder %s2718_s22, 0 }
   0xc   : > { %v264_v1 = vld [vmem:[%s3386_s1 + $0x38] sm:$0xff]  ;;  %2358 = vmatprep.subr.mxu0 %v2045_v0  ;;  %v263_v3 = vld [vmem:[%s3386_s1 + $0x30] sm:$0xff]  ;;  %v262_v5 = vld [vmem:[%s3386_s1 + $0x28] sm:$0xff] }
   0xd   : > { %2389 = vmatprep.subr.mxu1 %v264_v1  ;;  %2359 = vmatpush3.msra.mxu0 %v2045_v0  ;;  %s2742_s11 = scalar_select %p237_p3, %s2718_s22, 1  ;;  %v2042_v6 = vld [vmem:[%s3386_s1 + $0x60] sm:$0xff]  ;;  %v2041_v8 = vld [vmem:[%s3386_s1 + $0x58] sm:$0xff]  ;;  %v2040_v10 = vld [vmem:[%s3386_s1 + $0x50] sm:$0xff] }
   0xe   : > { %2390 = vmatpush3.msra.mxu1 %v264_v1  ;;  %2360 = vmatprep.subr.mxu0 %v2044_v2  ;;  %v261_v7 = vld [vmem:[%s3386_s1 + $0x20] sm:$0xff]  ;;  %v260_v9 = vld [vmem:[%s3386_s1 + $0x18] sm:$0xff]  ;;  %v259_v11 = vld [vmem:[%s3386_s1 + $0x10] sm:$0xff] }
   0xf   : > { %2391 = vmatprep.subr.mxu1 %v263_v3  ;;  %2361 = vmatpush3.msra.mxu0 %v2044_v2  ;;  %s2653_s20 = smul.u32 112, %s2742_s11  ;;  %v2039_v12 = vld [vmem:[%s3386_s1 + $0x48] sm:$0xff]  ;;  %v2038_v14 = vld [vmem:[%s3386_s1 + $0x40] sm:$0xff]  ;;  %v2073_v20 = vld [vmem:[%s3386_s1 + $0xb8] sm:$0xff] }
  0x10   : > { %2392 = vmatpush3.msra.mxu1 %v263_v3  ;;  %2362 = vmatprep.subr.mxu0 %v2043_v4  ;;  %v258_v13 = vld [vmem:[%s3386_s1 + $0x8] sm:$0xff]  ;;  %v257_v15 = vld [vmem:[%s3386_s1] sm:$0xff]  ;;  %v2072_v23 = vld [vmem:[%s3386_s1 + $0xb0] sm:$0xff]  ;;  %s2654_s28 = smul.u32 80, %s2742_s11 }
  0x11   : > { %2393 = vmatprep.subr.mxu1 %v262_v5  ;;  %2363 = vmatpush3.msra.mxu0 %v2043_v4  ;;  %s2772_s9 = scalar_lea.vmem %s3385_s0, %s2653_s20  ;;  %v2091_v24 = vld [vmem:[%s3386_s1 + $0xf8] sm:$0xff]  ;;  %v2071_v27 = vld [vmem:[%s3386_s1 + $0xa8] sm:$0xff]  ;;  %v2090_v28 = vld [vmem:[%s3386_s1 + $0xf0] sm:$0xff] }
  0x12   : > { %2394 = vmatpush3.msra.mxu1 %v262_v5  ;;  %2364 = vmatprep.subr.mxu0 %v2042_v6  ;;  %v265_v16 = vld [vmem:[%s2772_s9 + $0x1] sm:$0xff]  ;;  %v266_v18 = vld [vmem:[%s2772_s9 + $0x9] sm:$0xff]  ;;  %v267_v21 = vld [vmem:[%s2772_s9 + $0x11] sm:$0xff]  ;;  %s3287_s8 = scalar_lea.vmem %s3389_s4, %s2654_s28 }
  0x13   : > { %2395 = vmatprep.subr.mxu1 %v261_v7  ;;  %2365 = vmatpush3.msra.mxu0 %v2042_v6  ;;  %v247_v17 = vld [vmem:[%s2772_s9] sm:$0xff]  ;;  %v248_v19 = vld [vmem:[%s2772_s9 + $0x8] sm:$0xff]  ;;  %v249_v22 = vld [vmem:[%s2772_s9 + $0x10] sm:$0xff] }
  0x14   : > { %2396 = vmatpush3.msra.mxu1 %v261_v7  ;;  %2366 = vmatprep.subr.mxu0 %v2041_v8  ;;  %v268_v25 = vld [vmem:[%s2772_s9 + $0x19] sm:$0xff]  ;;  %v269_v29 = vld [vmem:[%s2772_s9 + $0x21] sm:$0xff]  ;;  %v270_v31 = vld [vmem:[%s2772_s9 + $0x29] sm:$0xff] }
  0x15   : > { %2397 = vmatprep.subr.mxu1 %v260_v9  ;;  %2367 = vmatpush3.msra.mxu0 %v2041_v8  ;;  %v250_v26 = vld [vmem:[%s2772_s9 + $0x18] sm:$0xff]  ;;  %v251_v30 = vld [vmem:[%s2772_s9 + $0x20] sm:$0xff]  ;;  %v252_v32 = vld [vmem:[%s2772_s9 + $0x28] sm:$0xff] }
  0x16   : > { %2398 = vmatpush3.msra.mxu1 %v260_v9  ;;  %2368 = vmatprep.subr.mxu0 %v2040_v10  ;;  %v2070_v33 = vld [vmem:[%s3386_s1 + $0xa0] sm:$0xff]  ;;  %v2089_v34 = vld [vmem:[%s3386_s1 + $0xe8] sm:$0xff]  ;;  %v2069_v35 = vld [vmem:[%s3386_s1 + $0x98] sm:$0xff] }
  0x17   : > { %2399 = vmatprep.subr.mxu1 %v259_v11  ;;  %2369 = vmatpush3.msra.mxu0 %v2040_v10  ;;  %v2088_v36 = vld [vmem:[%s3386_s1 + $0xe0] sm:$0xff]  ;;  %v271_v37 = vld [vmem:[%s2772_s9 + $0x31] sm:$0xff]  ;;  %v2067_v46 = vld [vmem:[%s3386_s1 + $0x88] sm:$0xff] }
  0x18   : > { %2400 = vmatpush3.msra.mxu1 %v259_v11  ;;  %2370 = vmatprep.subr.mxu0 %v2039_v12  ;;  %v253_v38 = vld [vmem:[%s2772_s9 + $0x30] sm:$0xff]  ;;  %v272_v39 = vld [vmem:[%s2772_s9 + $0x39] sm:$0xff]  ;;  %v273_v44 = vld [vmem:[%s2772_s9 + $0x41] sm:$0xff] }
  0x19   : > { %2401 = vmatprep.subr.mxu1 %v258_v13  ;;  %2371 = vmatpush3.msra.mxu0 %v2039_v12  ;;  %v254_v40 = vld [vmem:[%s2772_s9 + $0x38] sm:$0xff]  ;;  %v2068_v42 = vld [vmem:[%s3386_s1 + $0x90] sm:$0xff]  ;;  %v255_v45 = vld [vmem:[%s2772_s9 + $0x40] sm:$0xff] }
  0x1a   : > { %2402 = vmatpush3.msra.mxu1 %v258_v13  ;;  %2372 = vmatprep.subr.mxu0 %v2038_v14  ;;  %v2087_v41 = vld [vmem:[%s3386_s1 + $0xd8] sm:$0xff]  ;;  %v2086_v43 = vld [vmem:[%s3386_s1 + $0xd0] sm:$0xff]  ;;  %v256_v48 = vld [vmem:[%s2772_s9 + $0x48] sm:$0xff] }
  0x1b   : > { %2403 = vmatprep.subr.mxu1 %v257_v15  ;;  %2373 = vmatpush3.msra.mxu0 %v2038_v14  ;;  %v274_v47 = vld [vmem:[%s2772_s9 + $0x49] sm:$0xff]  ;;  %v2066_v50 = vld [vmem:[%s3386_s1 + $0x80] sm:$0xff]  ;;  %v750_v54 = vld [vmem:[%s2772_s9 + $0x12] sm:$0xff] }
  0x1c   : > { %2374 = vmatprep.mubr.msk.f32.mxu0 %vm284_vm0, %v265_v16  ;;  %2404 = vmatpush3.msra.mxu1 %v257_v15  ;;  %v2085_v49 = vld [vmem:[%s3386_s1 + $0xc8] sm:$0xff]  ;;  %v2084_v51 = vld [vmem:[%s3386_s1 + $0xc0] sm:$0xff]  ;;  %v2109_v55 = vld [vmem:[%s3386_s1 + $0x138] sm:$0xff] }
  0x1d   : > { %2405 = vmatprep.mubr.msk.f32.mxu1 %vm284_vm0, %v247_v17  ;;  %2375 = vmatmul.mubr.msk.f32.vlgmr.msra.gmra.mxu0 %vm284_vm0, %v266_v18  ;;  %v575_v52 = vld [vmem:[%s2772_s9 + $0x2] sm:$0xff]  ;;  %v749_v53 = vld [vmem:[%s2772_s9 + $0xa] sm:$0xff]  ;;  %v751_v56 = vld [vmem:[%s2772_s9 + $0x1a] sm:$0xff] }
  0x1e   : > { %2406 = vmatmul.mubr.msk.f32.vlgmr.msra.gmra.mxu1 %vm284_vm0, %v248_v19  ;;  %2420 = vmatprep.subr.mxu0 %v2073_v20  ;;  %v2108_v57 = vld [vmem:[%s3386_s1 + $0x130] sm:$0xff]  ;;  %v2127_v58 = vld [vmem:[%s3386_s1 + $0x178] sm:$0xff]  ;;  %v752_v59 = vld [vmem:[%s2772_s9 + $0x22] sm:$0xff] }
  0x1f   : > { %2377 = vmatprep.mubr.msk.f32.mxu0 %vm284_vm0, %v267_v21  ;;  %2421 = vmatpush3.msra.mxu0 %v2073_v20  ;;  %v2107_v60 = vld [vmem:[%s3386_s1 + $0x128] sm:$0xff]  ;;  %v2126_v61 = vld [vmem:[%s3386_s1 + $0x170] sm:$0xff]  ;;  %v2106_v0 = vld [vmem:[%s3386_s1 + $0x120] sm:$0xff] }
  0x20   : > { %2408 = vmatprep.mubr.msk.f32.mxu1 %vm284_vm0, %v249_v22  ;;  %2422 = vmatprep.subr.mxu0 %v2072_v23  ;;  %v753_v62 = vld [vmem:[%s2772_s9 + $0x2a] sm:$0xff]  ;;  %v754_v63 = vld [vmem:[%s2772_s9 + $0x32] sm:$0xff]  ;;  %v2124_v3 = vld [vmem:[%s3386_s1 + $0x160] sm:$0xff] }
  0x21   : > { %2451 = vmatprep.subr.mxu1 %v2091_v24  ;;  %2378 = vmatmul.mubr.msk.f32.gmra.mxu0 %vm284_vm0, %v268_v25  ;;  %v2125_v1 = vld [vmem:[%s3386_s1 + $0x168] sm:$0xff]  ;;  %v2105_v2 = vld [vmem:[%s3386_s1 + $0x118] sm:$0xff]  ;;  %v2104_v7 = vld [vmem:[%s3386_s1 + $0x110] sm:$0xff] }
  0x22   : > { %2409 = vmatmul.mubr.msk.f32.gmra.mxu1 %vm284_vm0, %v250_v26  ;;  %2423 = vmatpush3.msra.mxu0 %v2072_v23  ;;  %v755_v4 = vld [vmem:[%s2772_s9 + $0x3a] sm:$0xff]  ;;  %v756_v5 = vld [vmem:[%s2772_s9 + $0x42] sm:$0xff]  ;;  %v2122_v8 = vld [vmem:[%s3386_s1 + $0x150] sm:$0xff] }
  0x23   : > { %2452 = vmatpush3.msra.mxu1 %v2091_v24  ;;  %2424 = vmatprep.subr.mxu0 %v2071_v27  ;;  %v2123_v6 = vld [vmem:[%s3386_s1 + $0x158] sm:$0xff]  ;;  %v757_v9 = vld [vmem:[%s2772_s9 + $0x4a] sm:$0xff]  ;;  %v2102_v13 = vld [vmem:[%s3386_s1 + $0x100] sm:$0xff] }
  0x24   : > { %2453 = vmatprep.subr.mxu1 %v2090_v28  ;;  %2425 = vmatpush3.msra.mxu0 %v2071_v27  ;;  %v2103_v10 = vld [vmem:[%s3386_s1 + $0x108] sm:$0xff]  ;;  %v758_v11 = vld [vmem:[%s2772_s9 + $0x52] sm:$0xff]  ;;  %v2120_v14 = vld [vmem:[%s3386_s1 + $0x140] sm:$0xff] }
  0x25   : > { %2380 = vmatprep.mubr.msk.f32.mxu0 %vm284_vm0, %v269_v29  ;;  %2411 = vmatprep.mubr.msk.f32.mxu1 %vm284_vm0, %v251_v30  ;;  %v2121_v12 = vld [vmem:[%s3386_s1 + $0x148] sm:$0xff]  ;;  %v924_v17 = vld [vmem:[%s2772_s9 + $0x13] sm:$0xff]  ;;  %v925_v20 = vld [vmem:[%s2772_s9 + $0x1b] sm:$0xff] }
  0x26   : > { %2454 = vmatpush3.msra.mxu1 %v2090_v28  ;;  %2381 = vmatmul.mubr.msk.f32.gmra.mxu0 %vm284_vm0, %v270_v31  ;;  %v923_v15 = vld [vmem:[%s2772_s9 + $0xb] sm:$0xff]  ;;  %v2951_v18 = vld [vmem:[%s2772_s9 + $0x14] sm:$0xff]  ;;  %v2960_v21 = vld [vmem:[%s2772_s9 + $0x1c] sm:$0xff] }
  0x27   : > { %2412 = vmatmul.mubr.msk.f32.gmra.mxu1 %vm284_vm0, %v252_v32  ;;  %2426 = vmatprep.subr.mxu0 %v2070_v33  ;;  %v1097_v16 = vld [vmem:[%s2772_s9 + $0xc] sm:$0xff]  ;;  %v2145_v19 = vld [vmem:[%s3386_s1 + $0x1b8] sm:$0xff]  ;;  %v926_v24 = vld [vmem:[%s2772_s9 + $0x23] sm:$0xff] }
  0x28   : > { %2455 = vmatprep.subr.mxu1 %v2089_v34  ;;  %2427 = vmatpush3.msra.mxu0 %v2070_v33  ;;  %v2144_v22 = vld [vmem:[%s3386_s1 + $0x1b0] sm:$0xff]  ;;  %v2163_v23 = vld [vmem:[%s3386_s1 + $0x1f8] sm:$0xff]  ;;  %v2974_v25 = vld [vmem:[%s2772_s9 + $0x24] sm:$0xff] }
  0x29   : > { %2456 = vmatpush3.msra.mxu1 %v2089_v34  ;;  %2428 = vmatprep.subr.mxu0 %v2069_v35  ;;  %v2143_v26 = vld [vmem:[%s3386_s1 + $0x1a8] sm:$0xff]  ;;  %v2162_v27 = vld [vmem:[%s3386_s1 + $0x1f0] sm:$0xff]  ;;  %v2142_v32 = vld [vmem:[%s3386_s1 + $0x1a0] sm:$0xff] }
  0x2a   : > { %2457 = vmatprep.subr.mxu1 %v2088_v36  ;;  %2383 = vmatprep.mubr.msk.f32.mxu0 %vm284_vm0, %v271_v37  ;;  %v927_v28 = vld [vmem:[%s2772_s9 + $0x2b] sm:$0xff]  ;;  %v928_v30 = vld [vmem:[%s2772_s9 + $0x33] sm:$0xff]  ;;  %v3015_v37 = vld [vmem:[%s2772_s9 + $0x3c] sm:$0xff] }
  0x2b   : > { %2414 = vmatprep.mubr.msk.f32.mxu1 %vm284_vm0, %v253_v38  ;;  %2429 = vmatpush3.msra.mxu0 %v2069_v35  ;;  %v2989_v29 = vld [vmem:[%s2772_s9 + $0x2c] sm:$0xff]  ;;  %v2993_v31 = vld [vmem:[%s2772_s9 + $0x34] sm:$0xff]  ;;  %v2160_v35 = vld [vmem:[%s3386_s1 + $0x1e0] sm:$0xff] }
  0x2c   : > { %2458 = vmatpush3.msra.mxu1 %v2088_v36  ;;  %2384 = vmatmul.mubr.msk.f32.gmra.mxu0 %vm284_vm0, %v272_v39  ;;  %v2161_v33 = vld [vmem:[%s3386_s1 + $0x1e8] sm:$0xff]  ;;  %v2141_v34 = vld [vmem:[%s3386_s1 + $0x198] sm:$0xff] }
  0x2d   : > { %2415 = vmatmul.mubr.msk.f32.gmra.mxu1 %vm284_vm0, %v254_v40  ;;  %2459 = vmatprep.subr.mxu1 %v2087_v41  ;;  %v929_v36 = vld [vmem:[%s2772_s9 + $0x3b] sm:$0xff]  ;;  %v930_v38 = vld [vmem:[%s2772_s9 + $0x43] sm:$0xff] }
  0x2e   : > { %2430 = vmatprep.subr.mxu0 %v2068_v42  ;;  %2460 = vmatpush3.msra.mxu1 %v2087_v41  ;;  %v3019_v39 = vld [vmem:[%s2772_s9 + $0x44] sm:$0xff]  ;;  %v2159_v40 = vld [vmem:[%s3386_s1 + $0x1d8] sm:$0xff]  ;;  %v2140_v41 = vld [vmem:[%s3386_s1 + $0x190] sm:$0xff] }
  0x2f   : > { %2431 = vmatpush3.msra.mxu0 %v2068_v42  ;;  %2461 = vmatprep.subr.mxu1 %v2086_v43  ;;  %v2158_v42 = vld [vmem:[%s3386_s1 + $0x1d0] sm:$0xff] }
  0x30   : > { %2386 = vmatprep.mubr.msk.f32.mxu0 %vm284_vm0, %v273_v44  ;;  %2417 = vmatprep.mubr.msk.f32.mxu1 %vm284_vm0, %v255_v45  ;;  %v3038_v44 = vld [vmem:[%s2772_s9 + $0x4c] sm:$0xff] }
  0x31   : > { %2432 = vmatprep.subr.mxu0 %v2067_v46  ;;  %2462 = vmatpush3.msra.mxu1 %v2086_v43  ;;  %v931_v43 = vld [vmem:[%s2772_s9 + $0x4b] sm:$0xff] }
  0x32   : > { %2387 = vmatmul.mubr.msk.f32.gmra.mxu0 %vm284_vm0, %v274_v47  ;;  %2418 = vmatmul.mubr.msk.f32.gmra.mxu1 %vm284_vm0, %v256_v48  ;;  %v2139_v45 = vld [vmem:[%s3386_s1 + $0x188] sm:$0xff]  ;;  %v3046_v47 = vld [vmem:[%s2772_s9 + $0x54] sm:$0xff] }
  0x33   : > { %2433 = vmatpush3.msra.mxu0 %v2067_v46  ;;  %2463 = vmatprep.subr.mxu1 %v2085_v49  ;;  %v932_v46 = vld [vmem:[%s2772_s9 + $0x53] sm:$0xff]  ;;  %v2157_v48 = vld [vmem:[%s3386_s1 + $0x1c8] sm:$0xff] }
  0x34   : > { %2434 = vmatprep.subr.mxu0 %v2066_v50  ;;  %2464 = vmatpush3.msra.mxu1 %v2085_v49  ;;  %v2138_v49 = vld [vmem:[%s3386_s1 + $0x180] sm:$0xff] }
  0x35   : > { %2435 = vmatpush3.msra.mxu0 %v2066_v50  ;;  %2465 = vmatprep.subr.mxu1 %v2084_v51  ;;  %v2156_v50 = vld [vmem:[%s3386_s1 + $0x1c0] sm:$0xff] }
  0x36   : > { %2436 = vmatprep.mubr.msk.f32.mxu0 %vm284_vm0, %v575_v52  ;;  %2466 = vmatpush3.msra.mxu1 %v2084_v51  ;;  %v1445_v51 = vld [vmem:[%s2772_s9 + $0x15] sm:$0xff]  ;;  %v1446_v52 = vld [vmem:[%s2772_s9 + $0x1d] sm:$0xff] }
  0x37   : > { %2467 = vmatprep.mubr.msk.f32.mxu1 %vm284_vm0, %v749_v53  ;;  %2437 = vmatmul.mubr.msk.f32.vlgmr.msra.gmra.mxu0 %vm284_vm0, %v749_v53  ;;  %v2181_v53 = vld [vmem:[%s3386_s1 + $0x238] sm:$0xff] }
  0x38   : > { %2468 = vmatmul.mubr.msk.f32.vlgmr.msra.gmra.mxu1 %vm284_vm0, %v750_v54  ;;  %2482 = vmatprep.subr.mxu0 %v2109_v55 }
  0x39   : > { %2439 = vmatprep.mubr.msk.f32.mxu0 %vm284_vm0, %v750_v54  ;;  %2483 = vmatpush3.msra.mxu0 %v2109_v55  ;;  %v1447_v54 = vld [vmem:[%s2772_s9 + $0x25] sm:$0xff]  ;;  %v2180_v55 = vld [vmem:[%s3386_s1 + $0x230] sm:$0xff] }
  0x3a   : > { %2470 = vmatprep.mubr.msk.f32.mxu1 %vm284_vm0, %v751_v56  ;;  %2484 = vmatprep.subr.mxu0 %v2108_v57 }
  0x3b   : > { %2513 = vmatprep.subr.mxu1 %v2127_v58  ;;  %2440 = vmatmul.mubr.msk.f32.gmra.mxu0 %vm284_vm0, %v751_v56  ;;  %v1448_v56 = vld [vmem:[%s2772_s9 + $0x2d] sm:$0xff] }
  0x3c   : > { %2471 = vmatmul.mubr.msk.f32.gmra.mxu1 %vm284_vm0, %v752_v59  ;;  %2485 = vmatpush3.msra.mxu0 %v2108_v57  ;;  %v2179_v57 = vld [vmem:[%s3386_s1 + $0x228] sm:$0xff] }
  0x3d   : > { %2514 = vmatpush3.msra.mxu1 %v2127_v58  ;;  %2486 = vmatprep.subr.mxu0 %v2107_v60  ;;  %v1449_v58 = vld [vmem:[%s2772_s9 + $0x35] sm:$0xff] }
  0x3e   : > { %2515 = vmatprep.subr.mxu1 %v2126_v61  ;;  %2487 = vmatpush3.msra.mxu0 %v2107_v60  ;;  %v2178_v60 = vld [vmem:[%s3386_s1 + $0x220] sm:$0xff] }
  0x3f   : > { %2442 = vmatprep.mubr.msk.f32.mxu0 %vm284_vm0, %v752_v59  ;;  %2473 = vmatprep.mubr.msk.f32.mxu1 %vm284_vm0, %v753_v62  ;;  %v1450_v59 = vld [vmem:[%s2772_s9 + $0x3d] sm:$0xff] }
  0x40   : > { %2516 = vmatpush3.msra.mxu1 %v2126_v61  ;;  %2443 = vmatmul.mubr.msk.f32.gmra.mxu0 %vm284_vm0, %v753_v62  ;;  %v2177_v61 = vld [vmem:[%s3386_s1 + $0x218] sm:$0xff]  ;;  %v1451_v62 = vld [vmem:[%s2772_s9 + $0x45] sm:$0xff] }
  0x41   : > { %2474 = vmatmul.mubr.msk.f32.gmra.mxu1 %vm284_vm0, %v754_v63  ;;  %2488 = vmatprep.subr.mxu0 %v2106_v0 }
  0x42   : > { %2517 = vmatprep.subr.mxu1 %v2125_v1  ;;  %2489 = vmatpush3.msra.mxu0 %v2106_v0  ;;  %v2176_v0 = vld [vmem:[%s3386_s1 + $0x210] sm:$0xff] }
  0x43   : > { %2518 = vmatpush3.msra.mxu1 %v2125_v1  ;;  %2490 = vmatprep.subr.mxu0 %v2105_v2  ;;  %v1453_v1 = vld [vmem:[%s2772_s9 + $0x55] sm:$0xff] }
  0x44   : > { %2519 = vmatprep.subr.mxu1 %v2124_v3  ;;  %2445 = vmatprep.mubr.msk.f32.mxu0 %vm284_vm0, %v754_v63  ;;  %v1452_v63 = vld [vmem:[%s2772_s9 + $0x4d] sm:$0xff] }
  0x45   : > { %2476 = vmatprep.mubr.msk.f32.mxu1 %vm284_vm0, %v755_v4  ;;  %2491 = vmatpush3.msra.mxu0 %v2105_v2  ;;  %v2175_v2 = vld [vmem:[%s3386_s1 + $0x208] sm:$0xff] }
  0x46   : > { %2520 = vmatpush3.msra.mxu1 %v2124_v3  ;;  %2446 = vmatmul.mubr.msk.f32.gmra.mxu0 %vm284_vm0, %v755_v4  ;;  %v1280_v3 = vld [vmem:[%s2772_s9 + $0x5c] sm:$0xff] }
  0x47   : > { %2477 = vmatmul.mubr.msk.f32.gmra.mxu1 %vm284_vm0, %v756_v5  ;;  %2521 = vmatprep.subr.mxu1 %v2123_v6  ;;  %v1454_v4 = vld [vmem:[%s2772_s9 + $0x5d] sm:$0xff] }
  0x48   : > { %2492 = vmatprep.subr.mxu0 %v2104_v7  ;;  %2522 = vmatpush3.msra.mxu1 %v2123_v6  ;;  %v1619_v6 = vld [vmem:[%s2772_s9 + $0x16] sm:$0xff] }
  0x49   : > { %2493 = vmatpush3.msra.mxu0 %v2104_v7  ;;  %2523 = vmatprep.subr.mxu1 %v2122_v8  ;;  %v1625_v7 = vld [vmem:[%s2772_s9 + $0x46] sm:$0xff] }
  0x4a   : > { %2448 = vmatprep.mubr.msk.f32.mxu0 %vm284_vm0, %v756_v5  ;;  %2479 = vmatprep.mubr.msk.f32.mxu1 %vm284_vm0, %v757_v9  ;;  %v2174_v5 = vld [vmem:[%s3386_s1 + $0x200] sm:$0xff] }
  0x4b   : > { %2494 = vmatprep.subr.mxu0 %v2103_v10  ;;  %2524 = vmatpush3.msra.mxu1 %v2122_v8  ;;  %v1620_v8 = vld [vmem:[%s2772_s9 + $0x1e] sm:$0xff] }
  0x4c   : > { %2449 = vmatmul.mubr.msk.f32.gmra.mxu0 %vm284_vm0, %v757_v9  ;;  %2480 = vmatmul.mubr.msk.f32.gmra.mxu1 %vm284_vm0, %v758_v11  ;;  %v1626_v9 = vld [vmem:[%s2772_s9 + $0x4e] sm:$0xff]  ;;  %v1627_v11 = vld [vmem:[%s2772_s9 + $0x56] sm:$0xff] }
  0x4d   : > { %2495 = vmatpush3.msra.mxu0 %v2103_v10  ;;  %2525 = vmatprep.subr.mxu1 %v2121_v12  ;;  %v1621_v10 = vld [vmem:[%s2772_s9 + $0x26] sm:$0xff] }
  0x4e   : > { %2496 = vmatprep.subr.mxu0 %v2102_v13  ;;  %2526 = vmatpush3.msra.mxu1 %v2121_v12  ;;  %v1820_v12 = vld [vmem:[%s3388_s3] sm:$0xff] }
  0x4f   : > { %2497 = vmatpush3.msra.mxu0 %v2102_v13  ;;  %2527 = vmatprep.subr.mxu1 %v2120_v14  ;;  %v1822_v13 = vld [vmem:[%s3388_s3 + $0x10] sm:$0xff] }
  0x50   : > { %2498 = vmatprep.mubr.msk.f32.mxu0 %vm284_vm0, %v923_v15  ;;  %2528 = vmatpush3.msra.mxu1 %v2120_v14  ;;  %v1622_v14 = vld [vmem:[%s2772_s9 + $0x2e] sm:$0xff]  ;;  %v1628_v15 = vld [vmem:[%s2772_s9 + $0x5e] sm:$0xff] }
  0x51   : > { %2529 = vmatprep.mubr.msk.f32.mxu1 %vm284_vm0, %v1097_v16  ;;  %2499 = vmatmul.mubr.msk.f32.vlgmr.msra.gmra.mxu0 %vm284_vm0, %v924_v17  ;;  %v1623_v16 = vld [vmem:[%s2772_s9 + $0x36] sm:$0xff]  ;;  %v2675_v17 = vmov 0  }
  0x52   : > { %2530 = vmatmul.mubr.msk.f32.vlgmr.msra.gmra.mxu1 %vm284_vm0, %v2951_v18  ;;  %2544 = vmatprep.subr.mxu0 %v2145_v19 }
  0x53   : > { %2501 = vmatprep.mubr.msk.f32.mxu0 %vm284_vm0, %v925_v20  ;;  %2545 = vmatpush3.msra.mxu0 %v2145_v19  ;;  %v1823_v19 = vld [vmem:[%s3388_s3 + $0x18] sm:$0xff] }
  0x54   : > { %2532 = vmatprep.mubr.msk.f32.mxu1 %vm284_vm0, %v2960_v21  ;;  %2546 = vmatprep.subr.mxu0 %v2144_v22  ;;  %v1624_v20 = vld [vmem:[%s2772_s9 + $0x3e] sm:$0xff] }
  0x55   : > { %2575 = vmatprep.subr.mxu1 %v2163_v23  ;;  %2502 = vmatmul.mubr.msk.f32.gmra.mxu0 %vm284_vm0, %v926_v24  ;;  %v1827_v24 = vld [vmem:[%s3388_s3 + $0x38] sm:$0xff] }
  0x56   : > { %2533 = vmatmul.mubr.msk.f32.gmra.mxu1 %vm284_vm0, %v2974_v25  ;;  %2547 = vmatpush3.msra.mxu0 %v2144_v22  ;;  %v1825_v22 = vld [vmem:[%s3388_s3 + $0x28] sm:$0xff] }
  0x57   : > { %2576 = vmatpush3.msra.mxu1 %v2163_v23  ;;  %2548 = vmatprep.subr.mxu0 %v2143_v26  ;;  %v1826_v23 = vld [vmem:[%s3388_s3 + $0x30] sm:$0xff] }
  0x58   : > { %2577 = vmatprep.subr.mxu1 %v2162_v27  ;;  %2549 = vmatpush3.msra.mxu0 %v2143_v26  ;;  %v1829_v26 = vld [vmem:[%s3388_s3 + $0x48] sm:$0xff] }
  0x59   : > { %2504 = vmatprep.mubr.msk.f32.mxu0 %vm284_vm0, %v927_v28  ;;  %2535 = vmatprep.mubr.msk.f32.mxu1 %vm284_vm0, %v2989_v29 }
  0x5a   : > { %2578 = vmatpush3.msra.mxu1 %v2162_v27  ;;  %2505 = vmatmul.mubr.msk.f32.gmra.mxu0 %vm284_vm0, %v928_v30 }
  0x5b   : > { %2536 = vmatmul.mubr.msk.f32.gmra.mxu1 %vm284_vm0, %v2993_v31  ;;  %2550 = vmatprep.subr.mxu0 %v2142_v32 }
  0x5c   : > { %2579 = vmatprep.subr.mxu1 %v2161_v33  ;;  %2551 = vmatpush3.msra.mxu0 %v2142_v32 }
  0x5d   : > { %2580 = vmatpush3.msra.mxu1 %v2161_v33  ;;  %2552 = vmatprep.subr.mxu0 %v2141_v34 }
  0x5e   : > { %2581 = vmatprep.subr.mxu1 %v2160_v35  ;;  %2507 = vmatprep.mubr.msk.f32.mxu0 %vm284_vm0, %v929_v36 }
  0x5f   : > { %2538 = vmatprep.mubr.msk.f32.mxu1 %vm284_vm0, %v3015_v37  ;;  %2553 = vmatpush3.msra.mxu0 %v2141_v34 }
  0x60   : > { %2582 = vmatpush3.msra.mxu1 %v2160_v35  ;;  %2508 = vmatmul.mubr.msk.f32.gmra.mxu0 %vm284_vm0, %v930_v38 }
  0x61   : > { %2539 = vmatmul.mubr.msk.f32.gmra.mxu1 %vm284_vm0, %v3019_v39  ;;  %2583 = vmatprep.subr.mxu1 %v2159_v40 }
  0x62   : > { %2554 = vmatprep.subr.mxu0 %v2140_v41  ;;  %2584 = vmatpush3.msra.mxu1 %v2159_v40 }
  0x63   : > { %2555 = vmatpush3.msra.mxu0 %v2140_v41  ;;  %2585 = vmatprep.subr.mxu1 %v2158_v42 }
  0x64   : > { %2510 = vmatprep.mubr.msk.f32.mxu0 %vm284_vm0, %v931_v43  ;;  %2541 = vmatprep.mubr.msk.f32.mxu1 %vm284_vm0, %v3038_v44 }
  0x65   : > { %2556 = vmatprep.subr.mxu0 %v2139_v45  ;;  %2586 = vmatpush3.msra.mxu1 %v2158_v42 }
  0x66   : > { %2511 = vmatmul.mubr.msk.f32.gmra.mxu0 %vm284_vm0, %v932_v46  ;;  %2542 = vmatmul.mubr.msk.f32.gmra.mxu1 %vm284_vm0, %v3046_v47 }
  0x67   : > { %2557 = vmatpush3.msra.mxu0 %v2139_v45  ;;  %2587 = vmatprep.subr.mxu1 %v2157_v48 }
  0x68   : > { %2558 = vmatprep.subr.mxu0 %v2138_v49  ;;  %2588 = vmatpush3.msra.mxu1 %v2157_v48 }
  0x69   : > { %2559 = vmatpush3.msra.mxu0 %v2138_v49  ;;  %2589 = vmatprep.subr.mxu1 %v2156_v50 }
  0x6a   : > { %2560 = vmatprep.mubr.msk.f32.mxu0 %vm284_vm0, %v2951_v18  ;;  %2590 = vmatpush3.msra.mxu1 %v2156_v50  ;;  %v1821_v18 = vld [vmem:[%s3388_s3 + $0x8] sm:$0xff] }
  0x6b   : > { %2591 = vmatprep.mubr.msk.f32.mxu1 %vm284_vm0, %v1445_v51  ;;  %2561 = vmatmul.mubr.msk.f32.vlgmr.msra.gmra.mxu0 %vm284_vm0, %v2960_v21  ;;  %v1824_v21 = vld [vmem:[%s3388_s3 + $0x20] sm:$0xff] }
  0x6c   : > { %2592 = vmatmul.mubr.msk.f32.vlgmr.msra.gmra.mxu1 %vm284_vm0, %v1446_v52  ;;  %2606 = vmatprep.subr.mxu0 %v2181_v53 }
  0x6d   : > { %2563 = vmatprep.mubr.msk.f32.mxu0 %vm284_vm0, %v2974_v25  ;;  %2607 = vmatpush3.msra.mxu0 %v2181_v53  ;;  %v1828_v25 = vld [vmem:[%s3388_s3 + $0x40] sm:$0xff] }
  0x6e   : > { %2594 = vmatprep.mubr.msk.f32.mxu1 %vm284_vm0, %v1447_v54  ;;  %2608 = vmatprep.subr.mxu0 %v2180_v55 }
  0x6f   : > { %2637 = vmatprep.subr.mxu1 %v2181_v53  ;;  %2564 = vmatmul.mubr.msk.f32.gmra.mxu0 %vm284_vm0, %v2989_v29 }
  0x70   : > { %2595 = vmatmul.mubr.msk.f32.gmra.mxu1 %vm284_vm0, %v1448_v56  ;;  %2609 = vmatpush3.msra.mxu0 %v2180_v55 }
  0x71   : > { %2645 = vmatpush3.msra.mxu1 %v2181_v53  ;;  %2610 = vmatprep.subr.mxu0 %v2179_v57 }
  0x72   : > { %2638 = vmatprep.subr.mxu1 %v2180_v55  ;;  %2611 = vmatpush3.msra.mxu0 %v2179_v57 }
  0x73   : > { %2566 = vmatprep.mubr.msk.f32.mxu0 %vm284_vm0, %v2993_v31  ;;  %2597 = vmatprep.mubr.msk.f32.mxu1 %vm284_vm0, %v1449_v58 }
  0x74   : > { %2646 = vmatpush3.msra.mxu1 %v2180_v55  ;;  %2567 = vmatmul.mubr.msk.f32.gmra.mxu0 %vm284_vm0, %v3015_v37 }
  0x75   : > { %2598 = vmatmul.mubr.msk.f32.gmra.mxu1 %vm284_vm0, %v1450_v59  ;;  %2639 = vmatprep.subr.mxu1 %v2179_v57 }
  0x76   : > { %2612 = vmatprep.subr.mxu0 %v2178_v60  ;;  %2647 = vmatpush3.msra.mxu1 %v2179_v57 }
  0x77   : > { %2613 = vmatpush3.msra.mxu0 %v2178_v60  ;;  %2640 = vmatprep.subr.mxu1 %v2178_v60 }
  0x78   : > { %2614 = vmatprep.subr.mxu0 %v2177_v61  ;;  %2569 = vmatprep.mubr.msk.f32.mxu0 %vm284_vm0, %v3019_v39 }
  0x79   : > { %2600 = vmatprep.mubr.msk.f32.mxu1 %vm284_vm0, %v1451_v62  ;;  %2648 = vmatpush3.msra.mxu1 %v2178_v60 }
  0x7a   : > { %2615 = vmatpush3.msra.mxu0 %v2177_v61  ;;  %2601 = vmatmul.mubr.msk.f32.gmra.mxu1 %vm284_vm0, %v1452_v63 }
  0x7b   : > { %2570 = vmatmul.mubr.msk.f32.gmra.mxu0 %vm284_vm0, %v3038_v44  ;;  %2641 = vmatprep.subr.mxu1 %v2177_v61 }
  0x7c   : > { %2616 = vmatprep.subr.mxu0 %v2176_v0  ;;  %2649 = vmatpush3.msra.mxu1 %v2177_v61 }
  0x7d   : > { %2617 = vmatpush3.msra.mxu0 %v2176_v0  ;;  %2642 = vmatprep.subr.mxu1 %v2176_v0 }
  0x7e   : > { %2572 = vmatprep.mubr.msk.f32.mxu0 %vm284_vm0, %v3046_v47  ;;  %2603 = vmatprep.mubr.msk.f32.mxu1 %vm284_vm0, %v1453_v1 }
  0x7f   : > { %2650 = vmatpush3.msra.mxu1 %v2176_v0  ;;  %2618 = vmatprep.subr.mxu0 %v2175_v2 }
  0x80   : > { %2573 = vmatmul.mubr.msk.f32.gmra.mxu0 %vm284_vm0, %v1280_v3  ;;  %2604 = vmatmul.mubr.msk.f32.gmra.mxu1 %vm284_vm0, %v1454_v4 }
  0x81   : > { %2643 = vmatprep.subr.mxu1 %v2175_v2  ;;  %2619 = vmatpush3.msra.mxu0 %v2175_v2 }
  0x82   : > { %2651 = vmatpush3.msra.mxu1 %v2175_v2  ;;  %2620 = vmatprep.subr.mxu0 %v2174_v5 }
  0x83   : > { %2644 = vmatprep.subr.mxu1 %v2174_v5  ;;  %2621 = vmatpush3.msra.mxu0 %v2174_v5 }
  0x84   : > { %2652 = vmatpush3.msra.mxu1 %v2174_v5  ;;  %2622 = vmatprep.mubr.msk.f32.mxu0 %vm284_vm0, %v1619_v6 }
  0x85   : > { %2631 = vmatprep.mubr.msk.f32.mxu1 %vm284_vm0, %v1625_v7  ;;  %2623 = vmatmul.mubr.msk.f32.vlgmr.msra.gmra.mxu0 %vm284_vm0, %v1620_v8 }
  0x86   : > { %2632 = vmatmul.mubr.msk.f32.vlgmr.msra.gmra.mxu1 %vm284_vm0, %v1626_v9  ;;  %2625 = vmatprep.mubr.msk.f32.mxu0 %vm284_vm0, %v1621_v10 }
  0x87   : > { %2634 = vmatprep.mubr.msk.f32.mxu1 %vm284_vm0, %v1627_v11  ;;  %2665 = vset.pattern.permute.xlu0 %v2675_v17 }
  0x88   : > { %2666 = vset.pattern.permute.xlu1 %v2675_v17  ;;  %1832 = vperm.xlu0 %2665, %v1820_v12  }
  0x89   : > { %1842 = vperm.xlu1 %2666, %v1822_v13   ;;  %2626 = vmatmul.mubr.msk.f32.gmra.mxu0 %vm284_vm0, %v1622_v14 }
  0x8a   : > { %2635 = vmatmul.mubr.msk.f32.gmra.mxu1 %vm284_vm0, %v1628_v15  ;;  %2628 = vmatprep.mubr.msk.f32.mxu0 %vm284_vm0, %v1623_v16 }
  0x8c   : > { %1837 = vperm.xlu0 %2665, %v1821_v18  }
  0x8d   : > { %1847 = vperm.xlu1 %2666, %v1823_v19   ;;  %2629 = vmatmul.mubr.msk.f32.gmra.mxu0 %vm284_vm0, %v1624_v20 }
  0x90   : > { %1852 = vperm.xlu0 %2665, %v1824_v21  }
  0x91   : > { %1857 = vperm.xlu1 %2666, %v1825_v22  }
  0x94   : > { %1862 = vperm.xlu0 %2665, %v1826_v23  }
  0x95   : > { %1867 = vperm.xlu1 %2666, %v1827_v24  }
  0x98   : > { %1872 = vperm.xlu0 %2665, %v1828_v25  }
  0x99   : > { %1877 = vperm.xlu1 %2666, %v1829_v26  }
  0xdd   : > { %v2376_v27 = vpop.f32.mrf.mxu0 }
  0xde   : > { %v2407_v28 = vpop.f32.mrf.mxu1 }
  0xdf   : > { %v3176_v29 = vadd.f32 %v2407_v28, %v2376_v27  ;;  %v381_v30 = vpop.f32.mrf.mxu0 }
  0xe0   : > { %v526_v31 = vpop.f32.mrf.mxu1 }
  0xe1   : > { %v3178_v32 = vadd.f32 %v526_v31, %v381_v30  ;;  %v2379_v33 = vpop.f32.mrf.mxu0 }
  0xe2   : > { %v2410_v34 = vpop.f32.mrf.mxu1 }
  0xe3   : > { %v3180_v35 = vadd.f32 %v2410_v34, %v2379_v33  ;;  %v391_v36 = vpop.f32.mrf.mxu0 }
  0xe4   : > { %v536_v37 = vpop.f32.mrf.mxu1 }
  0xe5   : > { %v3182_v38 = vadd.f32 %v536_v37, %v391_v36 }
  0xe6   : > { %v2382_v39 = vpop.f32.mrf.mxu0 }
  0xe7   : > { %v2413_v40 = vpop.f32.mrf.mxu1 }
  0xe8   : > { %v3184_v41 = vadd.f32 %v2413_v40, %v2382_v39  ;;  %v401_v42 = vpop.f32.mrf.mxu0 }
  0xe9   : > { %v546_v43 = vpop.f32.mrf.mxu1 }
  0xea   : > { %v3186_v44 = vadd.f32 %v546_v43, %v401_v42 }
  0xec   : > { %v2385_v45 = vpop.f32.mrf.mxu0 }
  0xed   : > { %v2416_v46 = vpop.f32.mrf.mxu1 }
  0xee   : > { %v411_v47 = vpop.f32.mrf.mxu0  ;;  %v562_v42 = vadd.f32 %v2416_v46, %v2385_v45 }
  0xef   : > { %v556_v48 = vpop.f32.mrf.mxu1 }
  0xf0   : > { %v557_v43 = vadd.f32 %v556_v48, %v411_v47 }
  0xf2   : > { %v2388_v49 = vpop.f32.mrf.mxu0  ;;  %v2419_v50 = vpop.f32.mrf.mxu1 }
  0xf4   : > { %v3188_v51 = vpop.f32.mrf.mxu0  ;;  %v3190_v52 = vpop.f32.mrf.mxu1 }
  0xf7   : > { %v2438_v53 = vpop.f32.mrf.mxu0 }
  0xf8   : > { %v2469_v54 = vpop.f32.mrf.mxu1 }
  0xf9   : > { %v690_v55 = vpop.f32.mrf.mxu0 }
  0xfa   : > { %v864_v56 = vpop.f32.mrf.mxu1 }
  0xfb   : > { %v2441_v57 = vpop.f32.mrf.mxu0 }
  0xfc   : > { %v3192_v58 = vpop.f32.mrf.mxu1  ;;  %v742_v45 = vadd.f32 %v2441_v57, %v3180_v35 }
  0xfd   : > { %v3194_v59 = vpop.f32.mrf.mxu0 }
  0xfe   : > { %v3196_v60 = vpop.f32.mrf.mxu1 }
 0x100   : > { %v3198_v61 = vpop.f32.mrf.mxu0 }
 0x101   : > { %v3200_v62 = vpop.f32.mrf.mxu1 }
 0x102   : > { %v3202_v63 = vpop.f32.mrf.mxu0 }
 0x103   : > { %v3204_v0 = vpop.f32.mrf.mxu1 }
 0x104   : > { %3392 = vst [vmem:[#allocation2_spill] sm:$0xff] %v3204_v0 }
 0x106   : > { %v2447_v1 = vpop.f32.mrf.mxu0 }
 0x107   : > { %v2478_v2 = vpop.f32.mrf.mxu1 }
 0x108   : > { %v720_v3 = vpop.f32.mrf.mxu0 }
 0x109   : > { %v894_v4 = vpop.f32.mrf.mxu1 }
 0x10c   : > { %v2450_v5 = vpop.f32.mrf.mxu0  ;;  %v2481_v6 = vpop.f32.mrf.mxu1 }
 0x10e   : > { %v730_v7 = vpop.f32.mrf.mxu0  ;;  %v3206_v8 = vpop.f32.mrf.mxu1 }
 0x111   : > { %v2500_v9 = vpop.f32.mrf.mxu0 }
 0x112   : > { %v2531_v10 = vpop.f32.mrf.mxu1 }
 0x113   : > { %v1038_v11 = vpop.f32.mrf.mxu0 }
 0x114   : > { %v1212_v12 = vpop.f32.mrf.mxu1 }
 0x115   : > { %v2503_v13 = vpop.f32.mrf.mxu0 }
 0x116   : > { %v3208_v14 = vpop.f32.mrf.mxu1 }
 0x117   : > { %v3210_v15 = vpop.f32.mrf.mxu0 }
 0x118   : > { %v3212_v16 = vpop.f32.mrf.mxu1 }
 0x119   : > { %3393 = vst [vmem:[#allocation3_spill] sm:$0xff] %v3212_v16 }
 0x11a   : > { %v3214_v17 = vpop.f32.mrf.mxu0 }
 0x11b   : > { %3394 = vst [vmem:[#allocation4_spill] sm:$0xff] %v3214_v17  ;;  %v3216_v18 = vpop.f32.mrf.mxu1  ;;  %v739_v17 = vadd.f32 %v690_v55, %v3178_v32  ;;  %v567_v32 = vadd.f32 %v3190_v52, %v3188_v51  ;;  %v741_v55 = vadd.f32 %v3194_v59, %v3182_v38 }
 0x11c   : > { %3395 = vst [vmem:[#allocation5_spill] sm:$0xff] %v3216_v18  ;;  %v3218_v19 = vpop.f32.mrf.mxu0  ;;  %v746_v18 = vadd.f32 %v2447_v1, %v562_v42 }
 0x11d   : > { %3396 = vst [vmem:[#allocation6_spill] sm:$0xff] %v3218_v19  ;;  %v3220_v20 = vpop.f32.mrf.mxu1  ;;  %v913_v47 = vadd.f32 %v864_v56, %v739_v17  ;;  %v747_v57 = vadd.f32 %v730_v7, %v567_v32 }
 0x11e   : > { %3397 = vst [vmem:[#allocation7_spill] sm:$0xff] %v3220_v20  ;;  %v740_v20 = vadd.f32 %v2438_v53, %v3176_v29  ;;  %v920_v0 = vadd.f32 %v2478_v2, %v746_v18 }
 0x120   : > { %v2509_v21 = vpop.f32.mrf.mxu0 }
 0x121   : > { %v2540_v22 = vpop.f32.mrf.mxu1  ;;  %v1094_v53 = vadd.f32 %v2509_v21, %v920_v0  ;;  %v915_v0 = vadd.f32 %v3196_v60, %v741_v55  ;;  %v1833_v60 = vpop.permute.xlu0 %1832 }
 0x122   : > { %v1068_v23 = vpop.f32.mrf.mxu0 }
 0x123   : > { %v1242_v24 = vpop.f32.mrf.mxu1  ;;  %v1268_v2 = vadd.f32 %v2540_v22, %v1094_v53  ;;  %v1089_v7 = vadd.f32 %v3210_v15, %v915_v0  ;;  %v3403_v15 = vld [vmem:[#allocation2_spill] sm:$0xff] }
 0x126   : > { %v2512_v25 = vpop.f32.mrf.mxu0  ;;  %v3222_v26 = vpop.f32.mrf.mxu1 }
 0x128   : > { %v3224_v27 = vpop.f32.mrf.mxu0  ;;  %v3226_v28 = vpop.f32.mrf.mxu1 }
 0x129   : > { %3398 = vst [vmem:[#allocation8_spill] sm:$0xff] %v3226_v28 }
 0x12b   : > { %v2562_v30 = vpop.f32.mrf.mxu0 }
 0x12c   : > { %v3228_v31 = vpop.f32.mrf.mxu1 }
 0x12d   : > { %v1386_v33 = vpop.f32.mrf.mxu0 }
 0x12e   : > { %v3230_v34 = vpop.f32.mrf.mxu1 }
 0x12f   : > { %3399 = vst [vmem:[#allocation9_spill] sm:$0xff] %v3230_v34  ;;  %v3232_v36 = vpop.f32.mrf.mxu0  ;;  %v745_v34 = vadd.f32 %v720_v3, %v557_v43  ;;  %v1087_v3 = vadd.f32 %v1038_v11, %v913_v47  ;;  %v3408_v47 = vld [vmem:[#allocation6_spill] sm:$0xff] }
 0x130   : > { %3400 = vst [vmem:[#allocation10_spill] sm:$0xff] %v3232_v36  ;;  %v3234_v37 = vpop.f32.mrf.mxu1 }
 0x131   : > { %3401 = vst [vmem:[#allocation11_spill] sm:$0xff] %v3234_v37  ;;  %v3236_v39 = vpop.f32.mrf.mxu0  ;;  %v572_v37 = vadd.f32 %v2419_v50, %v2388_v49  ;;  %v919_v29 = vadd.f32 %v894_v4, %v745_v34  ;;  %v744_v4 = vadd.f32 %v3198_v61, %v3184_v41  ;;  %v3263_v41 = vpop.permute.xlu1 %1842 }
 0x132   : > { %3402 = vst [vmem:[#allocation12_spill] sm:$0xff] %v3236_v39  ;;  %v3238_v40 = vpop.f32.mrf.mxu1  ;;  %v914_v39 = vadd.f32 %v2469_v54, %v740_v20  ;;  %v916_v54 = vadd.f32 %v3192_v58, %v742_v45  ;;  %v743_v58 = vadd.f32 %v3202_v63, %v3186_v44  ;;  %v3407_v45 = vld [vmem:[#allocation4_spill] sm:$0xff] }
 0x133   : > { %v748_v46 = vadd.f32 %v2450_v5, %v572_v37  ;;  %v1093_v43 = vadd.f32 %v1068_v23, %v919_v29  ;;  %v918_v44 = vadd.f32 %v3200_v62, %v744_v4  ;;  %v3404_v23 = vld [vmem:[#allocation3_spill] sm:$0xff] }
 0x134   : > { %v3241_v28 = vpop.f32.mrf.mxu0  ;;  %v1088_v48 = vadd.f32 %v2500_v9, %v914_v39  ;;  %v1090_v5 = vadd.f32 %v2503_v13, %v916_v54  ;;  %v1261_v9 = vadd.f32 %v1212_v12, %v1087_v3  ;;  %v917_v22 = vadd.f32 %v3403_v15, %v743_v58  ;;  %v1838_v3 = vpop.permute.xlu0 %1837 }
 0x135   : > { %v3243_v19 = vpop.f32.mrf.mxu1  ;;  %v922_v35 = vadd.f32 %v2481_v6, %v748_v46  ;;  %v1267_v38 = vadd.f32 %v1242_v24, %v1093_v43  ;;  %v921_v6 = vadd.f32 %v3206_v8, %v747_v57  ;;  %v1263_v24 = vadd.f32 %v3404_v23, %v1089_v7  ;;  %v1848_v43 = vpop.permute.xlu1 %1847 }
 0x136   : > { %v3246_v16 = vpop.f32.mrf.mxu0  ;;  %v1262_v56 = vadd.f32 %v2531_v10, %v1088_v48  ;;  %v1435_v18 = vadd.f32 %v1386_v33, %v1261_v9  ;;  %v1264_v12 = vadd.f32 %v3208_v14, %v1090_v5  ;;  %v3277_v14 = vld [vmem:[%s3387_s2] ss:$0 sm:$0xff]  ;;  %v1092_v46 = vadd.f32 %v3407_v45, %v918_v44  ;;  %v3409_v48 = vld [vmem:[#allocation8_spill] sm:$0xff] }
 0x137   : > { %v3248_v36 = vpop.f32.mrf.mxu1  ;;  %v1096_v51 = vadd.f32 %v2512_v25, %v922_v35  ;;  %v1095_v21 = vadd.f32 %v3224_v27, %v921_v6  ;;  %v3405_v25 = vld [vmem:[#allocation10_spill] sm:$0xff]  ;;  %v3406_v27 = vld [vmem:[#allocation9_spill] sm:$0xff]  ;;  %v1091_v29 = vadd.f32 %v3408_v47, %v917_v22 }
 0x138   : > { %v1436_v59 = vadd.f32 %v2562_v30, %v1262_v56  ;;  %v1438_v30 = vadd.f32 %v3405_v25, %v1264_v12  ;;  %v1609_v37 = vadd.f32 %v3406_v27, %v1435_v18  ;;  %v3411_v57 = vld [vmem:[#allocation11_spill] sm:$0xff]  ;;  %v1853_v23 = vpop.permute.xlu0 %1852 }
 0x139   : > { %v1270_v20 = vadd.f32 %v3222_v26, %v1096_v51  ;;  %v1269_v53 = vadd.f32 %v3409_v48, %v1095_v21 }
 0x13a   : > { %v2602_v42 = vpop.f32.mrf.mxu1  ;;  %v1610_v63 = vadd.f32 %v3228_v31, %v1436_v59  ;;  %v1612_v56 = vadd.f32 %v3411_v57, %v1438_v30 }
 0x13b   : > { %v2571_v1 = vpop.f32.mrf.mxu0 }
 0x13c   : > { %v1590_v50 = vpop.f32.mrf.mxu1  ;;  %v1442_v11 = vadd.f32 %v2571_v1, %v1268_v2  ;;  %v3410_v1 = vld [vmem:[#allocation12_spill] sm:$0xff]  ;;  %v1863_v47 = vpop.permute.xlu0 %1862 }
 0x13d   : > { %v1416_v49 = vpop.f32.mrf.mxu0 }
 0x13e   : > { %v1441_v61 = vadd.f32 %v1416_v49, %v1267_v38  ;;  %v1616_v8 = vadd.f32 %v2602_v42, %v1442_v11  ;;  %v1437_v42 = vadd.f32 %v3410_v1, %v1263_v24  ;;  %v3412_v38 = vld [vmem:[#allocation5_spill] sm:$0xff]  ;;  %v3413_v11 = vld [vmem:[#allocation7_spill] sm:$0xff]  ;;  %v1858_v24 = vpop.permute.xlu1 %1857 }
 0x13f   : > { %v1266_v59 = vadd.f32 %v3412_v38, %v1092_v46 }
 0x140   : > { %v2574_v52 = vpop.f32.mrf.mxu0  ;;  %v2605_v17 = vpop.f32.mrf.mxu1  ;;  %v1615_v62 = vadd.f32 %v1590_v50, %v1441_v61 }
 0x141   : > { %v1444_v33 = vadd.f32 %v2574_v52, %v1270_v20  ;;  %v1440_v12 = vadd.f32 %v3241_v28, %v1266_v59 }
 0x142   : > { %v1426_v10 = vpop.f32.mrf.mxu0  ;;  %v1600_v13 = vpop.f32.mrf.mxu1 }
 0x143   : > { %v1618_v2 = vadd.f32 %v2605_v17, %v1444_v33  ;;  %v1443_v5 = vadd.f32 %v1426_v10, %v1269_v53  ;;  %v1265_v17 = vadd.f32 %v3413_v11, %v1091_v29  ;;  %v1611_v10 = vadd.f32 %v3238_v40, %v1437_v42 }
 0x145   : > { %v2624_v34 = vpop.f32.mrf.mxu0  ;;  %v1439_v20 = vadd.f32 %v3246_v16, %v1265_v17 }
 0x146   : > { %v2633_v26 = vpop.f32.mrf.mxu1  ;;  %v1784_v39 = vadd.f32 %v2624_v34, %v1610_v63  ;;  %v1614_v34 = vadd.f32 %v3243_v19, %v1440_v12  ;;  %v1868_v19 = vpop.permute.xlu1 %1867 }
 0x147   : > { %v1790_v31 = vadd.f32 %v2633_v26, %v1616_v8  ;;  %v1734_v32 = vpop.f32.mrf.mxu0  ;;  %v1617_v8 = vadd.f32 %v1600_v13, %v1443_v5  ;;  %v1613_v26 = vadd.f32 %v3248_v36, %v1439_v20 }
 0x148   : > { %v1764_v55 = vpop.f32.mrf.mxu1  ;;  %v1801_v49 = vadd.f32 %v3277_v14, %v1784_v39  ;;  %v1783_v54 = vadd.f32 %v1734_v32, %v1609_v37 }
 0x149   : > { %v3291_v50 = vadd.f32 %v3277_v14, %v1790_v31  ;;  %v1789_v35 = vadd.f32 %v1764_v55, %v1615_v62  ;;  %v2627_v0 = vpop.f32.mrf.mxu0 }
 0x14a   : > { %v2636_v4 = vpop.f32.mrf.mxu1  ;;  %1811 = vst.msk [vmem:[%s3287_s8 + $0x8] sm:$0xff] %vm284_vm0, %v1801_v49  ;;  %v1881_v51 = vmul.f32 %v1838_v3, %v1801_v49  ;;  %v1800_v52 = vadd.f32 %v3277_v14, %v1783_v54  ;;  %v1786_v58 = vadd.f32 %v2627_v0, %v1612_v56  ;;  %v1873_v0 = vpop.permute.xlu0 %1872 }
 0x14b   : > { %1817 = vst.msk [vmem:[%s3287_s8 + $0x38] sm:$0xff] %vm284_vm0, %v3291_v50  ;;  %v3301_v9 = vadd.f32 %v3277_v14, %v1789_v35  ;;  %v1792_v6 = vadd.f32 %v2636_v4, %v1618_v2  ;;  %v1744_v7 = vpop.f32.mrf.mxu0  ;;  %v1878_v4 = vpop.permute.xlu1 %1877 }
 0x14c   : > { %v1916_v18 = vmul.f32 %v1881_v51, %v1801_v49  ;;  %1810 = vst.msk [vmem:[%s3287_s8] sm:$0xff] %vm284_vm0, %v1800_v52  ;;  %v1880_v61 = vmul.f32 %v1833_v60, %v1800_v52  ;;  %v1803_v21 = vadd.f32 %v3277_v14, %v1786_v58  ;;  %v1774_v63 = vpop.f32.mrf.mxu1  ;;  %v1891_v15 = vsel %vm284_vm0, %v1881_v51, 0.0 }
 0x14d   : > { %1816 = vst.msk [vmem:[%s3287_s8 + $0x30] sm:$0xff] %vm284_vm0, %v3301_v9  ;;  %v3315_v44 = vadd.f32 %v3277_v14, %v1792_v6  ;;  %v2630_v40 = vpop.f32.mrf.mxu0  ;;  %v1785_v13 = vadd.f32 %v1744_v7, %v1611_v10  ;;  %v1791_v30 = vadd.f32 %v1774_v63, %v1617_v8  ;;  %v1887_v49 = vmul.f32 %v1868_v19, %v3291_v50 }
 0x14e   : > { %v1890_v60 = vsel %vm284_vm0, %v1880_v61, 0.0  ;;  %v1915_v22 = vmul.f32 %v1880_v61, %v1800_v52  ;;  %1813 = vst.msk [vmem:[%s3287_s8 + $0x18] sm:$0xff] %vm284_vm0, %v1803_v21  ;;  %v1926_v16 = vsel %vm284_vm0, %v1916_v18, 0.0  ;;  %v1883_v37 = vmul.f32 %v1848_v43, %v1803_v21 }
 0x14f   : > { %v1892_v25 = vadd.f32 %v1891_v15, %v1890_v60  ;;  %1819 = vst.msk [vmem:[%s3287_s8 + $0x48] sm:$0xff] %vm284_vm0, %v3315_v44  ;;  %v1754_v33 = vpop.f32.mrf.mxu0  ;;  %v1802_v62 = vadd.f32 %v3277_v14, %v1785_v13  ;;  %v1808_v39 = vadd.f32 %v3277_v14, %v1791_v30  ;;  %v1788_v31 = vadd.f32 %v2630_v40, %v1614_v34 }
 0x150   : > { %v1925_v28 = vsel %vm284_vm0, %v1915_v22, 0.0  ;;  %v1787_v45 = vadd.f32 %v1754_v33, %v1613_v26  ;;  %v1918_v48 = vmul.f32 %v1883_v37, %v1803_v21  ;;  %v1895_v3 = vsel %vm284_vm0, %v1883_v37, 0.0 }
 0x151   : > { %v1927_v27 = vadd.f32 %v1926_v16, %v1925_v28  ;;  %1812 = vst.msk [vmem:[%s3287_s8 + $0x10] sm:$0xff] %vm284_vm0, %v1802_v62  ;;  %v1882_v46 = vmul.f32 %v3263_v41, %v1802_v62  ;;  %1818 = vst.msk [vmem:[%s3287_s8 + $0x40] sm:$0xff] %vm284_vm0, %v1808_v39  ;;  %v1805_v36 = vadd.f32 %v3277_v14, %v1788_v31 }
 0x152   : > { %v1804_v29 = vadd.f32 %v3277_v14, %v1787_v45  ;;  %v1886_v41 = vmul.f32 %v1863_v47, %v3301_v9  ;;  %v1930_v35 = vsel %vm284_vm0, %v1918_v48, 0.0  ;;  %v1888_v38 = vmul.f32 %v1873_v0, %v1808_v39 }
 0x153   : > { %v1893_v53 = vsel %vm284_vm0, %v1882_v46, 0.0  ;;  %v1917_v1 = vmul.f32 %v1882_v46, %v1802_v62  ;;  %1815 = vst.msk [vmem:[%s3287_s8 + $0x28] sm:$0xff] %vm284_vm0, %v1805_v36  ;;  %v1885_v32 = vmul.f32 %v1858_v24, %v1805_v36  ;;  %v1922_v7 = vmul.f32 %v1887_v49, %v3291_v50 }
 0x154   : > { %v1894_v42 = vadd.f32 %v1893_v53, %v1892_v25  ;;  %1814 = vst.msk [vmem:[%s3287_s8 + $0x20] sm:$0xff] %vm284_vm0, %v1804_v29  ;;  %v1884_v55 = vmul.f32 %v1853_v23, %v1804_v29  ;;  %v1921_v52 = vmul.f32 %v1886_v41, %v3301_v9  ;;  %v1901_v6 = vsel %vm284_vm0, %v1886_v41, 0.0 }
 0x155   : > { %v1928_v43 = vsel %vm284_vm0, %v1917_v1, 0.0  ;;  %v1920_v57 = vmul.f32 %v1885_v32, %v1805_v36  ;;  %v1899_v59 = vsel %vm284_vm0, %v1885_v32, 0.0  ;;  %v1889_v10 = vmul.f32 %v1878_v4, %v3315_v44 }
 0x156   : > { %v1929_v14 = vadd.f32 %v1928_v43, %v1927_v27  ;;  %v1896_v54 = vadd.f32 %v1895_v3, %v1894_v42  ;;  %v1897_v56 = vsel %vm284_vm0, %v1884_v55, 0.0  ;;  %v1919_v2 = vmul.f32 %v1884_v55, %v1804_v29 }
 0x157   : > { %v1934_v18 = vsel %vm284_vm0, %v1920_v57, 0.0  ;;  %v1936_v20 = vsel %vm284_vm0, %v1921_v52, 0.0  ;;  %v1903_v9 = vsel %vm284_vm0, %v1887_v49, 0.0  ;;  %v1923_v21 = vmul.f32 %v1888_v38, %v1808_v39 }
 0x158   : > { %v1898_v5 = vadd.f32 %v1897_v56, %v1896_v54  ;;  %v1931_v51 = vadd.f32 %v1930_v35, %v1929_v14  ;;  %v1932_v11 = vsel %vm284_vm0, %v1919_v2, 0.0  ;;  %v1938_v8 = vsel %vm284_vm0, %v1922_v7, 0.0 }
 0x159   : > { %v1905_v15 = vsel %vm284_vm0, %v1888_v38, 0.0  ;;  %v1924_v60 = vmul.f32 %v1889_v10, %v3315_v44  ;;  %v1940_v23 = vsel %vm284_vm0, %v1923_v21, 0.0  ;;  %v1907_v24 = vsel %vm284_vm0, %v1889_v10, 0.0 }
 0x15a   : > { %v1900_v17 = vadd.f32 %v1899_v59, %v1898_v5  ;;  %v1933_v58 = vadd.f32 %v1932_v11, %v1931_v51 }
 0x15b   : > { %v1942_v28 = vsel %vm284_vm0, %v1924_v60, 0.0 }
 0x15c   : > { %v1902_v61 = vadd.f32 %v1901_v6, %v1900_v17  ;;  %v1935_v12 = vadd.f32 %v1934_v18, %v1933_v58 }
 0x15e   : > { %v1904_v63 = vadd.f32 %v1903_v9, %v1902_v61  ;;  %v1937_v40 = vadd.f32 %v1936_v20, %v1935_v12 }
 0x160   : > { %v1906_v50 = vadd.f32 %v1905_v15, %v1904_v63  ;;  %v1939_v22 = vadd.f32 %v1938_v8, %v1937_v40 }
 0x162   : > { %v1908_v25 = vadd.f32 %v1907_v24, %v1906_v50  ;;  %v1941_v16 = vadd.f32 %v1940_v23, %v1939_v22 }
 0x164   : > { %v1909_v13 = vrot.slane %v1908_v25, 4  ;;  %v1943_v30 = vadd.f32 %v1942_v28, %v1941_v16 }
 0x166   : > { %v1910_v33 = vadd.f32 %v1909_v13, %v1908_v25  ;;  %v1944_v34 = vrot.slane %v1943_v30, 4 }
 0x168   : > { %v1911_v26 = vrot.slane %v1910_v33, 2  ;;  %v1945_v27 = vadd.f32 %v1944_v34, %v1943_v30 }
 0x16a   : > { %v1912_v37 = vadd.f32 %v1911_v26, %v1910_v33  ;;  %v1946_v62 = vrot.slane %v1945_v27, 2 }
 0x16c   : > { %v1913_v39 = vrot.slane %v1912_v37, 1  ;;  %v1947_v44 = vadd.f32 %v1946_v62, %v1945_v27  ;;  %1953 = sbr.rel (%p2193_p4) target bundleno = 371 (0x173), region = 40 }
 0x16e   : > { %v1914_v31 = vadd.f32 %v1913_v39, %v1912_v37  ;;  %v1948_v45 = vrot.slane %v1947_v44, 1 }
 0x170   : > { %v1949_v46 = vadd.f32 %v1948_v45, %v1947_v44 }
 0x171   : > { %vm1954_vm1 = vcmask 516096   ;;  %v2676_v47 = vmov 0.0  }
 0x172   : > { %1955 = vst.msk [vmem:[%s3390_s5] sm:$0x1] %vm1954_vm1, %v2676_v47  ;;  %1956 = vst.msk [vmem:[%s3391_s6] sm:$0x1] %vm1954_vm1, %v2676_v47 }
 0x173 PF: > { %vm1959_vm2 = vcmask 516096  }
 0x179   : > { %v1957_v19 = vld [vmem:[%s3390_s5] sm:$0x1] }
 0x17a   : > { %v1961_v36 = vld [vmem:[%s3391_s6] sm:$0x1]  ;;  %v1958_v29 = vadd.f32 %v1957_v19, %v1914_v31 }
 0x17b   : > { %v1962_v48 = vadd.f32 %v1961_v36, %v1949_v46 }
 0x17c   : > { %1960 = vst.msk [vmem:[%s3390_s5] sm:$0x1] %vm1959_vm2, %v1958_v29 }
 0x17d   : > { %1963 = vst.msk [vmem:[%s3391_s6] sm:$0x1] %vm1959_vm2, %v1962_v48 }
 0x17e PF: > { %s17_s21 = sadd.s32 1, %s2673_s21  }
 0x17f   : > { %p14_p5 = scmp.ge.s32.totalorder %s17_s21, 4  }
 0x181   :  { %16 = sbr.rel (!%p14_p5) target bundleno = 1 (0x1), region = 94 }

// kernel: convnet_forward.12
= control target key start
LH: loop header
LB: loop body
LE: loop exit
PB: predicated region body
PF: predicated region fallthrough
CT: control target
= control target key end

     0   :  { %s1822_s21 = smov 0   ;;  %s2307_s0 = inlined_call_operand.vmem [shape: f32[2,42,64], index: 0, kind: input, shape index: {}]   ;;  %s2308_s1 = inlined_call_operand.vmem [shape: f32[9,64,64], index: 1, kind: input, shape index: {}]   ;;  %s2309_s2 = inlined_call_operand.vmem [shape: f32[1,64], index: 2, kind: input, shape index: {}]   ;;  %s2310_s3 = inlined_call_operand.vmem [shape: f32[24,1], index: 3, kind: input, shape index: {}]   ;;  %s2311_s4 = inlined_call_operand.vmem [shape: f32[2,24,64], index: 4, kind: output, shape index: {0}]   ;;  %s2312_s5 = inlined_call_operand.vmem [shape: f32[1,64], index: 5, kind: output, shape index: {1}]   ;;  %s2313_s6 = inlined_call_operand.vmem [shape: f32[1,64], index: 6, kind: output, shape index: {2}]  }
   0x1 LB: > { %s1828_s22 = sadd.s32 4294967295, %s1781_s21   ;;  %p1321_p0 = scmp.ge.s32.totalorder %s1781_s21, 1  ;;  %s1781_s21 = sphi %s1822_s21, %s17_s21  }
   0x2   : > { %p207_p1 = scmp.lt.s32.totalorder %s1781_s21, 3 }
   0x4   : > { %p208_p2 = pnand %p1321_p0, %p207_p1 }
   0x5   : > { %p237_p3 = scmp.lt.s32.totalorder (!%p208_p2), %s1828_s22, 1  ;;  %p1416_p4 = scmp.ne.s32.totalorder (!%p208_p2), %s1828_s22, 0 }
   0x6   : > { %211 = sbr.rel (%p208_p2) target bundleno = 350 (0x15e), region = 36 }
   0xb   : > { %v1331_v0 = vld [vmem:[%s2308_s1 + $0x78] sm:$0xff]  ;;  %v1783_v2 = vmov 0.0   ;;  %v1330_v3 = vld [vmem:[%s2308_s1 + $0x70] sm:$0xff]  ;;  %v1329_v5 = vld [vmem:[%s2308_s1 + $0x68] sm:$0xff]  ;;  %s1858_s11 = scalar_select %p237_p3, %s1828_s22, 1  ;;  %vm270_vm0 = vcmask 523264  }
   0xc   : > { %v257_v1 = vld [vmem:[%s2308_s1 + $0x38] sm:$0xff]  ;;  %1518 = vmatprep.subr.mxu0 %v1783_v2  ;;  %1543 = vmatprep.subr.mxu1 %v1783_v2  ;;  %v256_v4 = vld [vmem:[%s2308_s1 + $0x30] sm:$0xff]  ;;  %v255_v6 = vld [vmem:[%s2308_s1 + $0x28] sm:$0xff]  ;;  %vm1784_vm1 = vmmov 0  }
   0xd   : > { %1519 = vmatpush3.msra.mxu0 %v1331_v0  ;;  %1544 = vmatpush3.msra.mxu1 %v257_v1  ;;  %v1328_v7 = vld [vmem:[%s2308_s1 + $0x60] sm:$0xff]  ;;  %v1327_v9 = vld [vmem:[%s2308_s1 + $0x58] sm:$0xff]  ;;  %s1759_s20 = smul.u32 48, %s1858_s11  ;;  %v1326_v11 = vld [vmem:[%s2308_s1 + $0x50] sm:$0xff] }
   0xe   : > { %1520 = vmatprep.subr.mxu0 %v1783_v2  ;;  %1545 = vmatprep.subr.mxu1 %v1783_v2  ;;  %v254_v8 = vld [vmem:[%s2308_s1 + $0x20] sm:$0xff]  ;;  %v253_v10 = vld [vmem:[%s2308_s1 + $0x18] sm:$0xff]  ;;  %v252_v12 = vld [vmem:[%s2308_s1 + $0x10] sm:$0xff] }
   0xf   : > { %1521 = vmatpush3.msra.mxu0 %v1330_v3  ;;  %1546 = vmatpush3.msra.mxu1 %v256_v4  ;;  %v1325_v13 = vld [vmem:[%s2308_s1 + $0x48] sm:$0xff]  ;;  %s1896_s9 = scalar_lea.vmem %s2307_s0, %s1759_s20  ;;  %v1324_v15 = vld [vmem:[%s2308_s1 + $0x40] sm:$0xff]  ;;  %v1345_v19 = vld [vmem:[%s2308_s1 + $0xb8] sm:$0xff] }
  0x10   : > { %1522 = vmatprep.subr.mxu0 %v1783_v2  ;;  %1547 = vmatprep.subr.mxu1 %v1783_v2  ;;  %v251_v14 = vld [vmem:[%s2308_s1 + $0x8] sm:$0xff]  ;;  %v250_v16 = vld [vmem:[%s2308_s1] sm:$0xff]  ;;  %v1356_v20 = vld [vmem:[%s2308_s1 + $0xf8] sm:$0xff] }
  0x11   : > { %1523 = vmatpush3.msra.mxu0 %v1329_v5  ;;  %1548 = vmatpush3.msra.mxu1 %v255_v6  ;;  %v247_v17 = vld [vmem:[%s1896_s9] sm:$0xff]  ;;  %v1344_v21 = vld [vmem:[%s2308_s1 + $0xb0] sm:$0xff]  ;;  %v1343_v23 = vld [vmem:[%s2308_s1 + $0xa8] sm:$0xff] }
  0x12   : > { %1524 = vmatprep.subr.mxu0 %v1783_v2  ;;  %1549 = vmatprep.subr.mxu1 %v1783_v2  ;;  %v258_v18 = vld [vmem:[%s1896_s9 + $0x1] sm:$0xff]  ;;  %v1355_v22 = vld [vmem:[%s2308_s1 + $0xf0] sm:$0xff]  ;;  %v1341_v29 = vld [vmem:[%s2308_s1 + $0x98] sm:$0xff] }
  0x13   : > { %1525 = vmatpush3.msra.mxu0 %v1328_v7  ;;  %1550 = vmatpush3.msra.mxu1 %v254_v8  ;;  %v1354_v24 = vld [vmem:[%s2308_s1 + $0xe8] sm:$0xff]  ;;  %v1342_v26 = vld [vmem:[%s2308_s1 + $0xa0] sm:$0xff]  ;;  %v1352_v30 = vld [vmem:[%s2308_s1 + $0xd8] sm:$0xff] }
  0x14   : > { %1526 = vmatprep.subr.mxu0 %v1783_v2  ;;  %1551 = vmatprep.subr.mxu1 %v1783_v2  ;;  %v1941_v25 = vld [vmem:[%s1896_s9 + $0x8] sm:$0xff]  ;;  %v1353_v27 = vld [vmem:[%s2308_s1 + $0xe0] sm:$0xff]  ;;  %v1968_v31 = vld [vmem:[%s1896_s9 + $0x10] sm:$0xff] }
  0x15   : > { %1527 = vmatpush3.msra.mxu0 %v1327_v9  ;;  %1552 = vmatpush3.msra.mxu1 %v253_v10  ;;  %v259_v28 = vld [vmem:[%s1896_s9 + $0x9] sm:$0xff]  ;;  %v260_v34 = vld [vmem:[%s1896_s9 + $0x11] sm:$0xff]  ;;  %v1338_v37 = vld [vmem:[%s2308_s1 + $0x80] sm:$0xff] }
  0x16   : > { %1528 = vmatprep.subr.mxu0 %v1783_v2  ;;  %1553 = vmatprep.subr.mxu1 %v1783_v2  ;;  %v1340_v32 = vld [vmem:[%s2308_s1 + $0x90] sm:$0xff]  ;;  %v1339_v35 = vld [vmem:[%s2308_s1 + $0x88] sm:$0xff]  ;;  %v1349_v38 = vld [vmem:[%s2308_s1 + $0xc0] sm:$0xff] }
  0x17   : > { %1529 = vmatpush3.msra.mxu0 %v1326_v11  ;;  %1554 = vmatpush3.msra.mxu1 %v252_v12  ;;  %v1351_v33 = vld [vmem:[%s2308_s1 + $0xd0] sm:$0xff]  ;;  %v1350_v36 = vld [vmem:[%s2308_s1 + $0xc8] sm:$0xff]  ;;  %v1367_v41 = vld [vmem:[%s2308_s1 + $0x138] sm:$0xff] }
  0x18   : > { %1530 = vmatprep.subr.mxu0 %v1783_v2  ;;  %1555 = vmatprep.subr.mxu1 %v1783_v2  ;;  %v449_v39 = vld [vmem:[%s1896_s9 + $0x2] sm:$0xff]  ;;  %v1378_v42 = vld [vmem:[%s2308_s1 + $0x178] sm:$0xff]  ;;  %v1366_v43 = vld [vmem:[%s2308_s1 + $0x130] sm:$0xff] }
  0x19   : > { %1531 = vmatpush3.msra.mxu0 %v1325_v13  ;;  %1556 = vmatpush3.msra.mxu1 %v251_v14  ;;  %v553_v40 = vld [vmem:[%s1896_s9 + $0x6] sm:$0xff]  ;;  %v1377_v44 = vld [vmem:[%s2308_s1 + $0x170] sm:$0xff]  ;;  %v1363_v52 = vld [vmem:[%s2308_s1 + $0x118] sm:$0xff] }
  0x1a   : > { %1532 = vmatprep.subr.mxu0 %v1783_v2  ;;  %1557 = vmatprep.subr.mxu1 %v1783_v2  ;;  %v450_v45 = vld [vmem:[%s1896_s9 + $0xa] sm:$0xff]  ;;  %v1364_v49 = vld [vmem:[%s2308_s1 + $0x120] sm:$0xff]  ;;  %v451_v51 = vld [vmem:[%s1896_s9 + $0x12] sm:$0xff] }
  0x1b   : > { %1533 = vmatpush3.msra.mxu0 %v1324_v15  ;;  %1558 = vmatpush3.msra.mxu1 %v250_v16  ;;  %v1365_v46 = vld [vmem:[%s2308_s1 + $0x128] sm:$0xff]  ;;  %v1375_v50 = vld [vmem:[%s2308_s1 + $0x160] sm:$0xff]  ;;  %v1374_v53 = vld [vmem:[%s2308_s1 + $0x158] sm:$0xff] }
  0x1c   : > { %1559 = vmatprep.mubr.msk.f32.mxu1 %vm1784_vm1, %v1783_v2  ;;  %1534 = vmatprep.mubr.msk.f32.mxu0 %vm1784_vm1, %v1783_v2  ;;  %v1376_v47 = vld [vmem:[%s2308_s1 + $0x168] sm:$0xff]  ;;  %v2066_v54 = vld [vmem:[%s1896_s9 + $0x16] sm:$0xff]  ;;  %v1360_v59 = vld [vmem:[%s2308_s1 + $0x100] sm:$0xff] }
  0x1d   : > { %1560 = vmatmul.mubr.msk.f32.vlgmr.msra.gmra.mxu1 %vm270_vm0, %v247_v17  ;;  %1568 = vmatprep.subr.mxu0 %v1783_v2  ;;  %v2039_v48 = vld [vmem:[%s1896_s9 + $0xe] sm:$0xff]  ;;  %v1371_v60 = vld [vmem:[%s2308_s1 + $0x140] sm:$0xff]  ;;  %v1389_v62 = vld [vmem:[%s2308_s1 + $0x1b8] sm:$0xff] }
  0x1e   : > { %1593 = vmatprep.subr.mxu1 %v1783_v2  ;;  %1535 = vmatmul.mubr.msk.f32.vlgmr.msra.gmra.mxu0 %vm270_vm0, %v258_v18  ;;  %v1362_v55 = vld [vmem:[%s2308_s1 + $0x110] sm:$0xff]  ;;  %v1361_v57 = vld [vmem:[%s2308_s1 + $0x108] sm:$0xff]  ;;  %v1400_v63 = vld [vmem:[%s2308_s1 + $0x1f8] sm:$0xff] }
  0x1f   : > { %1569 = vmatpush3.msra.mxu0 %v1345_v19  ;;  %1594 = vmatpush3.msra.mxu1 %v1356_v20  ;;  %v1373_v56 = vld [vmem:[%s2308_s1 + $0x150] sm:$0xff]  ;;  %v1372_v58 = vld [vmem:[%s2308_s1 + $0x148] sm:$0xff]  ;;  %v1386_v6 = vld [vmem:[%s2308_s1 + $0x1a0] sm:$0xff] }
  0x20   : > { %1570 = vmatprep.subr.mxu0 %v1783_v2  ;;  %1595 = vmatprep.subr.mxu1 %v1783_v2  ;;  %v657_v61 = vld [vmem:[%s1896_s9 + $0x7] sm:$0xff]  ;;  %v1388_v0 = vld [vmem:[%s2308_s1 + $0x1b0] sm:$0xff]  ;;  %v1385_v9 = vld [vmem:[%s2308_s1 + $0x198] sm:$0xff] }
  0x21   : > { %1571 = vmatpush3.msra.mxu0 %v1344_v21  ;;  %1596 = vmatpush3.msra.mxu1 %v1355_v22  ;;  %v1399_v1 = vld [vmem:[%s2308_s1 + $0x1f0] sm:$0xff]  ;;  %v1387_v4 = vld [vmem:[%s2308_s1 + $0x1a8] sm:$0xff]  ;;  %v1397_v7 = vld [vmem:[%s2308_s1 + $0x1e0] sm:$0xff] }
  0x22   : > { %1572 = vmatprep.subr.mxu0 %v1783_v2  ;;  %1597 = vmatprep.subr.mxu1 %v1783_v2  ;;  %v658_v3 = vld [vmem:[%s1896_s9 + $0xf] sm:$0xff]  ;;  %v659_v8 = vld [vmem:[%s1896_s9 + $0x17] sm:$0xff]  ;;  %v1382_v16 = vld [vmem:[%s2308_s1 + $0x180] sm:$0xff] }
  0x23   : > { %1573 = vmatpush3.msra.mxu0 %v1343_v23  ;;  %1598 = vmatpush3.msra.mxu1 %v1354_v24  ;;  %v1398_v5 = vld [vmem:[%s2308_s1 + $0x1e8] sm:$0xff]  ;;  %v1396_v10 = vld [vmem:[%s2308_s1 + $0x1d8] sm:$0xff]  ;;  %v1384_v12 = vld [vmem:[%s2308_s1 + $0x190] sm:$0xff] }
  0x24   : > { %1562 = vmatprep.mubr.msk.f32.mxu1 %vm1784_vm1, %v1783_v2  ;;  %1574 = vmatprep.subr.mxu0 %v1783_v2  ;;  %v763_v11 = vld [vmem:[%s1896_s9 + $0x18] sm:$0xff]  ;;  %v1395_v13 = vld [vmem:[%s2308_s1 + $0x1d0] sm:$0xff]  ;;  %v1383_v14 = vld [vmem:[%s2308_s1 + $0x188] sm:$0xff] }
  0x25   : > { %1599 = vmatprep.subr.mxu1 %v1783_v2  ;;  %1537 = vmatprep.mubr.msk.f32.mxu0 %vm1784_vm1, %v1783_v2  ;;  %v1394_v15 = vld [vmem:[%s2308_s1 + $0x1c8] sm:$0xff]  ;;  %v1393_v17 = vld [vmem:[%s2308_s1 + $0x1c0] sm:$0xff]  ;;  %v1411_v20 = vld [vmem:[%s2308_s1 + $0x238] sm:$0xff] }
  0x26   : > { %1563 = vmatmul.mubr.msk.f32.gmra.mxu1 %vm270_vm0, %v1941_v25  ;;  %1575 = vmatpush3.msra.mxu0 %v1342_v26  ;;  %v865_v18 = vld [vmem:[%s1896_s9 + $0xc] sm:$0xff]  ;;  %v866_v22 = vld [vmem:[%s1896_s9 + $0x14] sm:$0xff]  ;;  %v867_v26 = vld [vmem:[%s1896_s9 + $0x1c] sm:$0xff] }
  0x27   : > { %1600 = vmatpush3.msra.mxu1 %v1353_v27  ;;  %1538 = vmatmul.mubr.msk.f32.gmra.mxu0 %vm270_vm0, %v259_v28  ;;  %v969_v19 = vld [vmem:[%s1896_s9 + $0xd] sm:$0xff]  ;;  %v970_v24 = vld [vmem:[%s1896_s9 + $0x15] sm:$0xff]  ;;  %v971_v28 = vld [vmem:[%s1896_s9 + $0x1d] sm:$0xff] }
  0x28   : > { %1576 = vmatprep.subr.mxu0 %v1783_v2  ;;  %1601 = vmatprep.subr.mxu1 %v1783_v2  ;;  %v1410_v21 = vld [vmem:[%s2308_s1 + $0x230] sm:$0xff]  ;;  %v1409_v23 = vld [vmem:[%s2308_s1 + $0x228] sm:$0xff]  ;;  %v1407_v27 = vld [vmem:[%s2308_s1 + $0x218] sm:$0xff] }
  0x29   : > { %1577 = vmatpush3.msra.mxu0 %v1341_v29  ;;  %1602 = vmatpush3.msra.mxu1 %v1352_v30  ;;  %v1406_v29 = vld [vmem:[%s2308_s1 + $0x210] sm:$0xff]  ;;  %v1405_v30 = vld [vmem:[%s2308_s1 + $0x208] sm:$0xff] }
  0x2a   : > { %1565 = vmatprep.mubr.msk.f32.mxu1 %vm1784_vm1, %v1783_v2  ;;  %1578 = vmatprep.subr.mxu0 %v1783_v2 }
  0x2b   : > { %1603 = vmatprep.subr.mxu1 %v1783_v2  ;;  %1540 = vmatprep.mubr.msk.f32.mxu0 %vm1784_vm1, %v1783_v2 }
  0x2c   : > { %1566 = vmatmul.mubr.msk.f32.gmra.mxu1 %vm270_vm0, %v1968_v31  ;;  %1579 = vmatpush3.msra.mxu0 %v1340_v32  ;;  %v1190_v32 = vld [vmem:[%s2310_s3] sm:$0xff] }
  0x2d   : > { %1604 = vmatpush3.msra.mxu1 %v1351_v33  ;;  %1541 = vmatmul.mubr.msk.f32.gmra.mxu0 %vm270_vm0, %v260_v34  ;;  %v1192_v33 = vld [vmem:[%s2310_s3 + $0x10] sm:$0xff]  ;;  %v1075_v34 = vld [vmem:[%s1896_s9 + $0x1e] sm:$0xff]  ;;  %s1760_s9 = smul.u32 24, %s1858_s11 }
  0x2e   : > { %1580 = vmatprep.subr.mxu0 %v1783_v2  ;;  %1605 = vmatprep.subr.mxu1 %v1783_v2 }
  0x2f   : > { %1581 = vmatpush3.msra.mxu0 %v1339_v35  ;;  %1606 = vmatpush3.msra.mxu1 %v1350_v36  ;;  %v1785_v35 = vmov 0   ;;  %v1191_v36 = vld [vmem:[%s2310_s3 + $0x8] sm:$0xff]  ;;  %s246_s17 = scalar_lea.vmem %s2311_s4, %s1760_s9 }
  0x30   : > { %1582 = vmatprep.subr.mxu0 %v1783_v2  ;;  %1607 = vmatprep.subr.mxu1 %v1783_v2 }
  0x31   : > { %1583 = vmatpush3.msra.mxu0 %v1338_v37  ;;  %1584 = vmatprep.mubr.msk.f32.mxu0 %vm1784_vm1, %v1783_v2 }
  0x32   : > { %1608 = vmatpush3.msra.mxu1 %v1349_v38  ;;  %1609 = vmatprep.mubr.msk.f32.mxu1 %vm1784_vm1, %v1783_v2 }
  0x33   : > { %1585 = vmatmul.mubr.msk.f32.vlgmr.msra.gmra.mxu0 %vm270_vm0, %v449_v39  ;;  %1610 = vmatmul.mubr.msk.f32.vlgmr.msra.gmra.mxu1 %vm270_vm0, %v553_v40 }
  0x34   : > { %1618 = vmatprep.subr.mxu0 %v1783_v2  ;;  %1643 = vmatprep.subr.mxu1 %v1783_v2 }
  0x35   : > { %1619 = vmatpush3.msra.mxu0 %v1367_v41  ;;  %1644 = vmatpush3.msra.mxu1 %v1378_v42 }
  0x36   : > { %1620 = vmatprep.subr.mxu0 %v1783_v2  ;;  %1645 = vmatprep.subr.mxu1 %v1783_v2 }
  0x37   : > { %1587 = vmatprep.mubr.msk.f32.mxu0 %vm1784_vm1, %v1783_v2  ;;  %1621 = vmatpush3.msra.mxu0 %v1366_v43 }
  0x38   : > { %1646 = vmatpush3.msra.mxu1 %v1377_v44  ;;  %1588 = vmatmul.mubr.msk.f32.gmra.mxu0 %vm270_vm0, %v450_v45 }
  0x39   : > { %1622 = vmatprep.subr.mxu0 %v1783_v2  ;;  %1647 = vmatprep.subr.mxu1 %v1783_v2 }
  0x3a   : > { %1612 = vmatprep.mubr.msk.f32.mxu1 %vm1784_vm1, %v1783_v2  ;;  %1623 = vmatpush3.msra.mxu0 %v1365_v46 }
  0x3b   : > { %1648 = vmatpush3.msra.mxu1 %v1376_v47  ;;  %1624 = vmatprep.subr.mxu0 %v1783_v2 }
  0x3c   : > { %1613 = vmatmul.mubr.msk.f32.gmra.mxu1 %vm270_vm0, %v2039_v48  ;;  %1649 = vmatprep.subr.mxu1 %v1783_v2 }
  0x3d   : > { %1590 = vmatprep.mubr.msk.f32.mxu0 %vm1784_vm1, %v1783_v2  ;;  %1625 = vmatpush3.msra.mxu0 %v1364_v49 }
  0x3e   : > { %1650 = vmatpush3.msra.mxu1 %v1375_v50  ;;  %1591 = vmatmul.mubr.msk.f32.gmra.mxu0 %vm270_vm0, %v451_v51 }
  0x3f   : > { %1626 = vmatprep.subr.mxu0 %v1783_v2  ;;  %1651 = vmatprep.subr.mxu1 %v1783_v2 }
  0x40   : > { %1615 = vmatprep.mubr.msk.f32.mxu1 %vm1784_vm1, %v1783_v2  ;;  %1627 = vmatpush3.msra.mxu0 %v1363_v52 }
  0x41   : > { %1652 = vmatpush3.msra.mxu1 %v1374_v53  ;;  %1628 = vmatprep.subr.mxu0 %v1783_v2 }
  0x42   : > { %1616 = vmatmul.mubr.msk.f32.gmra.mxu1 %vm270_vm0, %v2066_v54  ;;  %1653 = vmatprep.subr.mxu1 %v1783_v2 }
  0x43   : > { %1629 = vmatpush3.msra.mxu0 %v1362_v55  ;;  %1654 = vmatpush3.msra.mxu1 %v1373_v56 }
  0x44   : > { %1630 = vmatprep.subr.mxu0 %v1783_v2  ;;  %1655 = vmatprep.subr.mxu1 %v1783_v2 }
  0x45   : > { %1631 = vmatpush3.msra.mxu0 %v1361_v57  ;;  %1656 = vmatpush3.msra.mxu1 %v1372_v58 }
  0x46   : > { %1632 = vmatprep.subr.mxu0 %v1783_v2  ;;  %1657 = vmatprep.subr.mxu1 %v1783_v2 }
  0x47   : > { %1633 = vmatpush3.msra.mxu0 %v1360_v59  ;;  %1634 = vmatprep.mubr.msk.f32.mxu0 %vm1784_vm1, %v1783_v2 }
  0x48   : > { %1658 = vmatpush3.msra.mxu1 %v1371_v60  ;;  %1659 = vmatprep.mubr.msk.f32.mxu1 %vm1784_vm1, %v1783_v2 }
  0x49   : > { %1635 = vmatmul.mubr.msk.f32.vlgmr.msra.gmra.mxu0 %vm270_vm0, %v657_v61  ;;  %1660 = vmatmul.mubr.msk.f32.vlgmr.msra.gmra.mxu1 %vm270_vm0, %v1941_v25  ;;  %v1408_v25 = vld [vmem:[%s2308_s1 + $0x220] sm:$0xff] }
  0x4a   : > { %1668 = vmatprep.subr.mxu0 %v1783_v2  ;;  %1693 = vmatprep.subr.mxu1 %v1783_v2 }
  0x4b   : > { %1669 = vmatpush3.msra.mxu0 %v1389_v62  ;;  %1694 = vmatpush3.msra.mxu1 %v1400_v63 }
  0x4c   : > { %1670 = vmatprep.subr.mxu0 %v1783_v2  ;;  %1695 = vmatprep.subr.mxu1 %v1783_v2 }
  0x4d   : > { %1637 = vmatprep.mubr.msk.f32.mxu0 %vm1784_vm1, %v1783_v2  ;;  %1671 = vmatpush3.msra.mxu0 %v1388_v0 }
  0x4e   : > { %1696 = vmatpush3.msra.mxu1 %v1399_v1  ;;  %1638 = vmatmul.mubr.msk.f32.gmra.mxu0 %vm270_vm0, %v658_v3 }
  0x4f   : > { %1672 = vmatprep.subr.mxu0 %v1783_v2  ;;  %1697 = vmatprep.subr.mxu1 %v1783_v2 }
  0x50   : > { %1662 = vmatprep.mubr.msk.f32.mxu1 %vm1784_vm1, %v1783_v2  ;;  %1673 = vmatpush3.msra.mxu0 %v1387_v4 }
  0x51   : > { %1698 = vmatpush3.msra.mxu1 %v1398_v5  ;;  %1674 = vmatprep.subr.mxu0 %v1783_v2 }
  0x52   : > { %1663 = vmatmul.mubr.msk.f32.gmra.mxu1 %vm270_vm0, %v1968_v31  ;;  %1699 = vmatprep.subr.mxu1 %v1783_v2  ;;  %v1404_v31 = vld [vmem:[%s2308_s1 + $0x200] sm:$0xff] }
  0x53   : > { %1640 = vmatprep.mubr.msk.f32.mxu0 %vm1784_vm1, %v1783_v2  ;;  %1675 = vmatpush3.msra.mxu0 %v1386_v6 }
  0x54   : > { %1700 = vmatpush3.msra.mxu1 %v1397_v7  ;;  %1641 = vmatmul.mubr.msk.f32.gmra.mxu0 %vm270_vm0, %v659_v8 }
  0x55   : > { %1676 = vmatprep.subr.mxu0 %v1783_v2  ;;  %1701 = vmatprep.subr.mxu1 %v1783_v2 }
  0x56   : > { %1665 = vmatprep.mubr.msk.f32.mxu1 %vm1784_vm1, %v1783_v2  ;;  %1677 = vmatpush3.msra.mxu0 %v1385_v9 }
  0x57   : > { %1702 = vmatpush3.msra.mxu1 %v1396_v10  ;;  %1678 = vmatprep.subr.mxu0 %v1783_v2 }
  0x58   : > { %1666 = vmatmul.mubr.msk.f32.gmra.mxu1 %vm270_vm0, %v763_v11  ;;  %1703 = vmatprep.subr.mxu1 %v1783_v2 }
  0x59   : > { %1679 = vmatpush3.msra.mxu0 %v1384_v12  ;;  %1704 = vmatpush3.msra.mxu1 %v1395_v13 }
  0x5a   : > { %1680 = vmatprep.subr.mxu0 %v1783_v2  ;;  %1705 = vmatprep.subr.mxu1 %v1783_v2 }
  0x5b   : > { %1681 = vmatpush3.msra.mxu0 %v1383_v14  ;;  %1706 = vmatpush3.msra.mxu1 %v1394_v15 }
  0x5c   : > { %1682 = vmatprep.subr.mxu0 %v1783_v2  ;;  %1707 = vmatprep.subr.mxu1 %v1783_v2 }
  0x5d   : > { %1683 = vmatpush3.msra.mxu0 %v1382_v16  ;;  %1684 = vmatprep.mubr.msk.f32.mxu0 %vm1784_vm1, %v1783_v2 }
  0x5e   : > { %1708 = vmatpush3.msra.mxu1 %v1393_v17  ;;  %1709 = vmatprep.mubr.msk.f32.mxu1 %vm1784_vm1, %v1783_v2 }
  0x5f   : > { %1685 = vmatmul.mubr.msk.f32.vlgmr.msra.gmra.mxu0 %vm270_vm0, %v865_v18  ;;  %1710 = vmatmul.mubr.msk.f32.vlgmr.msra.gmra.mxu1 %vm270_vm0, %v969_v19 }
  0x60   : > { %1718 = vmatprep.subr.mxu0 %v1783_v2  ;;  %1743 = vmatprep.subr.mxu1 %v1783_v2 }
  0x61   : > { %1719 = vmatpush3.msra.mxu0 %v1411_v20  ;;  %1751 = vmatpush3.msra.mxu1 %v1411_v20 }
  0x62   : > { %1720 = vmatprep.subr.mxu0 %v1783_v2  ;;  %1744 = vmatprep.subr.mxu1 %v1783_v2 }
  0x63   : > { %1687 = vmatprep.mubr.msk.f32.mxu0 %vm1784_vm1, %v1783_v2  ;;  %1721 = vmatpush3.msra.mxu0 %v1410_v21 }
  0x64   : > { %1752 = vmatpush3.msra.mxu1 %v1410_v21  ;;  %1688 = vmatmul.mubr.msk.f32.gmra.mxu0 %vm270_vm0, %v866_v22 }
  0x65   : > { %1722 = vmatprep.subr.mxu0 %v1783_v2  ;;  %1745 = vmatprep.subr.mxu1 %v1783_v2 }
  0x66   : > { %1712 = vmatprep.mubr.msk.f32.mxu1 %vm1784_vm1, %v1783_v2  ;;  %1723 = vmatpush3.msra.mxu0 %v1409_v23 }
  0x67   : > { %1753 = vmatpush3.msra.mxu1 %v1409_v23  ;;  %1724 = vmatprep.subr.mxu0 %v1783_v2 }
  0x68   : > { %1713 = vmatmul.mubr.msk.f32.gmra.mxu1 %vm270_vm0, %v970_v24  ;;  %1746 = vmatprep.subr.mxu1 %v1783_v2 }
  0x69   : > { %1690 = vmatprep.mubr.msk.f32.mxu0 %vm1784_vm1, %v1783_v2  ;;  %1725 = vmatpush3.msra.mxu0 %v1408_v25 }
  0x6a   : > { %1754 = vmatpush3.msra.mxu1 %v1408_v25  ;;  %1691 = vmatmul.mubr.msk.f32.gmra.mxu0 %vm270_vm0, %v867_v26 }
  0x6b   : > { %1726 = vmatprep.subr.mxu0 %v1783_v2  ;;  %1747 = vmatprep.subr.mxu1 %v1783_v2 }
  0x6c   : > { %1715 = vmatprep.mubr.msk.f32.mxu1 %vm1784_vm1, %v1783_v2  ;;  %1727 = vmatpush3.msra.mxu0 %v1407_v27 }
  0x6d   : > { %1755 = vmatpush3.msra.mxu1 %v1407_v27  ;;  %1728 = vmatprep.subr.mxu0 %v1783_v2 }
  0x6e   : > { %1716 = vmatmul.mubr.msk.f32.gmra.mxu1 %vm270_vm0, %v971_v28  ;;  %1748 = vmatprep.subr.mxu1 %v1783_v2 }
  0x6f   : > { %1729 = vmatpush3.msra.mxu0 %v1406_v29  ;;  %1756 = vmatpush3.msra.mxu1 %v1406_v29 }
  0x70   : > { %1730 = vmatprep.subr.mxu0 %v1783_v2  ;;  %1749 = vmatprep.subr.mxu1 %v1783_v2 }
  0x71   : > { %1731 = vmatpush3.msra.mxu0 %v1405_v30  ;;  %1757 = vmatpush3.msra.mxu1 %v1405_v30 }
  0x72   : > { %1732 = vmatprep.subr.mxu0 %v1783_v2  ;;  %1750 = vmatprep.subr.mxu1 %v1783_v2 }
  0x73   : > { %1733 = vmatpush3.msra.mxu0 %v1404_v31  ;;  %1758 = vmatpush3.msra.mxu1 %v1404_v31 }
  0x74   : > { %1734 = vmatprep.mubr.msk.f32.mxu0 %vm1784_vm1, %v1783_v2  ;;  %1737 = vmatprep.mubr.msk.f32.mxu1 %vm1784_vm1, %v1783_v2 }
  0x75   : > { %1735 = vmatmul.mubr.msk.f32.vlgmr.msra.gmra.mxu0 %vm270_vm0, %v2039_v48  ;;  %1738 = vmatmul.mubr.msk.f32.vlgmr.msra.gmra.mxu1 %vm270_vm0, %v2066_v54 }
  0x76   : > { %1740 = vmatprep.mubr.msk.f32.mxu1 %vm1784_vm1, %v1783_v2  ;;  %1773 = vset.pattern.permute.xlu0 %v1785_v35 }
  0x77   : > { %1195 = vperm.xlu0 %1773, %v1190_v32   ;;  %1774 = vset.pattern.permute.xlu1 %v1785_v35 }
  0x78   : > { %1205 = vperm.xlu1 %1774, %v1192_v33  }
  0x79   : > { %1741 = vmatmul.mubr.msk.f32.gmra.mxu1 %vm270_vm0, %v1075_v34 }
  0x7b   : > { %1200 = vperm.xlu0 %1773, %v1191_v36  }
  0xdd   : > { %v435_v37 = vpop.f32.mrf.mxu1 }
  0xde   : > { %v346_v38 = vpop.f32.mrf.mxu0 }
  0xdf   : > { %v436_v39 = vadd.f32 %v435_v37, %v346_v38  ;;  %v1561_v40 = vpop.f32.mrf.mxu1 }
  0xe0   : > { %v1536_v41 = vpop.f32.mrf.mxu0 }
  0xe6   : > { %v440_v42 = vpop.f32.mrf.mxu1 }
  0xe7   : > { %v351_v2 = vpop.f32.mrf.mxu0 }
  0xe8   : > { %v441_v43 = vadd.f32 %v440_v42, %v351_v2  ;;  %v1564_v44 = vpop.f32.mrf.mxu1  ;;  %v1415_v2 = vld [vmem:[%s2309_s2] ss:$0 sm:$0xff] }
  0xe9   : > { %v1539_v45 = vpop.f32.mrf.mxu0 }
  0xec   : > { %v445_v46 = vpop.f32.mrf.mxu1 }
  0xed   : > { %v356_v47 = vpop.f32.mrf.mxu0 }
  0xee   : > { %v1567_v48 = vpop.f32.mrf.mxu1  ;;  %v446_v18 = vadd.f32 %v445_v46, %v356_v47 }
  0xef   : > { %v1542_v49 = vpop.f32.mrf.mxu0 }
  0xf2   : > { %v1196_v38 = vpop.permute.xlu0 %1195 }
  0xf3   : > { %v536_v50 = vpop.f32.mrf.mxu0  ;;  %v640_v51 = vpop.f32.mrf.mxu1 }
  0xf4   : > { %v550_v15 = vadd.f32 %v536_v50, %v436_v39 }
  0xf5   : > { %v1586_v52 = vpop.f32.mrf.mxu0  ;;  %v1611_v53 = vpop.f32.mrf.mxu1 }
  0xf6   : > { %v654_v20 = vadd.f32 %v640_v51, %v550_v15  ;;  %v1201_v51 = vpop.permute.xlu0 %1200 }
  0xf8   : > { %v541_v54 = vpop.f32.mrf.mxu0 }
  0xf9   : > { %v551_v16 = vadd.f32 %v541_v54, %v441_v43 }
  0xfa   : > { %v1589_v55 = vpop.f32.mrf.mxu0 }
  0xfc   : > { %v645_v56 = vpop.f32.mrf.mxu1 }
  0xfd   : > { %v655_v21 = vadd.f32 %v645_v56, %v551_v16 }
  0xfe   : > { %v546_v57 = vpop.f32.mrf.mxu0  ;;  %v1614_v58 = vpop.f32.mrf.mxu1 }
  0xff   : > { %v552_v22 = vadd.f32 %v546_v57, %v446_v18 }
 0x100   : > { %v1592_v59 = vpop.f32.mrf.mxu0 }
 0x102   : > { %v650_v60 = vpop.f32.mrf.mxu1 }
 0x103   : > { %v656_v28 = vadd.f32 %v650_v60, %v552_v22 }
 0x104   : > { %v1617_v61 = vpop.f32.mrf.mxu1 }
 0x105   : > { %v1206_v61 = vpop.permute.xlu1 %1205 }
 0x109   : > { %v744_v62 = vpop.f32.mrf.mxu0  ;;  %v848_v63 = vpop.f32.mrf.mxu1 }
 0x10a   : > { %v758_v24 = vadd.f32 %v744_v62, %v654_v20 }
 0x10b   : > { %v1636_v0 = vpop.f32.mrf.mxu0  ;;  %v1661_v1 = vpop.f32.mrf.mxu1 }
 0x10c   : > { %v862_v30 = vadd.f32 %v848_v63, %v758_v24 }
 0x10e   : > { %v749_v3 = vpop.f32.mrf.mxu0 }
 0x10f   : > { %v759_v25 = vadd.f32 %v749_v3, %v655_v21 }
 0x110   : > { %v1639_v4 = vpop.f32.mrf.mxu0 }
 0x112   : > { %v853_v5 = vpop.f32.mrf.mxu1 }
 0x113   : > { %v863_v31 = vadd.f32 %v853_v5, %v759_v25 }
 0x114   : > { %v754_v6 = vpop.f32.mrf.mxu0  ;;  %v1664_v7 = vpop.f32.mrf.mxu1 }
 0x115   : > { %v760_v32 = vadd.f32 %v754_v6, %v656_v28 }
 0x116   : > { %v1642_v8 = vpop.f32.mrf.mxu0 }
 0x118   : > { %v858_v9 = vpop.f32.mrf.mxu1 }
 0x119   : > { %v864_v37 = vadd.f32 %v858_v9, %v760_v32 }
 0x11a   : > { %v1667_v10 = vpop.f32.mrf.mxu1 }
 0x11f   : > { %v952_v11 = vpop.f32.mrf.mxu0  ;;  %v1056_v12 = vpop.f32.mrf.mxu1 }
 0x120   : > { %v966_v34 = vadd.f32 %v952_v11, %v862_v30 }
 0x121   : > { %v1686_v13 = vpop.f32.mrf.mxu0  ;;  %v1711_v14 = vpop.f32.mrf.mxu1 }
 0x122   : > { %v1070_v39 = vadd.f32 %v1056_v12, %v966_v34 }
 0x124   : > { %v957_v17 = vpop.f32.mrf.mxu0 }
 0x125   : > { %v967_v35 = vadd.f32 %v957_v17, %v863_v31 }
 0x126   : > { %v1689_v19 = vpop.f32.mrf.mxu0 }
 0x128   : > { %v1061_v23 = vpop.f32.mrf.mxu1 }
 0x129   : > { %v1071_v40 = vadd.f32 %v1061_v23, %v967_v35 }
 0x12a   : > { %v962_v26 = vpop.f32.mrf.mxu0  ;;  %v1714_v27 = vpop.f32.mrf.mxu1 }
 0x12b   : > { %v968_v41 = vadd.f32 %v962_v26, %v864_v37 }
 0x12c   : > { %v1692_v29 = vpop.f32.mrf.mxu0 }
 0x12e   : > { %v1066_v33 = vpop.f32.mrf.mxu1 }
 0x12f   : > { %v1072_v48 = vadd.f32 %v1066_v33, %v968_v41 }
 0x130   : > { %v1717_v36 = vpop.f32.mrf.mxu1 }
 0x135   : > { %v1160_v42 = vpop.f32.mrf.mxu0  ;;  %v1165_v43 = vpop.f32.mrf.mxu1 }
 0x136   : > { %v1174_v44 = vadd.f32 %v1160_v42, %v1070_v39  ;;  %v1175_v45 = vadd.f32 %v1165_v43, %v1071_v40 }
 0x137   : > { %v1736_v46 = vpop.f32.mrf.mxu0  ;;  %v1739_v47 = vpop.f32.mrf.mxu1 }
 0x138   : > { %v1184_v49 = vadd.f32 %v1415_v2, %v1174_v44  ;;  %v1185_v50 = vadd.f32 %v1415_v2, %v1175_v45 }
 0x139   : > { %v1170_v52 = vpop.f32.mrf.mxu1 }
 0x13a   : > { %1187 = vst.msk [vmem:[%s246_s17] sm:$0xff] %vm270_vm0, %v1184_v49  ;;  %1188 = vst.msk [vmem:[%s246_s17 + $0x8] sm:$0xff] %vm270_vm0, %v1185_v50  ;;  %v1208_v53 = vmul.f32 %v1196_v38, %v1184_v49  ;;  %v1209_v54 = vmul.f32 %v1201_v51, %v1185_v50  ;;  %v1176_v55 = vadd.f32 %v1170_v52, %v1072_v48 }
 0x13b   : > { %v1742_v56 = vpop.f32.mrf.mxu1 }
 0x13c   : > { %v1211_v57 = vsel %vm270_vm0, %v1208_v53, 0.0  ;;  %v1212_v58 = vsel %vm270_vm0, %v1209_v54, 0.0  ;;  %v1222_v59 = vmul.f32 %v1208_v53, %v1184_v49  ;;  %v1223_v60 = vmul.f32 %v1209_v54, %v1185_v50 }
 0x13d   : > { %v1213_v62 = vadd.f32 %v1212_v58, %v1211_v57  ;;  %v1186_v63 = vadd.f32 %v1415_v2, %v1176_v55 }
 0x13e   : > { %v1225_v0 = vsel %vm270_vm0, %v1222_v59, 0.0  ;;  %v1226_v1 = vsel %vm270_vm0, %v1223_v60, 0.0 }
 0x13f   : > { %v1227_v3 = vadd.f32 %v1226_v1, %v1225_v0  ;;  %1189 = vst.msk [vmem:[%s246_s17 + $0x10] sm:$0xff] %vm270_vm0, %v1186_v63  ;;  %v1210_v4 = vmul.f32 %v1206_v61, %v1186_v63 }
 0x141   : > { %v1214_v5 = vsel %vm270_vm0, %v1210_v4, 0.0  ;;  %v1224_v6 = vmul.f32 %v1210_v4, %v1186_v63 }
 0x142   : > { %v1215_v7 = vadd.f32 %v1214_v5, %v1213_v62 }
 0x143   : > { %v1228_v8 = vsel %vm270_vm0, %v1224_v6, 0.0 }
 0x144   : > { %v1216_v9 = vrot.slane %v1215_v7, 4  ;;  %v1229_v10 = vadd.f32 %v1228_v8, %v1227_v3 }
 0x146   : > { %v1217_v11 = vadd.f32 %v1216_v9, %v1215_v7  ;;  %v1230_v12 = vrot.slane %v1229_v10, 4 }
 0x148   : > { %v1218_v13 = vrot.slane %v1217_v11, 2  ;;  %v1231_v14 = vadd.f32 %v1230_v12, %v1229_v10 }
 0x14a   : > { %v1219_v15 = vadd.f32 %v1218_v13, %v1217_v11  ;;  %v1232_v16 = vrot.slane %v1231_v14, 2 }
 0x14c   : > { %v1220_v17 = vrot.slane %v1219_v15, 1  ;;  %v1233_v18 = vadd.f32 %v1232_v16, %v1231_v14  ;;  %1239 = sbr.rel (%p1416_p4) target bundleno = 339 (0x153), region = 40 }
 0x14e   : > { %v1221_v19 = vadd.f32 %v1220_v17, %v1219_v15  ;;  %v1234_v20 = vrot.slane %v1233_v18, 1 }
 0x150   : > { %v1235_v21 = vadd.f32 %v1234_v20, %v1233_v18 }
 0x151   : > { %vm1240_vm2 = vcmask 516096   ;;  %v1786_v22 = vmov 0.0  }
 0x152   : > { %1241 = vst.msk [vmem:[%s2312_s5] sm:$0x1] %vm1240_vm2, %v1786_v22  ;;  %1242 = vst.msk [vmem:[%s2313_s6] sm:$0x1] %vm1240_vm2, %v1786_v22 }
 0x153 PF: > { %vm1245_vm3 = vcmask 516096  }
 0x159   : > { %v1243_v23 = vld [vmem:[%s2312_s5] sm:$0x1] }
 0x15a   : > { %v1247_v24 = vld [vmem:[%s2313_s6] sm:$0x1]  ;;  %v1244_v25 = vadd.f32 %v1243_v23, %v1221_v19 }
 0x15b   : > { %v1248_v26 = vadd.f32 %v1247_v24, %v1235_v21 }
 0x15c   : > { %1246 = vst.msk [vmem:[%s2312_s5] sm:$0x1] %vm1245_vm3, %v1244_v25 }
 0x15d   : > { %1249 = vst.msk [vmem:[%s2313_s6] sm:$0x1] %vm1245_vm3, %v1248_v26 }
 0x15e PF: > { %s17_s21 = sadd.s32 1, %s1781_s21  }
 0x15f   : > { %p14_p5 = scmp.ge.s32.totalorder %s17_s21, 4  }
 0x161   :  { %16 = sbr.rel (!%p14_p5) target bundleno = 1 (0x1), region = 94 }

// kernel: convnet_forward.13
= control target key start
LH: loop header
LB: loop body
LE: loop exit
PB: predicated region body
PF: predicated region fallthrough
CT: control target
= control target key end

     0   :  { %s608_s27 = smov 0   ;;  %s653_s0 = inlined_call_operand.vmem [shape: f32[2,2,2,64], index: 0, kind: input, shape index: {}]   ;;  %s654_s1 = inlined_call_operand.vmem [shape: f32[2,2,2,64], index: 1, kind: input, shape index: {}]   ;;  %s655_s2 = inlined_call_operand.vmem [shape: f32[2,2,2,64], index: 2, kind: input, shape index: {}]   ;;  %s656_s3 = inlined_call_operand.vmem [shape: f32[2,2,2,64], index: 3, kind: input, shape index: {}]   ;;  %s657_s4 = inlined_call_operand.vmem [shape: f32[1,64], index: 4, kind: input, shape index: {}]   ;;  %s658_s5 = inlined_call_operand.vmem [shape: f32[1,64], index: 5, kind: input, shape index: {}]   ;;  %s659_s6 = inlined_call_operand.vmem [shape: f32[1,64], index: 6, kind: input, shape index: {}]   ;;  %s660_s7 = inlined_call_operand.vmem [shape: f32[1,64], index: 7, kind: input, shape index: {}]   ;;  %s661_s8 = inlined_call_operand.vmem [shape: f32[2,2,2,64], index: 8, kind: output, shape index: {}]  }
   0x1 LB: > { %s523_s28 = sadd.s32 4294967295, %s561_s27   ;;  %p527_p0 = scmp.ge.s32.totalorder %s561_s27, 1  ;;  %s561_s27 = sphi %s608_s27, %s18_s27  }
   0x2   : > { %p292_p1 = scmp.lt.s32.totalorder %s561_s27, 3 }
   0x4   : > { %p293_p2 = pnand %p527_p0, %p292_p1 }
   0x5   : > { %p341_p3 = scmp.lt.s32.totalorder (!%p293_p2), %s523_s28, 1 }
   0x6   : > { %296 = sbr.rel (%p293_p2) target bundleno = 52 (0x34), region = 52 }
   0xb   : > { %v366_v0 = vld [vmem:[%s657_s4] sm:$0x1]  ;;  %s663_s28 = smov (!%p341_p3, %s523_s28), 1  ;;  %v382_v7 = vlaneseq  ;;  %vm429_vm0 = vcmask 517120  }
   0xc   : > { %v368_v1 = vld [vmem:[%s658_s5] sm:$0x1]  ;;  %v367_v2 = vmul.f32 0.03125, %v366_v0  ;;  %s622_s11 = sshll.u32 %s663_s28, 2 }
   0xd   : > { %v369_v3 = vmul.f32 0.03125, %v368_v1  ;;  %v383_v8 = vshrl.u32 %v382_v7, 7  ;;  %s345_s14 = scalar_lea.vmem %s653_s0, %s622_s11  ;;  %v374_v9 = vld [vmem:[%s659_s6] sm:$0x1]  ;;  %s350_s19 = scalar_lea.vmem %s654_s1, %s622_s11 }
   0xe   : > { %v370_v4 = vmul.f32 %v367_v2, %v367_v2  ;;  %s355_s22 = scalar_lea.vmem %s655_s2, %s622_s11  ;;  %s360_s25 = scalar_lea.vmem %s656_s3, %s622_s11  ;;  %v376_v13 = vld [vmem:[%s660_s7] sm:$0x1]  ;;  %v380_v17 = vld [vmem:[%s345_s14 + $0x2] sm:$0x3] }
   0xf   : > { %v384_v10 = vsub.s32 0, %v383_v8  ;;  %v379_v14 = vld [vmem:[%s345_s14] sm:$0x3]  ;;  %v400_v21 = vld [vmem:[%s350_s19 + $0x2] sm:$0x3]  ;;  %s365_s9 = scalar_lea.vmem %s661_s8, %s622_s11 }
  0x10   : > { %v371_v5 = vsub.f32 %v369_v3, %v370_v4  ;;  %v399_v15 = vld [vmem:[%s350_s19] sm:$0x3]  ;;  %v410_v22 = vld [vmem:[%s355_s22 + $0x2] sm:$0x3] }
  0x11   : > { %v409_v16 = vld [vmem:[%s355_s22] sm:$0x3]  ;;  %v418_v23 = vld [vmem:[%s360_s25 + $0x2] sm:$0x3] }
  0x12   : > { %v372_v6 = vadd.f32 1e-05, %v371_v5  ;;  %v417_v20 = vld [vmem:[%s360_s25] sm:$0x3] }
  0x14   : > { %553 = vrsqrt.f32 %v372_v6 }
  0x21   : > { %v554_v11 = vpop.eup %553 }
  0x22   : > { %v375_v12 = vmul.f32 %v554_v11, %v374_v9 }
  0x24   : > { %v377_v18 = vmul.f32 %v375_v12, %v367_v2  ;;  %v385_v19 = vrot.slane %v375_v12, %v384_v10 }
  0x26   : > { %v378_v24 = vsub.f32 %v376_v13, %v377_v18  ;;  %v387_v25 = vmul.f32 %v385_v19, %v379_v14  ;;  %v401_v26 = vmul.f32 %v399_v15, %v385_v19  ;;  %v411_v27 = vmul.f32 %v409_v16, %v385_v19 }
  0x27   : > { %v419_v28 = vmul.f32 %v417_v20, %v385_v19  ;;  %v388_v29 = vmul.f32 %v385_v19, %v380_v17  ;;  %v402_v30 = vmul.f32 %v400_v21, %v385_v19  ;;  %v412_v31 = vmul.f32 %v410_v22, %v385_v19 }
  0x28   : > { %v393_v32 = vrot.slane %v378_v24, %v384_v10  ;;  %v420_v33 = vmul.f32 %v418_v23, %v385_v19 }
  0x2a   : > { %v395_v34 = vadd.f32 %v393_v32, %v387_v25  ;;  %v403_v35 = vadd.f32 %v401_v26, %v393_v32  ;;  %v413_v36 = vadd.f32 %v411_v27, %v393_v32  ;;  %v421_v37 = vadd.f32 %v419_v28, %v393_v32 }
  0x2b   : > { %v396_v38 = vadd.f32 %v393_v32, %v388_v29  ;;  %v404_v39 = vadd.f32 %v402_v30, %v393_v32  ;;  %v414_v40 = vadd.f32 %v412_v31, %v393_v32  ;;  %v422_v41 = vadd.f32 %v420_v33, %v393_v32 }
  0x2c   : > { %v397_v42 = vmax.f32 %v395_v34, 0.0  ;;  %v405_v43 = vmax.f32 %v403_v35, 0.0  ;;  %v415_v44 = vmax.f32 %v413_v36, 0.0  ;;  %v423_v45 = vmax.f32 %v421_v37, 0.0 }
  0x2d   : > { %v398_v46 = vmax.f32 %v396_v38, 0.0  ;;  %v406_v47 = vmax.f32 %v404_v39, 0.0  ;;  %v416_v48 = vmax.f32 %v414_v40, 0.0  ;;  %v424_v49 = vmax.f32 %v422_v41, 0.0 }
  0x2e   : > { %v407_v50 = vmax.f32 %v397_v42, %v405_v43  ;;  %v425_v51 = vmax.f32 %v415_v44, %v423_v45 }
  0x2f   : > { %v408_v52 = vmax.f32 %v398_v46, %v406_v47  ;;  %v426_v53 = vmax.f32 %v416_v48, %v424_v49 }
  0x30   : > { %v427_v54 = vmax.f32 %v407_v50, %v425_v51 }
  0x31   : > { %v428_v55 = vmax.f32 %v408_v52, %v426_v53 }
  0x32   : > { %430 = vst.msk [vmem:[%s365_s9] sm:$0x3] %vm429_vm0, %v427_v54 }
  0x33   : > { %431 = vst.msk [vmem:[%s365_s9 + $0x2] sm:$0x3] %vm429_vm0, %v428_v55 }
  0x34 PF: > { %s18_s27 = sadd.s32 1, %s561_s27  }
  0x35   : > { %p15_p4 = scmp.ge.s32.totalorder %s18_s27, 4  }
  0x37   :  { %17 = sbr.rel (!%p15_p4) target bundleno = 1 (0x1), region = 91 }

// kernel: convnet_forward.15
= control target key start
LH: loop header
LB: loop body
LE: loop exit
PB: predicated region body
PF: predicated region fallthrough
CT: control target
= control target key end

     0   :  { %s729_s0 = inlined_call_operand.vmem [shape: f32[2,1,1,64], index: 0, kind: input, shape index: {}]   ;;  %s730_s1 = inlined_call_operand.vmem [shape: f32[2,1,1,64], index: 1, kind: input, shape index: {}]   ;;  %s731_s2 = inlined_call_operand.vmem [shape: f32[2,1,1,64], index: 2, kind: input, shape index: {}]   ;;  %s732_s3 = inlined_call_operand.vmem [shape: f32[2,1,1,64], index: 3, kind: input, shape index: {}]   ;;  %s733_s4 = inlined_call_operand.vmem [shape: f32[1,64], index: 4, kind: input, shape index: {}]   ;;  %s734_s5 = inlined_call_operand.vmem [shape: f32[1,64], index: 5, kind: input, shape index: {}]   ;;  %s735_s6 = inlined_call_operand.vmem [shape: f32[1,64], index: 6, kind: input, shape index: {}]   ;;  %s736_s7 = inlined_call_operand.vmem [shape: f32[1,64], index: 7, kind: input, shape index: {}]   ;;  %s737_s8 = inlined_call_operand.hbm [shape: f32[2,1,1,64], index: 8, kind: output, shape index: {}]  }
   0x1   :  { %738 = sst [smem:[#allocation5_spill]] %s733_s4 }
   0x2   :  { %739 = sst [smem:[#allocation6_spill]] %s734_s5 }
   0x3   :  { %13 = vsyncpa [#allocation3], 0 }
   0x4   :  { %15 = vsyncpa [#allocation3 + $0x1], 0  ;;  %s621_s27 = smov 0   ;;  %s623_s28 = smov 0  }
   0x5   :  { %s625_s29 = smov 0   ;;  %s627_s30 = smov 0  }
   0x6 LB: > { %s642_s9 = sadd.s32 4294967295, %s573_s30   ;;  %s465_s10 = sadd.s32 4294967294, %s573_s30   ;;  %s573_s30 = sphi %s627_s30, %s747_s30   ;;  %s569_s29 = sphi %s625_s29, %s746_s29   ;;  %s565_s28 = sphi %s623_s28, %s745_s28   ;;  %s561_s27 = sphi %s621_s27, %s744_s27  }
   0x7   : > { %s646_s11 = sadd.s32 1, %s573_s30   ;;  %s216_s12 = sadd.s32 1, %s569_s29 }
   0x8   : > { %s213_s13 = ssub.s32 %s573_s30, %s646_s11  ;;  %p226_p0 = scmp.ne.s32.totalorder %s569_s29, %s565_s28 }
   0x9   : > { %p214_p1 = scmp.eq.s32.totalorder %s213_s13, 0  ;;  %p227_p2 = scmp.eq.s32.totalorder %s642_s9, 1 }
   0xa   : > { %p232_p3 = scmp.ne.s32.totalorder %s565_s28, %s561_s27  ;;  %p233_p4 = scmp.eq.s32.totalorder %s465_s10, 1 }
   0xb   : > { %s657_s14 = scalar_select %p214_p1, %s569_s29, %s216_s12  }
   0xc   : > { %p659_p5 = por %p227_p2, %p226_p0  ;;  %p663_p6 = por %p233_p4, %p232_p3 }
   0xd   : > { %p468_p7 = scmp.ge.s32.totalorder %s573_s30, 1  ;;  %p287_p8 = scmp.lt.s32.totalorder %s573_s30, 3 }
   0xf   : > { %p288_p9 = pnand %p468_p7, %p287_p8 }
  0x10   : > { %s742_s4 = sld [smem:[#allocation5_spill]] (!%p288_p9)  ;;  %p327_p10 = scmp.lt.s32.totalorder (!%p288_p9), %s642_s9, 1 }
  0x11   : > { %291 = sbr.rel (%p288_p9) target bundleno = 72 (0x48), region = 52  ;;  %s743_s5 = sld [smem:[#allocation6_spill]] (!%p288_p9) }
  0x16   : > { %v339_v0 = vld [vmem:[%s742_s4] sm:$0x1]  ;;  %s328_s21 = scalar_select %p327_p10, %s642_s9, 1  ;;  %vm371_vm0 = vcmask 516096  }
  0x17   : > { %v341_v1 = vld [vmem:[%s743_s5] sm:$0x1]  ;;  %v340_v2 = vmul.f32 0.125, %v339_v0 }
  0x18   : > { %v342_v3 = vmul.f32 0.125, %v341_v1  ;;  %s329_s24 = scalar_lea.vmem %s729_s0, %s328_s21  ;;  %s332_s10 = scalar_lea.vmem %s730_s1, %s328_s21  ;;  %v347_v7 = vld [vmem:[%s735_s6] sm:$0x1] }
  0x19   : > { %v343_v4 = vmul.f32 %v340_v2, %v340_v2  ;;  %s335_s17 = scalar_lea.vmem %s731_s2, %s328_s21  ;;  %s338_s20 = scalar_lea.vmem %s732_s3, %s328_s21  ;;  %v352_v9 = vld [vmem:[%s329_s24] sm:$0x1] }
  0x1a   : > { %v356_v10 = vld [vmem:[%s332_s10] sm:$0x1]  ;;  %s325_s21 = sand.u32 1, %s565_s28   ;;  %s469_s24 = sshll.u32 %s642_s9, 4 }
  0x1b   : > { %v344_v5 = vsub.f32 %v342_v3, %v343_v4  ;;  %v361_v11 = vld [vmem:[%s335_s17] sm:$0x1]  ;;  %s326_s4 = scalar_lea.vmem [#allocation2], %s325_s21  ;;  %s384_s10 = scalar_lea.hbm %s737_s8, %s469_s24 }
  0x1c   : > { %v365_v13 = vld [vmem:[%s338_s20] sm:$0x1]  ;;  %s386_s5 = sshll.u32 %s326_s4, 4  ;;  %s374_s12 = scalar_lea.sflag [#allocation3], %s325_s21  ;;  %s387_s5 = int_to_ptr.vmem [resolvable:$true] %s386_s5 }
  0x1d   : > { %v345_v6 = vadd.f32 1e-05, %v344_v5  ;;  %v349_v14 = vld [vmem:[%s736_s7] sm:$0x1]  ;;  %s513_s13 = scalar_lea.vmem %s387_s5, 16  ;;  %s575_s17 = smov [#allocation2]  }
  0x1e   : > { %p514_p11 = scmp.ne.s32.totalorder %s387_s5, %s513_s13  ;;  %s517_s18 = sshll.u32 %s575_s17, 4  ;;  %s518_s18 = int_to_ptr.vmem [resolvable:$false] %s517_s18 }
  0x1f   : > { %511 = vrsqrt.f32 %v345_v6  ;;  %s519_s9 = scalar_lea.vmem %s518_s18, 32  ;;  %p520_p0 = scmp.lt.s32.totalorder %s387_s5, %s518_s18 }
  0x20   : > { %p515_p12 = pnand %p514_p11, %p659_p5  ;;  %p521_p1 = scmp.lt.s32.totalorder %s519_s9, %s513_s13 }
  0x22   : > { %p516_p13 = pneg %p515_p12  ;;  %p522_p2 = por %p521_p1, %p520_p0 }
  0x24   : > { %p523_p3 = pnand %p522_p2, %p516_p13 }
  0x2c   : > { %v512_v8 = vpop.eup %511 }
  0x2d   : > { %v348_v12 = vmul.f32 %v512_v8, %v347_v7 }
  0x2f   : > { %v350_v15 = vmul.f32 %v348_v12, %v340_v2  ;;  %v353_v16 = vmul.f32 %v352_v9, %v348_v12  ;;  %v357_v17 = vmul.f32 %v356_v10, %v348_v12  ;;  %v362_v18 = vmul.f32 %v361_v11, %v348_v12 }
  0x30   : > { %v366_v19 = vmul.f32 %v365_v13, %v348_v12 }
  0x31   : > { %v351_v20 = vsub.f32 %v349_v14, %v350_v15 }
  0x33   : > { %v354_v21 = vadd.f32 %v353_v16, %v351_v20  ;;  %v358_v22 = vadd.f32 %v357_v17, %v351_v20  ;;  %v363_v23 = vadd.f32 %v362_v18, %v351_v20  ;;  %v367_v24 = vadd.f32 %v366_v19, %v351_v20 }
  0x35   : > { %v355_v25 = vmax.f32 %v354_v21, 0.0  ;;  %v359_v26 = vmax.f32 %v358_v22, 0.0  ;;  %v364_v27 = vmax.f32 %v363_v23, 0.0  ;;  %v368_v28 = vmax.f32 %v367_v24, 0.0 }
  0x37   : > { %v360_v29 = vmax.f32 %v355_v25, %v359_v26  ;;  %v369_v30 = vmax.f32 %v364_v27, %v368_v28 }
  0x39   : > { %v370_v31 = vmax.f32 %v360_v29, %v369_v30 }
  0x3b   : > { %372 = vst.msk [vmem:[%s326_s4] sm:$0x1] %vm371_vm0, %v370_v31 }
  0x3c   : > { %526 = shalt.err (!%p523_p3)
}
  0x3d   : > { %s527_s19 = scalar_lea.hbm %s384_s10, 16  ;;  %s531_s23 = scalar_lea.hbm %s737_s8, 32 }
  0x3e   : > { %p528_p4 = scmp.ne.s32.totalorder %s384_s10, %s527_s19  ;;  %p532_p9 = scmp.lt.s32.totalorder %s384_s10, %s737_s8 }
  0x3f   : > { %p533_p10 = scmp.lt.s32.totalorder %s531_s23, %s527_s19 }
  0x40   : > { %p529_p7 = pnand %p528_p4, %p659_p5 }
  0x41   : > { %p534_p11 = por %p533_p10, %p532_p9 }
  0x42   : > { %p530_p8 = pneg %p529_p7 }
  0x44   : > { %p535_p12 = pnand %p534_p11, %p530_p8 }
  0x46   : > { %538 = shalt.err (!%p535_p12)
}
  0x47   : > { %472 = dma.vmem_to_hbm [thread:$0]  (%p659_p5), %s387_s5, 16, %s384_s10, %s374_s12  }
  0x48 PF: > { %p478_p13 = scmp.ge.s32.totalorder %s573_s30, 2  ;;  %s398_s24 = sand.u32 1, %s561_s27  }
  0x49   : > { %s399_s25 = scalar_lea.sflag [#allocation3], %s398_s24 }
  0x4a   : > { %p475_p0 = pnand %p478_p13, %p663_p6 }
  0x4c   : > { %p476_p1 = pneg %p475_p0 }
  0x4e   : > { %556 = dma.done.wait (%p476_p1), %s399_s25, 16  }
  0x4f   : > { %558 = vsyncadd (%p476_p1), %s399_s25, 4294967280  ;;  %p18_p2 = scmp.ge.s32.totalorder %s646_s11, 4   ;;  %s744_s27 = smov %s565_s28 }
  0x50   : > { %s745_s28 = smov %s569_s29  ;;  %s746_s29 = smov %s657_s14 }
  0x51   : > { %s747_s30 = smov %s646_s11  ;;  %20 = sbr.rel (!%p18_p2) target bundleno = 6 (0x6), region = 96 }
  0x56   :  { %403 = vsyncpa [#allocation3], 1 }
  0x57   :  { %405 = vsyncpa [#allocation3 + $0x1], 1 }

// kernel: convnet_forward.14
= control target key start
LH: loop header
LB: loop body
LE: loop exit
PB: predicated region body
PF: predicated region fallthrough
CT: control target
= control target key end

     0   :  { %s1506_s21 = smov 0   ;;  %s1885_s0 = inlined_call_operand.vmem [shape: f32[2,20,64], index: 0, kind: input, shape index: {}]   ;;  %s1886_s1 = inlined_call_operand.vmem [shape: f32[9,64,64], index: 1, kind: input, shape index: {}]   ;;  %s1887_s2 = inlined_call_operand.vmem [shape: f32[1,64], index: 2, kind: input, shape index: {}]   ;;  %s1888_s3 = inlined_call_operand.vmem [shape: f32[8,1], index: 3, kind: input, shape index: {}]   ;;  %s1889_s4 = inlined_call_operand.vmem [shape: f32[2,8,64], index: 4, kind: output, shape index: {0}]   ;;  %s1890_s5 = inlined_call_operand.vmem [shape: f32[1,64], index: 5, kind: output, shape index: {1}]   ;;  %s1891_s6 = inlined_call_operand.vmem [shape: f32[1,64], index: 6, kind: output, shape index: {2}]  }
   0x1 LB: > { %s1512_s22 = sadd.s32 4294967295, %s1465_s21   ;;  %p1113_p0 = scmp.ge.s32.totalorder %s1465_s21, 1  ;;  %s1465_s21 = sphi %s1506_s21, %s17_s21  }
   0x2   : > { %p207_p1 = scmp.lt.s32.totalorder %s1465_s21, 3 }
   0x4   : > { %p208_p2 = pnand %p1113_p0, %p207_p1 }
   0x5   : > { %p236_p3 = scmp.lt.s32.totalorder (!%p208_p2), %s1512_s22, 1  ;;  %p1190_p4 = scmp.ne.s32.totalorder (!%p208_p2), %s1512_s22, 0 }
   0x6   : > { %211 = sbr.rel (%p208_p2) target bundleno = 325 (0x145), region = 36 }
   0xb   : > { %v1123_v0 = vld [vmem:[%s1886_s1 + $0x78] sm:$0xff]  ;;  %v1467_v2 = vmov 0.0   ;;  %v1122_v3 = vld [vmem:[%s1886_s1 + $0x70] sm:$0xff]  ;;  %v1121_v5 = vld [vmem:[%s1886_s1 + $0x68] sm:$0xff]  ;;  %s1540_s11 = scalar_select %p236_p3, %s1512_s22, 1  ;;  %vm264_vm0 = vcmask 523264  }
   0xc   : > { %v253_v1 = vld [vmem:[%s1886_s1 + $0x38] sm:$0xff]  ;;  %1274 = vmatprep.subr.mxu0 %v1467_v2  ;;  %1293 = vmatprep.subr.mxu1 %v1467_v2  ;;  %v252_v4 = vld [vmem:[%s1886_s1 + $0x30] sm:$0xff]  ;;  %v251_v6 = vld [vmem:[%s1886_s1 + $0x28] sm:$0xff]  ;;  %vm1468_vm1 = vmmov 0  }
   0xd   : > { %1275 = vmatpush3.msra.mxu0 %v1123_v0  ;;  %1294 = vmatpush3.msra.mxu1 %v253_v1  ;;  %v1120_v7 = vld [vmem:[%s1886_s1 + $0x60] sm:$0xff]  ;;  %v1119_v9 = vld [vmem:[%s1886_s1 + $0x58] sm:$0xff]  ;;  %s1445_s20 = smul.u32 24, %s1540_s11  ;;  %v1118_v11 = vld [vmem:[%s1886_s1 + $0x50] sm:$0xff] }
   0xe   : > { %1276 = vmatprep.subr.mxu0 %v1467_v2  ;;  %1295 = vmatprep.subr.mxu1 %v1467_v2  ;;  %v250_v8 = vld [vmem:[%s1886_s1 + $0x20] sm:$0xff]  ;;  %v249_v10 = vld [vmem:[%s1886_s1 + $0x18] sm:$0xff]  ;;  %v248_v12 = vld [vmem:[%s1886_s1 + $0x10] sm:$0xff] }
   0xf   : > { %1277 = vmatpush3.msra.mxu0 %v1122_v3  ;;  %1296 = vmatpush3.msra.mxu1 %v252_v4  ;;  %v1117_v13 = vld [vmem:[%s1886_s1 + $0x48] sm:$0xff]  ;;  %s1578_s9 = scalar_lea.vmem %s1885_s0, %s1445_s20  ;;  %v1116_v15 = vld [vmem:[%s1886_s1 + $0x40] sm:$0xff]  ;;  %v1133_v19 = vld [vmem:[%s1886_s1 + $0xb8] sm:$0xff] }
  0x10   : > { %1278 = vmatprep.subr.mxu0 %v1467_v2  ;;  %1297 = vmatprep.subr.mxu1 %v1467_v2  ;;  %v247_v14 = vld [vmem:[%s1886_s1 + $0x8] sm:$0xff]  ;;  %v246_v17 = vld [vmem:[%s1886_s1] sm:$0xff]  ;;  %v1132_v20 = vld [vmem:[%s1886_s1 + $0xb0] sm:$0xff] }
  0x11   : > { %1279 = vmatpush3.msra.mxu0 %v1121_v5  ;;  %1298 = vmatpush3.msra.mxu1 %v251_v6  ;;  %v254_v16 = vld [vmem:[%s1578_s9 + $0x1] sm:$0xff]  ;;  %v1142_v21 = vld [vmem:[%s1886_s1 + $0xf8] sm:$0xff]  ;;  %v1141_v23 = vld [vmem:[%s1886_s1 + $0xf0] sm:$0xff] }
  0x12   : > { %1280 = vmatprep.subr.mxu0 %v1467_v2  ;;  %1299 = vmatprep.subr.mxu1 %v1467_v2  ;;  %v245_v18 = vld [vmem:[%s1578_s9] sm:$0xff]  ;;  %v1131_v22 = vld [vmem:[%s1886_s1 + $0xa8] sm:$0xff]  ;;  %v1129_v26 = vld [vmem:[%s1886_s1 + $0x98] sm:$0xff] }
  0x13   : > { %1281 = vmatpush3.msra.mxu0 %v1120_v7  ;;  %1300 = vmatpush3.msra.mxu1 %v250_v8  ;;  %v1130_v24 = vld [vmem:[%s1886_s1 + $0xa0] sm:$0xff]  ;;  %v1140_v25 = vld [vmem:[%s1886_s1 + $0xe8] sm:$0xff]  ;;  %v1128_v28 = vld [vmem:[%s1886_s1 + $0x90] sm:$0xff] }
  0x14   : > { %1282 = vmatprep.subr.mxu0 %v1467_v2  ;;  %1301 = vmatprep.subr.mxu1 %v1467_v2  ;;  %v1139_v27 = vld [vmem:[%s1886_s1 + $0xe0] sm:$0xff]  ;;  %v1138_v29 = vld [vmem:[%s1886_s1 + $0xd8] sm:$0xff]  ;;  %v1127_v30 = vld [vmem:[%s1886_s1 + $0x88] sm:$0xff] }
  0x15   : > { %1283 = vmatpush3.msra.mxu0 %v1119_v9  ;;  %1302 = vmatpush3.msra.mxu1 %v249_v10  ;;  %v1137_v31 = vld [vmem:[%s1886_s1 + $0xd0] sm:$0xff]  ;;  %v1126_v32 = vld [vmem:[%s1886_s1 + $0x80] sm:$0xff]  ;;  %v1136_v33 = vld [vmem:[%s1886_s1 + $0xc8] sm:$0xff] }
  0x16   : > { %1284 = vmatprep.subr.mxu0 %v1467_v2  ;;  %1303 = vmatprep.subr.mxu1 %v1467_v2  ;;  %v411_v34 = vld [vmem:[%s1578_s9 + $0x2] sm:$0xff]  ;;  %v1151_v36 = vld [vmem:[%s1886_s1 + $0x138] sm:$0xff]  ;;  %v1150_v38 = vld [vmem:[%s1886_s1 + $0x130] sm:$0xff] }
  0x17   : > { %1285 = vmatpush3.msra.mxu0 %v1118_v11  ;;  %1304 = vmatpush3.msra.mxu1 %v248_v12  ;;  %v1135_v35 = vld [vmem:[%s1886_s1 + $0xc0] sm:$0xff]  ;;  %v1160_v39 = vld [vmem:[%s1886_s1 + $0x178] sm:$0xff]  ;;  %v1149_v40 = vld [vmem:[%s1886_s1 + $0x128] sm:$0xff] }
  0x18   : > { %1286 = vmatprep.subr.mxu0 %v1467_v2  ;;  %1305 = vmatprep.subr.mxu1 %v1467_v2  ;;  %v495_v37 = vld [vmem:[%s1578_s9 + $0x4] sm:$0xff]  ;;  %v1159_v41 = vld [vmem:[%s1886_s1 + $0x170] sm:$0xff]  ;;  %v1147_v44 = vld [vmem:[%s1886_s1 + $0x118] sm:$0xff] }
  0x19   : > { %1287 = vmatpush3.msra.mxu0 %v1117_v13  ;;  %1306 = vmatpush3.msra.mxu1 %v247_v14  ;;  %v1148_v42 = vld [vmem:[%s1886_s1 + $0x120] sm:$0xff]  ;;  %v1158_v43 = vld [vmem:[%s1886_s1 + $0x168] sm:$0xff]  ;;  %v1146_v46 = vld [vmem:[%s1886_s1 + $0x110] sm:$0xff]  ;;  %v1469_v14 = vmov 0  }
  0x1a   : > { %1288 = vmatprep.subr.mxu0 %v1467_v2  ;;  %1290 = vmatprep.mubr.msk.f32.mxu0 %vm1468_vm1, %v1467_v2  ;;  %v1157_v45 = vld [vmem:[%s1886_s1 + $0x160] sm:$0xff]  ;;  %v1156_v47 = vld [vmem:[%s1886_s1 + $0x158] sm:$0xff]  ;;  %v1145_v48 = vld [vmem:[%s1886_s1 + $0x108] sm:$0xff] }
  0x1b   : > { %1289 = vmatpush3.msra.mxu0 %v1116_v15  ;;  %1307 = vmatprep.subr.mxu1 %v1467_v2  ;;  %v1155_v49 = vld [vmem:[%s1886_s1 + $0x150] sm:$0xff]  ;;  %v1144_v50 = vld [vmem:[%s1886_s1 + $0x100] sm:$0xff]  ;;  %v1154_v51 = vld [vmem:[%s1886_s1 + $0x148] sm:$0xff] }
  0x1c   : > { %1291 = vmatmul.mubr.msk.f32.vlgmr.msra.gmra.mxu0 %vm264_vm0, %v254_v16  ;;  %1308 = vmatpush3.msra.mxu1 %v246_v17  ;;  %v579_v52 = vld [vmem:[%s1578_s9 + $0x5] sm:$0xff]  ;;  %v1169_v54 = vld [vmem:[%s1886_s1 + $0x1b8] sm:$0xff]  ;;  %v1168_v56 = vld [vmem:[%s1886_s1 + $0x1b0] sm:$0xff] }
  0x1d   : > { %1309 = vmatprep.mubr.msk.f32.mxu1 %vm1468_vm1, %v1467_v2  ;;  %1312 = vmatprep.subr.mxu0 %v1467_v2  ;;  %v1153_v53 = vld [vmem:[%s1886_s1 + $0x140] sm:$0xff]  ;;  %v1178_v57 = vld [vmem:[%s1886_s1 + $0x1f8] sm:$0xff]  ;;  %v1167_v58 = vld [vmem:[%s1886_s1 + $0x1a8] sm:$0xff] }
  0x1e   : > { %1310 = vmatmul.mubr.msk.f32.vlgmr.msra.gmra.mxu1 %vm264_vm0, %v245_v18  ;;  %1313 = vmatpush3.msra.mxu0 %v1133_v19  ;;  %v663_v55 = vld [vmem:[%s1578_s9 + $0x6] sm:$0xff]  ;;  %v1177_v59 = vld [vmem:[%s1886_s1 + $0x1f0] sm:$0xff]  ;;  %v1165_v62 = vld [vmem:[%s1886_s1 + $0x198] sm:$0xff] }
  0x1f   : > { %1314 = vmatprep.subr.mxu0 %v1467_v2  ;;  %1331 = vmatprep.subr.mxu1 %v1467_v2  ;;  %v1166_v60 = vld [vmem:[%s1886_s1 + $0x1a0] sm:$0xff]  ;;  %v1176_v61 = vld [vmem:[%s1886_s1 + $0x1e8] sm:$0xff]  ;;  %v1164_v0 = vld [vmem:[%s1886_s1 + $0x190] sm:$0xff] }
  0x20   : > { %1315 = vmatpush3.msra.mxu0 %v1132_v20  ;;  %1332 = vmatpush3.msra.mxu1 %v1142_v21  ;;  %v1175_v63 = vld [vmem:[%s1886_s1 + $0x1e0] sm:$0xff]  ;;  %v1174_v1 = vld [vmem:[%s1886_s1 + $0x1d8] sm:$0xff]  ;;  %v1163_v3 = vld [vmem:[%s1886_s1 + $0x188] sm:$0xff] }
  0x21   : > { %1316 = vmatprep.subr.mxu0 %v1467_v2  ;;  %1333 = vmatprep.subr.mxu1 %v1467_v2  ;;  %v1173_v4 = vld [vmem:[%s1886_s1 + $0x1d0] sm:$0xff]  ;;  %v1162_v5 = vld [vmem:[%s1886_s1 + $0x180] sm:$0xff]  ;;  %v1172_v6 = vld [vmem:[%s1886_s1 + $0x1c8] sm:$0xff] }
  0x22   : > { %1317 = vmatpush3.msra.mxu0 %v1131_v22  ;;  %1334 = vmatpush3.msra.mxu1 %v1141_v23  ;;  %v747_v7 = vld [vmem:[%s1578_s9 + $0x8] sm:$0xff]  ;;  %v1171_v8 = vld [vmem:[%s1886_s1 + $0x1c0] sm:$0xff]  ;;  %v1187_v9 = vld [vmem:[%s1886_s1 + $0x238] sm:$0xff] }
  0x23   : > { %1318 = vmatprep.subr.mxu0 %v1467_v2  ;;  %1335 = vmatprep.subr.mxu1 %v1467_v2  ;;  %v831_v10 = vld [vmem:[%s1578_s9 + $0x9] sm:$0xff]  ;;  %v1008_v12 = vld [vmem:[%s1888_s3] sm:$0xff]  ;;  %v1183_v16 = vld [vmem:[%s1886_s1 + $0x218] sm:$0xff] }
  0x24   : > { %1319 = vmatpush3.msra.mxu0 %v1130_v24  ;;  %1336 = vmatpush3.msra.mxu1 %v1140_v25  ;;  %v1186_v11 = vld [vmem:[%s1886_s1 + $0x230] sm:$0xff]  ;;  %v1185_v13 = vld [vmem:[%s1886_s1 + $0x228] sm:$0xff]  ;;  %v1184_v15 = vld [vmem:[%s1886_s1 + $0x220] sm:$0xff] }
  0x25   : > { %1320 = vmatprep.subr.mxu0 %v1467_v2  ;;  %1337 = vmatprep.subr.mxu1 %v1467_v2  ;;  %v1182_v17 = vld [vmem:[%s1886_s1 + $0x210] sm:$0xff]  ;;  %v1181_v18 = vld [vmem:[%s1886_s1 + $0x208] sm:$0xff]  ;;  %v1180_v19 = vld [vmem:[%s1886_s1 + $0x200] sm:$0xff] }
  0x26   : > { %1321 = vmatpush3.msra.mxu0 %v1129_v26  ;;  %1338 = vmatpush3.msra.mxu1 %v1139_v27  ;;  %v915_v20 = vld [vmem:[%s1578_s9 + $0xa] sm:$0xff]  ;;  %s1115_s9 = sshll.u32 %s1540_s11, 3 }
  0x27   : > { %1322 = vmatprep.subr.mxu0 %v1467_v2  ;;  %1339 = vmatprep.subr.mxu1 %v1467_v2  ;;  %s244_s13 = scalar_lea.vmem %s1889_s4, %s1115_s9 }
  0x28   : > { %1323 = vmatpush3.msra.mxu0 %v1128_v28  ;;  %1340 = vmatpush3.msra.mxu1 %v1138_v29 }
  0x29   : > { %1324 = vmatprep.subr.mxu0 %v1467_v2  ;;  %1341 = vmatprep.subr.mxu1 %v1467_v2 }
  0x2a   : > { %1325 = vmatpush3.msra.mxu0 %v1127_v30  ;;  %1342 = vmatpush3.msra.mxu1 %v1137_v31 }
  0x2b   : > { %1326 = vmatprep.subr.mxu0 %v1467_v2  ;;  %1343 = vmatprep.subr.mxu1 %v1467_v2 }
  0x2c   : > { %1327 = vmatpush3.msra.mxu0 %v1126_v32  ;;  %1328 = vmatprep.mubr.msk.f32.mxu0 %vm1468_vm1, %v1467_v2 }
  0x2d   : > { %1344 = vmatpush3.msra.mxu1 %v1136_v33  ;;  %1329 = vmatmul.mubr.msk.f32.vlgmr.msra.gmra.mxu0 %vm264_vm0, %v411_v34 }
  0x2e   : > { %1345 = vmatprep.subr.mxu1 %v1467_v2  ;;  %1350 = vmatprep.subr.mxu0 %v1467_v2 }
  0x2f   : > { %1346 = vmatpush3.msra.mxu1 %v1135_v35  ;;  %1347 = vmatprep.mubr.msk.f32.mxu1 %vm1468_vm1, %v1467_v2 }
  0x30   : > { %1351 = vmatpush3.msra.mxu0 %v1151_v36  ;;  %1348 = vmatmul.mubr.msk.f32.vlgmr.msra.gmra.mxu1 %vm264_vm0, %v495_v37 }
  0x31   : > { %1352 = vmatprep.subr.mxu0 %v1467_v2  ;;  %1369 = vmatprep.subr.mxu1 %v1467_v2 }
  0x32   : > { %1353 = vmatpush3.msra.mxu0 %v1150_v38  ;;  %1370 = vmatpush3.msra.mxu1 %v1160_v39 }
  0x33   : > { %1354 = vmatprep.subr.mxu0 %v1467_v2  ;;  %1371 = vmatprep.subr.mxu1 %v1467_v2 }
  0x34   : > { %1355 = vmatpush3.msra.mxu0 %v1149_v40  ;;  %1372 = vmatpush3.msra.mxu1 %v1159_v41 }
  0x35   : > { %1356 = vmatprep.subr.mxu0 %v1467_v2  ;;  %1373 = vmatprep.subr.mxu1 %v1467_v2 }
  0x36   : > { %1357 = vmatpush3.msra.mxu0 %v1148_v42  ;;  %1374 = vmatpush3.msra.mxu1 %v1158_v43 }
  0x37   : > { %1358 = vmatprep.subr.mxu0 %v1467_v2  ;;  %1375 = vmatprep.subr.mxu1 %v1467_v2 }
  0x38   : > { %1359 = vmatpush3.msra.mxu0 %v1147_v44  ;;  %1376 = vmatpush3.msra.mxu1 %v1157_v45  ;;  %v1189_v44 = vld [vmem:[%s1887_s2] ss:$0 sm:$0xff] }
  0x39   : > { %1360 = vmatprep.subr.mxu0 %v1467_v2  ;;  %1377 = vmatprep.subr.mxu1 %v1467_v2 }
  0x3a   : > { %1361 = vmatpush3.msra.mxu0 %v1146_v46  ;;  %1378 = vmatpush3.msra.mxu1 %v1156_v47 }
  0x3b   : > { %1362 = vmatprep.subr.mxu0 %v1467_v2  ;;  %1379 = vmatprep.subr.mxu1 %v1467_v2 }
  0x3c   : > { %1363 = vmatpush3.msra.mxu0 %v1145_v48  ;;  %1380 = vmatpush3.msra.mxu1 %v1155_v49 }
  0x3d   : > { %1364 = vmatprep.subr.mxu0 %v1467_v2  ;;  %1381 = vmatprep.subr.mxu1 %v1467_v2 }
  0x3e   : > { %1365 = vmatpush3.msra.mxu0 %v1144_v50  ;;  %1366 = vmatprep.mubr.msk.f32.mxu0 %vm1468_vm1, %v1467_v2 }
  0x3f   : > { %1382 = vmatpush3.msra.mxu1 %v1154_v51  ;;  %1367 = vmatmul.mubr.msk.f32.vlgmr.msra.gmra.mxu0 %vm264_vm0, %v579_v52 }
  0x40   : > { %1383 = vmatprep.subr.mxu1 %v1467_v2  ;;  %1388 = vmatprep.subr.mxu0 %v1467_v2 }
  0x41   : > { %1384 = vmatpush3.msra.mxu1 %v1153_v53  ;;  %1385 = vmatprep.mubr.msk.f32.mxu1 %vm1468_vm1, %v1467_v2 }
  0x42   : > { %1389 = vmatpush3.msra.mxu0 %v1169_v54  ;;  %1386 = vmatmul.mubr.msk.f32.vlgmr.msra.gmra.mxu1 %vm264_vm0, %v663_v55 }
  0x43   : > { %1390 = vmatprep.subr.mxu0 %v1467_v2  ;;  %1407 = vmatprep.subr.mxu1 %v1467_v2 }
  0x44   : > { %1391 = vmatpush3.msra.mxu0 %v1168_v56  ;;  %1408 = vmatpush3.msra.mxu1 %v1178_v57 }
  0x45   : > { %1392 = vmatprep.subr.mxu0 %v1467_v2  ;;  %1409 = vmatprep.subr.mxu1 %v1467_v2 }
  0x46   : > { %1393 = vmatpush3.msra.mxu0 %v1167_v58  ;;  %1410 = vmatpush3.msra.mxu1 %v1177_v59 }
  0x47   : > { %1394 = vmatprep.subr.mxu0 %v1467_v2  ;;  %1411 = vmatprep.subr.mxu1 %v1467_v2 }
  0x48   : > { %1395 = vmatpush3.msra.mxu0 %v1166_v60  ;;  %1412 = vmatpush3.msra.mxu1 %v1176_v61 }
  0x49   : > { %1396 = vmatprep.subr.mxu0 %v1467_v2  ;;  %1413 = vmatprep.subr.mxu1 %v1467_v2 }
  0x4a   : > { %1397 = vmatpush3.msra.mxu0 %v1165_v62  ;;  %1414 = vmatpush3.msra.mxu1 %v1175_v63 }
  0x4b   : > { %1398 = vmatprep.subr.mxu0 %v1467_v2  ;;  %1415 = vmatprep.subr.mxu1 %v1467_v2 }
  0x4c   : > { %1399 = vmatpush3.msra.mxu0 %v1164_v0  ;;  %1416 = vmatpush3.msra.mxu1 %v1174_v1 }
  0x4d   : > { %1400 = vmatprep.subr.mxu0 %v1467_v2  ;;  %1417 = vmatprep.subr.mxu1 %v1467_v2 }
  0x4e   : > { %1401 = vmatpush3.msra.mxu0 %v1163_v3  ;;  %1418 = vmatpush3.msra.mxu1 %v1173_v4 }
  0x4f   : > { %1402 = vmatprep.subr.mxu0 %v1467_v2  ;;  %1419 = vmatprep.subr.mxu1 %v1467_v2 }
  0x50   : > { %1403 = vmatpush3.msra.mxu0 %v1162_v5  ;;  %1404 = vmatprep.mubr.msk.f32.mxu0 %vm1468_vm1, %v1467_v2 }
  0x51   : > { %1420 = vmatpush3.msra.mxu1 %v1172_v6  ;;  %1405 = vmatmul.mubr.msk.f32.vlgmr.msra.gmra.mxu0 %vm264_vm0, %v747_v7 }
  0x52   : > { %1421 = vmatprep.subr.mxu1 %v1467_v2  ;;  %1426 = vmatprep.subr.mxu0 %v1467_v2 }
  0x53   : > { %1422 = vmatpush3.msra.mxu1 %v1171_v8  ;;  %1423 = vmatprep.mubr.msk.f32.mxu1 %vm1468_vm1, %v1467_v2 }
  0x54   : > { %1427 = vmatpush3.msra.mxu0 %v1187_v9  ;;  %1424 = vmatmul.mubr.msk.f32.vlgmr.msra.gmra.mxu1 %vm264_vm0, %v831_v10 }
  0x55   : > { %1428 = vmatprep.subr.mxu0 %v1467_v2  ;;  %1442 = vmatprep.mubr.msk.f32.mxu0 %vm1468_vm1, %v1467_v2 }
  0x56   : > { %1429 = vmatpush3.msra.mxu0 %v1186_v11  ;;  %1458 = vset.pattern.permute.xlu0 %v1469_v14 }
  0x57   : > { %1430 = vmatprep.subr.mxu0 %v1467_v2  ;;  %1011 = vperm.xlu0 %1458, %v1008_v12  }
  0x58   : > { %1431 = vmatpush3.msra.mxu0 %v1185_v13 }
  0x59   : > { %1432 = vmatprep.subr.mxu0 %v1467_v2 }
  0x5a   : > { %1433 = vmatpush3.msra.mxu0 %v1184_v15 }
  0x5b   : > { %1434 = vmatprep.subr.mxu0 %v1467_v2 }
  0x5c   : > { %1435 = vmatpush3.msra.mxu0 %v1183_v16 }
  0x5d   : > { %1436 = vmatprep.subr.mxu0 %v1467_v2 }
  0x5e   : > { %1437 = vmatpush3.msra.mxu0 %v1182_v17 }
  0x5f   : > { %1438 = vmatprep.subr.mxu0 %v1467_v2 }
  0x60   : > { %1439 = vmatpush3.msra.mxu0 %v1181_v18 }
  0x61   : > { %1440 = vmatprep.subr.mxu0 %v1467_v2 }
  0x62   : > { %1441 = vmatpush3.msra.mxu0 %v1180_v19 }
  0x63   : > { %1443 = vmatmul.mubr.msk.f32.vlgmr.msra.gmra.mxu0 %vm264_vm0, %v915_v20 }
  0xd2   : > { %v1012_v47 = vpop.permute.xlu0 %1011 }
  0xdc   : > { %v334_v21 = vpop.f32.mrf.mxu0 }
  0xde   : > { %v407_v22 = vpop.f32.mrf.mxu1  ;;  %v1292_v23 = vpop.f32.mrf.mxu0 }
  0xdf   : > { %v408_v33 = vadd.f32 %v407_v22, %v334_v21 }
  0xe0   : > { %v1311_v24 = vpop.f32.mrf.mxu1 }
  0xed   : > { %v490_v25 = vpop.f32.mrf.mxu0 }
  0xee   : > { %v494_v35 = vadd.f32 %v490_v25, %v408_v33 }
  0xef   : > { %v1330_v26 = vpop.f32.mrf.mxu0 }
  0xf0   : > { %v574_v27 = vpop.f32.mrf.mxu1 }
  0xf1   : > { %v578_v37 = vadd.f32 %v574_v27, %v494_v35 }
  0xf2   : > { %v1349_v28 = vpop.f32.mrf.mxu1 }
  0xff   : > { %v658_v29 = vpop.f32.mrf.mxu0 }
 0x100   : > { %v662_v39 = vadd.f32 %v658_v29, %v578_v37 }
 0x101   : > { %v1368_v30 = vpop.f32.mrf.mxu0 }
 0x102   : > { %v742_v31 = vpop.f32.mrf.mxu1 }
 0x103   : > { %v746_v40 = vadd.f32 %v742_v31, %v662_v39 }
 0x104   : > { %v1387_v32 = vpop.f32.mrf.mxu1 }
 0x111   : > { %v826_v34 = vpop.f32.mrf.mxu0 }
 0x112   : > { %v830_v41 = vadd.f32 %v826_v34, %v746_v40 }
 0x113   : > { %v1406_v2 = vpop.f32.mrf.mxu0 }
 0x114   : > { %v910_v36 = vpop.f32.mrf.mxu1 }
 0x115   : > { %v914_v42 = vadd.f32 %v910_v36, %v830_v41 }
 0x116   : > { %v1425_v38 = vpop.f32.mrf.mxu1 }
 0x123   : > { %v994_v43 = vpop.f32.mrf.mxu0 }
 0x124   : > { %v998_v45 = vadd.f32 %v994_v43, %v914_v42 }
 0x125   : > { %v1444_v46 = vpop.f32.mrf.mxu0 }
 0x126   : > { %v1006_v48 = vadd.f32 %v1189_v44, %v998_v45 }
 0x128   : > { %1007 = vst.msk [vmem:[%s244_s13] sm:$0xff] %vm264_vm0, %v1006_v48  ;;  %v1014_v49 = vmul.f32 %v1012_v47, %v1006_v48 }
 0x12a   : > { %v1015_v50 = vsel %vm264_vm0, %v1014_v49, 0.0  ;;  %v1022_v51 = vmul.f32 %v1014_v49, %v1006_v48 }
 0x12b   : > { %v1016_v52 = vrot.slane %v1015_v50, 4 }
 0x12c   : > { %v1023_v53 = vsel %vm264_vm0, %v1022_v51, 0.0 }
 0x12d   : > { %v1017_v54 = vadd.f32 %v1016_v52, %v1015_v50  ;;  %v1024_v55 = vrot.slane %v1023_v53, 4 }
 0x12f   : > { %v1018_v56 = vrot.slane %v1017_v54, 2  ;;  %v1025_v57 = vadd.f32 %v1024_v55, %v1023_v53 }
 0x131   : > { %v1019_v58 = vadd.f32 %v1018_v56, %v1017_v54  ;;  %v1026_v59 = vrot.slane %v1025_v57, 2 }
 0x133   : > { %v1020_v60 = vrot.slane %v1019_v58, 1  ;;  %v1027_v61 = vadd.f32 %v1026_v59, %v1025_v57  ;;  %1033 = sbr.rel (%p1190_p4) target bundleno = 314 (0x13a), region = 40 }
 0x135   : > { %v1021_v62 = vadd.f32 %v1020_v60, %v1019_v58  ;;  %v1028_v63 = vrot.slane %v1027_v61, 1 }
 0x137   : > { %v1029_v0 = vadd.f32 %v1028_v63, %v1027_v61 }
 0x138   : > { %vm1034_vm2 = vcmask 516096   ;;  %v1470_v1 = vmov 0.0  }
 0x139   : > { %1035 = vst.msk [vmem:[%s1890_s5] sm:$0x1] %vm1034_vm2, %v1470_v1  ;;  %1036 = vst.msk [vmem:[%s1891_s6] sm:$0x1] %vm1034_vm2, %v1470_v1 }
 0x13a PF: > { %vm1039_vm3 = vcmask 516096  }
 0x140   : > { %v1037_v3 = vld [vmem:[%s1890_s5] sm:$0x1] }
 0x141   : > { %v1041_v4 = vld [vmem:[%s1891_s6] sm:$0x1]  ;;  %v1038_v5 = vadd.f32 %v1037_v3, %v1021_v62 }
 0x142   : > { %v1042_v6 = vadd.f32 %v1041_v4, %v1029_v0 }
 0x143   : > { %1040 = vst.msk [vmem:[%s1890_s5] sm:$0x1] %vm1039_vm3, %v1038_v5 }
 0x144   : > { %1043 = vst.msk [vmem:[%s1891_s6] sm:$0x1] %vm1039_vm3, %v1042_v6 }
 0x145 PF: > { %s17_s21 = sadd.s32 1, %s1465_s21  }
 0x146   : > { %p14_p5 = scmp.ge.s32.totalorder %s17_s21, 4  }
 0x148   :  { %16 = sbr.rel (!%p14_p5) target bundleno = 1 (0x1), region = 94 }

</bundles_post_ra>
